<compile_context>
chip_gen: v5e
topology: v5e:2x2
jax: 0.10.0
libtpu: 0.0.40
codegen_flags: <defaults>
</compile_context>

<pallas_src>
import jax
import jax.numpy as jnp
from jax import lax
from jax.experimental import pallas as pl
from jax.experimental.pallas import tpu as pltpu

EXPANSION = 4


# ---------------------------------------------------------------------------
# Fused Pallas kernel: conv1+bn1+relu -> conv2+bn2+relu -> conv3+bn3 + residual + relu
# ---------------------------------------------------------------------------
def bottleneck_kernel(x_ref, w1_ref, b1_ref, w2_ref, b2_ref, w3_ref, b3_ref,
                      o_ref, h1pad_ref, lhs_ref):
    """One grid step processes a block of `nft` frames end-to-end in VMEM.

    x_ref     : (nft, H, W, Cin)  f32   channels-last frames
    w1_ref    : (Cin, P)          bf16  1x1 conv1 weights, BN1 scale folded in
    b1_ref    : (1, P)            f32
    w2_ref    : (9*P, P)          bf16  3x3 conv2 weights (tap-major), BN2 folded
    b2_ref    : (1, P)            f32
    w3_ref    : (P, Cout)         bf16  1x1 conv3 weights, BN3 scale folded in
    b3_ref    : (1, Cout)         f32
    o_ref     : (nft, H, W, Cout)       Cout == Cin (downsample=None path)
    h1pad_ref : (nft, H+2, W+2, P) f32  halo-padded conv1 output (VMEM scratch)
    lhs_ref   : (nft*H*W, 9*P)    bf16  im2col LHS for conv2 (VMEM scratch)
    """
    nft, H, W, cin = x_ref.shape
    P = w1_ref.shape[1]
    cout = w3_ref.shape[1]
    M = nft * H * W
    mxu = w1_ref.dtype                               # bf16 MXU operands, f32 accum

    xm = x_ref[...].reshape(M, cin)                  # f32, reused for the residual

    # ---- conv1 (1x1x1, BN1 folded) + ReLU ---------------------------------
    h1 = jnp.dot(xm.astype(mxu), w1_ref[...], preferred_element_type=jnp.float32)
    h1 = jnp.maximum(h1 + b1_ref[...], 0.0)          # (M, P) f32

    # ---- stage conv2 input: zero ONLY the halo, rewrite the interior ------
    zrow = jnp.zeros((nft, 1, W + 2, P), h1pad_ref.dtype)
    zcol = jnp.zeros((nft, H + 2, 1, P), h1pad_ref.dtype)
    h1pad_ref[:, 0:1, :, :] = zrow
    h1pad_ref[:, H + 1:H + 2, :, :] = zrow
    h1pad_ref[:, :, 0:1, :] = zcol
    h1pad_ref[:, :, W + 1:W + 2, :] = zcol
    h1pad_ref[:, 1:H + 1, 1:W + 1, :] = h1.reshape(nft, H, W, P)

    # ---- conv2 (1x3x3, BN2 folded) as ONE im2col matmul -------------------
    # Build the (M, 9*P) tap-major im2col LHS in VMEM (ref-sliced tap reads),
    # then a single K=9*P MXU matmul against the tap-major (9*P, P) slab.
    for dh in range(3):                              # static unroll: 9 small copies
        for dw in range(3):
            tap = dh * 3 + dw
            patch = h1pad_ref[:, dh:dh + H, dw:dw + W, :].reshape(M, P)
            lhs_ref[:, tap * P:(tap + 1) * P] = patch.astype(lhs_ref.dtype)
    h2 = jnp.dot(lhs_ref[...], w2_ref[...], preferred_element_type=jnp.float32)
    h2 = jnp.maximum(h2 + b2_ref[...], 0.0)          # (M, P) f32

    # ---- conv3 (1x1x1, BN3 folded) + residual + ReLU -----------------------
    y = jnp.dot(h2.astype(mxu), w3_ref[...], preferred_element_type=jnp.float32)
    y = y + b3_ref[...] + xm                         # residual: Cout == Cin
    o_ref[...] = jnp.maximum(y, 0.0).reshape(nft, H, W, cout).astype(o_ref.dtype)


# ---------------------------------------------------------------------------
# VMEM budgeting / tiling
# ---------------------------------------------------------------------------
def _round_up(v, m):
    return -(-v // m) * m


def _block_footprint_bytes(nft, H, W, cin, cout, P, mxu_bytes=2):
    """Conservative per-step VMEM residency (lane-padded), incl. double buffering."""
    f32 = 4
    lane, sub = 128, 8
    M = nft * H * W
    x_blk = nft * H * _round_up(W, sub) * _round_up(cin, lane) * f32
    o_blk = nft * H * _round_up(W, sub) * _round_up(cout, lane) * f32
    halo = nft * (H + 2) * _round_up(W + 2, sub) * _round_up(P, lane) * f32
    im2col = _round_up(M, sub) * _round_up(9 * P, lane) * mxu_bytes
    h_tmp = 2 * _round_up(M, sub) * _round_up(P, lane) * f32       # h1 / h2 temps
    weights = (_round_up(cin, sub) * _round_up(P, lane)
               + _round_up(9 * P, sub) * _round_up(P, lane)
               + _round_up(P, sub) * _round_up(cout, lane)) * mxu_bytes
    # x / out blocks are double-buffered by the Pallas pipeline; +1 MiB slack.
    return 2 * (x_blk + o_blk) + halo + im2col + h_tmp + 2 * weights + (1 << 20)


def _vmem_limit_bytes():
    """Per-generation VMEM limit: ~3/4 of physical VMEM (128 MiB v5e/v6e,
    64 MiB per TensorCore on v7x), with a safe fallback if the query fails."""
    try:
        cap = int(pltpu.get_tpu_info().vmem_capacity_bytes)
    except Exception:
        cap = 64 << 20                       # v7x per-TC capacity; safe everywhere
    cap = max(cap, 32 << 20)
    return int(min(cap * 3 // 4, 100 << 20))


def _pick_frames_per_block(nf, H, W, cin, cout, P, budget_bytes, mxu_bytes=2):
    """Largest frame tile whose VMEM footprint fits the budget, preferring a grid
    extent that is even and >= 4 (balanced v7x TensorCores + live DMA pipeline)."""
    divisors = [t for t in range(1, nf + 1) if nf % t == 0]
    fits = [t for t in divisors
            if _block_footprint_bytes(t, H, W, cin, cout, P, mxu_bytes) <= budget_bytes]
    if not fits:
        fits = [1]
    for ok in (lambda g: g >= 4 and g % 2 == 0,
               lambda g: g >= 2 and g % 2 == 0,
               lambda g: g >= 2,
               lambda g: True):
        cand = [t for t in fits if ok(nf // t)]
        if cand:
            return max(cand)
    return 1


# ---------------------------------------------------------------------------
# Wrappers
# ---------------------------------------------------------------------------
def bottleneck_forward_frames(x, kparams, frames_per_block=None):
    """Core fused forward on channels-last frames x: (NF, H, W, Cin)."""
    nf, H, W, cin = x.shape
    w1, b1 = kparams["w1"], kparams["b1"]
    w2, b2 = kparams["w2"], kparams["b2"]
    w3, b3 = kparams["w3"], kparams["b3"]
    P = w1.shape[1]
    cout = w3.shape[1]
    assert cout == cin, "downsample=None requires inplanes == planes * expansion"
    mxu_dtype = w2.dtype
    mxu_bytes = w2.dtype.itemsize

    vmem_limit = _vmem_limit_bytes()
    nft = frames_per_block or _pick_frames_per_block(
        nf, H, W, cin, cout, P, budget_bytes=vmem_limit // 2, mxu_bytes=mxu_bytes)
    assert nf % nft == 0
    grid = (nf // nft,)

    return pl.pallas_call(
        bottleneck_kernel,
        out_shape=jax.ShapeDtypeStruct((nf, H, W, cout), x.dtype),
        grid=grid,
        in_specs=[
            pl.BlockSpec((nft, H, W, cin), lambda i: (i, 0, 0, 0)),
            pl.BlockSpec((cin, P), lambda i: (0, 0)),
            pl.BlockSpec((1, P), lambda i: (0, 0)),
            pl.BlockSpec((9 * P, P), lambda i: (0, 0)),
            pl.BlockSpec((1, P), lambda i: (0, 0)),
            pl.BlockSpec((P, cout), lambda i: (0, 0)),
            pl.BlockSpec((1, cout), lambda i: (0, 0)),
        ],
        out_specs=pl.BlockSpec((nft, H, W, cout), lambda i: (i, 0, 0, 0)),
        scratch_shapes=[
            pltpu.VMEM((nft, H + 2, W + 2, P), jnp.float32),      # halo-padded h1
            pltpu.VMEM((nft * H * W, 9 * P), mxu_dtype),          # im2col LHS
        ],
        compiler_params=pltpu.CompilerParams(
            dimension_semantics=("parallel",),
            vmem_limit_bytes=vmem_limit),
    )(x, w1, b1, w2, b2, w3, b3)


def bottleneck_forward(x_ncdhw, kparams, frames_per_block=None):
    """NCDHW wrapper matching the PyTorch module I/O.

    NOTE: the two full-tensor transposes here roughly double HBM traffic for this
    otherwise fused, largely memory-bound block; keep the surrounding model
    channels-last and call bottleneck_forward_frames directly when possible.
    """
    N, cin, D, H, W = x_ncdhw.shape
    xf = jnp.transpose(x_ncdhw, (0, 2, 3, 4, 1)).reshape(N * D, H, W, cin)
    out = bottleneck_forward_frames(xf, kparams, frames_per_block)
    cout = out.shape[-1]
    out = out.reshape(N, D, H, W, cout)
    return jnp.transpose(out, (0, 4, 1, 2, 3))


# ---------------------------------------------------------------------------
# Parameters (deterministic, synthetic) + kernel-side prep + pure-JAX references
# ---------------------------------------------------------------------------
def make_params(key, inplanes, planes, eps=1e-5):
    ks = jax.random.split(key, 6)
    # PyTorch layouts: (Cout, Cin, kt, kh, kw)
    w1 = 0.1 * jax.random.normal(ks[0], (planes, inplanes, 1, 1, 1), jnp.float32)
    w2 = 0.1 * jax.random.normal(ks[1], (planes, planes, 1, 3, 3), jnp.float32)
    w3 = 0.1 * jax.random.normal(ks[2], (planes * EXPANSION, planes, 1, 1, 1),
                                 jnp.float32)

    def bn(k, c):
        kg, kb, km, kv = jax.random.split(k, 4)
        gamma = 1.0 + 0.1 * jax.random.normal(kg, (c,), jnp.float32)
        beta = 0.1 * jax.random.normal(kb, (c,), jnp.float32)
        mean = 0.1 * jax.random.normal(km, (c,), jnp.float32)
        var = jnp.abs(jax.random.normal(kv, (c,), jnp.float32)) + 0.5
        scale = gamma / jnp.sqrt(var + eps)
        bias = beta - mean * scale
        return scale, bias

    s1, b1 = bn(ks[3], planes)
    s2, b2 = bn(ks[4], planes)
    s3, b3 = bn(ks[5], planes * EXPANSION)

    return dict(
        w1=jnp.transpose(w1[:, :, 0, 0, 0], (1, 0)),        # (Cin, P)
        w2=jnp.transpose(w2[:, :, 0], (2, 3, 1, 0)),        # (3, 3, P, P)  HWIO
        w3=jnp.transpose(w3[:, :, 0, 0, 0], (1, 0)),        # (P, 4P)
        scale1=s1, bias1=b1, scale2=s2, bias2=b2, scale3=s3, bias3=b3,
    )


def prepare_kernel_params(p, mxu_dtype=jnp.bfloat16):
    """Fold eval-mode BN scales into the conv weights (bias-only epilogue),
    flatten conv2 to a tap-major (9*P, P) slab, cast weights to the MXU operand
    dtype (bf16 is MXU-native on v5e/v6e/v7x); biases stay f32."""
    P = p["w1"].shape[1]
    return dict(
        w1=(p["w1"] * p["scale1"][None, :]).astype(mxu_dtype),
        b1=p["bias1"].reshape(1, -1),
        w2=(p["w2"] * p["scale2"][None, None, None, :]).reshape(9 * P, P).astype(mxu_dtype),
        b2=p["bias2"].reshape(1, -1),
        w3=(p["w3"] * p["scale3"][None, :]).astype(mxu_dtype),
        b3=p["bias3"].reshape(1, -1),
    )


def reference_forward(x_ncdhw, p):
    """Module-exact math in full f32 (HIGHEST precision), unfolded BN."""
    N, cin, D, H, W = x_ncdhw.shape
    xf = jnp.transpose(x_ncdhw, (0, 2, 3, 4, 1)).reshape(N * D, H, W, cin)
    hi = lax.Precision.HIGHEST

    h1 = jnp.einsum("nhwc,cp->nhwp", xf, p["w1"], precision=hi)
    h1 = jnp.maximum(h1 * p["scale1"] + p["bias1"], 0.0)
    h2 = lax.conv_general_dilated(
        h1, p["w2"], window_strides=(1, 1), padding=((1, 1), (1, 1)),
        dimension_numbers=("NHWC", "HWIO", "NHWC"), precision=hi)
    h2 = jnp.maximum(h2 * p["scale2"] + p["bias2"], 0.0)
    y = jnp.einsum("nhwp,pk->nhwk", h2, p["w3"], precision=hi)
    y = y * p["scale3"] + p["bias3"] + xf
    out = jnp.maximum(y, 0.0)
    cout = p["w3"].shape[1]
    return jnp.transpose(out.reshape(N, D, H, W, cout), (0, 4, 1, 2, 3))


def reference_forward_prepared(x_ncdhw, kp):
    """Pure-JAX mirror of the kernel's exact math (folded BN, bf16 MXU operands,
    f32 accumulation/epilogue) for a tight correctness check of the kernel logic."""
    N, cin, D, H, W = x_ncdhw.shape
    nf = N * D
    xf = jnp.transpose(x_ncdhw, (0, 2, 3, 4, 1)).reshape(nf, H, W, cin)
    P = kp["w1"].shape[1]
    cout = kp["w3"].shape[1]
    mxu = kp["w1"].dtype

    xm = xf.reshape(-1, cin)
    h1 = jnp.dot(xm.astype(mxu), kp["w1"], preferred_element_type=jnp.float32)
    h1 = jnp.maximum(h1 + kp["b1"], 0.0).reshape(nf, H, W, P)
    h1p = jnp.pad(h1, ((0, 0), (1, 1), (1, 1), (0, 0)))
    taps = [h1p[:, dh:dh + H, dw:dw + W, :].reshape(-1, P).astype(mxu)
            for dh in range(3) for dw in range(3)]
    lhs = jnp.concatenate(taps, axis=-1)
    h2 = jnp.maximum(jnp.dot(lhs, kp["w2"], preferred_element_type=jnp.float32)
                     + kp["b2"], 0.0)
    y = jnp.dot(h2.astype(mxu), kp["w3"], preferred_element_type=jnp.float32)
    y = jnp.maximum(y + kp["b3"] + xm, 0.0)
    return jnp.transpose(y.reshape(N, D, H, W, cout), (0, 4, 1, 2, 3))


# ---------------------------------------------------------------------------
if __name__ == "__main__":
    key = jax.random.PRNGKey(0)
    kx, kp = jax.random.split(key)

    # Small Bottleneck: planes=32, inplanes = planes*4 = 128 (so downsample=None holds).
    # Real I3D configs use planes >= 64, which makes the P-channel staging lane-dense;
    # the kernel itself is shape-agnostic.
    N, planes, D, H, W = 2, 32, 4, 16, 16
    inplanes = planes * EXPANSION                    # 128 -> lane-dense in/out blocks
    x = jax.random.normal(kx, (N, inplanes, D, H, W), jnp.float32)

    params = make_params(kp, inplanes=inplanes, planes=planes)
    kparams = prepare_kernel_params(params)

    out = jax.block_until_ready(bottleneck_forward(x, kparams))
    assert out.shape == (N, inplanes, D, H, W)

    # Tight check vs a pure-JAX mirror of the kernel math (same bf16 operand
    # rounding): catches logic bugs in halo handling / im2col ordering / tiling.
    ref_kernel_math = reference_forward_prepared(x, kparams)
    err_tight = float(jnp.max(jnp.abs(out - ref_kernel_math)))
    assert jnp.allclose(out, ref_kernel_math, rtol=2e-3, atol=2e-3), err_tight

    # Looser check vs module-exact f32 math (difference is bf16 MXU rounding only).
    ref_f32 = reference_forward(x, params)
    err_f32 = float(jnp.max(jnp.abs(out - ref_f32)))
    assert jnp.allclose(out, ref_f32, rtol=5e-2, atol=5e-2), err_f32

    print("KERNEL_OK")
</pallas_src>

<mosaic_0001>
module attributes {stable_mosaic.version = 11 : i64} {
  func.func @bottleneck_kernel(%arg0: i32, %arg1: memref<2x16x16x128xf32, #tpu.memory_space<vmem>>, %arg2: memref<128x32xbf16, #tpu.memory_space<vmem>>, %arg3: memref<1x32xf32, #tpu.memory_space<vmem>>, %arg4: memref<288x32xbf16, #tpu.memory_space<vmem>>, %arg5: memref<1x32xf32, #tpu.memory_space<vmem>>, %arg6: memref<32x128xbf16, #tpu.memory_space<vmem>>, %arg7: memref<1x128xf32, #tpu.memory_space<vmem>>, %arg8: memref<2x16x16x128xf32, #tpu.memory_space<vmem>>, %arg9: memref<2x18x18x32xf32, #tpu.memory_space<vmem>>, %arg10: memref<512x288xbf16, #tpu.memory_space<vmem>>) attributes {dimension_semantics = [#tpu.dimension_semantics<parallel>], iteration_bounds = array<i64: 4>, scalar_prefetch = 0 : i64, scratch_operands = 2 : i64, tpu.core_type = #tpu.core_type<tc>, window_params = [{transform_indices = @transform_0, window_bounds = array<i64: 2, 16, 16, 128>}, {pipeline_mode = #tpu.pipeline_mode<synchronous>, transform_indices = @transform_1, window_bounds = array<i64: 128, 32>}, {pipeline_mode = #tpu.pipeline_mode<synchronous>, transform_indices = @transform_2, window_bounds = array<i64: 1, 32>}, {pipeline_mode = #tpu.pipeline_mode<synchronous>, transform_indices = @transform_3, window_bounds = array<i64: 288, 32>}, {pipeline_mode = #tpu.pipeline_mode<synchronous>, transform_indices = @transform_4, window_bounds = array<i64: 1, 32>}, {pipeline_mode = #tpu.pipeline_mode<synchronous>, transform_indices = @transform_5, window_bounds = array<i64: 32, 128>}, {pipeline_mode = #tpu.pipeline_mode<synchronous>, transform_indices = @transform_6, window_bounds = array<i64: 1, 128>}, {transform_indices = @transform_7, window_bounds = array<i64: 2, 16, 16, 128>}]} {
    %c0 = arith.constant 0 : index
    %c0_0 = arith.constant 0 : index
    %c0_1 = arith.constant 0 : index
    %c0_2 = arith.constant 0 : index
    %0 = vector.load %arg1[%c0, %c0_0, %c0_1, %c0_2] : memref<2x16x16x128xf32, #tpu.memory_space<vmem>>, vector<2x16x16x128xf32>
    %1 = vector.shape_cast %0 : vector<2x16x16x128xf32> to vector<512x128xf32>
    %2 = arith.truncf %1 : vector<512x128xf32> to vector<512x128xbf16>
    %c0_3 = arith.constant 0 : index
    %c0_4 = arith.constant 0 : index
    %3 = vector.load %arg2[%c0_3, %c0_4] : memref<128x32xbf16, #tpu.memory_space<vmem>>, vector<128x32xbf16>
    %cst = arith.constant dense<0.000000e+00> : vector<512x32xf32>
    %4 = tpu.matmul %2, %3, %cst {dimension_numbers = #tpu.dot_dimension_numbers<[1], [0], [0], [1], [0, 0, 1, 1], [], []>} : vector<512x128xbf16>, vector<128x32xbf16>, vector<512x32xf32> -> vector<512x32xf32>
    %c0_5 = arith.constant 0 : index
    %c0_6 = arith.constant 0 : index
    %5 = vector.load %arg3[%c0_5, %c0_6] : memref<1x32xf32, #tpu.memory_space<vmem>>, vector<1x32xf32>
    %6 = vector.broadcast %5 : vector<1x32xf32> to vector<512x32xf32>
    %7 = arith.addf %4, %6 : vector<512x32xf32>
    %cst_7 = arith.constant 0.000000e+00 : f32
    %8 = vector.broadcast %cst_7 : f32 to vector<512x32xf32>
    %9 = arith.maximumf %7, %8 : vector<512x32xf32>
    %cst_8 = arith.constant 0.000000e+00 : f32
    %10 = vector.broadcast %cst_8 : f32 to vector<2x1x18x32xf32>
    %cst_9 = arith.constant 0.000000e+00 : f32
    %11 = vector.broadcast %cst_9 : f32 to vector<2x18x1x32xf32>
    %c0_10 = arith.constant 0 : index
    %c0_11 = arith.constant 0 : index
    %c0_12 = arith.constant 0 : index
    %c0_13 = arith.constant 0 : index
    %12 = vector.load %arg9[%c0_10, %c0_11, %c0_12, %c0_13] : memref<2x18x18x32xf32, #tpu.memory_space<vmem>>, vector<2x1x18x32xf32>
    tpu.vector_store %arg9[%c0_10, %c0_11, %c0_12, %c0_13], %10 {strides = array<i32>} : memref<2x18x18x32xf32, #tpu.memory_space<vmem>>, vector<2x1x18x32xf32>,
    %c0_14 = arith.constant 0 : index
    %c17 = arith.constant 17 : index
    %c0_15 = arith.constant 0 : index
    %c0_16 = arith.constant 0 : index
    %13 = vector.load %arg9[%c0_14, %c17, %c0_15, %c0_16] : memref<2x18x18x32xf32, #tpu.memory_space<vmem>>, vector<2x1x18x32xf32>
    tpu.vector_store %arg9[%c0_14, %c17, %c0_15, %c0_16], %10 {strides = array<i32>} : memref<2x18x18x32xf32, #tpu.memory_space<vmem>>, vector<2x1x18x32xf32>,
    %c0_17 = arith.constant 0 : index
    %c0_18 = arith.constant 0 : index
    %c0_19 = arith.constant 0 : index
    %c0_20 = arith.constant 0 : index
    %14 = vector.load %arg9[%c0_17, %c0_18, %c0_19, %c0_20] : memref<2x18x18x32xf32, #tpu.memory_space<vmem>>, vector<2x18x1x32xf32>
    tpu.vector_store %arg9[%c0_17, %c0_18, %c0_19, %c0_20], %11 {strides = array<i32>} : memref<2x18x18x32xf32, #tpu.memory_space<vmem>>, vector<2x18x1x32xf32>,
    %c0_21 = arith.constant 0 : index
    %c0_22 = arith.constant 0 : index
    %c17_23 = arith.constant 17 : index
    %c0_24 = arith.constant 0 : index
    %15 = vector.load %arg9[%c0_21, %c0_22, %c17_23, %c0_24] : memref<2x18x18x32xf32, #tpu.memory_space<vmem>>, vector<2x18x1x32xf32>
    tpu.vector_store %arg9[%c0_21, %c0_22, %c17_23, %c0_24], %11 {strides = array<i32>} : memref<2x18x18x32xf32, #tpu.memory_space<vmem>>, vector<2x18x1x32xf32>,
    %16 = vector.shape_cast %9 : vector<512x32xf32> to vector<2x16x16x32xf32>
    %c0_25 = arith.constant 0 : index
    %c1 = arith.constant 1 : index
    %c1_26 = arith.constant 1 : index
    %c0_27 = arith.constant 0 : index
    %17 = vector.load %arg9[%c0_25, %c1, %c1_26, %c0_27] : memref<2x18x18x32xf32, #tpu.memory_space<vmem>>, vector<2x16x16x32xf32>
    tpu.vector_store %arg9[%c0_25, %c1, %c1_26, %c0_27], %16 {strides = array<i32>} : memref<2x18x18x32xf32, #tpu.memory_space<vmem>>, vector<2x16x16x32xf32>,
    %c0_28 = arith.constant 0 : index
    %c0_29 = arith.constant 0 : index
    %c0_30 = arith.constant 0 : index
    %c0_31 = arith.constant 0 : index
    %18 = vector.load %arg9[%c0_28, %c0_29, %c0_30, %c0_31] : memref<2x18x18x32xf32, #tpu.memory_space<vmem>>, vector<2x16x16x32xf32>
    %19 = vector.shape_cast %18 : vector<2x16x16x32xf32> to vector<512x32xf32>
    %20 = arith.truncf %19 : vector<512x32xf32> to vector<512x32xbf16>
    %c0_32 = arith.constant 0 : index
    %c0_33 = arith.constant 0 : index
    %21 = vector.load %arg10[%c0_32, %c0_33] : memref<512x288xbf16, #tpu.memory_space<vmem>>, vector<512x32xbf16>
    tpu.vector_store %arg10[%c0_32, %c0_33], %20 {strides = array<i32>} : memref<512x288xbf16, #tpu.memory_space<vmem>>, vector<512x32xbf16>,
    %c0_34 = arith.constant 0 : index
    %c0_35 = arith.constant 0 : index
    %c1_36 = arith.constant 1 : index
    %c0_37 = arith.constant 0 : index
    %22 = vector.load %arg9[%c0_34, %c0_35, %c1_36, %c0_37] : memref<2x18x18x32xf32, #tpu.memory_space<vmem>>, vector<2x16x16x32xf32>
    %23 = vector.shape_cast %22 : vector<2x16x16x32xf32> to vector<512x32xf32>
    %24 = arith.truncf %23 : vector<512x32xf32> to vector<512x32xbf16>
    %c0_38 = arith.constant 0 : index
    %c32 = arith.constant 32 : index
    %25 = vector.load %arg10[%c0_38, %c32] : memref<512x288xbf16, #tpu.memory_space<vmem>>, vector<512x32xbf16>
    tpu.vector_store %arg10[%c0_38, %c32], %24 {strides = array<i32>} : memref<512x288xbf16, #tpu.memory_space<vmem>>, vector<512x32xbf16>,
    %c0_39 = arith.constant 0 : index
    %c0_40 = arith.constant 0 : index
    %c2 = arith.constant 2 : index
    %c0_41 = arith.constant 0 : index
    %26 = vector.load %arg9[%c0_39, %c0_40, %c2, %c0_41] : memref<2x18x18x32xf32, #tpu.memory_space<vmem>>, vector<2x16x16x32xf32>
    %27 = vector.shape_cast %26 : vector<2x16x16x32xf32> to vector<512x32xf32>
    %28 = arith.truncf %27 : vector<512x32xf32> to vector<512x32xbf16>
    %c0_42 = arith.constant 0 : index
    %c64 = arith.constant 64 : index
    %29 = vector.load %arg10[%c0_42, %c64] : memref<512x288xbf16, #tpu.memory_space<vmem>>, vector<512x32xbf16>
    tpu.vector_store %arg10[%c0_42, %c64], %28 {strides = array<i32>} : memref<512x288xbf16, #tpu.memory_space<vmem>>, vector<512x32xbf16>,
    %c0_43 = arith.constant 0 : index
    %c1_44 = arith.constant 1 : index
    %c0_45 = arith.constant 0 : index
    %c0_46 = arith.constant 0 : index
    %30 = vector.load %arg9[%c0_43, %c1_44, %c0_45, %c0_46] : memref<2x18x18x32xf32, #tpu.memory_space<vmem>>, vector<2x16x16x32xf32>
    %31 = vector.shape_cast %30 : vector<2x16x16x32xf32> to vector<512x32xf32>
    %32 = arith.truncf %31 : vector<512x32xf32> to vector<512x32xbf16>
    %c0_47 = arith.constant 0 : index
    %c96 = arith.constant 96 : index
    %33 = vector.load %arg10[%c0_47, %c96] : memref<512x288xbf16, #tpu.memory_space<vmem>>, vector<512x32xbf16>
    tpu.vector_store %arg10[%c0_47, %c96], %32 {strides = array<i32>} : memref<512x288xbf16, #tpu.memory_space<vmem>>, vector<512x32xbf16>,
    %c0_48 = arith.constant 0 : index
    %c1_49 = arith.constant 1 : index
    %c1_50 = arith.constant 1 : index
    %c0_51 = arith.constant 0 : index
    %34 = vector.load %arg9[%c0_48, %c1_49, %c1_50, %c0_51] : memref<2x18x18x32xf32, #tpu.memory_space<vmem>>, vector<2x16x16x32xf32>
    %35 = vector.shape_cast %34 : vector<2x16x16x32xf32> to vector<512x32xf32>
    %36 = arith.truncf %35 : vector<512x32xf32> to vector<512x32xbf16>
    %c0_52 = arith.constant 0 : index
    %c128 = arith.constant 128 : index
    %37 = vector.load %arg10[%c0_52, %c128] : memref<512x288xbf16, #tpu.memory_space<vmem>>, vector<512x32xbf16>
    tpu.vector_store %arg10[%c0_52, %c128], %36 {strides = array<i32>} : memref<512x288xbf16, #tpu.memory_space<vmem>>, vector<512x32xbf16>,
    %c0_53 = arith.constant 0 : index
    %c1_54 = arith.constant 1 : index
    %c2_55 = arith.constant 2 : index
    %c0_56 = arith.constant 0 : index
    %38 = vector.load %arg9[%c0_53, %c1_54, %c2_55, %c0_56] : memref<2x18x18x32xf32, #tpu.memory_space<vmem>>, vector<2x16x16x32xf32>
    %39 = vector.shape_cast %38 : vector<2x16x16x32xf32> to vector<512x32xf32>
    %40 = arith.truncf %39 : vector<512x32xf32> to vector<512x32xbf16>
    %c0_57 = arith.constant 0 : index
    %c160 = arith.constant 160 : index
    %41 = vector.load %arg10[%c0_57, %c160] : memref<512x288xbf16, #tpu.memory_space<vmem>>, vector<512x32xbf16>
    tpu.vector_store %arg10[%c0_57, %c160], %40 {strides = array<i32>} : memref<512x288xbf16, #tpu.memory_space<vmem>>, vector<512x32xbf16>,
    %c0_58 = arith.constant 0 : index
    %c2_59 = arith.constant 2 : index
    %c0_60 = arith.constant 0 : index
    %c0_61 = arith.constant 0 : index
    %42 = vector.load %arg9[%c0_58, %c2_59, %c0_60, %c0_61] : memref<2x18x18x32xf32, #tpu.memory_space<vmem>>, vector<2x16x16x32xf32>
    %43 = vector.shape_cast %42 : vector<2x16x16x32xf32> to vector<512x32xf32>
    %44 = arith.truncf %43 : vector<512x32xf32> to vector<512x32xbf16>
    %c0_62 = arith.constant 0 : index
    %c192 = arith.constant 192 : index
    %45 = vector.load %arg10[%c0_62, %c192] : memref<512x288xbf16, #tpu.memory_space<vmem>>, vector<512x32xbf16>
    tpu.vector_store %arg10[%c0_62, %c192], %44 {strides = array<i32>} : memref<512x288xbf16, #tpu.memory_space<vmem>>, vector<512x32xbf16>,
    %c0_63 = arith.constant 0 : index
    %c2_64 = arith.constant 2 : index
    %c1_65 = arith.constant 1 : index
    %c0_66 = arith.constant 0 : index
    %46 = vector.load %arg9[%c0_63, %c2_64, %c1_65, %c0_66] : memref<2x18x18x32xf32, #tpu.memory_space<vmem>>, vector<2x16x16x32xf32>
    %47 = vector.shape_cast %46 : vector<2x16x16x32xf32> to vector<512x32xf32>
    %48 = arith.truncf %47 : vector<512x32xf32> to vector<512x32xbf16>
    %c0_67 = arith.constant 0 : index
    %c224 = arith.constant 224 : index
    %49 = vector.load %arg10[%c0_67, %c224] : memref<512x288xbf16, #tpu.memory_space<vmem>>, vector<512x32xbf16>
    tpu.vector_store %arg10[%c0_67, %c224], %48 {strides = array<i32>} : memref<512x288xbf16, #tpu.memory_space<vmem>>, vector<512x32xbf16>,
    %c0_68 = arith.constant 0 : index
    %c2_69 = arith.constant 2 : index
    %c2_70 = arith.constant 2 : index
    %c0_71 = arith.constant 0 : index
    %50 = vector.load %arg9[%c0_68, %c2_69, %c2_70, %c0_71] : memref<2x18x18x32xf32, #tpu.memory_space<vmem>>, vector<2x16x16x32xf32>
    %51 = vector.shape_cast %50 : vector<2x16x16x32xf32> to vector<512x32xf32>
    %52 = arith.truncf %51 : vector<512x32xf32> to vector<512x32xbf16>
    %c0_72 = arith.constant 0 : index
    %c256 = arith.constant 256 : index
    %53 = vector.load %arg10[%c0_72, %c256] : memref<512x288xbf16, #tpu.memory_space<vmem>>, vector<512x32xbf16>
    tpu.vector_store %arg10[%c0_72, %c256], %52 {strides = array<i32>} : memref<512x288xbf16, #tpu.memory_space<vmem>>, vector<512x32xbf16>,
    %c0_73 = arith.constant 0 : index
    %c0_74 = arith.constant 0 : index
    %54 = vector.load %arg10[%c0_73, %c0_74] : memref<512x288xbf16, #tpu.memory_space<vmem>>, vector<512x288xbf16>
    %c0_75 = arith.constant 0 : index
    %c0_76 = arith.constant 0 : index
    %55 = vector.load %arg4[%c0_75, %c0_76] : memref<288x32xbf16, #tpu.memory_space<vmem>>, vector<288x32xbf16>
    %cst_77 = arith.constant dense<0.000000e+00> : vector<512x32xf32>
    %56 = tpu.matmul %54, %55, %cst_77 {dimension_numbers = #tpu.dot_dimension_numbers<[1], [0], [0], [1], [0, 0, 1, 1], [], []>} : vector<512x288xbf16>, vector<288x32xbf16>, vector<512x32xf32> -> vector<512x32xf32>
    %c0_78 = arith.constant 0 : index
    %c0_79 = arith.constant 0 : index
    %57 = vector.load %arg5[%c0_78, %c0_79] : memref<1x32xf32, #tpu.memory_space<vmem>>, vector<1x32xf32>
    %58 = vector.broadcast %57 : vector<1x32xf32> to vector<512x32xf32>
    %59 = arith.addf %56, %58 : vector<512x32xf32>
    %cst_80 = arith.constant 0.000000e+00 : f32
    %60 = vector.broadcast %cst_80 : f32 to vector<512x32xf32>
    %61 = arith.maximumf %59, %60 : vector<512x32xf32>
    %62 = arith.truncf %61 : vector<512x32xf32> to vector<512x32xbf16>
    %c0_81 = arith.constant 0 : index
    %c0_82 = arith.constant 0 : index
    %63 = vector.load %arg6[%c0_81, %c0_82] : memref<32x128xbf16, #tpu.memory_space<vmem>>, vector<32x128xbf16>
    %cst_83 = arith.constant dense<0.000000e+00> : vector<512x128xf32>
    %64 = tpu.matmul %62, %63, %cst_83 {dimension_numbers = #tpu.dot_dimension_numbers<[1], [0], [0], [1], [0, 0, 1, 1], [], []>} : vector<512x32xbf16>, vector<32x128xbf16>, vector<512x128xf32> -> vector<512x128xf32>
    %c0_84 = arith.constant 0 : index
    %c0_85 = arith.constant 0 : index
    %65 = vector.load %arg7[%c0_84, %c0_85] : memref<1x128xf32, #tpu.memory_space<vmem>>, vector<1x128xf32>
    %66 = vector.broadcast %65 : vector<1x128xf32> to vector<512x128xf32>
    %67 = arith.addf %64, %66 : vector<512x128xf32>
    %68 = arith.addf %67, %1 : vector<512x128xf32>
    %cst_86 = arith.constant 0.000000e+00 : f32
    %69 = vector.broadcast %cst_86 : f32 to vector<512x128xf32>
    %70 = arith.maximumf %68, %69 : vector<512x128xf32>
    %71 = vector.shape_cast %70 : vector<512x128xf32> to vector<2x16x16x128xf32>
    %c0_87 = arith.constant 0 : index
    %c0_88 = arith.constant 0 : index
    %c0_89 = arith.constant 0 : index
    %c0_90 = arith.constant 0 : index
    %72 = vector.load %arg8[%c0_87, %c0_88, %c0_89, %c0_90] : memref<2x16x16x128xf32, #tpu.memory_space<vmem>>, vector<2x16x16x128xf32>
    tpu.vector_store %arg8[%c0_87, %c0_88, %c0_89, %c0_90], %71 {strides = array<i32>} : memref<2x16x16x128xf32, #tpu.memory_space<vmem>>, vector<2x16x16x128xf32>,
    return
  }
  func.func @transform_0(%arg0: i32) -> (i32, i32, i32, i32) {
    %c0_i32 = arith.constant 0 : i32
    %c0_i32_0 = arith.constant 0 : i32
    %c0_i32_1 = arith.constant 0 : i32
    %c0_i32_2 = arith.constant 0 : i32
    return %arg0, %c0_i32, %c0_i32_0, %c0_i32_1 : i32, i32, i32, i32
  }
  func.func @transform_1(%arg0: i32) -> (i32, i32) {
    %c0_i32 = arith.constant 0 : i32
    %c0_i32_0 = arith.constant 0 : i32
    %c0_i32_1 = arith.constant 0 : i32
    return %c0_i32, %c0_i32_0 : i32, i32
  }
  func.func @transform_2(%arg0: i32) -> (i32, i32) {
    %c0_i32 = arith.constant 0 : i32
    %c0_i32_0 = arith.constant 0 : i32
    %c0_i32_1 = arith.constant 0 : i32
    return %c0_i32, %c0_i32_0 : i32, i32
  }
  func.func @transform_3(%arg0: i32) -> (i32, i32) {
    %c0_i32 = arith.constant 0 : i32
    %c0_i32_0 = arith.constant 0 : i32
    %c0_i32_1 = arith.constant 0 : i32
    return %c0_i32, %c0_i32_0 : i32, i32
  }
  func.func @transform_4(%arg0: i32) -> (i32, i32) {
    %c0_i32 = arith.constant 0 : i32
    %c0_i32_0 = arith.constant 0 : i32
    %c0_i32_1 = arith.constant 0 : i32
    return %c0_i32, %c0_i32_0 : i32, i32
  }
  func.func @transform_5(%arg0: i32) -> (i32, i32) {
    %c0_i32 = arith.constant 0 : i32
    %c0_i32_0 = arith.constant 0 : i32
    %c0_i32_1 = arith.constant 0 : i32
    return %c0_i32, %c0_i32_0 : i32, i32
  }
  func.func @transform_6(%arg0: i32) -> (i32, i32) {
    %c0_i32 = arith.constant 0 : i32
    %c0_i32_0 = arith.constant 0 : i32
    %c0_i32_1 = arith.constant 0 : i32
    return %c0_i32, %c0_i32_0 : i32, i32
  }
  func.func @transform_7(%arg0: i32) -> (i32, i32, i32, i32) {
    %c0_i32 = arith.constant 0 : i32
    %c0_i32_0 = arith.constant 0 : i32
    %c0_i32_1 = arith.constant 0 : i32
    %c0_i32_2 = arith.constant 0 : i32
    return %arg0, %c0_i32, %c0_i32_0, %c0_i32_1 : i32, i32, i32, i32
  }
}

</mosaic_0001>

<bundles_post_ra>
// kernel: tpu_custom_call.1
= control target key start
LH: loop header
LB: loop body
LE: loop exit
PB: predicated region body
PF: predicated region fallthrough
CT: control target
= control target key end

     0   :  { %12 = vsyncpa [#allocation5], 0  ;;  %s9932_s0 = inlined_call_operand.hbm [shape: f32[8,16,16,128], index: 0, kind: input, shape index: {}]   ;;  %s9933_s1 = inlined_call_operand.vmem [shape: bf16[128,32], index: 1, kind: input, shape index: {}]   ;;  %s9934_s2 = inlined_call_operand.vmem [shape: f32[1,32], index: 2, kind: input, shape index: {}]   ;;  %s9935_s3 = inlined_call_operand.vmem [shape: bf16[288,32], index: 3, kind: input, shape index: {}]   ;;  %s9936_s4 = inlined_call_operand.vmem [shape: f32[1,32], index: 4, kind: input, shape index: {}]   ;;  %s9937_s5 = inlined_call_operand.vmem [shape: bf16[32,128], index: 5, kind: input, shape index: {}]   ;;  %s9938_s6 = inlined_call_operand.vmem [shape: f32[1,128], index: 6, kind: input, shape index: {}]   ;;  %s9939_s7 = inlined_call_operand.hbm [shape: f32[8,16,16,128], index: 7, kind: output, shape index: {}]  }
   0x1   :  { %14 = vsyncpa [#allocation5 + $0x1], 0 }
   0x2   :  { %15 = vsyncpa [#allocation6], 0 }
   0x3   :  { %17 = vsyncpa [#allocation6 + $0x1], 0  ;;  %s7141_s24 = smov 0   ;;  %s7143_s25 = smov 0  }
   0x4   :  { %s7145_s26 = smov 0   ;;  %s7147_s27 = smov 0  }
   0x5 LB: > { %s7162_s28 = sadd.s32 4294967295, %s7091_s27   ;;  %s6144_s29 = sadd.s32 4294967294, %s7091_s27   ;;  %s7091_s27 = sphi %s7147_s27, %s10063_s27   ;;  %s7087_s26 = sphi %s7145_s26, %s10062_s26   ;;  %s7083_s25 = sphi %s7143_s25, %s10061_s25   ;;  %s7079_s24 = sphi %s7141_s24, %s10060_s24  }
   0x6   : > { %s7166_s30 = sadd.s32 1, %s7091_s27   ;;  %s30_s8 = sadd.s32 1, %s7087_s26 }
   0x7   : > { %s27_s9 = ssub.s32 %s7091_s27, %s7166_s30  ;;  %p37_p0 = scmp.ne.s32.totalorder %s7087_s26, %s7083_s25 }
   0x8   : > { %p28_p1 = scmp.eq.s32.totalorder %s27_s9, 0  ;;  %p38_p2 = scmp.eq.s32.totalorder %s7091_s27, 0 }
   0x9   : > { %p43_p3 = scmp.ne.s32.totalorder %s7083_s25, %s7079_s24  ;;  %p44_p4 = scmp.eq.s32.totalorder %s7162_s28, 0 }
   0xa   : > { %s7178_s10 = scalar_select %p28_p1, %s7087_s26, %s30_s8  }
   0xb   : > { %p7180_p5 = por %p38_p2, %p37_p0  ;;  %p7184_p6 = por %p44_p4, %p43_p3 }
   0xc   : > { %9965 = sst [smem:[#allocation10_spill]] %s7178_s10  ;;  %p193_p7 = scmp.eq.s32.totalorder %s7162_s28, 3 }
   0xd   : > { %p199_p8 = scmp.eq.s32.totalorder %s6144_s29, 3  ;;  %p6878_p9 = scmp.lt.s32.totalorder %s7091_s27, 4 }
   0xe   : > { %p7190_p10 = por %p193_p7, %p37_p0  ;;  %s237_s15 = sand.u32 1, %s7087_s26  }
   0xf   : > { %p7194_p11 = por %p199_p8, %p43_p3  ;;  %s6721_s16 = sshll.u32 %s7091_s27, 9 }
  0x10   : > { %s6147_s17 = sshll.u32 %s237_s15, 9  ;;  %s247_s20 = scalar_lea.hbm %s9932_s0, %s6721_s16 }
  0x11   : > { %s248_s21 = sshll.u32 %s247_s20, 4  ;;  %s241_s22 = scalar_lea.vmem [#allocation4], %s6147_s17  ;;  %s249_s21 = int_to_ptr.hbm [resolvable:$true] %s248_s21 }
  0x12   : > { %s250_s23 = sshll.u32 %s241_s22, 4  ;;  %p7205_p12 = pnand %p6878_p9, %p7180_p5  ;;  %s251_s23 = int_to_ptr.vmem [resolvable:$true] %s250_s23 }
  0x13   : > { %p6151_p13 = scmp.ge.s32.totalorder %s7091_s27, 1  ;;  %p258_p0 = scmp.lt.s32.totalorder %s7091_s27, 5 }
  0x14   : > { %s238_s8 = scalar_lea.sflag [#allocation5], %s237_s15  ;;  %s6995_s9 = sshra.s32 %s249_s21, 4  ;;  %s6996_s9 = int_to_ptr.hbm [resolvable:$true] %s6995_s9 }
  0x15   : > { %s6997_s10 = scalar_lea.hbm %s6996_s9, 512  ;;  %p6999_p2 = pneg %p7205_p12 }
  0x16   : > { %p6998_p1 = scmp.ne.s32.totalorder %s6996_s9, %s6997_s10  ;;  %s7002_s11 = scalar_lea.hbm %s9932_s0, 2048 }
  0x17   : > { %p7003_p5 = scmp.lt.s32.totalorder %s6996_s9, %s9932_s0  ;;  %p7004_p7 = scmp.lt.s32.totalorder %s7002_s11, %s6997_s10 }
  0x18   : > { %p7000_p3 = pnand %p6999_p2, %p6998_p1 }
  0x19   : > { %p7005_p8 = por %p7004_p7, %p7003_p5 }
  0x1a   : > { %p7001_p4 = pneg %p7000_p3 }
  0x1c   : > { %p7006_p9 = pnand %p7005_p8, %p7001_p4 }
  0x1e   : > { %7009 = shalt.err (!%p7006_p9)
}
  0x1f   : > { %s7093_s15 = smov 128   ;;  %s7094_s20 = smov 8  }
  0x20   : > { %6873 = dma.hbm_to_vmem [thread:$0]  (!%p7205_p12), %s249_s21, 8192, %s251_s23, %s238_s8, %s7093_s15, %s7093_s15, %s7094_s20  }
  0x21   : > { %p259_p1 = pnand %p6151_p13, %p258_p0 }
  0x23   : > { %262 = sbr.rel (%p259_p1) target bundleno = 1667 (0x683), region = 48 }
  0x28   : > { %s7226_s22 = sand.u32 1, %s7083_s25  }
  0x29   : > { %s6152_s10 = sshll.u32 %s7226_s22, 9  ;;  %s265_s9 = scalar_lea.sflag [#allocation5], %s7226_s22 }
  0x2a   : > { %s7232_s16 = scalar_lea.vmem [#allocation4], %s6152_s10 }
  0x2b   : > { %7070 = dma.done.wait (%p7184_p6), %s265_s9, 8192  }
  0x2c   : > { %7072 = vsyncadd (%p7184_p6), %s265_s9, 4294959104  ;;  %v6729_v0 = vld [vmem:[%s9933_s1 + $0x38] sm:$0xff]  ;;  %v6728_v1 = vld [vmem:[%s9933_s1 + $0x30] sm:$0xff]  ;;  %vm700_vm0 = vcmask 261120   ;;  %v7095_v51 = vmov 0.0   ;;  %vm715_vm1 = vcmask 253952  }
  0x2d   : > { %467 = vmatpush.bf16.msra.mxu0 %v6729_v0  ;;  %6848 = vmatpush.bf16.msra.mxu1 %v6729_v0  ;;  %v6727_v2 = vld [vmem:[%s9933_s1 + $0x28] sm:$0xff]  ;;  %v6726_v3 = vld [vmem:[%s9933_s1 + $0x20] sm:$0xff]  ;;  %v6725_v4 = vld [vmem:[%s9933_s1 + $0x18] sm:$0xff]  ;;  %701 = vst.msk [vmem:[#allocation2] sm:$0xff] %vm700_vm0, %v7095_v51  ;;  %s7096_s17 = smov 32   ;;  %s7097_s11 = smov 64  }
  0x2e   : > { %6849 = vmatpush.bf16.msra.mxu2 %v6729_v0  ;;  %v6724_v5 = vld [vmem:[%s9933_s1 + $0x10] sm:$0xff]  ;;  %v6723_v6 = vld [vmem:[%s9933_s1 + $0x8] sm:$0xff]  ;;  %v6722_v7 = vld [vmem:[%s9933_s1] sm:$0xff]  ;;  %702 = vst.msk [vmem:[#allocation2 + $0x8] sm:$0xff] %vm700_vm0, %v7095_v51  ;;  %vm703_vm2 = vcmask 254976   ;;  %vm981_vm3 = vcmask 257024  }
  0x2f   : > { %v303_v8 = vld [vmem:[%s7232_s16] sm:$0xff]  ;;  %v304_v9 = vld [vmem:[%s7232_s16 + $0x8] sm:$0xff]  ;;  %v305_v17 = vld [vmem:[%s7232_s16 + $0x10] sm:$0xff]  ;;  %705 = vst.msk [vmem:[#allocation2 + $0x1b0] sm:$0xff] %vm700_vm0, %v7095_v51  ;;  %s7098_s19 = smov 96   ;;  %vm1430_vm4 = vcmask 519424  }
  0x30   : > { %v339_v10 = vld [vmem:[%s7232_s16 + $0x120] sm:$0xff]  ;;  %v340_v11 = vld [vmem:[%s7232_s16 + $0x128] sm:$0xff]  ;;  %v367_v14 = vpack.c.bf16 %v304_v9, %v303_v8  ;;  %v306_v18 = vld [vmem:[%s7232_s16 + $0x18] sm:$0xff]  ;;  %706 = vst.msk [vmem:[#allocation2 + $0x1b8] sm:$0xff] %vm700_vm0, %v7095_v51  ;;  %vm1879_vm5 = vcmask 781824   ;;  %vm2328_vm6 = vcmask 1044224  }
  0x31   : > { %468 = vmatpush.bf16.msra.mxu0 %v6728_v1  ;;  %6850 = vmatpush.bf16.msra.mxu1 %v6728_v1  ;;  %v355_v12 = vld [vmem:[%s7232_s16 + $0x1a0] sm:$0xff]  ;;  %v356_v13 = vld [vmem:[%s7232_s16 + $0x1a8] sm:$0xff]  ;;  %v385_v15 = vpack.c.bf16 %v340_v11, %v339_v10  ;;  %v341_v19 = vld [vmem:[%s7232_s16 + $0x130] sm:$0xff]  ;;  %v368_v23 = vpack.c.bf16 %v306_v18, %v305_v17  ;;  %709 = vst.msk [vmem:[#allocation2 + $0x198] sm:$0xff] %vm700_vm0, %v7095_v51  ;;  %s8810_s21 = scalar_lea.vmem [#allocation7], %s6152_s10  ;;  %s6055_s15 = scalar_lea.sflag [#allocation6], %s7226_s22 }
  0x32   : > { %6851 = vmatpush.bf16.msra.mxu2 %v6728_v1  ;;  %v393_v16 = vpack.c.bf16 %v356_v13, %v355_v12  ;;  %v342_v20 = vld [vmem:[%s7232_s16 + $0x138] sm:$0xff]  ;;  %v357_v21 = vld [vmem:[%s7232_s16 + $0x1b0] sm:$0xff]  ;;  %v307_v26 = vld [vmem:[%s7232_s16 + $0x20] sm:$0xff]  ;;  %710 = vst.msk [vmem:[#allocation2 + $0x1a0] sm:$0xff] %vm700_vm0, %v7095_v51  ;;  %s6068_s12 = sshll.u32 %s8810_s21, 4  ;;  %s6069_s12 = int_to_ptr.vmem [resolvable:$true] %s6068_s12 }
  0x33   : > { %v358_v22 = vld [vmem:[%s7232_s16 + $0x1b8] sm:$0xff]  ;;  %v386_v24 = vpack.c.bf16 %v342_v20, %v341_v19  ;;  %v308_v27 = vld [vmem:[%s7232_s16 + $0x28] sm:$0xff]  ;;  %v343_v28 = vld [vmem:[%s7232_s16 + $0x140] sm:$0xff]  ;;  %712 = vst.msk [vmem:[#allocation2 + $0x348] sm:$0xff] %vm700_vm0, %v7095_v51 }
  0x34   : > { %v394_v25 = vpack.c.bf16 %v358_v22, %v357_v21  ;;  %v344_v29 = vld [vmem:[%s7232_s16 + $0x148] sm:$0xff]  ;;  %v369_v30 = vpack.c.bf16 %v308_v27, %v307_v26  ;;  %v359_v32 = vld [vmem:[%s7232_s16 + $0x1c0] sm:$0xff]  ;;  %v309_v35 = vld [vmem:[%s7232_s16 + $0x30] sm:$0xff]  ;;  %713 = vst.msk [vmem:[#allocation2 + $0x350] sm:$0xff] %vm700_vm0, %v7095_v51 }
  0x35   : > { %469 = vmatpush.bf16.msra.mxu0 %v6727_v2  ;;  %6852 = vmatpush.bf16.msra.mxu1 %v6727_v2  ;;  %v387_v31 = vpack.c.bf16 %v344_v29, %v343_v28  ;;  %v360_v33 = vld [vmem:[%s7232_s16 + $0x1c8] sm:$0xff]  ;;  %v310_v36 = vld [vmem:[%s7232_s16 + $0x38] sm:$0xff]  ;;  %v345_v37 = vld [vmem:[%s7232_s16 + $0x150] sm:$0xff]  ;;  %716 = vst.msk [vmem:[#allocation2] sm:$0x1] %vm715_vm1, %v7095_v51 }
  0x36   : > { %6853 = vmatpush.bf16.msra.mxu2 %v6727_v2  ;;  %v395_v34 = vpack.c.bf16 %v360_v33, %v359_v32  ;;  %v346_v38 = vld [vmem:[%s7232_s16 + $0x158] sm:$0xff]  ;;  %v370_v39 = vpack.c.bf16 %v310_v36, %v309_v35  ;;  %v311_v41 = vld [vmem:[%s7232_s16 + $0x40] sm:$0xff]  ;;  %v312_v42 = vld [vmem:[%s7232_s16 + $0x48] sm:$0xff]  ;;  %717 = vst.msk [vmem:[#allocation2 + $0x18] sm:$0x1] %vm715_vm1, %v7095_v51 }
  0x37   : > { %v388_v40 = vpack.c.bf16 %v346_v38, %v345_v37  ;;  %v347_v43 = vld [vmem:[%s7232_s16 + $0x160] sm:$0xff]  ;;  %v348_v44 = vld [vmem:[%s7232_s16 + $0x168] sm:$0xff]  ;;  %v371_v45 = vpack.c.bf16 %v312_v42, %v311_v41  ;;  %v313_v47 = vld [vmem:[%s7232_s16 + $0x50] sm:$0xff]  ;;  %718 = vst.msk [vmem:[#allocation2 + $0x30] sm:$0x1] %vm715_vm1, %v7095_v51 }
  0x38   : > { %v389_v46 = vpack.c.bf16 %v348_v44, %v347_v43  ;;  %v314_v48 = vld [vmem:[%s7232_s16 + $0x58] sm:$0xff]  ;;  %v349_v49 = vld [vmem:[%s7232_s16 + $0x170] sm:$0xff]  ;;  %v1046_v54 = vld [vmem:[#allocation2 + $0x1] sm:$0xff]  ;;  %719 = vst.msk [vmem:[#allocation2 + $0x48] sm:$0x1] %vm715_vm1, %v7095_v51 }
  0x39   : > { %470 = vmatpush.bf16.msra.mxu0 %v6726_v3  ;;  %6854 = vmatpush.bf16.msra.mxu1 %v6726_v3  ;;  %v350_v50 = vld [vmem:[%s7232_s16 + $0x178] sm:$0xff]  ;;  %v372_v52 = vpack.c.bf16 %v314_v48, %v313_v47  ;;  %v1110_v55 = vpack.c.bf16 %v1046_v54, %v1046_v54  ;;  %720 = vst.msk [vmem:[#allocation2 + $0x60] sm:$0x1] %vm715_vm1, %v7095_v51  ;;  %v361_v56 = vld [vmem:[%s7232_s16 + $0x1d0] sm:$0xff]  ;;  %v315_v59 = vld [vmem:[%s7232_s16 + $0x60] sm:$0xff] }
  0x3a   : > { %6855 = vmatpush.bf16.msra.mxu2 %v6726_v3  ;;  %v390_v53 = vpack.c.bf16 %v350_v50, %v349_v49  ;;  %721 = vst.msk [vmem:[#allocation2 + $0x78] sm:$0x1] %vm715_vm1, %v7095_v51  ;;  %v362_v57 = vld [vmem:[%s7232_s16 + $0x1d8] sm:$0xff]  ;;  %v316_v60 = vld [vmem:[%s7232_s16 + $0x68] sm:$0xff]  ;;  %v351_v61 = vld [vmem:[%s7232_s16 + $0x180] sm:$0xff] }
  0x3b   : > { %1238 = vrot.lane.b32.xlu0 %v1110_v55, %s7096_s17  ;;  %722 = vst.msk [vmem:[#allocation2 + $0x90] sm:$0x1] %vm715_vm1, %v7095_v51  ;;  %v396_v58 = vpack.c.bf16 %v362_v57, %v361_v56  ;;  %v352_v62 = vld [vmem:[%s7232_s16 + $0x188] sm:$0xff]  ;;  %v373_v63 = vpack.c.bf16 %v316_v60, %v315_v59  ;;  %v317_v1 = vld [vmem:[%s7232_s16 + $0x70] sm:$0xff]  ;;  %v318_v2 = vld [vmem:[%s7232_s16 + $0x78] sm:$0xff] }
  0x3c   : > { %723 = vst.msk [vmem:[#allocation2 + $0xa8] sm:$0x1] %vm715_vm1, %v7095_v51  ;;  %v391_v0 = vpack.c.bf16 %v352_v62, %v351_v61  ;;  %v353_v3 = vld [vmem:[%s7232_s16 + $0x190] sm:$0xff]  ;;  %v319_v13 = vld [vmem:[%s7232_s16 + $0x80] sm:$0xff]  ;;  %v322_v21 = vld [vmem:[%s7232_s16 + $0x98] sm:$0xff] }
  0x3d   : > { %471 = vmatpush.bf16.msra.mxu0 %v6725_v4  ;;  %6856 = vmatpush.bf16.msra.mxu1 %v6725_v4  ;;  %724 = vst.msk [vmem:[#allocation2 + $0xc0] sm:$0x1] %vm715_vm1, %v7095_v51  ;;  %v1078_v9 = vld [vmem:[#allocation2 + $0x1b1] sm:$0xff] }
  0x3e   : > { %6857 = vmatpush.bf16.msra.mxu2 %v6725_v4  ;;  %725 = vst.msk [vmem:[#allocation2 + $0xd8] sm:$0x1] %vm715_vm1, %v7095_v51  ;;  %v354_v4 = vld [vmem:[%s7232_s16 + $0x198] sm:$0xff]  ;;  %v1142_v10 = vpack.c.bf16 %v1078_v9, %v1078_v9  ;;  %v321_v20 = vld [vmem:[%s7232_s16 + $0x90] sm:$0xff] }
  0x3f   : > { %726 = vst.msk [vmem:[#allocation2 + $0xf0] sm:$0x1] %vm715_vm1, %v7095_v51 }
  0x40   : > { %727 = vst.msk [vmem:[#allocation2 + $0x108] sm:$0x1] %vm715_vm1, %v7095_v51  ;;  %1302 = vrot.lane.b32.xlu2 %v1142_v10, %s7096_s17 }
  0x41   : > { %472 = vmatpush.bf16.msra.mxu0 %v6724_v5  ;;  %6858 = vmatpush.bf16.msra.mxu1 %v6724_v5  ;;  %728 = vst.msk [vmem:[#allocation2 + $0x120] sm:$0x1] %vm715_vm1, %v7095_v51 }
  0x42   : > { %6859 = vmatpush.bf16.msra.mxu2 %v6724_v5  ;;  %729 = vst.msk [vmem:[#allocation2 + $0x138] sm:$0x1] %vm715_vm1, %v7095_v51  ;;  %v374_v5 = vpack.c.bf16 %v318_v2, %v317_v1 }
  0x43   : > { %730 = vst.msk [vmem:[#allocation2 + $0x150] sm:$0x1] %vm715_vm1, %v7095_v51 }
  0x44   : > { %731 = vst.msk [vmem:[#allocation2 + $0x168] sm:$0x1] %vm715_vm1, %v7095_v51 }
  0x45   : > { %473 = vmatpush.bf16.msra.mxu0 %v6723_v6  ;;  %6860 = vmatpush.bf16.msra.mxu1 %v6723_v6  ;;  %732 = vst.msk [vmem:[#allocation2 + $0x180] sm:$0x1] %vm715_vm1, %v7095_v51 }
  0x46   : > { %6861 = vmatpush.bf16.msra.mxu2 %v6723_v6  ;;  %735 = vst.msk [vmem:[#allocation2 + $0x1c8] sm:$0x1] %vm715_vm1, %v7095_v51  ;;  %v392_v6 = vpack.c.bf16 %v354_v4, %v353_v3 }
  0x47   : > { %736 = vst.msk [vmem:[#allocation2 + $0x1e0] sm:$0x1] %vm715_vm1, %v7095_v51 }
  0x48   : > { %737 = vst.msk [vmem:[#allocation2 + $0x1f8] sm:$0x1] %vm715_vm1, %v7095_v51 }
  0x49   : > { %474 = vmatpush.bf16.msra.mxu0 %v6722_v7  ;;  %6862 = vmatpush.bf16.msra.mxu1 %v6722_v7  ;;  %738 = vst.msk [vmem:[#allocation2 + $0x210] sm:$0x1] %vm715_vm1, %v7095_v51 }
  0x4a   : > { %6863 = vmatpush.bf16.msra.mxu2 %v6722_v7  ;;  %739 = vst.msk [vmem:[#allocation2 + $0x228] sm:$0x1] %vm715_vm1, %v7095_v51  ;;  %v1495_v7 = vld [vmem:[#allocation2 + $0x2] sm:$0xff] }
  0x4b   : > { %740 = vst.msk [vmem:[#allocation2 + $0x240] sm:$0x1] %vm715_vm1, %v7095_v51  ;;  %v1559_v8 = vpack.c.bf16 %v1495_v7, %v1495_v7 }
  0x4c   : > { %475 = vmatmul.bf16.vlgmr.msra.gmra.mxu0 %v367_v14  ;;  %565 = vmatmul.bf16.vlgmr.msra.gmra.mxu1 %v385_v15  ;;  %741 = vst.msk [vmem:[#allocation2 + $0x258] sm:$0x1] %vm715_vm1, %v7095_v51  ;;  %v320_v14 = vld [vmem:[%s7232_s16 + $0x88] sm:$0xff] }
  0x4d   : > { %605 = vmatmul.bf16.vlgmr.msra.gmra.mxu2 %v393_v16  ;;  %742 = vst.msk [vmem:[#allocation2 + $0x270] sm:$0x1] %vm715_vm1, %v7095_v51  ;;  %1687 = vrot.lane.b32.xlu1 %v1559_v8, %s7097_s11  ;;  %v375_v15 = vpack.c.bf16 %v320_v14, %v319_v13  ;;  %v1527_v13 = vld [vmem:[#allocation2 + $0x1b2] sm:$0xff] }
  0x4e   : > { %743 = vst.msk [vmem:[#allocation2 + $0x288] sm:$0x1] %vm715_vm1, %v7095_v51 }
  0x4f   : > { %744 = vst.msk [vmem:[#allocation2 + $0x2a0] sm:$0x1] %vm715_vm1, %v7095_v51 }
  0x50   : > { %745 = vst.msk [vmem:[#allocation2 + $0x2b8] sm:$0x1] %vm715_vm1, %v7095_v51 }
  0x51   : > { %746 = vst.msk [vmem:[#allocation2 + $0x2d0] sm:$0x1] %vm715_vm1, %v7095_v51 }
  0x52   : > { %747 = vst.msk [vmem:[#allocation2 + $0x2e8] sm:$0x1] %vm715_vm1, %v7095_v51 }
  0x53   : > { %748 = vst.msk [vmem:[#allocation2 + $0x300] sm:$0x1] %vm715_vm1, %v7095_v51 }
  0x54   : > { %749 = vst.msk [vmem:[#allocation2 + $0x318] sm:$0x1] %vm715_vm1, %v7095_v51 }
  0x55   : > { %750 = vst.msk [vmem:[#allocation2 + $0x330] sm:$0x1] %vm715_vm1, %v7095_v51 }
  0x56   : > { %753 = vst.msk [vmem:[#allocation2 + $0x29] sm:$0x1] %vm715_vm1, %v7095_v51 }
  0x57   : > { %754 = vst.msk [vmem:[#allocation2 + $0x41] sm:$0x1] %vm715_vm1, %v7095_v51 }
  0x58   : > { %755 = vst.msk [vmem:[#allocation2 + $0x59] sm:$0x1] %vm715_vm1, %v7095_v51 }
  0x59   : > { %756 = vst.msk [vmem:[#allocation2 + $0x71] sm:$0x1] %vm715_vm1, %v7095_v51 }
  0x5a   : > { %757 = vst.msk [vmem:[#allocation2 + $0x89] sm:$0x1] %vm715_vm1, %v7095_v51 }
  0x5b   : > { %758 = vst.msk [vmem:[#allocation2 + $0xa1] sm:$0x1] %vm715_vm1, %v7095_v51 }
  0x5c   : > { %480 = vmatmul.bf16.gmra.mxu0 %v368_v23  ;;  %570 = vmatmul.bf16.gmra.mxu1 %v386_v24  ;;  %759 = vst.msk [vmem:[#allocation2 + $0xb9] sm:$0x1] %vm715_vm1, %v7095_v51  ;;  %v376_v23 = vpack.c.bf16 %v322_v21, %v321_v20  ;;  %v7458_v24 = vld [vmem:[%s9934_s2] ss:$0 sm:$0xff] }
  0x5d   : > { %610 = vmatmul.bf16.gmra.mxu2 %v394_v25  ;;  %760 = vst.msk [vmem:[#allocation2 + $0xd1] sm:$0x1] %vm715_vm1, %v7095_v51 }
  0x5e   : > { %761 = vst.msk [vmem:[#allocation2 + $0xe9] sm:$0x1] %vm715_vm1, %v7095_v51 }
  0x5f   : > { %762 = vst.msk [vmem:[#allocation2 + $0x101] sm:$0x1] %vm715_vm1, %v7095_v51 }
  0x60   : > { %763 = vst.msk [vmem:[#allocation2 + $0x119] sm:$0x1] %vm715_vm1, %v7095_v51 }
  0x61   : > { %764 = vst.msk [vmem:[#allocation2 + $0x131] sm:$0x1] %vm715_vm1, %v7095_v51 }
  0x62   : > { %765 = vst.msk [vmem:[#allocation2 + $0x149] sm:$0x1] %vm715_vm1, %v7095_v51 }
  0x63   : > { %766 = vst.msk [vmem:[#allocation2 + $0x161] sm:$0x1] %vm715_vm1, %v7095_v51 }
  0x64   : > { %767 = vst.msk [vmem:[#allocation2 + $0x179] sm:$0x1] %vm715_vm1, %v7095_v51 }
  0x65   : > { %768 = vst.msk [vmem:[#allocation2 + $0x191] sm:$0x1] %vm715_vm1, %v7095_v51 }
  0x66   : > { %771 = vst.msk [vmem:[#allocation2 + $0x1d9] sm:$0x1] %vm715_vm1, %v7095_v51 }
  0x67   : > { %772 = vst.msk [vmem:[#allocation2 + $0x1f1] sm:$0x1] %vm715_vm1, %v7095_v51 }
  0x68   : > { %773 = vst.msk [vmem:[#allocation2 + $0x209] sm:$0x1] %vm715_vm1, %v7095_v51 }
  0x69   : > { %774 = vst.msk [vmem:[#allocation2 + $0x221] sm:$0x1] %vm715_vm1, %v7095_v51 }
  0x6a   : > { %775 = vst.msk [vmem:[#allocation2 + $0x239] sm:$0x1] %vm715_vm1, %v7095_v51 }
  0x6b   : > { %776 = vst.msk [vmem:[#allocation2 + $0x251] sm:$0x1] %vm715_vm1, %v7095_v51 }
  0x6c   : > { %485 = vmatmul.bf16.gmra.mxu0 %v369_v30  ;;  %575 = vmatmul.bf16.gmra.mxu1 %v387_v31  ;;  %777 = vst.msk [vmem:[#allocation2 + $0x269] sm:$0x1] %vm715_vm1, %v7095_v51  ;;  %v363_v30 = vld [vmem:[%s7232_s16 + $0x1e0] sm:$0xff]  ;;  %v364_v31 = vld [vmem:[%s7232_s16 + $0x1e8] sm:$0xff] }
  0x6d   : > { %615 = vmatmul.bf16.gmra.mxu2 %v395_v34  ;;  %778 = vst.msk [vmem:[#allocation2 + $0x281] sm:$0x1] %vm715_vm1, %v7095_v51  ;;  %v397_v34 = vpack.c.bf16 %v364_v31, %v363_v30 }
  0x6e   : > { %779 = vst.msk [vmem:[#allocation2 + $0x299] sm:$0x1] %vm715_vm1, %v7095_v51 }
  0x6f   : > { %780 = vst.msk [vmem:[#allocation2 + $0x2b1] sm:$0x1] %vm715_vm1, %v7095_v51 }
  0x70   : > { %781 = vst.msk [vmem:[#allocation2 + $0x2c9] sm:$0x1] %vm715_vm1, %v7095_v51 }
  0x71   : > { %782 = vst.msk [vmem:[#allocation2 + $0x2e1] sm:$0x1] %vm715_vm1, %v7095_v51 }
  0x72   : > { %783 = vst.msk [vmem:[#allocation2 + $0x2f9] sm:$0x1] %vm715_vm1, %v7095_v51 }
  0x73   : > { %784 = vst.msk [vmem:[#allocation2 + $0x311] sm:$0x1] %vm715_vm1, %v7095_v51 }
  0x74   : > { %785 = vst.msk [vmem:[#allocation2 + $0x329] sm:$0x1] %vm715_vm1, %v7095_v51 }
  0x75   : > { %786 = vst.msk [vmem:[#allocation2 + $0x341] sm:$0x1] %vm715_vm1, %v7095_v51 }
  0x76   : > { %733 = vst.msk [vmem:[#allocation2 + $0x198] sm:$0x1] %vm715_vm1, %v7095_v51 }
  0x77   : > { %734 = vst.msk [vmem:[#allocation2 + $0x1b0] sm:$0x1] %vm715_vm1, %v7095_v51 }
  0x78   : > { %751 = vst.msk [vmem:[#allocation2 + $0x348] sm:$0x1] %vm715_vm1, %v7095_v51 }
  0x79   : > { %704 = vst.msk [vmem:[#allocation2 + $0x10] sm:$0x3] %vm703_vm2, %v7095_v51 }
  0x7a   : > { %711 = vst.msk [vmem:[#allocation2 + $0x1a8] sm:$0x3] %vm703_vm2, %v7095_v51 }
  0x7b   : > { %714 = vst.msk [vmem:[#allocation2 + $0x358] sm:$0x3] %vm703_vm2, %v7095_v51 }
  0x7c   : > { %490 = vmatmul.bf16.gmra.mxu0 %v370_v39  ;;  %580 = vmatmul.bf16.gmra.mxu1 %v388_v40  ;;  %769 = vst.msk [vmem:[#allocation2 + $0x1a9] sm:$0x1] %vm715_vm1, %v7095_v51 }
  0x7d   : > { %620 = vmatmul.bf16.gmra.mxu2 %v396_v58  ;;  %787 = vst.msk [vmem:[#allocation2 + $0x359] sm:$0x1] %vm715_vm1, %v7095_v51 }
  0x7e   : > { %707 = vst.msk [vmem:[#allocation2 + $0x1c0] sm:$0x3] %vm703_vm2, %v7095_v51 }
  0x7f   : > { %752 = vst.msk [vmem:[#allocation2 + $0x11] sm:$0x1] %vm715_vm1, %v7095_v51 }
  0x80   : > { %v1047_v41 = vld [vmem:[#allocation2 + $0x9] sm:$0xff]  ;;  %770 = vst.msk [vmem:[#allocation2 + $0x1c1] sm:$0x1] %vm715_vm1, %v7095_v51 }
  0x81   : > { %v1111_v44 = vpack.c.bf16 %v1047_v41, %v1047_v41 }
  0x83   : > { %1240 = vrot.lane.b32.xlu0 %v1111_v44, %s7096_s17 }
  0x85   : > { %v1079_v58 = vld [vmem:[#allocation2 + $0x1b9] sm:$0xff] }
  0x86   : > { %v1496_v62 = vld [vmem:[#allocation2 + $0xa] sm:$0xff] }
  0x87   : > { %v1560_v1 = vpack.c.bf16 %v1496_v62, %v1496_v62  ;;  %v1528_v2 = vld [vmem:[#allocation2 + $0x1ba] sm:$0xff] }
  0x88   : > { %v1592_v4 = vpack.c.bf16 %v1528_v2, %v1528_v2 }
  0x89   : > { %1689 = vrot.lane.b32.xlu2 %v1560_v1, %s7097_s11 }
  0x8a   : > { %1753 = vrot.lane.b32.xlu1 %v1592_v4, %s7097_s11 }
  0x8c   : > { %495 = vmatmul.bf16.gmra.mxu0 %v371_v45  ;;  %585 = vmatmul.bf16.gmra.mxu1 %v389_v46 }
  0x8d   : > { %625 = vmatmul.bf16.gmra.mxu2 %v397_v34 }
  0x9c   : > { %500 = vmatmul.bf16.gmra.mxu0 %v372_v52  ;;  %590 = vmatmul.bf16.gmra.mxu1 %v390_v53  ;;  %v323_v52 = vld [vmem:[%s7232_s16 + $0xa0] sm:$0xff]  ;;  %v324_v53 = vld [vmem:[%s7232_s16 + $0xa8] sm:$0xff] }
  0x9d   : > { %v377_v57 = vpack.c.bf16 %v324_v53, %v323_v52 }
  0xac   : > { %505 = vmatmul.bf16.gmra.mxu0 %v373_v63  ;;  %595 = vmatmul.bf16.gmra.mxu1 %v391_v0  ;;  %v1143_v0 = vpack.c.bf16 %v1079_v58, %v1079_v58 }
  0xae   : > { %1304 = vrot.lane.b32.xlu0 %v1143_v0, %s7096_s17 }
  0xbc   : > { %510 = vmatmul.bf16.gmra.mxu0 %v374_v5  ;;  %600 = vmatmul.bf16.gmra.mxu1 %v392_v6 }
  0xc9   : > { %v476_v11 = vpop.f32.mrf.mxu0  ;;  %v566_v12 = vpop.f32.mrf.mxu1 }
  0xca   : > { %v477_v25 = vadd.f32 %v7458_v24, %v476_v11  ;;  %v567_v26 = vadd.f32 %v7458_v24, %v566_v12 }
  0xcc   : > { %515 = vmatmul.bf16.gmra.mxu0 %v375_v15  ;;  %v636_v35 = vmax.f32 %v477_v25, 0.0  ;;  %v672_v37 = vmax.f32 %v567_v26, 0.0  ;;  %v1591_v26 = vpack.c.bf16 %v1527_v13, %v1527_v13 }
  0xce   : > { %789 = vst.msk [vmem:[#allocation2 + $0x19] sm:$0xff] %vm700_vm0, %v636_v35  ;;  %1751 = vrot.lane.b32.xlu0 %v1591_v26, %s7097_s11 }
  0xcf   : > { %825 = vst.msk [vmem:[#allocation2 + $0x1f9] sm:$0xff] %vm700_vm0, %v672_v37  ;;  %v325_v37 = vld [vmem:[%s7232_s16 + $0xb0] sm:$0xff] }
  0xd0   : > { %v606_v18 = vpop.f32.mrf.mxu2 }
  0xd1   : > { %v478_v16 = vpop.f32.mrf.mxu0  ;;  %v568_v17 = vpop.f32.mrf.mxu1  ;;  %v607_v27 = vadd.f32 %v7458_v24, %v606_v18 }
  0xd2   : > { %v479_v32 = vadd.f32 %v7458_v24, %v478_v16  ;;  %v569_v36 = vadd.f32 %v7458_v24, %v568_v17 }
  0xd3   : > { %v688_v39 = vmax.f32 %v607_v27, 0.0 }
  0xd4   : > { %v637_v42 = vmax.f32 %v479_v32, 0.0  ;;  %v673_v45 = vmax.f32 %v569_v36, 0.0 }
  0xd5   : > { %841 = vst.msk [vmem:[#allocation2 + $0x2b9] sm:$0xff] %vm700_vm0, %v688_v39  ;;  %v1048_v9 = vld [vmem:[#allocation2 + $0x19] sm:$0xff] }
  0xd6   : > { %790 = vst.msk [vmem:[#allocation2 + $0x21] sm:$0xff] %vm700_vm0, %v637_v42  ;;  %v891_v7 = vld [vmem:[#allocation2 + $0x1f8] sm:$0xff]  ;;  %v1112_v20 = vpack.c.bf16 %v1048_v9, %v1048_v9 }
  0xd7   : > { %826 = vst.msk [vmem:[#allocation2 + $0x201] sm:$0xff] %vm700_vm0, %v673_v45  ;;  %v1084_v8 = vld [vmem:[#allocation2 + $0x1f9] sm:$0xff]  ;;  %v955_v10 = vpack.c.bf16 %v891_v7, %v891_v7 }
  0xd8   : > { %v608_v28 = vpop.f32.mrf.mxu2  ;;  %1242 = vrot.lane.b32.xlu1 %v1112_v20, %s7096_s17  ;;  %v1944_v31 = vld [vmem:[#allocation2 + $0x18] sm:$0xff]  ;;  %2521 = vst.msk [vmem:[#allocation3 + $0x4] sm:$0xf] %vm981_vm3, %v1112_v20 }
  0xd9   : > { %v481_v19 = vpop.f32.mrf.mxu0  ;;  %v571_v22 = vpop.f32.mrf.mxu1  ;;  %v609_v38 = vadd.f32 %v7458_v24, %v608_v28  ;;  %1020 = vst.msk [vmem:[#allocation3 + $0x1c8] sm:$0xf] %vm981_vm3, %v955_v10  ;;  %v2008_v45 = vpack.c.bf16 %v1944_v31, %v1944_v31 }
  0xda   : > { %v482_v40 = vadd.f32 %v7458_v24, %v481_v19  ;;  %v572_v43 = vadd.f32 %v7458_v24, %v571_v22  ;;  %v1148_v19 = vpack.c.bf16 %v1084_v8, %v1084_v8 }
  0xdb   : > { %v689_v47 = vmax.f32 %v609_v38, 0.0  ;;  %v326_v38 = vld [vmem:[%s7232_s16 + $0xb8] sm:$0xff]  ;;  %984 = vst.msk [vmem:[#allocation3 + $0x18] sm:$0xf] %vm981_vm3, %v2008_v45 }
  0xdc   : > { %520 = vmatmul.bf16.gmra.mxu0 %v376_v23  ;;  %v638_v49 = vmax.f32 %v482_v40, 0.0  ;;  %v674_v54 = vmax.f32 %v572_v43, 0.0  ;;  %1314 = vrot.lane.b32.xlu2 %v1148_v19, %s7096_s17  ;;  %v1100_v39 = vld [vmem:[#allocation2 + $0x2b9] sm:$0xff]  ;;  %v378_v42 = vpack.c.bf16 %v326_v38, %v325_v37 }
  0xdd   : > { %842 = vst.msk [vmem:[#allocation2 + $0x2c1] sm:$0xff] %vm700_vm0, %v689_v47  ;;  %v1049_v35 = vld [vmem:[#allocation2 + $0x21] sm:$0xff]  ;;  %v907_v43 = vld [vmem:[#allocation2 + $0x2b8] sm:$0xff] }
  0xde   : > { %791 = vst.msk [vmem:[#allocation2 + $0x31] sm:$0xff] %vm700_vm0, %v638_v49  ;;  %v3964_v12 = vld [vmem:[#allocation2 + $0x1fa] sm:$0xff]  ;;  %v1164_v49 = vpack.c.bf16 %v1100_v39, %v1100_v39  ;;  %v1498_v2 = vld [vmem:[#allocation2 + $0x22] sm:$0xff] }
  0xdf   : > { %827 = vst.msk [vmem:[#allocation2 + $0x211] sm:$0xff] %vm700_vm0, %v674_v54  ;;  %v7516_v16 = vpack.c.bf16 %v3964_v12, %v3964_v12  ;;  %v892_v52 = vld [vmem:[#allocation2 + $0x200] sm:$0xff]  ;;  %v7561_v12 = vpack.c.bf16 %v1498_v2, %v1498_v2 }
  0xe0   : > { %v611_v51 = vpop.f32.mrf.mxu2  ;;  %1346 = vrot.lane.b32.xlu0 %v1164_v49, %s7096_s17  ;;  %v2585_v62 = vld [vmem:[#allocation2 + $0x1a] sm:$0xff] }
  0xe1   : > { %v483_v29 = vpop.f32.mrf.mxu0  ;;  %v573_v33 = vpop.f32.mrf.mxu1  ;;  %v612_v61 = vadd.f32 %v7458_v24, %v611_v51  ;;  %4092 = vst.msk [vmem:[#allocation3 + $0x1a0] sm:$0xf] %vm981_vm3, %v7516_v16  ;;  %v971_v51 = vpack.c.bf16 %v907_v43, %v907_v43  ;;  %v2649_v10 = vpack.c.bf16 %v2585_v62, %v2585_v62  ;;  %v2394_v31 = vld [vmem:[#allocation2 + $0x21] sm:$0xff] }
  0xe2   : > { %v484_v46 = vadd.f32 %v7458_v24, %v483_v29  ;;  %v574_v48 = vadd.f32 %v7458_v24, %v573_v33  ;;  %v2458_v38 = vpack.c.bf16 %v2394_v31, %v2394_v31 }
  0xe3   : > { %v690_v6 = vmax.f32 %v612_v61, 0.0  ;;  %1036 = vst.msk [vmem:[#allocation3 + $0x288] sm:$0xf] %vm981_vm3, %v971_v51  ;;  %v1085_v61 = vld [vmem:[#allocation2 + $0x201] sm:$0xff] }
  0xe4   : > { %v639_v59 = vmax.f32 %v484_v46, 0.0  ;;  %v675_v63 = vmax.f32 %v574_v48, 0.0  ;;  %v3980_v17 = vld [vmem:[#allocation2 + $0x2ba] sm:$0xff]  ;;  %v3981_v18 = vld [vmem:[#allocation2 + $0x2c2] sm:$0xff]  ;;  %v1113_v46 = vpack.c.bf16 %v1049_v35, %v1049_v35  ;;  %2136 = vrot.lane.b32.xlu2 %v2008_v45, %s7098_s19  ;;  %v1149_v9 = vpack.c.bf16 %v1085_v61, %v1085_v61  ;;  %2522 = vst.msk [vmem:[#allocation3 + $0x10] sm:$0xf] %vm981_vm3, %v2458_v38 }
  0xe5   : > { %843 = vst.msk [vmem:[#allocation2 + $0x2d1] sm:$0xff] %vm700_vm0, %v690_v6  ;;  %v4044_v21 = vpack.c.bf16 %v3980_v17, %v3980_v17  ;;  %v4045_v22 = vpack.c.bf16 %v3981_v18, %v3981_v18  ;;  %v1945_v48 = vld [vmem:[#allocation2 + $0x20] sm:$0xff]  ;;  %v3034_v17 = vld [vmem:[#allocation2 + $0x30] sm:$0xff] }
  0xe6   : > { %792 = vst.msk [vmem:[#allocation2 + $0x39] sm:$0xff] %vm700_vm0, %v639_v59  ;;  %v908_v53 = vld [vmem:[#allocation2 + $0x2c0] sm:$0xff]  ;;  %1244 = vrot.lane.b32.xlu1 %v1113_v46, %s7096_s17  ;;  %v7571_v19 = vpack.c.bf16 %v3034_v17, %v3034_v17  ;;  %v893_v62 = vld [vmem:[#allocation2 + $0x210] sm:$0xff] }
  0xe7   : > { %828 = vst.msk [vmem:[#allocation2 + $0x219] sm:$0xff] %vm700_vm0, %v675_v63 }
  0xe8   : > { %4108 = vst.msk [vmem:[#allocation3 + $0x260] sm:$0xf] %vm981_vm3, %v4044_v21  ;;  %v613_v59 = vpop.f32.mrf.mxu2  ;;  %1316 = vrot.lane.b32.xlu0 %v1149_v9, %s7096_s17  ;;  %v327_v21 = vld [vmem:[%s7232_s16 + $0xc0] sm:$0xff]  ;;  %v1086_v9 = vld [vmem:[#allocation2 + $0x211] sm:$0xff] }
  0xe9   : > { %v486_v50 = vpop.f32.mrf.mxu0  ;;  %v576_v56 = vpop.f32.mrf.mxu1  ;;  %4109 = vst.msk [vmem:[#allocation3 + $0x26c] sm:$0xf] %vm981_vm3, %v4045_v22  ;;  %v614_v1 = vadd.f32 %v7458_v24, %v613_v59  ;;  %v328_v22 = vld [vmem:[%s7232_s16 + $0xc8] sm:$0xff] }
  0xea   : > { %v487_v55 = vadd.f32 %v7458_v24, %v486_v50  ;;  %v577_v60 = vadd.f32 %v7458_v24, %v576_v56  ;;  %986 = vst.msk [vmem:[#allocation3 + $0x30] sm:$0xf] %vm981_vm3, %v7571_v19  ;;  %v1101_v59 = vld [vmem:[#allocation2 + $0x2c1] sm:$0xff] }
  0xeb   : > { %v691_v13 = vmax.f32 %v614_v1, 0.0  ;;  %v1165_v2 = vpack.c.bf16 %v1101_v59, %v1101_v59 }
  0xec   : > { %525 = vmatmul.bf16.gmra.mxu0 %v377_v57  ;;  %v640_v3 = vmax.f32 %v487_v55, 0.0  ;;  %v676_v5 = vmax.f32 %v577_v60, 0.0  ;;  %v7544_v55 = vpack.c.bf16 %v1945_v48, %v1945_v48  ;;  %v956_v57 = vpack.c.bf16 %v892_v52, %v892_v52  ;;  %2777 = vrot.lane.b32.xlu2 %v2649_v10, %s7096_s17  ;;  %v909_v1 = vld [vmem:[#allocation2 + $0x2d0] sm:$0xff] }
  0xed   : > { %v3930_v27 = vld [vmem:[#allocation2 + $0x32] sm:$0xff]  ;;  %v972_v60 = vpack.c.bf16 %v908_v53, %v908_v53  ;;  %844 = vst.msk [vmem:[#allocation2 + $0x2d9] sm:$0xff] %vm700_vm0, %v691_v13 }
  0xee   : > { %793 = vst.msk [vmem:[#allocation2 + $0x49] sm:$0xff] %vm700_vm0, %v640_v3  ;;  %v7525_v28 = vpack.c.bf16 %v3930_v27, %v3930_v27  ;;  %v3966_v29 = vld [vmem:[#allocation2 + $0x212] sm:$0xff]  ;;  %v3967_v30 = vld [vmem:[#allocation2 + $0x21a] sm:$0xff]  ;;  %1693 = vrot.lane.b32.xlu1 %v7561_v12, %s7097_s11 }
  0xef   : > { %829 = vst.msk [vmem:[#allocation2 + $0x229] sm:$0xff] %vm700_vm0, %v676_v5  ;;  %v4030_v32 = vpack.c.bf16 %v3966_v29, %v3966_v29  ;;  %v4031_v33 = vpack.c.bf16 %v3967_v30, %v3967_v30  ;;  %v3035_v18 = vld [vmem:[#allocation2 + $0x38] sm:$0xff]  ;;  %v379_v30 = vpack.c.bf16 %v328_v22, %v327_v21  ;;  %v329_v13 = vld [vmem:[%s7232_s16 + $0xd0] sm:$0xff] }
  0xf0   : > { %4058 = vst.msk [vmem:[#allocation3 + $0x8] sm:$0xf] %vm981_vm3, %v7525_v28  ;;  %1691 = vrot.lane.b32.xlu0 %v2649_v10, %s7097_s11 }
  0xf1   : > { %v488_v11 = vpop.f32.mrf.mxu0  ;;  %v578_v15 = vpop.f32.mrf.mxu1  ;;  %4094 = vst.msk [vmem:[#allocation3 + $0x1b8] sm:$0xf] %vm981_vm3, %v4030_v32 }
  0xf2   : > { %v489_v14 = vadd.f32 %v7458_v24, %v488_v11  ;;  %v579_v25 = vadd.f32 %v7458_v24, %v578_v15  ;;  %4095 = vst.msk [vmem:[#allocation3 + $0x1c4] sm:$0xf] %vm981_vm3, %v4031_v33  ;;  %v1050_v15 = vld [vmem:[#allocation2 + $0x31] sm:$0xff]  ;;  %v1534_v33 = vld [vmem:[#allocation2 + $0x202] sm:$0xff] }
  0xf3   : > { %985 = vst.msk [vmem:[#allocation3 + $0x24] sm:$0xf] %vm981_vm3, %v7544_v55  ;;  %v7579_v32 = vpack.c.bf16 %v1050_v15, %v1050_v15  ;;  %v1598_v39 = vpack.c.bf16 %v1534_v33, %v1534_v33 }
  0xf4   : > { %v641_v23 = vmax.f32 %v489_v14, 0.0  ;;  %v677_v34 = vmax.f32 %v579_v25, 0.0  ;;  %1021 = vst.msk [vmem:[#allocation3 + $0x1d4] sm:$0xf] %vm981_vm3, %v956_v57  ;;  %v894_v14 = vld [vmem:[#allocation2 + $0x218] sm:$0xff]  ;;  %v7575_v25 = vpack.c.bf16 %v3035_v18, %v3035_v18 }
  0xf5   : > { %1037 = vst.msk [vmem:[#allocation3 + $0x294] sm:$0xf] %vm981_vm3, %v972_v60  ;;  %v958_v26 = vpack.c.bf16 %v894_v14, %v894_v14  ;;  %1246 = vrot.lane.b32.xlu2 %v7579_v32, %s7096_s17  ;;  %v3983_v48 = vld [vmem:[#allocation2 + $0x2da] sm:$0xff]  ;;  %v3036_v59 = vld [vmem:[#allocation2 + $0x48] sm:$0xff] }
  0xf6   : > { %794 = vst.msk [vmem:[#allocation2 + $0x51] sm:$0xff] %vm700_vm0, %v641_v23  ;;  %v1500_v23 = vld [vmem:[#allocation2 + $0x3a] sm:$0xff]  ;;  %1765 = vrot.lane.b32.xlu1 %v1598_v39, %s7097_s11  ;;  %v4047_v52 = vpack.c.bf16 %v3983_v48, %v3983_v48 }
  0xf7   : > { %830 = vst.msk [vmem:[#allocation2 + $0x231] sm:$0xff] %vm700_vm0, %v677_v34  ;;  %v330_v14 = vld [vmem:[%s7232_s16 + $0xd8] sm:$0xff] }
  0xf8   : > { %987 = vst.msk [vmem:[#allocation3 + $0x3c] sm:$0xf] %vm981_vm3, %v7575_v25  ;;  %1763 = vrot.lane.b32.xlu0 %v7516_v16, %s7097_s11  ;;  %v380_v21 = vpack.c.bf16 %v330_v14, %v329_v13  ;;  %v910_v31 = vld [vmem:[#allocation2 + $0x2d8] sm:$0xff] }
  0xf9   : > { %v491_v36 = vpop.f32.mrf.mxu0  ;;  %v581_v41 = vpop.f32.mrf.mxu1  ;;  %1023 = vst.msk [vmem:[#allocation3 + $0x1ec] sm:$0xf] %vm981_vm3, %v958_v26 }
  0xfa   : > { %v492_v40 = vadd.f32 %v7458_v24, %v491_v36  ;;  %v582_v44 = vadd.f32 %v7458_v24, %v581_v41  ;;  %v7584_v36 = vpack.c.bf16 %v1500_v23, %v1500_v23  ;;  %v1102_v41 = vld [vmem:[#allocation2 + $0x2d1] sm:$0xff]  ;;  %4111 = vst.msk [vmem:[#allocation3 + $0x284] sm:$0xf] %vm981_vm3, %v4047_v52  ;;  %v1150_v23 = vpack.c.bf16 %v1086_v9, %v1086_v9 }
  0xfc   : > { %v642_v47 = vmax.f32 %v492_v40, 0.0  ;;  %530 = vmatmul.bf16.gmra.mxu0 %v378_v42  ;;  %v678_v50 = vmax.f32 %v582_v44, 0.0  ;;  %4059 = vst.msk [vmem:[#allocation3 + $0x14] sm:$0xf] %vm981_vm3, %v7584_v36 }
  0xfd   : > { %v3932_v54 = vld [vmem:[#allocation2 + $0x4a] sm:$0xff] }
  0xfe   : > { %795 = vst.msk [vmem:[#allocation2 + $0x61] sm:$0xff] %vm700_vm0, %v642_v47  ;;  %v7547_v56 = vpack.c.bf16 %v3932_v54, %v3932_v54  ;;  %v3968_v3 = vld [vmem:[#allocation2 + $0x22a] sm:$0xff]  ;;  %v3969_v4 = vld [vmem:[#allocation2 + $0x232] sm:$0xff]  ;;  %1348 = vrot.lane.b32.xlu1 %v1165_v2, %s7096_s17 }
  0xff   : > { %831 = vst.msk [vmem:[#allocation2 + $0x241] sm:$0xff] %vm700_vm0, %v678_v50  ;;  %v4032_v6 = vpack.c.bf16 %v3968_v3, %v3968_v3  ;;  %v4033_v7 = vpack.c.bf16 %v3969_v4, %v3969_v4  ;;  %v3982_v47 = vld [vmem:[#allocation2 + $0x2d2] sm:$0xff]  ;;  %v616_v50 = vpop.f32.mrf.mxu2  ;;  %v973_v3 = vpack.c.bf16 %v909_v1, %v909_v1 }
 0x100   : > { %4060 = vst.msk [vmem:[#allocation3 + $0x20] sm:$0xf] %vm981_vm3, %v7547_v56  ;;  %v4046_v51 = vpack.c.bf16 %v3982_v47, %v3982_v47  ;;  %v617_v57 = vadd.f32 %v7458_v24, %v616_v50  ;;  %v2396_v4 = vld [vmem:[#allocation2 + $0x39] sm:$0xff]  ;;  %2779 = vrot.lane.b32.xlu0 %v7561_v12, %s7096_s17  ;;  %v3965_v47 = vld [vmem:[#allocation2 + $0x202] sm:$0xff] }
 0x101   : > { %v493_v58 = vpop.f32.mrf.mxu0  ;;  %v583_v0 = vpop.f32.mrf.mxu1  ;;  %4096 = vst.msk [vmem:[#allocation3 + $0x1d0] sm:$0xf] %vm981_vm3, %v4032_v6  ;;  %v957_v6 = vpack.c.bf16 %v893_v62, %v893_v62  ;;  %v332_v62 = vld [vmem:[%s7232_s16 + $0xe8] sm:$0xff] }
 0x102   : > { %v494_v63 = vadd.f32 %v7458_v24, %v493_v58  ;;  %v584_v5 = vadd.f32 %v7458_v24, %v583_v0  ;;  %4097 = vst.msk [vmem:[#allocation3 + $0x1dc] sm:$0xf] %vm981_vm3, %v4033_v7  ;;  %v1166_v58 = vpack.c.bf16 %v1102_v41, %v1102_v41  ;;  %v692_v0 = vmax.f32 %v617_v57, 0.0  ;;  %v1051_v7 = vld [vmem:[#allocation2 + $0x39] sm:$0xff] }
 0x103   : > { %4110 = vst.msk [vmem:[#allocation3 + $0x278] sm:$0xf] %vm981_vm3, %v4046_v51  ;;  %v7621_v22 = vpack.c.bf16 %v1051_v7, %v1051_v7  ;;  %v974_v41 = vpack.c.bf16 %v910_v31, %v910_v31  ;;  %v4029_v51 = vpack.c.bf16 %v3965_v47, %v3965_v47  ;;  %v1103_v47 = vld [vmem:[#allocation2 + $0x2d9] sm:$0xff] }
 0x104   : > { %v643_v8 = vmax.f32 %v494_v63, 0.0  ;;  %v679_v11 = vmax.f32 %v584_v5, 0.0  ;;  %v2395_v5 = vld [vmem:[#allocation2 + $0x31] sm:$0xff]  ;;  %1350 = vrot.lane.b32.xlu2 %v1166_v58, %s7096_s17  ;;  %845 = vst.msk [vmem:[#allocation2 + $0x2e9] sm:$0xff] %vm700_vm0, %v692_v0 }
 0x105   : > { %v2459_v15 = vpack.c.bf16 %v2395_v5, %v2395_v5  ;;  %1038 = vst.msk [vmem:[#allocation3 + $0x2a0] sm:$0xf] %vm981_vm3, %v973_v3  ;;  %v1502_v3 = vld [vmem:[#allocation2 + $0x52] sm:$0xff] }
 0x106   : > { %796 = vst.msk [vmem:[#allocation2 + $0x69] sm:$0xff] %vm700_vm0, %v643_v8  ;;  %v2460_v8 = vpack.c.bf16 %v2396_v4, %v2396_v4  ;;  %1318 = vrot.lane.b32.xlu1 %v1150_v23, %s7096_s17  ;;  %v7659_v5 = vpack.c.bf16 %v1502_v3, %v1502_v3 }
 0x107   : > { %832 = vst.msk [vmem:[#allocation2 + $0x249] sm:$0xff] %vm700_vm0, %v679_v11  ;;  %v618_v11 = vpop.f32.mrf.mxu2 }
 0x108   : > { %1022 = vst.msk [vmem:[#allocation3 + $0x1e0] sm:$0xf] %vm981_vm3, %v957_v6  ;;  %2138 = vrot.lane.b32.xlu0 %v7544_v55, %s7098_s19 }
 0x109   : > { %v496_v20 = vpop.f32.mrf.mxu0  ;;  %v586_v29 = vpop.f32.mrf.mxu1  ;;  %2524 = vst.msk [vmem:[#allocation3 + $0x28] sm:$0xf] %vm981_vm3, %v2460_v8 }
 0x10a   : > { %v497_v27 = vadd.f32 %v7458_v24, %v496_v20  ;;  %v587_v34 = vadd.f32 %v7458_v24, %v586_v29  ;;  %v619_v20 = vadd.f32 %v7458_v24, %v618_v11  ;;  %2523 = vst.msk [vmem:[#allocation3 + $0x1c] sm:$0xf] %vm981_vm3, %v2459_v15 }
 0x10b   : > { %1039 = vst.msk [vmem:[#allocation3 + $0x2ac] sm:$0xf] %vm981_vm3, %v974_v41  ;;  %v854_v41 = vld [vmem:[#allocation2 + $0x8] sm:$0xff] }
 0x10c   : > { %v644_v35 = vmax.f32 %v497_v27, 0.0  ;;  %535 = vmatmul.bf16.gmra.mxu0 %v379_v30  ;;  %v680_v37 = vmax.f32 %v587_v34, 0.0  ;;  %v693_v27 = vmax.f32 %v619_v20, 0.0  ;;  %1248 = vrot.lane.b32.xlu2 %v7621_v22, %s7096_s17  ;;  %4093 = vst.msk [vmem:[#allocation3 + $0x1ac] sm:$0xf] %vm981_vm3, %v4029_v51  ;;  %v3037_v20 = vld [vmem:[#allocation2 + $0x50] sm:$0xff] }
 0x10d   : > { %v3934_v40 = vld [vmem:[#allocation2 + $0x62] sm:$0xff]  ;;  %4061 = vst.msk [vmem:[#allocation3 + $0x2c] sm:$0xf] %vm981_vm3, %v7659_v5 }
 0x10e   : > { %797 = vst.msk [vmem:[#allocation2 + $0x79] sm:$0xff] %vm700_vm0, %v644_v35  ;;  %v7594_v42 = vpack.c.bf16 %v3934_v40, %v3934_v40  ;;  %v3970_v43 = vld [vmem:[#allocation2 + $0x242] sm:$0xff]  ;;  %v3971_v44 = vld [vmem:[#allocation2 + $0x24a] sm:$0xff]  ;;  %3226 = vrot.lane.b32.xlu1 %v7571_v19, %s7097_s11 }
 0x10f   : > { %833 = vst.msk [vmem:[#allocation2 + $0x259] sm:$0xff] %vm700_vm0, %v680_v37  ;;  %v4034_v45 = vpack.c.bf16 %v3970_v43, %v3970_v43  ;;  %v4035_v46 = vpack.c.bf16 %v3971_v44, %v3971_v44  ;;  %v885_v40 = vld [vmem:[#allocation2 + $0x1b0] sm:$0xff]  ;;  %v1087_v43 = vld [vmem:[#allocation2 + $0x219] sm:$0xff] }
 0x110   : > { %4062 = vst.msk [vmem:[#allocation3 + $0x38] sm:$0xf] %vm981_vm3, %v7594_v42  ;;  %v1151_v12 = vpack.c.bf16 %v1087_v43, %v1087_v43  ;;  %3674 = vrot.lane.b32.xlu0 %v7579_v32, %s7098_s19  ;;  %v1239_v32 = vpop.permute.xlu0 %1238  ;;  %v918_v43 = vpack.c.bf16 %v854_v41, %v854_v41  ;;  %v335_v41 = vld [vmem:[%s7232_s16 + $0x100] sm:$0xff] }
 0x111   : > { %v498_v49 = vpop.f32.mrf.mxu0  ;;  %v588_v54 = vpop.f32.mrf.mxu1  ;;  %4098 = vst.msk [vmem:[#allocation3 + $0x1e8] sm:$0xf] %vm981_vm3, %v4034_v45 }
 0x112   : > { %v499_v53 = vadd.f32 %v7458_v24, %v498_v49  ;;  %v589_v60 = vadd.f32 %v7458_v24, %v588_v54  ;;  %4099 = vst.msk [vmem:[#allocation3 + $0x1f4] sm:$0xf] %vm981_vm3, %v4035_v46  ;;  %v949_v46 = vpack.c.bf16 %v885_v40, %v885_v40  ;;  %v1303_v54 = vpop.permute.xlu2 %1302  ;;  %v6842_v40 = vld [vmem:[%s9935_s3 + $0x80] sm:$0xff] }
 0x113   : > { %846 = vst.msk [vmem:[#allocation2 + $0x2f1] sm:$0xff] %vm700_vm0, %v693_v27 }
 0x114   : > { %v645_v61 = vmax.f32 %v499_v53, 0.0  ;;  %v681_v63 = vmax.f32 %v589_v60, 0.0  ;;  %1014 = vst.msk [vmem:[#allocation3 + $0x180] sm:$0xf] %vm981_vm3, %v949_v46  ;;  %1320 = vrot.lane.b32.xlu2 %v1151_v12, %s7096_s17  ;;  %v333_v12 = vld [vmem:[%s7232_s16 + $0xf0] sm:$0xff] }
 0x115   : > { %1463 = vst.msk [vmem:[#allocation3 + $0x180] sm:$0xf] %vm1430_vm4, %v1303_v54 }
 0x116   : > { %798 = vst.msk [vmem:[#allocation2 + $0x81] sm:$0xff] %vm700_vm0, %v645_v61  ;;  %v331_v61 = vld [vmem:[%s7232_s16 + $0xe0] sm:$0xff]  ;;  %2140 = vrot.lane.b32.xlu1 %v7571_v19, %s7098_s19  ;;  %v6843_v19 = vld [vmem:[%s9935_s3 + $0x88] sm:$0xff] }
 0x117   : > { %834 = vst.msk [vmem:[#allocation2 + $0x261] sm:$0xff] %vm700_vm0, %v681_v63  ;;  %v7652_v63 = vpack.c.bf16 %v3036_v59, %v3036_v59  ;;  %v381_v2 = vpack.c.bf16 %v332_v62, %v331_v61  ;;  %6864 = vmatpush.bf16.msra.mxu3 %v6843_v19  ;;  %5318 = vmatpush.bf16.msrb.mxu0 %v6843_v19 }
 0x118   : > { %1697 = vrot.lane.b32.xlu0 %v7584_v36, %s7097_s11  ;;  %983 = vst.msk [vmem:[#allocation3 + $0xc] sm:$0xf] %vm981_vm3, %v918_v43 }
 0x119   : > { %v501_v10 = vpop.f32.mrf.mxu0  ;;  %v591_v18 = vpop.f32.mrf.mxu1  ;;  %988 = vst.msk [vmem:[#allocation3 + $0x48] sm:$0xf] %vm981_vm3, %v7652_v63 }
 0x11a   : > { %v502_v17 = vadd.f32 %v7458_v24, %v501_v10  ;;  %v592_v16 = vadd.f32 %v7458_v24, %v591_v18  ;;  %v3984_v52 = vld [vmem:[#allocation2 + $0x2ea] sm:$0xff]  ;;  %v3985_v53 = vld [vmem:[#allocation2 + $0x2f2] sm:$0xff] }
 0x11b   : > { %v4048_v57 = vpack.c.bf16 %v3984_v52, %v3984_v52  ;;  %v4049_v58 = vpack.c.bf16 %v3985_v53, %v3985_v53  ;;  %v912_v31 = vld [vmem:[#allocation2 + $0x2f0] sm:$0xff]  ;;  %6865 = vmatpush.bf16.msra.mxu3 %v6842_v40  ;;  %5319 = vmatpush.bf16.msrb.mxu0 %v6842_v40 }
 0x11c   : > { %v646_v26 = vmax.f32 %v502_v17, 0.0  ;;  %540 = vmatmul.bf16.gmra.mxu0 %v380_v21  ;;  %v682_v29 = vmax.f32 %v592_v16, 0.0  ;;  %1695 = vrot.lane.b32.xlu2 %v7525_v28, %s7097_s11  ;;  %v853_v17 = vld [vmem:[#allocation2] sm:$0xff] }
 0x11d   : > { %v3936_v30 = vld [vmem:[#allocation2 + $0x7a] sm:$0xff]  ;;  %4112 = vst.msk [vmem:[#allocation3 + $0x290] sm:$0xf] %vm981_vm3, %v4048_v57  ;;  %v917_v21 = vpack.c.bf16 %v853_v17, %v853_v17 }
 0x11e   : > { %799 = vst.msk [vmem:[#allocation2 + $0x91] sm:$0xff] %vm700_vm0, %v646_v26  ;;  %v4000_v33 = vpack.c.bf16 %v3936_v30, %v3936_v30  ;;  %v3972_v34 = vld [vmem:[#allocation2 + $0x25a] sm:$0xff]  ;;  %v3973_v35 = vld [vmem:[#allocation2 + $0x262] sm:$0xff]  ;;  %3676 = vrot.lane.b32.xlu1 %v7621_v22, %s7098_s19 }
 0x11f   : > { %835 = vst.msk [vmem:[#allocation2 + $0x271] sm:$0xff] %vm700_vm0, %v682_v29  ;;  %v4036_v37 = vpack.c.bf16 %v3972_v34, %v3972_v34  ;;  %v4037_v38 = vpack.c.bf16 %v3973_v35, %v3973_v35  ;;  %v7683_v29 = vpack.c.bf16 %v3037_v20, %v3037_v20  ;;  %v2397_v34 = vld [vmem:[#allocation2 + $0x49] sm:$0xff]  ;;  %v976_v35 = vpack.c.bf16 %v912_v31, %v912_v31 }
 0x120   : > { %4064 = vst.msk [vmem:[#allocation3 + $0x50] sm:$0xf] %vm981_vm3, %v4000_v33  ;;  %v911_v33 = vld [vmem:[#allocation2 + $0x2e8] sm:$0xff] }
 0x121   : > { %v503_v39 = vpop.f32.mrf.mxu0  ;;  %4100 = vst.msk [vmem:[#allocation3 + $0x200] sm:$0xf] %vm981_vm3, %v4036_v37  ;;  %v593_v45 = vpop.f32.mrf.mxu1  ;;  %v975_v37 = vpack.c.bf16 %v911_v33, %v911_v33  ;;  %v1088_v31 = vld [vmem:[#allocation2 + $0x229] sm:$0xff] }
 0x122   : > { %v504_v44 = vadd.f32 %v7458_v24, %v503_v39  ;;  %4101 = vst.msk [vmem:[#allocation3 + $0x20c] sm:$0xf] %vm981_vm3, %v4037_v38  ;;  %v594_v48 = vadd.f32 %v7458_v24, %v593_v45  ;;  %v2461_v38 = vpack.c.bf16 %v2397_v34, %v2397_v34  ;;  %v2398_v39 = vld [vmem:[#allocation2 + $0x51] sm:$0xff] }
 0x123   : > { %4113 = vst.msk [vmem:[#allocation3 + $0x29c] sm:$0xf] %vm981_vm3, %v4049_v58  ;;  %v2462_v22 = vpack.c.bf16 %v2398_v39, %v2398_v39  ;;  %v1053_v34 = vld [vmem:[#allocation2 + $0x51] sm:$0xff] }
 0x124   : > { %v647_v49 = vmax.f32 %v504_v44, 0.0  ;;  %v683_v50 = vmax.f32 %v594_v48, 0.0  ;;  %982 = vst.msk [vmem:[#allocation3] sm:$0xf] %vm981_vm3, %v917_v21  ;;  %3228 = vrot.lane.b32.xlu2 %v7575_v25, %s7097_s11  ;;  %v1688_v48 = vpop.permute.xlu1 %1687  ;;  %v3517_v21 = vld [vmem:[#allocation2 + $0x201] sm:$0xff] }
 0x125   : > { %1431 = vst.msk [vmem:[#allocation3] sm:$0xf] %vm1430_vm4, %v1239_v32  ;;  %v7732_v32 = vpop.permute.xlu2 %1689 }
 0x126   : > { %800 = vst.msk [vmem:[#allocation2 + $0x99] sm:$0xff] %vm700_vm0, %v647_v49  ;;  %2781 = vrot.lane.b32.xlu1 %v7525_v28, %s7096_s17 }
 0x127   : > { %836 = vst.msk [vmem:[#allocation2 + $0x279] sm:$0xff] %vm700_vm0, %v683_v50  ;;  %v334_v50 = vld [vmem:[%s7232_s16 + $0xf8] sm:$0xff] }
 0x128   : > { %989 = vst.msk [vmem:[#allocation3 + $0x54] sm:$0xf] %vm981_vm3, %v7683_v29  ;;  %v382_v57 = vpack.c.bf16 %v334_v50, %v333_v12 }
 0x129   : > { %v506_v60 = vpop.f32.mrf.mxu0  ;;  %v596_v1 = vpop.f32.mrf.mxu1  ;;  %1041 = vst.msk [vmem:[#allocation3 + $0x2c4] sm:$0xf] %vm981_vm3, %v976_v35 }
 0x12a   : > { %v507_v0 = vadd.f32 %v7458_v24, %v506_v60  ;;  %v597_v4 = vadd.f32 %v7458_v24, %v596_v1  ;;  %1040 = vst.msk [vmem:[#allocation3 + $0x2b8] sm:$0xf] %vm981_vm3, %v975_v37 }
 0x12b   : > { %2525 = vst.msk [vmem:[#allocation3 + $0x34] sm:$0xf] %vm981_vm3, %v2461_v38 }
 0x12c   : > { %v648_v55 = vmax.f32 %v507_v0, 0.0  ;;  %545 = vmatmul.bf16.gmra.mxu0 %v381_v2  ;;  %v684_v8 = vmax.f32 %v597_v4, 0.0  ;;  %1880 = vst.msk [vmem:[#allocation3] sm:$0xf] %vm1879_vm5, %v1688_v48  ;;  %v1167_v0 = vpack.c.bf16 %v1103_v47, %v1103_v47  ;;  %2783 = vrot.lane.b32.xlu2 %v7584_v36, %s7096_s17  ;;  %v895_v4 = vld [vmem:[#allocation2 + $0x228] sm:$0xff]  ;;  %v7750_v47 = vpack.c.bf16 %v1053_v34, %v1053_v34 }
 0x12d   : > { %v3938_v6 = vld [vmem:[#allocation2 + $0x92] sm:$0xff]  ;;  %v3939_v7 = vld [vmem:[#allocation2 + $0x9a] sm:$0xff]  ;;  %2526 = vst.msk [vmem:[#allocation3 + $0x40] sm:$0xf] %vm981_vm3, %v2462_v22 }
 0x12e   : > { %v4002_v9 = vpack.c.bf16 %v3938_v6, %v3938_v6  ;;  %v4003_v10 = vpack.c.bf16 %v3939_v7, %v3939_v7  ;;  %v3974_v11 = vld [vmem:[#allocation2 + $0x272] sm:$0xff]  ;;  %v3975_v13 = vld [vmem:[#allocation2 + $0x27a] sm:$0xff]  ;;  %801 = vst.msk [vmem:[#allocation2 + $0xa9] sm:$0xff] %vm700_vm0, %v648_v55  ;;  %1352 = vrot.lane.b32.xlu0 %v1167_v0, %s7096_s17  ;;  %v1104_v55 = vld [vmem:[#allocation2 + $0x2e9] sm:$0xff] }
 0x12f   : > { %v4038_v14 = vpack.c.bf16 %v3974_v11, %v3974_v11  ;;  %v4039_v15 = vpack.c.bf16 %v3975_v13, %v3975_v13  ;;  %837 = vst.msk [vmem:[#allocation2 + $0x289] sm:$0xff] %vm700_vm0, %v684_v8  ;;  %v886_v7 = vld [vmem:[#allocation2 + $0x1b8] sm:$0xff]  ;;  %v896_v8 = vld [vmem:[#allocation2 + $0x230] sm:$0xff]  ;;  %v1168_v28 = vpack.c.bf16 %v1104_v55, %v1104_v55  ;;  %v7773_v55 = vld [vmem:[%s9934_s2] ss:$0 sm:$0xff] }
 0x130   : > { %4066 = vst.msk [vmem:[#allocation3 + $0x68] sm:$0xf] %vm981_vm3, %v4002_v9  ;;  %v1052_v9 = vld [vmem:[#allocation2 + $0x49] sm:$0xff]  ;;  %v950_v36 = vpack.c.bf16 %v886_v7, %v886_v7  ;;  %v960_v13 = vpack.c.bf16 %v896_v8, %v896_v8  ;;  %v1089_v0 = vld [vmem:[#allocation2 + $0x231] sm:$0xff] }
 0x131   : > { %4067 = vst.msk [vmem:[#allocation3 + $0x74] sm:$0xf] %vm981_vm3, %v4003_v10  ;;  %v508_v18 = vpop.f32.mrf.mxu0  ;;  %v598_v23 = vpop.f32.mrf.mxu1  ;;  %v959_v10 = vpack.c.bf16 %v895_v4, %v895_v4  ;;  %1354 = vrot.lane.b32.xlu1 %v1168_v28, %s7096_s17  ;;  %v1105_v28 = vld [vmem:[#allocation2 + $0x2f1] sm:$0xff] }
 0x132   : > { %4102 = vst.msk [vmem:[#allocation3 + $0x218] sm:$0xf] %vm981_vm3, %v4038_v14  ;;  %v509_v16 = vadd.f32 %v7458_v24, %v508_v18  ;;  %v599_v26 = vadd.f32 %v7458_v24, %v598_v23  ;;  %v3516_v14 = vld [vmem:[#allocation2 + $0x1f9] sm:$0xff] }
 0x133   : > { %4103 = vst.msk [vmem:[#allocation3 + $0x224] sm:$0xf] %vm981_vm3, %v4039_v15  ;;  %v1116_v15 = vpack.c.bf16 %v1052_v9, %v1052_v9  ;;  %v7727_v23 = vpack.c.bf16 %v3516_v14, %v3516_v14  ;;  %v3532_v9 = vld [vmem:[#allocation2 + $0x2b9] sm:$0xff] }
 0x134   : > { %v649_v27 = vmax.f32 %v509_v16, 0.0  ;;  %v685_v30 = vmax.f32 %v599_v26, 0.0  ;;  %1015 = vst.msk [vmem:[#allocation3 + $0x18c] sm:$0xf] %vm981_vm3, %v950_v36  ;;  %2142 = vrot.lane.b32.xlu2 %v7575_v25, %s7098_s19  ;;  %v3519_v26 = vld [vmem:[#allocation2 + $0x219] sm:$0xff]  ;;  %v7735_v25 = vpack.c.bf16 %v3517_v21, %v3517_v21  ;;  %v1169_v21 = vpack.c.bf16 %v1105_v28, %v1105_v28 }
 0x135   : > { %1024 = vst.msk [vmem:[#allocation3 + $0x1f8] sm:$0xf] %vm981_vm3, %v959_v10  ;;  %v7739_v35 = vpack.c.bf16 %v3519_v26, %v3519_v26  ;;  %v3535_v10 = vld [vmem:[#allocation2 + $0x2d9] sm:$0xff]  ;;  %v6732_v28 = vld [vmem:[#allocation3 + $0x10] sm:$0xf0] }
 0x136   : > { %802 = vst.msk [vmem:[#allocation2 + $0xb1] sm:$0xff] %vm700_vm0, %v649_v27  ;;  %1250 = vrot.lane.b32.xlu0 %v1116_v15, %s7096_s17  ;;  %v621_v27 = vpop.f32.mrf.mxu2  ;;  %v3038_v14 = vld [vmem:[#allocation2 + $0x60] sm:$0xff]  ;;  %v338_v26 = vld [vmem:[%s7232_s16 + $0x118] sm:$0xff] }
 0x137   : > { %838 = vst.msk [vmem:[#allocation2 + $0x291] sm:$0xff] %vm700_vm0, %v685_v30  ;;  %v3518_v30 = vld [vmem:[#allocation2 + $0x211] sm:$0xff]  ;;  %v622_v33 = vadd.f32 %v7458_v24, %v621_v27 }
 0x138   : > { %9971 = vst [vmem:[#allocation11_spill] sm:$0xff] %v7727_v23  ;;  %v7744_v43 = vpack.c.bf16 %v3518_v30, %v3518_v30 }
 0x139   : > { %v6460_v44 = vld [vmem:[#allocation3 + $0x218] sm:$0xf]  ;;  %v511_v49 = vpop.f32.mrf.mxu0  ;;  %v601_v54 = vpop.f32.mrf.mxu1  ;;  %1025 = vst.msk [vmem:[#allocation3 + $0x204] sm:$0xf] %vm981_vm3, %v960_v13  ;;  %v694_v37 = vmax.f32 %v622_v33, 0.0  ;;  %1252 = vrot.lane.b32.xlu1 %v7750_v47, %s7096_s17 }
 0x13a   : > { %v6798_v45 = vld [vmem:[#allocation3 + $0x220] sm:$0xf0]  ;;  %v512_v53 = vadd.f32 %v7458_v24, %v511_v49  ;;  %v602_v62 = vadd.f32 %v7458_v24, %v601_v54  ;;  %9972 = vst [vmem:[#allocation12_spill] sm:$0xff] %v7739_v35  ;;  %v1241_v13 = vpop.permute.xlu0 %1240 }
 0x13b   : > { %v6461_v46 = vor.u32 %v6798_v45, %v6460_v44  ;;  %2557 = vst.msk [vmem:[#allocation3 + $0x1b4] sm:$0xf] %vm981_vm3, %v7727_v23  ;;  %v1152_v44 = vpack.c.bf16 %v1088_v31, %v1088_v31 }
 0x13c   : > { %550 = vmatmul.bf16.gmra.mxu0 %v382_v57  ;;  %v650_v3 = vmax.f32 %v512_v53, 0.0  ;;  %v686_v6 = vmax.f32 %v602_v62, 0.0  ;;  %9973 = vst [vmem:[#allocation13_spill] sm:$0xff] %v7744_v43  ;;  %3678 = vrot.lane.b32.xlu2 %v1116_v15, %s7098_s19 }
 0x13d   : > { %v3940_v51 = vld [vmem:[#allocation2 + $0xaa] sm:$0xff]  ;;  %v3941_v52 = vld [vmem:[#allocation2 + $0xb2] sm:$0xff]  ;;  %6664 = vmatmul.msk.bf16.vlgmr.msra.gmra.mxu3 %vm700_vm0, %v6461_v46  ;;  %2558 = vst.msk [vmem:[#allocation3 + $0x1c0] sm:$0xf] %vm981_vm3, %v7735_v25 }
 0x13e   : > { %v4004_v58 = vpack.c.bf16 %v3940_v51, %v3940_v51  ;;  %v4005_v59 = vpack.c.bf16 %v3941_v52, %v3941_v52  ;;  %v3976_v60 = vld [vmem:[#allocation2 + $0x28a] sm:$0xff]  ;;  %v3977_v61 = vld [vmem:[#allocation2 + $0x292] sm:$0xff]  ;;  %803 = vst.msk [vmem:[#allocation2 + $0xc1] sm:$0xff] %vm700_vm0, %v650_v3  ;;  %1322 = vrot.lane.b32.xlu0 %v1152_v44, %s7096_s17  ;;  %v1315_v51 = vpop.permute.xlu2 %1314  ;;  %v1754_v44 = vpop.permute.xlu1 %1753 }
 0x13f   : > { %v4040_v1 = vpack.c.bf16 %v3976_v60, %v3976_v60  ;;  %v4041_v2 = vpack.c.bf16 %v3977_v61, %v3977_v61  ;;  %839 = vst.msk [vmem:[#allocation2 + $0x2a1] sm:$0xff] %vm700_vm0, %v686_v6  ;;  %v336_v46 = vld [vmem:[%s7232_s16 + $0x108] sm:$0xff]  ;;  %v3521_v3 = vld [vmem:[#allocation2 + $0x231] sm:$0xff] }
 0x140   : > { %4068 = vst.msk [vmem:[#allocation3 + $0x80] sm:$0xf] %vm981_vm3, %v4004_v58  ;;  %v383_v48 = vpack.c.bf16 %v336_v46, %v335_v41  ;;  %v623_v58 = vpop.f32.mrf.mxu2  ;;  %v7780_v8 = vpack.c.bf16 %v3521_v3, %v3521_v3 }
 0x141   : > { %4069 = vst.msk [vmem:[#allocation3 + $0x8c] sm:$0xf] %vm981_vm3, %v4005_v59  ;;  %v513_v11 = vpop.f32.mrf.mxu0  ;;  %v603_v18 = vpop.f32.mrf.mxu1  ;;  %v3520_v59 = vld [vmem:[#allocation2 + $0x229] sm:$0xff]  ;;  %v624_v62 = vadd.f32 %v7458_v24, %v623_v58  ;;  %v3533_v58 = vld [vmem:[#allocation2 + $0x2c1] sm:$0xff] }
 0x142   : > { %4104 = vst.msk [vmem:[#allocation3 + $0x230] sm:$0xf] %vm981_vm3, %v4040_v1  ;;  %v514_v17 = vadd.f32 %v7458_v24, %v513_v11  ;;  %v604_v20 = vadd.f32 %v7458_v24, %v603_v18  ;;  %v7767_v4 = vpack.c.bf16 %v3520_v59, %v3520_v59  ;;  %v7789_v11 = vpack.c.bf16 %v3532_v9, %v3532_v9  ;;  %v337_v18 = vld [vmem:[%s7232_s16 + $0x110] sm:$0xff]  ;;  %v1090_v59 = vld [vmem:[#allocation2 + $0x241] sm:$0xff] }
 0x143   : > { %4105 = vst.msk [vmem:[#allocation3 + $0x23c] sm:$0xf] %vm981_vm3, %v4041_v2  ;;  %v695_v1 = vmax.f32 %v624_v62, 0.0  ;;  %v384_v33 = vpack.c.bf16 %v338_v26, %v337_v18  ;;  %v7844_v3 = vpack.c.bf16 %v3533_v58, %v3533_v58  ;;  %v1055_v58 = vld [vmem:[#allocation2 + $0x69] sm:$0xff] }
 0x144   : > { %v651_v16 = vmax.f32 %v514_v17, 0.0  ;;  %v687_v19 = vmax.f32 %v604_v20, 0.0  ;;  %847 = vst.msk [vmem:[#allocation2 + $0x301] sm:$0xff] %vm700_vm0, %v694_v37  ;;  %1701 = vrot.lane.b32.xlu2 %v7659_v5, %s7097_s11  ;;  %v7795_v20 = vpack.c.bf16 %v3535_v10, %v3535_v10  ;;  %v6831_v10 = vld [vmem:[%s9935_s3 + $0x28] sm:$0xff] }
 0x145   : > { %2560 = vst.msk [vmem:[#allocation3 + $0x1d8] sm:$0xf] %vm981_vm3, %v7739_v35 }
 0x146   : > { %804 = vst.msk [vmem:[#allocation2 + $0xc9] sm:$0xff] %vm700_vm0, %v651_v16  ;;  %3230 = vrot.lane.b32.xlu0 %v7652_v63, %s7097_s11  ;;  %v2137_v36 = vpop.permute.xlu2 %2136  ;;  %v7799_v16 = vpack.c.bf16 %v3038_v14, %v3038_v14 }
 0x147   : > { %840 = vst.msk [vmem:[#allocation2 + $0x2a9] sm:$0xff] %vm700_vm0, %v687_v19 }
 0x148   : > { %2559 = vst.msk [vmem:[#allocation3 + $0x1cc] sm:$0xf] %vm981_vm3, %v7744_v43 }
 0x149   : > { %v516_v38 = vpop.f32.mrf.mxu0  ;;  %v6472_v39 = vld [vmem:[#allocation3 + $0x230] sm:$0xf]  ;;  %1469 = vst.msk [vmem:[#allocation3 + $0x1c8] sm:$0xf] %vm1430_vm4, %v1315_v51  ;;  %v366_v51 = vld [vmem:[%s7232_s16 + $0x1f8] sm:$0xff] }
 0x14a   : > { %v6801_v40 = vld [vmem:[#allocation3 + $0x238] sm:$0xf0]  ;;  %v517_v45 = vadd.f32 %v7458_v24, %v516_v38  ;;  %9974 = vst [vmem:[#allocation14_spill] sm:$0xff] %v7767_v4  ;;  %v1153_v24 = vpack.c.bf16 %v1089_v0, %v1089_v0  ;;  %v1243_v0 = vpop.permute.xlu1 %1242 }
 0x14b   : > { %v6473_v22 = vor.u32 %v6801_v40, %v6472_v39  ;;  %848 = vst.msk [vmem:[#allocation2 + $0x309] sm:$0xff] %vm700_vm0, %v695_v1  ;;  %v6496_v1 = vld [vmem:[#allocation3 + $0x260] sm:$0xf] }
 0x14c   : > { %v652_v49 = vmax.f32 %v517_v45, 0.0  ;;  %555 = vmatmul.bf16.gmra.mxu0 %v383_v48  ;;  %9975 = vst [vmem:[#allocation15_spill] sm:$0xff] %v7780_v8  ;;  %1324 = vrot.lane.b32.xlu1 %v1153_v24, %s7096_s17  ;;  %v6196_v24 = vld [vmem:[#allocation3 + $0x8] sm:$0xf] }
 0x14d   : > { %6665 = vmatmul.msk.bf16.gmra.mxu3 %vm700_vm0, %v6473_v22  ;;  %v3942_v12 = vld [vmem:[#allocation2 + $0xc2] sm:$0xff]  ;;  %v3943_v50 = vld [vmem:[#allocation2 + $0xca] sm:$0xff]  ;;  %2561 = vst.msk [vmem:[#allocation3 + $0x1e4] sm:$0xf] %vm981_vm3, %v7767_v4  ;;  %1356 = vrot.lane.b32.xlu2 %v1169_v21, %s7096_s17  ;;  %v1305_v22 = vpop.permute.xlu0 %1304  ;;  %v6197_v26 = vor.u32 %v6732_v28, %v6196_v24 }
 0x14e   : > { %v4006_v52 = vpack.c.bf16 %v3942_v12, %v3942_v12  ;;  %v4007_v53 = vpack.c.bf16 %v3943_v50, %v3943_v50  ;;  %v3978_v54 = vld [vmem:[#allocation2 + $0x2a2] sm:$0xff]  ;;  %v3979_v57 = vld [vmem:[#allocation2 + $0x2aa] sm:$0xff]  ;;  %805 = vst.msk [vmem:[#allocation2 + $0xd9] sm:$0xff] %vm700_vm0, %v652_v49  ;;  %2144 = vrot.lane.b32.xlu0 %v7652_v63, %s7098_s19  ;;  %v2778_v41 = vpop.permute.xlu2 %2777  ;;  %v6833_v63 = vld [vmem:[%s9935_s3 + $0x38] sm:$0xff] }
 0x14f   : > { %v4042_v60 = vpack.c.bf16 %v3978_v54, %v3978_v54  ;;  %v4043_v61 = vpack.c.bf16 %v3979_v57, %v3979_v57  ;;  %2329 = vst.msk [vmem:[#allocation3] sm:$0xf] %vm2328_vm6, %v2137_v36  ;;  %v365_v50 = vld [vmem:[%s7232_s16 + $0x1f0] sm:$0xff]  ;;  %4974 = vmatpush.bf16.msrb.mxu1 %v6833_v63  ;;  %v626_v36 = vpop.f32.mrf.mxu2  ;;  %v3039_v63 = vld [vmem:[#allocation2 + $0x68] sm:$0xff] }
 0x150   : > { %4070 = vst.msk [vmem:[#allocation3 + $0x98] sm:$0xf] %vm981_vm3, %v4006_v52  ;;  %v1504_v54 = vld [vmem:[#allocation2 + $0x6a] sm:$0xff] }
 0x151   : > { %4071 = vst.msk [vmem:[#allocation3 + $0xa4] sm:$0xf] %vm981_vm3, %v4007_v53  ;;  %v518_v2 = vpop.f32.mrf.mxu0  ;;  %v398_v53 = vpack.c.bf16 %v366_v51, %v365_v50  ;;  %v7841_v62 = vpack.c.bf16 %v1504_v54, %v1504_v54  ;;  %v898_v50 = vld [vmem:[#allocation2 + $0x248] sm:$0xff] }
 0x152   : > { %4106 = vst.msk [vmem:[#allocation3 + $0x248] sm:$0xf] %vm981_vm3, %v4042_v60  ;;  %v519_v6 = vadd.f32 %v7773_v55, %v518_v2  ;;  %v3986_v27 = vld [vmem:[#allocation2 + $0x302] sm:$0xff]  ;;  %v3987_v30 = vld [vmem:[#allocation2 + $0x30a] sm:$0xff] }
 0x153   : > { %4107 = vst.msk [vmem:[#allocation3 + $0x254] sm:$0xf] %vm981_vm3, %v4043_v61  ;;  %v4050_v34 = vpack.c.bf16 %v3986_v27, %v3986_v27  ;;  %v4051_v37 = vpack.c.bf16 %v3987_v30, %v3987_v30  ;;  %630 = vmatmul.bf16.gmra.mxu2 %v398_v53  ;;  %v6832_v61 = vld [vmem:[%s9935_s3 + $0x30] sm:$0xff]  ;;  %v6807_v2 = vld [vmem:[#allocation3 + $0x268] sm:$0xf0] }
 0x154   : > { %v653_v7 = vmax.f32 %v519_v6, 0.0  ;;  %9976 = vst [vmem:[#allocation16_spill] sm:$0xff] %v7789_v11  ;;  %1699 = vrot.lane.b32.xlu1 %v7547_v56, %s7097_s11  ;;  %4975 = vmatpush.bf16.msrb.mxu1 %v6832_v61  ;;  %v914_v54 = vld [vmem:[#allocation2 + $0x308] sm:$0xff]  ;;  %v6810_v61 = vld [vmem:[#allocation3 + $0x280] sm:$0xf0] }
 0x155   : > { %2562 = vst.msk [vmem:[#allocation3 + $0x1f0] sm:$0xf] %vm981_vm3, %v7780_v8  ;;  %v1752_v6 = vpop.permute.xlu0 %1751  ;;  %v6735_v24 = vld [vmem:[#allocation3 + $0x28] sm:$0xf0] }
 0x156   : > { %806 = vst.msk [vmem:[#allocation2 + $0xe1] sm:$0xff] %vm700_vm0, %v653_v7  ;;  %3680 = vrot.lane.b32.xlu0 %v7750_v47, %s7098_s19  ;;  %v1247_v60 = vpop.permute.xlu2 %1246  ;;  %v1154_v47 = vpack.c.bf16 %v1090_v59, %v1090_v59  ;;  %v3536_v7 = vld [vmem:[#allocation2 + $0x2e9] sm:$0xff]  ;;  %v6508_v59 = vld [vmem:[#allocation3 + $0x278] sm:$0xf] }
 0x157   : > { %1432 = vst.msk [vmem:[#allocation3 + $0xc] sm:$0xf] %vm1430_vm4, %v1241_v13  ;;  %v7851_v13 = vpack.c.bf16 %v3536_v7, %v3536_v7  ;;  %v978_v7 = vpack.c.bf16 %v914_v54, %v914_v54  ;;  %v6839_v28 = vld [vmem:[%s9935_s3 + $0x68] sm:$0xff] }
 0x158   : > { %9977 = vst [vmem:[#allocation17_spill] sm:$0xff] %v7795_v20  ;;  %4976 = vmatpush.bf16.msrb.mxu1 %v6831_v10  ;;  %v6509_v10 = vor.u32 %v6810_v61, %v6508_v59  ;;  %v1107_v54 = vld [vmem:[#allocation2 + $0x309] sm:$0xff] }
 0x159   : > { %v521_v15 = vpop.f32.mrf.mxu0  ;;  %v6484_v17 = vld [vmem:[#allocation3 + $0x248] sm:$0xf]  ;;  %1881 = vst.msk [vmem:[#allocation3 + $0xc] sm:$0xf] %vm1879_vm5, %v7732_v32  ;;  %v6836_v61 = vld [vmem:[%s9935_s3 + $0x50] sm:$0xff] }
 0x15a   : > { %v6804_v19 = vld [vmem:[#allocation3 + $0x250] sm:$0xf0]  ;;  %2573 = vst.msk [vmem:[#allocation3 + $0x274] sm:$0xf] %vm981_vm3, %v7789_v11  ;;  %v1054_v32 = vld [vmem:[#allocation2 + $0x61] sm:$0xff]  ;;  %v522_v40 = vadd.f32 %v7773_v55, %v521_v15 }
 0x15b   : > { %v6485_v31 = vor.u32 %v6804_v19, %v6484_v17  ;;  %990 = vst.msk [vmem:[#allocation3 + $0x60] sm:$0xf] %vm981_vm3, %v7799_v16  ;;  %v7817_v46 = vpack.c.bf16 %v1054_v32, %v1054_v32  ;;  %v913_v15 = vld [vmem:[#allocation2 + $0x300] sm:$0xff]  ;;  %v6497_v17 = vor.u32 %v6807_v2, %v6496_v1  ;;  %v627_v19 = vadd.f32 %v7773_v55, %v626_v36 }
 0x15c   : > { %2576 = vst.msk [vmem:[#allocation3 + $0x298] sm:$0xf] %vm981_vm3, %v7795_v20  ;;  %560 = vmatmul.bf16.gmra.mxu0 %v384_v33  ;;  %v654_v49 = vmax.f32 %v522_v40, 0.0  ;;  %3232 = vrot.lane.b32.xlu1 %v7683_v29, %s7097_s11  ;;  %v977_v18 = vpack.c.bf16 %v913_v15, %v913_v15  ;;  %v962_v1 = vpack.c.bf16 %v898_v50, %v898_v50  ;;  %v6520_v50 = vld [vmem:[#allocation3 + $0x290] sm:$0xf] }
 0x15d   : > { %v3944_v38 = vld [vmem:[#allocation2 + $0xda] sm:$0xff]  ;;  %v3945_v39 = vld [vmem:[#allocation2 + $0xe2] sm:$0xff]  ;;  %6666 = vmatmul.msk.bf16.gmra.mxu3 %vm700_vm0, %v6485_v31  ;;  %4114 = vst.msk [vmem:[#allocation3 + $0x2a8] sm:$0xf] %vm981_vm3, %v4050_v34  ;;  %1254 = vrot.lane.b32.xlu2 %v7817_v46, %s7096_s17 }
 0x15e   : > { %2969 = vst.msk [vmem:[#allocation3 + $0x4] sm:$0xf] %vm1430_vm4, %v2778_v41  ;;  %v4008_v45 = vpack.c.bf16 %v3944_v38, %v3944_v38  ;;  %v4009_v48 = vpack.c.bf16 %v3945_v39, %v3945_v39  ;;  %2785 = vrot.lane.b32.xlu0 %v7547_v56, %s7096_s17  ;;  %v1351_v31 = vpop.permute.xlu2 %1350  ;;  %v6830_v34 = vld [vmem:[%s9935_s3 + $0x20] sm:$0xff]  ;;  %v1347_v38 = vpop.permute.xlu0 %1346  ;;  %v696_v39 = vmax.f32 %v627_v19, 0.0 }
 0x15f   : > { %4115 = vst.msk [vmem:[#allocation3 + $0x2b4] sm:$0xf] %vm981_vm3, %v4051_v37  ;;  %v1106_v37 = vld [vmem:[#allocation2 + $0x301] sm:$0xff]  ;;  %4977 = vmatpush.bf16.msrb.mxu1 %v6830_v34 }
 0x160   : > { %1464 = vst.msk [vmem:[#allocation3 + $0x18c] sm:$0xf] %vm1430_vm4, %v1305_v22  ;;  %v1170_v40 = vpack.c.bf16 %v1106_v37, %v1106_v37  ;;  %v897_v22 = vld [vmem:[#allocation2 + $0x240] sm:$0xff]  ;;  %v628_v37 = vpop.f32.mrf.mxu2 }
 0x161   : > { %v523_v12 = vpop.f32.mrf.mxu0  ;;  %1913 = vst.msk [vmem:[#allocation3 + $0x18c] sm:$0xf] %vm1879_vm5, %v1754_v44  ;;  %v6829_v44 = vld [vmem:[%s9935_s3 + $0x18] sm:$0xff] }
 0x162   : > { %v524_v52 = vadd.f32 %v7773_v55, %v523_v12  ;;  %4072 = vst.msk [vmem:[#allocation3 + $0xb0] sm:$0xf] %vm981_vm3, %v4008_v45  ;;  %v6841_v45 = vld [vmem:[%s9935_s3 + $0x78] sm:$0xff] }
 0x163   : > { %4073 = vst.msk [vmem:[#allocation3 + $0xbc] sm:$0xf] %vm981_vm3, %v4009_v48  ;;  %v961_v48 = vpack.c.bf16 %v897_v22, %v897_v22  ;;  %4978 = vmatpush.bf16.msrb.mxu1 %v6829_v44  ;;  %5143 = vmatpush.bf16.msrb.mxu2 %v6841_v45  ;;  %v1506_v45 = vld [vmem:[#allocation2 + $0x82] sm:$0xff] }
 0x164   : > { %v655_v57 = vmax.f32 %v524_v52, 0.0  ;;  %807 = vst.msk [vmem:[#allocation2 + $0xf1] sm:$0xff] %vm700_vm0, %v654_v49  ;;  %2787 = vrot.lane.b32.xlu1 %v7659_v5, %s7096_s17  ;;  %v1245_v5 = vpop.permute.xlu1 %1244  ;;  %v2399_v49 = vld [vmem:[#allocation2 + $0x61] sm:$0xff]  ;;  %v6828_v52 = vld [vmem:[%s9935_s3 + $0x10] sm:$0xff] }
 0x165   : > { %1435 = vst.msk [vmem:[#allocation3 + $0x30] sm:$0xf] %vm1430_vm4, %v1247_v60  ;;  %1326 = vrot.lane.b32.xlu2 %v1154_v47, %s7096_s17  ;;  %v2463_v53 = vpack.c.bf16 %v2399_v49, %v2399_v49  ;;  %v6827_v47 = vld [vmem:[%s9935_s3 + $0x8] sm:$0xff]  ;;  %v3041_v22 = vld [vmem:[#allocation2 + $0x80] sm:$0xff] }
 0x166   : > { %808 = vst.msk [vmem:[#allocation2 + $0xf9] sm:$0xff] %vm700_vm0, %v655_v57  ;;  %1358 = vrot.lane.b32.xlu0 %v1170_v40, %s7096_s17  ;;  %v1249_v51 = vpop.permute.xlu2 %1248  ;;  %v1317_v60 = vpop.permute.xlu0 %1316  ;;  %v629_v40 = vadd.f32 %v7773_v55, %v628_v37  ;;  %v899_v37 = vld [vmem:[#allocation2 + $0x258] sm:$0xff] }
 0x167   : > { %9978 = vst [vmem:[#allocation18_spill] sm:$0xff] %v7844_v3  ;;  %4979 = vmatpush.bf16.msrb.mxu1 %v6828_v52  ;;  %v7951_v52 = vpack.c.bf16 %v1506_v45, %v1506_v45  ;;  %v1057_v45 = vld [vmem:[#allocation2 + $0x81] sm:$0xff] }
 0x168   : > { %1433 = vst.msk [vmem:[#allocation3 + $0x18] sm:$0xf] %vm1430_vm4, %v1243_v0  ;;  %v6208_v0 = vld [vmem:[#allocation3 + $0x20] sm:$0xf]  ;;  %v697_v49 = vmax.f32 %v629_v40, 0.0 }
 0x169   : > { %1912 = vst.msk [vmem:[#allocation3 + $0x180] sm:$0xf] %vm1879_vm5, %v1752_v6  ;;  %v526_v9 = vpop.f32.mrf.mxu0  ;;  %v6840_v6 = vld [vmem:[%s9935_s3 + $0x70] sm:$0xff]  ;;  %v6209_v15 = vor.u32 %v6735_v24, %v6208_v0  ;;  %v900_v24 = vld [vmem:[#allocation2 + $0x260] sm:$0xff] }
 0x16a   : > { %9979 = vst [vmem:[#allocation19_spill] sm:$0xff] %v7851_v13  ;;  %v527_v14 = vadd.f32 %v7773_v55, %v526_v9  ;;  %v1119_v9 = vpack.c.bf16 %v1055_v58, %v1055_v58  ;;  %5144 = vmatpush.bf16.msrb.mxu2 %v6840_v6  ;;  %v7954_v58 = vpack.c.bf16 %v3041_v22, %v3041_v22 }
 0x16b   : > { %4063 = vst.msk [vmem:[#allocation3 + $0x44] sm:$0xf] %vm981_vm3, %v7841_v62  ;;  %4980 = vmatpush.bf16.msrb.mxu1 %v6827_v47  ;;  %v6835_v47 = vld [vmem:[%s9935_s3 + $0x48] sm:$0xff]  ;;  %v963_v22 = vpack.c.bf16 %v899_v37, %v899_v37 }
 0x16c   : > { %2574 = vst.msk [vmem:[#allocation3 + $0x280] sm:$0xf] %vm981_vm3, %v7844_v3  ;;  %v656_v21 = vmax.f32 %v527_v14, 0.0  ;;  %6642 = vmatmul.msk.bf16.vlgmr.msrb.gmra.mxu0 %vm700_vm0, %v6197_v26  ;;  %2146 = vrot.lane.b32.xlu1 %v7683_v29, %s7098_s19  ;;  %v1694_v57 = vpop.permute.xlu1 %1693  ;;  %v7897_v29 = vpack.c.bf16 %v3039_v63, %v3039_v63 }
 0x16d   : > { %2577 = vst.msk [vmem:[#allocation3 + $0x2a4] sm:$0xf] %vm981_vm3, %v7851_v13  ;;  %v3946_v27 = vld [vmem:[#allocation2 + $0xf2] sm:$0xff]  ;;  %v3947_v30 = vld [vmem:[#allocation2 + $0xfa] sm:$0xff]  ;;  %6667 = vmatmul.msk.bf16.gmra.mxu3 %vm700_vm0, %v6497_v17  ;;  %3234 = vrot.lane.b32.xlu2 %v7799_v16, %s7097_s11 }
 0x16e   : > { %1042 = vst.msk [vmem:[#allocation3 + $0x2d0] sm:$0xf] %vm981_vm3, %v977_v18  ;;  %v4010_v33 = vpack.c.bf16 %v3946_v27, %v3946_v27  ;;  %v4011_v32 = vpack.c.bf16 %v3947_v30, %v3947_v30  ;;  %1256 = vrot.lane.b32.xlu0 %v1119_v9, %s7096_s17  ;;  %v1321_v19 = vpop.permute.xlu2 %1320  ;;  %v1091_v30 = vld [vmem:[#allocation2 + $0x249] sm:$0xff]  ;;  %5145 = vmatpush.bf16.msrb.mxu2 %v6839_v28 }
 0x16f   : > { %809 = vst.msk [vmem:[#allocation2 + $0x109] sm:$0xff] %vm700_vm0, %v656_v21  ;;  %v2400_v21 = vld [vmem:[#allocation2 + $0x69] sm:$0xff] }
 0x170   : > { %1487 = vst.msk [vmem:[#allocation3 + $0x2a0] sm:$0xf] %vm1430_vm4, %v1351_v31  ;;  %v2464_v34 = vpack.c.bf16 %v2400_v21, %v2400_v21 }
 0x171   : > { %1434 = vst.msk [vmem:[#allocation3 + $0x24] sm:$0xf] %vm1430_vm4, %v1245_v5  ;;  %v528_v56 = vpop.f32.mrf.mxu0 }
 0x172   : > { %1485 = vst.msk [vmem:[#allocation3 + $0x288] sm:$0xf] %vm1430_vm4, %v1347_v38  ;;  %v529_v41 = vadd.f32 %v7773_v55, %v528_v56  ;;  %v6738_v0 = vld [vmem:[#allocation3 + $0x40] sm:$0xf0] }
 0x173   : > { %4074 = vst.msk [vmem:[#allocation3 + $0xc8] sm:$0xf] %vm981_vm3, %v4010_v33  ;;  %v1692_v33 = vpop.permute.xlu0 %1691 }
 0x174   : > { %4075 = vst.msk [vmem:[#allocation3 + $0xd4] sm:$0xf] %vm981_vm3, %v4011_v32  ;;  %v657_v12 = vmax.f32 %v529_v41, 0.0  ;;  %3682 = vrot.lane.b32.xlu1 %v7817_v46, %s7098_s19  ;;  %v3534_v46 = vld [vmem:[#allocation2 + $0x2d1] sm:$0xff]  ;;  %v1766_v27 = vpop.permute.xlu1 %1765  ;;  %v6838_v32 = vld [vmem:[%s9935_s3 + $0x60] sm:$0xff] }
 0x175   : > { %849 = vst.msk [vmem:[#allocation2 + $0x319] sm:$0xff] %vm700_vm0, %v696_v39  ;;  %2148 = vrot.lane.b32.xlu2 %v7799_v16, %s7098_s19  ;;  %v6826_v16 = vld [vmem:[%s9935_s3] sm:$0xff]  ;;  %v7933_v38 = vpack.c.bf16 %v3534_v46, %v3534_v46  ;;  %v1155_v39 = vpack.c.bf16 %v1091_v30, %v1091_v30  ;;  %5146 = vmatpush.bf16.msrb.mxu2 %v6838_v32  ;;  %v6837_v41 = vld [vmem:[%s9935_s3 + $0x58] sm:$0xff] }
 0x176   : > { %1026 = vst.msk [vmem:[#allocation3 + $0x210] sm:$0xf] %vm981_vm3, %v961_v48  ;;  %4981 = vmatpush.bf16.msrb.mxu1 %v6826_v16  ;;  %v1696_v48 = vpop.permute.xlu2 %1695  ;;  %v2402_v32 = vld [vmem:[#allocation2 + $0x81] sm:$0xff] }
 0x177   : > { %810 = vst.msk [vmem:[#allocation2 + $0x111] sm:$0xff] %vm700_vm0, %v657_v12  ;;  %1328 = vrot.lane.b32.xlu0 %v1155_v39, %s7096_s17  ;;  %v3040_v12 = vld [vmem:[#allocation2 + $0x78] sm:$0xff] }
 0x178   : > { %1436 = vst.msk [vmem:[#allocation3 + $0x3c] sm:$0xf] %vm1430_vm4, %v1249_v51  ;;  %v6813_v51 = vld [vmem:[#allocation3 + $0x298] sm:$0xf0]  ;;  %v7957_v59 = vpack.c.bf16 %v3040_v12, %v3040_v12  ;;  %v6816_v12 = vld [vmem:[#allocation3 + $0x2b0] sm:$0xf0] }
 0x179   : > { %1883 = vst.msk [vmem:[#allocation3 + $0x24] sm:$0xf] %vm1879_vm5, %v1694_v57  ;;  %v531_v2 = vpop.f32.mrf.mxu0  ;;  %5147 = vmatpush.bf16.msrb.mxu2 %v6837_v41  ;;  %v6220_v57 = vld [vmem:[#allocation3 + $0x38] sm:$0xf]  ;;  %v6521_v6 = vor.u32 %v6813_v51, %v6520_v50 }
 0x17a   : > { %1470 = vst.msk [vmem:[#allocation3 + $0x1d4] sm:$0xf] %vm1430_vm4, %v1317_v60  ;;  %v532_v36 = vadd.f32 %v7773_v55, %v531_v2  ;;  %v1171_v2 = vpack.c.bf16 %v1107_v54, %v1107_v54  ;;  %v2401_v41 = vld [vmem:[#allocation2 + $0x79] sm:$0xff] }
 0x17b   : > { %2527 = vst.msk [vmem:[#allocation3 + $0x4c] sm:$0xf] %vm981_vm3, %v2463_v53  ;;  %v1764_v53 = vpop.permute.xlu0 %1763 }
 0x17c   : > { %991 = vst.msk [vmem:[#allocation3 + $0x6c] sm:$0xf] %vm981_vm3, %v7897_v29  ;;  %v658_v14 = vmax.f32 %v532_v36, 0.0  ;;  %6643 = vmatmul.msk.bf16.gmra.mxu0 %vm700_vm0, %v6209_v15  ;;  %1705 = vrot.lane.b32.xlu1 %v7841_v62, %s7097_s11  ;;  %v1349_v63 = vpop.permute.xlu1 %1348  ;;  %v964_v36 = vpack.c.bf16 %v900_v24, %v900_v24 }
 0x17d   : > { %1027 = vst.msk [vmem:[#allocation3 + $0x21c] sm:$0xf] %vm981_vm3, %v962_v1  ;;  %6668 = vmatmul.msk.bf16.gmra.mxu3 %vm700_vm0, %v6509_v10  ;;  %3684 = vrot.lane.b32.xlu2 %v1119_v9, %s7098_s19  ;;  %v6221_v9 = vor.u32 %v6738_v0, %v6220_v57  ;;  %v1108_v10 = vld [vmem:[#allocation2 + $0x319] sm:$0xff]  ;;  %v2465_v57 = vpack.c.bf16 %v2401_v41, %v2401_v41 }
 0x17e   : > { %v3948_v17 = vld [vmem:[#allocation2 + $0x10a] sm:$0xff]  ;;  %v3949_v18 = vld [vmem:[#allocation2 + $0x112] sm:$0xff]  ;;  %1043 = vst.msk [vmem:[#allocation3 + $0x2dc] sm:$0xf] %vm981_vm3, %v978_v7  ;;  %5148 = vmatpush.bf16.msrb.mxu2 %v6836_v61  ;;  %v3229_v15 = vpop.permute.xlu2 %3228 }
 0x17f   : > { %v4012_v26 = vpack.c.bf16 %v3948_v17, %v3948_v17  ;;  %811 = vst.msk [vmem:[#allocation2 + $0x121] sm:$0xff] %vm700_vm0, %v658_v14  ;;  %v4013_v31 = vpack.c.bf16 %v3949_v18, %v3949_v18  ;;  %1703 = vrot.lane.b32.xlu0 %v7594_v42, %s7097_s11  ;;  %v1056_v17 = vld [vmem:[#allocation2 + $0x79] sm:$0xff] }
 0x180   : > { %1472 = vst.msk [vmem:[#allocation3 + $0x1ec] sm:$0xf] %vm1430_vm4, %v1321_v19  ;;  %v7984_v46 = vpack.c.bf16 %v1056_v17, %v1056_v17  ;;  %v3523_v17 = vld [vmem:[#allocation2 + $0x249] sm:$0xff] }
 0x181   : > { %1919 = vst.msk [vmem:[#allocation3 + $0x1d4] sm:$0xf] %vm1879_vm5, %v1766_v27  ;;  %v533_v5 = vpop.f32.mrf.mxu0 }
 0x182   : > { %1882 = vst.msk [vmem:[#allocation3 + $0x18] sm:$0xf] %vm1879_vm5, %v1692_v33  ;;  %v534_v56 = vadd.f32 %v7773_v55, %v533_v5  ;;  %5149 = vmatpush.bf16.msrb.mxu2 %v6835_v47 }
 0x183   : > { %9980 = vst [vmem:[#allocation20_spill] sm:$0xff] %v7933_v38  ;;  %v2780_v19 = vpop.permute.xlu0 %2779 }
 0x184   : > { %4076 = vst.msk [vmem:[#allocation3 + $0xe0] sm:$0xf] %vm981_vm3, %v4012_v26  ;;  %v659_v44 = vmax.f32 %v534_v56, 0.0  ;;  %1360 = vrot.lane.b32.xlu1 %v1171_v2, %s7096_s17  ;;  %v1319_v18 = vpop.permute.xlu1 %1318  ;;  %v1172_v26 = vpack.c.bf16 %v1108_v10, %v1108_v10  ;;  %v1092_v56 = vld [vmem:[#allocation2 + $0x259] sm:$0xff]  ;;  %v1093_v10 = vld [vmem:[#allocation2 + $0x261] sm:$0xff] }
 0x185   : > { %4077 = vst.msk [vmem:[#allocation3 + $0xec] sm:$0xf] %vm981_vm3, %v4013_v31  ;;  %2789 = vrot.lane.b32.xlu2 %v7594_v42, %s7096_s17  ;;  %v6834_v31 = vld [vmem:[%s9935_s3 + $0x40] sm:$0xff]  ;;  %v1156_v50 = vpack.c.bf16 %v1092_v56, %v1092_v56 }
 0x186   : > { %2528 = vst.msk [vmem:[#allocation3 + $0x58] sm:$0xf] %vm981_vm3, %v2464_v34  ;;  %5150 = vmatpush.bf16.msrb.mxu2 %v6834_v31  ;;  %v2784_v39 = vpop.permute.xlu2 %2783  ;;  %v877_v3 = vld [vmem:[#allocation2 + $0x120] sm:$0xff] }
 0x187   : > { %2575 = vst.msk [vmem:[#allocation3 + $0x28c] sm:$0xf] %vm981_vm3, %v7933_v38  ;;  %3236 = vrot.lane.b32.xlu0 %v7897_v29, %s7097_s11 }
 0x188   : > { %812 = vst.msk [vmem:[#allocation2 + $0x129] sm:$0xff] %vm700_vm0, %v659_v44 }
 0x189   : > { %1884 = vst.msk [vmem:[#allocation3 + $0x30] sm:$0xf] %vm1879_vm5, %v1696_v48  ;;  %v536_v60 = vpop.f32.mrf.mxu0 }
 0x18a   : > { %1486 = vst.msk [vmem:[#allocation3 + $0x294] sm:$0xf] %vm1430_vm4, %v1349_v63  ;;  %v537_v1 = vadd.f32 %v7773_v55, %v536_v60  ;;  %v2466_v63 = vpack.c.bf16 %v2402_v32, %v2402_v32  ;;  %v8003_v60 = vpack.c.bf16 %v1057_v45, %v1057_v45  ;;  %v1505_v32 = vld [vmem:[#allocation2 + $0x7a] sm:$0xff] }
 0x18b   : > { %1918 = vst.msk [vmem:[#allocation3 + $0x1c8] sm:$0xf] %vm1879_vm5, %v1764_v53  ;;  %v2139_v48 = vpop.permute.xlu0 %2138  ;;  %v6232_v53 = vld [vmem:[#allocation3 + $0x50] sm:$0xf] }
 0x18c   : > { %850 = vst.msk [vmem:[#allocation2 + $0x321] sm:$0xff] %vm700_vm0, %v697_v49  ;;  %v660_v7 = vmax.f32 %v537_v1, 0.0  ;;  %6644 = vmatmul.msk.bf16.gmra.mxu0 %vm700_vm0, %v6221_v9  ;;  %1258 = vrot.lane.b32.xlu1 %v7984_v46, %s7096_s17  ;;  %v3227_v44 = vpop.permute.xlu1 %3226  ;;  %v6532_v49 = vld [vmem:[#allocation3 + $0x2a8] sm:$0xf]  ;;  %v915_v1 = vld [vmem:[#allocation2 + $0x318] sm:$0xff] }
 0x18d   : > { %4065 = vst.msk [vmem:[#allocation3 + $0x5c] sm:$0xf] %vm981_vm3, %v7951_v52  ;;  %6669 = vmatmul.msk.bf16.gmra.mxu3 %vm700_vm0, %v6521_v6  ;;  %1362 = vrot.lane.b32.xlu2 %v1172_v26, %s7096_s17  ;;  %v6533_v0 = vor.u32 %v6816_v12, %v6532_v49  ;;  %v1157_v26 = vpack.c.bf16 %v1093_v10, %v1093_v10 }
 0x18e   : > { %993 = vst.msk [vmem:[#allocation3 + $0x84] sm:$0xf] %vm981_vm3, %v7954_v58  ;;  %v2143_v24 = vpop.permute.xlu2 %2142 }
 0x18f   : > { %v3950_v28 = vld [vmem:[#allocation2 + $0x122] sm:$0xff]  ;;  %v3951_v14 = vld [vmem:[#allocation2 + $0x12a] sm:$0xff]  ;;  %992 = vst.msk [vmem:[#allocation3 + $0x78] sm:$0xf] %vm981_vm3, %v7957_v59  ;;  %2791 = vrot.lane.b32.xlu0 %v7841_v62, %s7096_s17 }
 0x190   : > { %813 = vst.msk [vmem:[#allocation2 + $0x139] sm:$0xff] %vm700_vm0, %v660_v7  ;;  %v4014_v21 = vpack.c.bf16 %v3950_v28, %v3950_v28  ;;  %v4015_v16 = vpack.c.bf16 %v3951_v14, %v3951_v14  ;;  %v979_v7 = vpack.c.bf16 %v915_v1, %v915_v1 }
 0x191   : > { %1029 = vst.msk [vmem:[#allocation3 + $0x234] sm:$0xf] %vm981_vm3, %v964_v36  ;;  %v538_v30 = vpop.f32.mrf.mxu0  ;;  %v6188_v36 = vld [vmem:[#allocation3] sm:$0xf] }
 0x192   : > { %1471 = vst.msk [vmem:[#allocation3 + $0x1e0] sm:$0xf] %vm1430_vm4, %v1319_v18  ;;  %v539_v5 = vadd.f32 %v7773_v55, %v538_v30  ;;  %v8024_v30 = vpack.c.bf16 %v3523_v17, %v3523_v17 }
 0x193   : > { %2970 = vst.msk [vmem:[#allocation3 + $0x10] sm:$0xf] %vm1430_vm4, %v2780_v19  ;;  %v3988_v42 = vld [vmem:[#allocation2 + $0x31a] sm:$0xff]  ;;  %v3989_v27 = vld [vmem:[#allocation2 + $0x322] sm:$0xff]  ;;  %v3675_v14 = vpop.permute.xlu0 %3674 }
 0x194   : > { %3419 = vst.msk [vmem:[#allocation3 + $0x10] sm:$0xf] %vm1879_vm5, %v3229_v15  ;;  %v4052_v33 = vpack.c.bf16 %v3988_v42, %v3988_v42  ;;  %v4053_v34 = vpack.c.bf16 %v3989_v27, %v3989_v27  ;;  %v661_v40 = vmax.f32 %v539_v5, 0.0  ;;  %v6741_v54 = vld [vmem:[#allocation3 + $0x58] sm:$0xf0]  ;;  %v916_v47 = vld [vmem:[#allocation2 + $0x320] sm:$0xff]  ;;  %1330 = vrot.lane.b32.xlu1 %v1156_v50, %s7096_s17  ;;  %v2141_v9 = vpop.permute.xlu1 %2140 }
 0x195   : > { %4078 = vst.msk [vmem:[#allocation3 + $0xf8] sm:$0xf] %vm981_vm3, %v4014_v21  ;;  %1260 = vrot.lane.b32.xlu2 %v8003_v60, %s7096_s17  ;;  %v6233_v6 = vor.u32 %v6741_v54, %v6232_v53  ;;  %v980_v28 = vpack.c.bf16 %v916_v47, %v916_v47  ;;  %v2404_v47 = vld [vmem:[#allocation2 + $0x99] sm:$0xff] }
 0x196   : > { %4079 = vst.msk [vmem:[#allocation3 + $0x104] sm:$0xf] %vm981_vm3, %v4015_v16  ;;  %v8033_v5 = vpop.permute.xlu2 %3678 }
 0x197   : > { %4116 = vst.msk [vmem:[#allocation3 + $0x2c0] sm:$0xf] %vm981_vm3, %v4052_v33  ;;  %v3524_v33 = vld [vmem:[#allocation2 + $0x259] sm:$0xff]  ;;  %2150 = vrot.lane.b32.xlu0 %v7897_v29, %s7098_s19  ;;  %v8044_v29 = vpack.c.bf16 %v1505_v32, %v1505_v32 }
 0x198   : > { %4117 = vst.msk [vmem:[#allocation3 + $0x2cc] sm:$0xf] %vm981_vm3, %v4053_v34  ;;  %v3522_v34 = vld [vmem:[#allocation2 + $0x241] sm:$0xff] }
 0x199   : > { %2972 = vst.msk [vmem:[#allocation3 + $0x28] sm:$0xf] %vm1430_vm4, %v2784_v39  ;;  %v541_v51 = vpop.f32.mrf.mxu0  ;;  %v8036_v39 = vpack.c.bf16 %v3524_v33, %v3524_v33  ;;  %v3537_v33 = vld [vmem:[#allocation2 + $0x2f1] sm:$0xff]  ;;  %v6256_v32 = vld [vmem:[#allocation3 + $0x80] sm:$0xf] }
 0x19a   : > { %3418 = vst.msk [vmem:[#allocation3 + $0x4] sm:$0xf] %vm1879_vm5, %v3227_v44  ;;  %v542_v61 = vadd.f32 %v7773_v55, %v541_v51  ;;  %v8041_v44 = vpack.c.bf16 %v3522_v34, %v3522_v34 }
 0x19b   : > { %2330 = vst.msk [vmem:[#allocation3 + $0xc] sm:$0xf] %vm2328_vm6, %v2139_v48  ;;  %v1698_v56 = vpop.permute.xlu0 %1697  ;;  %v6744_v48 = vld [vmem:[#allocation3 + $0x70] sm:$0xf0] }
 0x19c   : > { %814 = vst.msk [vmem:[#allocation2 + $0x141] sm:$0xff] %vm700_vm0, %v661_v40  ;;  %v662_v2 = vmax.f32 %v542_v61, 0.0  ;;  %6645 = vmatmul.msk.bf16.gmra.mxu0 %vm700_vm0, %v6233_v6  ;;  %3238 = vrot.lane.b32.xlu1 %v7957_v59, %s7097_s11  ;;  %v3677_v37 = vpop.permute.xlu1 %3676 }
 0x19d   : > { %1028 = vst.msk [vmem:[#allocation3 + $0x228] sm:$0xf] %vm981_vm3, %v963_v22  ;;  %6670 = vmatmul.msk.bf16.gmra.mxu3 %vm700_vm0, %v6533_v0  ;;  %1332 = vrot.lane.b32.xlu2 %v1157_v26, %s7096_s17  ;;  %v6244_v22 = vld [vmem:[#allocation3 + $0x68] sm:$0xf]  ;;  %v3043_v0 = vld [vmem:[#allocation2 + $0x98] sm:$0xff] }
 0x19e   : > { %2530 = vst.msk [vmem:[#allocation3 + $0x70] sm:$0xf] %vm981_vm3, %v2466_v63  ;;  %v6544_v40 = vld [vmem:[#allocation3 + $0x2c0] sm:$0xf]  ;;  %v3042_v63 = vld [vmem:[#allocation2 + $0x90] sm:$0xff]  ;;  %v6245_v51 = vor.u32 %v6744_v48, %v6244_v22  ;;  %v8060_v1 = vpop.permute.xlu2 %1701  ;;  %v8067_v10 = vpack.c.bf16 %v3043_v0, %v3043_v0  ;;  %v8089_v22 = vpack.c.bf16 %v3537_v33, %v3537_v33 }
 0x19f   : > { %2529 = vst.msk [vmem:[#allocation3 + $0x64] sm:$0xf] %vm981_vm3, %v2465_v57  ;;  %v6819_v41 = vld [vmem:[#allocation3 + $0x2c8] sm:$0xf0]  ;;  %v8051_v53 = vpack.c.bf16 %v3042_v63, %v3042_v63  ;;  %3686 = vrot.lane.b32.xlu0 %v7984_v46, %s7098_s19  ;;  %v1508_v33 = vld [vmem:[#allocation2 + $0x9a] sm:$0xff] }
 0x1a0   : > { %815 = vst.msk [vmem:[#allocation2 + $0x151] sm:$0xff] %vm700_vm0, %v662_v2  ;;  %v6545_v12 = vor.u32 %v6819_v41, %v6544_v40 }
 0x1a1   : > { %2332 = vst.msk [vmem:[#allocation3 + $0x24] sm:$0xf] %vm2328_vm6, %v2143_v24  ;;  %v543_v19 = vpop.f32.mrf.mxu0 }
 0x1a2   : > { %2331 = vst.msk [vmem:[#allocation3 + $0x18] sm:$0xf] %vm2328_vm6, %v2141_v9  ;;  %v6731_v15 = vld [vmem:[#allocation3 + $0x8] sm:$0xf0]  ;;  %v544_v27 = vadd.f32 %v7773_v55, %v543_v19  ;;  %v2403_v19 = vld [vmem:[#allocation2 + $0x91] sm:$0xff] }
 0x1a3   : > { %3866 = vst.msk [vmem:[#allocation3 + $0x4] sm:$0xf] %vm2328_vm6, %v3675_v14  ;;  %v6189_v62 = vor.u32 %v6731_v15, %v6188_v36  ;;  %v3952_v18 = vld [vmem:[#allocation2 + $0x13a] sm:$0xff]  ;;  %v3953_v21 = vld [vmem:[#allocation2 + $0x142] sm:$0xff]  ;;  %v1353_v36 = vpop.permute.xlu0 %1352  ;;  %v2468_v14 = vpack.c.bf16 %v2404_v47, %v2404_v47 }
 0x1a4   : > { %v4016_v16 = vpack.c.bf16 %v3952_v18, %v3952_v18  ;;  %v4017_v42 = vpack.c.bf16 %v3953_v21, %v3953_v21  ;;  %1044 = vst.msk [vmem:[#allocation3 + $0x2e8] sm:$0xf] %vm981_vm3, %v979_v7  ;;  %v663_v31 = vmax.f32 %v544_v27, 0.0  ;;  %2152 = vrot.lane.b32.xlu1 %v7957_v59, %s7098_s19  ;;  %v2782_v59 = vpop.permute.xlu1 %2781  ;;  %v902_v21 = vld [vmem:[#allocation2 + $0x278] sm:$0xff] }
 0x1a5   : > { %4982 = vmatmul.bf16.vlgmr.msrb.gmra.mxu1 %v6189_v62  ;;  %1045 = vst.msk [vmem:[#allocation3 + $0x2f4] sm:$0xf] %vm981_vm3, %v980_v28  ;;  %1707 = vrot.lane.b32.xlu2 %v8044_v29, %s7097_s11  ;;  %v901_v62 = vld [vmem:[#allocation2 + $0x270] sm:$0xff] }
 0x1a6   : > { %9981 = vst [vmem:[#allocation21_spill] sm:$0xff] %v8024_v30  ;;  %v965_v18 = vpack.c.bf16 %v901_v62, %v901_v62  ;;  %v6750_v62 = vld [vmem:[#allocation3 + $0xa0] sm:$0xf0] }
 0x1a7   : > { %4080 = vst.msk [vmem:[#allocation3 + $0x110] sm:$0xf] %vm981_vm3, %v4016_v16  ;;  %1709 = vrot.lane.b32.xlu0 %v7951_v52, %s7097_s11  ;;  %v1357_v26 = vpop.permute.xlu2 %1356 }
 0x1a8   : > { %4081 = vst.msk [vmem:[#allocation3 + $0x11c] sm:$0xf] %vm981_vm3, %v4017_v42  ;;  %v6734_v50 = vld [vmem:[#allocation3 + $0x20] sm:$0xf0] }
 0x1a9   : > { %816 = vst.msk [vmem:[#allocation2 + $0x159] sm:$0xff] %vm700_vm0, %v663_v31  ;;  %v546_v45 = vpop.f32.mrf.mxu0  ;;  %v6200_v2 = vld [vmem:[#allocation3 + $0x18] sm:$0xf]  ;;  %v3525_v42 = vld [vmem:[#allocation2 + $0x261] sm:$0xff]  ;;  %v966_v31 = vpack.c.bf16 %v902_v21, %v902_v21 }
 0x1aa   : > { %9982 = vst [vmem:[#allocation22_spill] sm:$0xff] %v8036_v39  ;;  %v547_v49 = vadd.f32 %v7773_v55, %v546_v45  ;;  %v6730_v24 = vld [vmem:[#allocation3 + $0x4] sm:$0xf]  ;;  %v6201_v28 = vor.u32 %v6734_v50, %v6200_v2  ;;  %v8086_v40 = vpack.c.bf16 %v3525_v42, %v3525_v42 }
 0x1ab   : > { %2564 = vst.msk [vmem:[#allocation3 + $0x208] sm:$0xf] %vm981_vm3, %v8024_v30  ;;  %v1251_v34 = vpop.permute.xlu0 %1250  ;;  %v3538_v50 = vld [vmem:[#allocation2 + $0x301] sm:$0xff] }
 0x1ac   : > { %3867 = vst.msk [vmem:[#allocation3 + $0x10] sm:$0xf] %vm2328_vm6, %v3677_v37  ;;  %v664_v61 = vmax.f32 %v547_v49, 0.0  ;;  %6646 = vmatmul.msk.bf16.gmra.mxu0 %vm700_vm0, %v6245_v51  ;;  %3688 = vrot.lane.b32.xlu1 %v8003_v60, %s7098_s19  ;;  %v1355_v27 = vpop.permute.xlu1 %1354  ;;  %v1109_v60 = vld [vmem:[#allocation2 + $0x321] sm:$0xff]  ;;  %v2467_v37 = vpack.c.bf16 %v2403_v19, %v2403_v19  ;;  %v8109_v47 = vpack.c.bf16 %v3538_v50, %v3538_v50 }
 0x1ad   : > { %9983 = vst [vmem:[#allocation23_spill] sm:$0xff] %v8041_v44  ;;  %6671 = vmatmul.msk.bf16.gmra.mxu3 %vm700_vm0, %v6545_v12  ;;  %3240 = vrot.lane.b32.xlu2 %v7954_v58, %s7097_s11  ;;  %v1173_v49 = vpack.c.bf16 %v1109_v60, %v1109_v60  ;;  %v1507_v60 = vld [vmem:[#allocation2 + $0x92] sm:$0xff] }
 0x1ae   : > { %1885 = vst.msk [vmem:[#allocation3 + $0x3c] sm:$0xf] %vm1879_vm5, %v1698_v56  ;;  %v6747_v56 = vld [vmem:[#allocation3 + $0x88] sm:$0xf0] }
 0x1af   : > { %2565 = vst.msk [vmem:[#allocation3 + $0x214] sm:$0xf] %vm981_vm3, %v8036_v39  ;;  %v6257_v45 = vor.u32 %v6747_v56, %v6256_v32  ;;  %1364 = vrot.lane.b32.xlu0 %v1173_v49, %s7096_s17  ;;  %v3540_v56 = vld [vmem:[#allocation2 + $0x319] sm:$0xff] }
 0x1b0   : > { %2563 = vst.msk [vmem:[#allocation3 + $0x1fc] sm:$0xf] %vm981_vm3, %v8041_v44  ;;  %v3954_v54 = vld [vmem:[#allocation2 + $0x152] sm:$0xff]  ;;  %v3955_v57 = vld [vmem:[#allocation2 + $0x15a] sm:$0xff] }
 0x1b1   : > { %v4018_v6 = vpack.c.bf16 %v3954_v54, %v3954_v54  ;;  %994 = vst.msk [vmem:[#allocation3 + $0x90] sm:$0xf] %vm981_vm3, %v8051_v53  ;;  %v4019_v9 = vpack.c.bf16 %v3955_v57, %v3955_v57  ;;  %v548_v15 = vpop.f32.mrf.mxu0  ;;  %v1058_v54 = vld [vmem:[#allocation2 + $0x91] sm:$0xff] }
 0x1b2   : > { %817 = vst.msk [vmem:[#allocation2 + $0x169] sm:$0xff] %vm700_vm0, %v664_v61  ;;  %v549_v17 = vadd.f32 %v7773_v55, %v548_v15 }
 0x1b3   : > { %v6190_v7 = vld [vmem:[#allocation3 + $0xc] sm:$0xf0]  ;;  %2971 = vst.msk [vmem:[#allocation3 + $0x1c] sm:$0xf] %vm1430_vm4, %v2782_v59  ;;  %v1323_v51 = vpop.permute.xlu0 %1322 }
 0x1b4   : > { %v6193_v46 = vor.u32 %v6730_v24, %v6190_v7  ;;  %1488 = vst.msk [vmem:[#allocation3 + $0x2ac] sm:$0xf] %vm1430_vm4, %v1353_v36  ;;  %v665_v16 = vmax.f32 %v549_v17, 0.0  ;;  %2793 = vrot.lane.b32.xlu1 %v8044_v29, %s7096_s17  ;;  %v1253_v63 = vpop.permute.xlu1 %1252  ;;  %v1059_v29 = vld [vmem:[#allocation2 + $0x99] sm:$0xff]  ;;  %v1122_v7 = vpack.c.bf16 %v1058_v54, %v1058_v54  ;;  %v3045_v54 = vld [vmem:[#allocation2 + $0xb0] sm:$0xff] }
 0x1b5   : > { %4082 = vst.msk [vmem:[#allocation3 + $0x128] sm:$0xf] %vm981_vm3, %v4018_v6  ;;  %4987 = vmatmul.bf16.gmra.mxu1 %v6201_v28  ;;  %2795 = vrot.lane.b32.xlu2 %v7951_v52, %s7096_s17  ;;  %v8111_v59 = vpack.c.bf16 %v1059_v29, %v1059_v29  ;;  %v6268_v17 = vld [vmem:[#allocation3 + $0x98] sm:$0xf] }
 0x1b6   : > { %5151 = vmatmul.bf16.vlgmr.msrb.gmra.mxu2 %v6193_v46  ;;  %4083 = vst.msk [vmem:[#allocation3 + $0x134] sm:$0xf] %vm981_vm3, %v4019_v9  ;;  %v6269_v21 = vor.u32 %v6750_v62, %v6268_v17 }
 0x1b7   : > { %995 = vst.msk [vmem:[#allocation3 + $0x9c] sm:$0xf] %vm981_vm3, %v8067_v10  ;;  %v1255_v12 = vpop.permute.xlu2 %1254  ;;  %1262 = vrot.lane.b32.xlu0 %v1122_v7, %s7096_s17 }
 0x1b8   : > { %2532 = vst.msk [vmem:[#allocation3 + $0x88] sm:$0xf] %vm981_vm3, %v2468_v14  ;;  %v1095_v14 = vld [vmem:[#allocation2 + $0x279] sm:$0xff] }
 0x1b9   : > { %1030 = vst.msk [vmem:[#allocation3 + $0x240] sm:$0xf] %vm981_vm3, %v965_v18  ;;  %v551_v41 = vpop.f32.mrf.mxu0  ;;  %v1159_v19 = vpack.c.bf16 %v1095_v14, %v1095_v14  ;;  %v1076_v30 = vld [vmem:[#allocation2 + $0x169] sm:$0xff] }
 0x1ba   : > { %1490 = vst.msk [vmem:[#allocation3 + $0x2c4] sm:$0xf] %vm1430_vm4, %v1357_v26  ;;  %v552_v48 = vadd.f32 %v7773_v55, %v551_v41  ;;  %v8148_v41 = vpack.c.bf16 %v1508_v33, %v1508_v33 }
 0x1bb   : > { %1489 = vst.msk [vmem:[#allocation3 + $0x2b8] sm:$0xf] %vm1430_vm4, %v1355_v27  ;;  %v3231_v28 = vpop.permute.xlu0 %3230 }
 0x1bc   : > { %1437 = vst.msk [vmem:[#allocation3 + $0x48] sm:$0xf] %vm1430_vm4, %v1251_v34  ;;  %6647 = vmatmul.msk.bf16.gmra.mxu0 %vm700_vm0, %v6257_v45  ;;  %v666_v52 = vmax.f32 %v552_v48, 0.0  ;;  %1264 = vrot.lane.b32.xlu1 %v8111_v59, %s7096_s17 }
 0x1bd   : > { %9984 = vst [vmem:[#allocation24_spill] sm:$0xff] %v8086_v40  ;;  %2154 = vrot.lane.b32.xlu2 %v7954_v58, %s7098_s19  ;;  %v1094_v58 = vld [vmem:[#allocation2 + $0x271] sm:$0xff] }
 0x1be   : > { %818 = vst.msk [vmem:[#allocation2 + $0x171] sm:$0xff] %vm700_vm0, %v665_v16  ;;  %v1325_v36 = vpop.permute.xlu1 %1324  ;;  %v1158_v16 = vpack.c.bf16 %v1094_v58, %v1094_v58  ;;  %v904_v58 = vld [vmem:[#allocation2 + $0x290] sm:$0xff] }
 0x1bf   : > { %9985 = vst [vmem:[#allocation25_spill] sm:$0xff] %v8089_v22  ;;  %v1327_v9 = vpop.permute.xlu2 %1326 }
 0x1c0   : > { %1031 = vst.msk [vmem:[#allocation3 + $0x24c] sm:$0xf] %vm981_vm3, %v966_v31  ;;  %1334 = vrot.lane.b32.xlu0 %v1158_v16, %s7096_s17 }
 0x1c1   : > { %2531 = vst.msk [vmem:[#allocation3 + $0x7c] sm:$0xf] %vm981_vm3, %v2467_v37  ;;  %v553_v6 = vpop.f32.mrf.mxu0  ;;  %v3541_v37 = vld [vmem:[#allocation2 + $0x321] sm:$0xff] }
 0x1c2   : > { %2566 = vst.msk [vmem:[#allocation3 + $0x220] sm:$0xf] %vm981_vm3, %v8086_v40  ;;  %v554_v24 = vadd.f32 %v7773_v55, %v553_v6  ;;  %v8146_v32 = vpack.c.bf16 %v3541_v37, %v3541_v37  ;;  %v881_v40 = vld [vmem:[#allocation2 + $0x150] sm:$0xff] }
 0x1c3   : > { %2578 = vst.msk [vmem:[#allocation3 + $0x2b0] sm:$0xf] %vm981_vm3, %v8089_v22  ;;  %v2145_v34 = vpop.permute.xlu0 %2144  ;;  %v6768_v22 = vld [vmem:[#allocation3 + $0x130] sm:$0xf0] }
 0x1c4   : > { %1439 = vst.msk [vmem:[#allocation3 + $0x60] sm:$0xf] %vm1430_vm4, %v1255_v12  ;;  %v667_v46 = vmax.f32 %v554_v24, 0.0  ;;  %1336 = vrot.lane.b32.xlu1 %v1159_v19, %s7096_s17  ;;  %v8152_v12 = vpack.c.bf16 %v3540_v56, %v3540_v56  ;;  %v8175_v24 = vpack.c.bf16 %v3045_v54, %v3045_v54  ;;  %v1096_v19 = vld [vmem:[#allocation2 + $0x289] sm:$0xff]  ;;  %v1097_v54 = vld [vmem:[#allocation2 + $0x291] sm:$0xff] }
 0x1c5   : > { %1438 = vst.msk [vmem:[#allocation3 + $0x54] sm:$0xf] %vm1430_vm4, %v1253_v63  ;;  %v3956_v57 = vld [vmem:[#allocation2 + $0x16a] sm:$0xff]  ;;  %v3957_v61 = vld [vmem:[#allocation2 + $0x172] sm:$0xff]  ;;  %3690 = vrot.lane.b32.xlu2 %v1122_v7, %s7098_s19  ;;  %v8154_v63 = vpack.c.bf16 %v1507_v60, %v1507_v60  ;;  %v1160_v60 = vpack.c.bf16 %v1096_v19, %v1096_v19  ;;  %v1062_v19 = vld [vmem:[#allocation2 + $0xc1] sm:$0xff] }
 0x1c6   : > { %1473 = vst.msk [vmem:[#allocation3 + $0x1f8] sm:$0xf] %vm1430_vm4, %v1323_v51  ;;  %v4020_v0 = vpack.c.bf16 %v3956_v57, %v3956_v57  ;;  %v4021_v2 = vpack.c.bf16 %v3957_v61, %v3957_v61  ;;  %v1700_v31 = vpop.permute.xlu1 %1699  ;;  %v8159_v51 = vld [vmem:[%s9934_s2] ss:$0 sm:$0xff]  ;;  %v1060_v57 = vld [vmem:[#allocation2 + $0xa9] sm:$0xff] }
 0x1c7   : > { %1887 = vst.msk [vmem:[#allocation3 + $0x54] sm:$0xf] %vm1879_vm5, %v8060_v1  ;;  %v3539_v1 = vld [vmem:[#allocation2 + $0x309] sm:$0xff]  ;;  %v8138_v27 = vpop.permute.xlu2 %3234 }
 0x1c8   : > { %9986 = vst [vmem:[#allocation26_spill] sm:$0xff] %v8109_v47  ;;  %v8126_v15 = vpack.c.bf16 %v3539_v1, %v3539_v1  ;;  %v2405_v61 = vld [vmem:[#allocation2 + $0xa9] sm:$0xff]  ;;  %3242 = vrot.lane.b32.xlu0 %v8051_v53, %s7097_s11  ;;  %v8178_v1 = vpack.c.bf16 %v1060_v57, %v1060_v57 }
 0x1c9   : > { %819 = vst.msk [vmem:[#allocation2 + $0x181] sm:$0xff] %vm700_vm0, %v666_v52  ;;  %v556_v18 = vpop.f32.mrf.mxu0 }
 0x1ca   : > { %4084 = vst.msk [vmem:[#allocation3 + $0x140] sm:$0xf] %vm981_vm3, %v4020_v0  ;;  %v557_v26 = vadd.f32 %v7773_v55, %v556_v18  ;;  %v968_v18 = vpack.c.bf16 %v904_v58, %v904_v58  ;;  %v6756_v58 = vld [vmem:[#allocation3 + $0xd0] sm:$0xf0] }
 0x1cb   : > { %4085 = vst.msk [vmem:[#allocation3 + $0x14c] sm:$0xf] %vm981_vm3, %v4021_v2  ;;  %v3681_v7 = vpop.permute.xlu0 %3680 }
 0x1cc   : > { %2579 = vst.msk [vmem:[#allocation3 + $0x2bc] sm:$0xf] %vm981_vm3, %v8109_v47  ;;  %v668_v42 = vmax.f32 %v557_v26, 0.0  ;;  %6648 = vmatmul.msk.bf16.gmra.mxu0 %vm700_vm0, %v6269_v21  ;;  %1711 = vrot.lane.b32.xlu1 %v8154_v63, %s7097_s11 }
 0x1cd   : > { %1475 = vst.msk [vmem:[#allocation3 + $0x210] sm:$0xf] %vm1430_vm4, %v1327_v9  ;;  %1713 = vrot.lane.b32.xlu2 %v8148_v41, %s7097_s11  ;;  %v2469_v9 = vpack.c.bf16 %v2405_v61, %v2405_v61  ;;  %v2406_v61 = vld [vmem:[#allocation2 + $0xb1] sm:$0xff] }
 0x1ce   : > { %1474 = vst.msk [vmem:[#allocation3 + $0x204] sm:$0xf] %vm1430_vm4, %v1325_v36  ;;  %v3233_v6 = vpop.permute.xlu1 %3232  ;;  %v6280_v36 = vld [vmem:[#allocation3 + $0xb0] sm:$0xf] }
 0x1cf   : > { %9987 = vst [vmem:[#allocation27_spill] sm:$0xff] %v8126_v15  ;;  %v2149_v0 = vpop.permute.xlu2 %2148 }
 0x1d0   : > { %3420 = vst.msk [vmem:[#allocation3 + $0x1c] sm:$0xf] %vm1879_vm5, %v3231_v28  ;;  %v903_v28 = vld [vmem:[#allocation2 + $0x288] sm:$0xff]  ;;  %3692 = vrot.lane.b32.xlu0 %v8111_v59, %s7098_s19 }
 0x1d1   : > { %3868 = vst.msk [vmem:[#allocation3 + $0x1c] sm:$0xf] %vm2328_vm6, %v8033_v5  ;;  %v3044_v5 = vld [vmem:[#allocation2 + $0xa8] sm:$0xff]  ;;  %v558_v49 = vpop.f32.mrf.mxu0  ;;  %v967_v62 = vpack.c.bf16 %v903_v28, %v903_v28 }
 0x1d2   : > { %820 = vst.msk [vmem:[#allocation2 + $0x189] sm:$0xff] %vm700_vm0, %v667_v46  ;;  %v8142_v55 = vpack.c.bf16 %v3044_v5, %v3044_v5  ;;  %v559_v29 = vadd.f32 %v8159_v51, %v558_v49  ;;  %v6753_v46 = vld [vmem:[#allocation3 + $0xb8] sm:$0xf0]  ;;  %v6292_v28 = vld [vmem:[#allocation3 + $0xc8] sm:$0xf] }
 0x1d3   : > { %2580 = vst.msk [vmem:[#allocation3 + $0x2c8] sm:$0xf] %vm981_vm3, %v8126_v15  ;;  %v6281_v17 = vor.u32 %v6753_v46, %v6280_v36  ;;  %v2470_v36 = vpack.c.bf16 %v2406_v61, %v2406_v61  ;;  %v1068_v15 = vld [vmem:[#allocation2 + $0x109] sm:$0xff] }
 0x1d4   : > { %821 = vst.msk [vmem:[#allocation2 + $0x1c9] sm:$0xff] %vm700_vm0, %v668_v42  ;;  %v669_v2 = vmax.f32 %v559_v29, 0.0  ;;  %3244 = vrot.lane.b32.xlu1 %v8067_v10, %s7097_s11  ;;  %v1061_v42 = vld [vmem:[#allocation2 + $0xb1] sm:$0xff] }
 0x1d5   : > { %1886 = vst.msk [vmem:[#allocation3 + $0x48] sm:$0xf] %vm1879_vm5, %v1700_v31  ;;  %1266 = vrot.lane.b32.xlu2 %v8178_v1, %s7096_s17  ;;  %v2786_v31 = vpop.permute.xlu0 %2785  ;;  %v8201_v59 = vpack.c.bf16 %v1061_v42, %v1061_v42 }
 0x1d6   : > { %2333 = vst.msk [vmem:[#allocation3 + $0x30] sm:$0xf] %vm2328_vm6, %v2145_v34  ;;  %v2788_v16 = vpop.permute.xlu1 %2787  ;;  %v631_v57 = vpop.f32.mrf.mxu2 }
 0x1d7   : > { %9988 = vst [vmem:[#allocation28_spill] sm:$0xff] %v8146_v32  ;;  %v8193_v26 = vpop.permute.xlu2 %3684 }
 0x1d8   : > { %996 = vst.msk [vmem:[#allocation3 + $0xa8] sm:$0xf] %vm981_vm3, %v8142_v55  ;;  %v6733_v33 = vld [vmem:[#allocation3 + $0x1c] sm:$0xf]  ;;  %1268 = vrot.lane.b32.xlu0 %v8201_v59, %s7096_s17 }
 0x1d9   : > { %v3958_v45 = vld [vmem:[#allocation2 + $0x182] sm:$0xff]  ;;  %v3959_v48 = vld [vmem:[#allocation2 + $0x18a] sm:$0xff]  ;;  %9989 = vst [vmem:[#allocation29_spill] sm:$0xff] %v8152_v12  ;;  %v561_v14 = vpop.f32.mrf.mxu0 }
 0x1da   : > { %v4022_v52 = vpack.c.bf16 %v3958_v45, %v3958_v45  ;;  %v4023_v50 = vpack.c.bf16 %v3959_v48, %v3959_v48  ;;  %2582 = vst.msk [vmem:[#allocation3 + $0x2e0] sm:$0xf] %vm981_vm3, %v8146_v32  ;;  %v562_v21 = vadd.f32 %v8159_v51, %v561_v14  ;;  %v3047_v45 = vld [vmem:[#allocation2 + $0xc8] sm:$0xff]  ;;  %v6293_v14 = vor.u32 %v6756_v58, %v6292_v28 }
 0x1db   : > { %2581 = vst.msk [vmem:[#allocation3 + $0x2d4] sm:$0xf] %vm981_vm3, %v8152_v12  ;;  %v8206_v49 = vpack.c.bf16 %v3047_v45, %v3047_v45  ;;  %v2407_v28 = vld [vmem:[#allocation2 + $0xc1] sm:$0xff]  ;;  %v2413_v12 = vld [vmem:[#allocation2 + $0x109] sm:$0xff] }
 0x1dc   : > { %4086 = vst.msk [vmem:[#allocation3 + $0x158] sm:$0xf] %vm981_vm3, %v4022_v52  ;;  %6649 = vmatmul.msk.bf16.gmra.mxu0 %vm700_vm0, %v6281_v17  ;;  %v670_v5 = vmax.f32 %v562_v21, 0.0  ;;  %2799 = vrot.lane.b32.xlu1 %v8148_v41, %s7096_s17  ;;  %v632_v41 = vadd.f32 %v8159_v51, %v631_v57  ;;  %v906_v17 = vld [vmem:[#allocation2 + $0x2a8] sm:$0xff] }
 0x1dd   : > { %4087 = vst.msk [vmem:[#allocation3 + $0x164] sm:$0xf] %vm981_vm3, %v4023_v50  ;;  %1338 = vrot.lane.b32.xlu2 %v1160_v60, %s7096_s17  ;;  %v3046_v50 = vld [vmem:[#allocation2 + $0xc0] sm:$0xff] }
 0x1de   : > { %2335 = vst.msk [vmem:[#allocation3 + $0x48] sm:$0xf] %vm2328_vm6, %v2149_v0  ;;  %v2147_v29 = vpop.permute.xlu1 %2146  ;;  %v1359_v0 = vpop.permute.xlu0 %1358 }
 0x1df   : > { %3421 = vst.msk [vmem:[#allocation3 + $0x28] sm:$0xf] %vm1879_vm5, %v3233_v6  ;;  %v8218_v6 = vpack.c.bf16 %v3046_v50, %v3046_v50 }
 0x1e0   : > { %3869 = vst.msk [vmem:[#allocation3 + $0x28] sm:$0xf] %vm2328_vm6, %v3681_v7  ;;  %v1161_v7 = vpack.c.bf16 %v1097_v54, %v1097_v54 }
 0x1e1   : > { %822 = vst.msk [vmem:[#allocation2 + $0x1d1] sm:$0xff] %vm700_vm0, %v669_v2  ;;  %v563_v56 = vpop.f32.mrf.mxu0  ;;  %v1510_v2 = vld [vmem:[#allocation2 + $0xb2] sm:$0xff] }
 0x1e2   : > { %997 = vst.msk [vmem:[#allocation3 + $0xb4] sm:$0xf] %vm981_vm3, %v8175_v24  ;;  %v564_v48 = vadd.f32 %v8159_v51, %v563_v56  ;;  %v8221_v46 = vpack.c.bf16 %v1510_v2, %v1510_v2  ;;  %1340 = vrot.lane.b32.xlu0 %v1161_v7, %s7096_s17  ;;  %v1099_v2 = vld [vmem:[#allocation2 + $0x2a9] sm:$0xff] }
 0x1e3   : > { %2533 = vst.msk [vmem:[#allocation3 + $0x94] sm:$0xf] %vm981_vm3, %v2469_v9  ;;  %v698_v9 = vmax.f32 %v632_v41, 0.0  ;;  %v2408_v41 = vld [vmem:[#allocation2 + $0xc9] sm:$0xff] }
 0x1e4   : > { %1032 = vst.msk [vmem:[#allocation3 + $0x258] sm:$0xf] %vm981_vm3, %v967_v62  ;;  %v671_v52 = vmax.f32 %v564_v48, 0.0  ;;  %v905_v62 = vld [vmem:[#allocation2 + $0x2a0] sm:$0xff]  ;;  %1717 = vrot.lane.b32.xlu1 %v8221_v46, %s7097_s11  ;;  %v1509_v48 = vld [vmem:[#allocation2 + $0xaa] sm:$0xff] }
 0x1e5   : > { %1033 = vst.msk [vmem:[#allocation3 + $0x264] sm:$0xf] %vm981_vm3, %v968_v18  ;;  %3246 = vrot.lane.b32.xlu2 %v8142_v55, %s7097_s11  ;;  %v1063_v18 = vld [vmem:[#allocation2 + $0xc9] sm:$0xff]  ;;  %v8243_v61 = vpack.c.bf16 %v1509_v48, %v1509_v48 }
 0x1e6   : > { %2974 = vst.msk [vmem:[#allocation3 + $0x40] sm:$0xf] %vm1430_vm4, %v2788_v16  ;;  %v970_v16 = vpack.c.bf16 %v906_v17, %v906_v17  ;;  %v3683_v42 = vpop.permute.xlu1 %3682  ;;  %v1257_v60 = vpop.permute.xlu0 %1256  ;;  %v8235_v56 = vpack.c.bf16 %v1063_v18, %v1063_v18  ;;  %v3526_v17 = vld [vmem:[#allocation2 + $0x271] sm:$0xff]  ;;  %v1163_v18 = vpack.c.bf16 %v1099_v2, %v1099_v2 }
 0x1e7   : > { %v6202_v34 = vld [vmem:[#allocation3 + $0x24] sm:$0xf0]  ;;  %2973 = vst.msk [vmem:[#allocation3 + $0x34] sm:$0xf] %vm1430_vm4, %v2786_v31  ;;  %v873_v2 = vld [vmem:[#allocation2 + $0xf0] sm:$0xff] }
 0x1e8   : > { %v6205_v37 = vor.u32 %v6733_v33, %v6202_v34  ;;  %3422 = vst.msk [vmem:[#allocation3 + $0x34] sm:$0xf] %vm1879_vm5, %v8138_v27  ;;  %v2790_v27 = vpop.permute.xlu2 %2789  ;;  %v633_v33 = vpop.f32.mrf.mxu2  ;;  %v969_v34 = vpack.c.bf16 %v905_v62, %v905_v62 }
 0x1e9   : > { %823 = vst.msk [vmem:[#allocation2 + $0x1e1] sm:$0xff] %vm700_vm0, %v670_v5  ;;  %v6212_v5 = vld [vmem:[#allocation3 + $0x30] sm:$0xf]  ;;  %v634_v45 = vadd.f32 %v8159_v51, %v633_v33  ;;  %v3049_v51 = vld [vmem:[#allocation2 + $0xe0] sm:$0xff]  ;;  %v8263_v33 = vpack.c.bf16 %v3526_v17, %v3526_v17 }
 0x1ea   : > { %5156 = vmatmul.bf16.gmra.mxu2 %v6205_v37  ;;  %999 = vst.msk [vmem:[#allocation3 + $0xcc] sm:$0xf] %vm981_vm3, %v8206_v49  ;;  %1715 = vrot.lane.b32.xlu0 %v8243_v61, %s7097_s11 }
 0x1eb   : > { %2975 = vst.msk [vmem:[#allocation3 + $0x4c] sm:$0xf] %vm1430_vm4, %v2790_v27  ;;  %v8239_v27 = vpack.c.bf16 %v1062_v19, %v1062_v19  ;;  %v699_v57 = vmax.f32 %v634_v45, 0.0 }
 0x1ec   : > { %2334 = vst.msk [vmem:[#allocation3 + $0x3c] sm:$0xf] %vm2328_vm6, %v2147_v29  ;;  %6650 = vmatmul.msk.bf16.gmra.mxu0 %vm700_vm0, %v6293_v14  ;;  %v8257_v14 = vpack.c.bf16 %v3049_v51, %v3049_v51 }
 0x1ed   : > { %1491 = vst.msk [vmem:[#allocation3 + $0x2d0] sm:$0xf] %vm1430_vm4, %v1359_v0  ;;  %1272 = vrot.lane.b32.xlu2 %v8235_v56, %s7096_s17  ;;  %v3048_v0 = vld [vmem:[#allocation2 + $0xd8] sm:$0xff]  ;;  %1270 = vrot.lane.b32.xlu1 %v8239_v27, %s7096_s17 }
 0x1ee   : > { %824 = vst.msk [vmem:[#allocation2 + $0x1e9] sm:$0xff] %vm700_vm0, %v671_v52  ;;  %v1706_v58 = vpop.permute.xlu1 %1705  ;;  %v1329_v62 = vpop.permute.xlu0 %1328 }
 0x1ef   : > { %851 = vst.msk [vmem:[#allocation2 + $0x331] sm:$0xff] %vm700_vm0, %v698_v9  ;;  %v1098_v9 = vld [vmem:[#allocation2 + $0x2a1] sm:$0xff] }
 0x1f0   : > { %998 = vst.msk [vmem:[#allocation3 + $0xc0] sm:$0xf] %vm981_vm3, %v8218_v6  ;;  %v1363_v21 = vpop.permute.xlu2 %1362  ;;  %v1162_v19 = vpack.c.bf16 %v1098_v9, %v1098_v9  ;;  %v874_v9 = vld [vmem:[#allocation2 + $0xf8] sm:$0xff] }
 0x1f1   : > { %2534 = vst.msk [vmem:[#allocation3 + $0xa0] sm:$0xf] %vm981_vm3, %v2470_v36  ;;  %v8254_v36 = vpack.c.bf16 %v3048_v0, %v3048_v0  ;;  %v8284_v0 = vpop.f32.mrf.mxu3 }
 0x1f2   : > { %1493 = vst.msk [vmem:[#allocation3 + $0x2e8] sm:$0xf] %vm1430_vm4, %v1363_v21  ;;  %v2472_v21 = vpack.c.bf16 %v2408_v41, %v2408_v41  ;;  %2797 = vrot.lane.b32.xlu0 %v8154_v63, %s7096_s17  ;;  %v1512_v63 = vld [vmem:[#allocation2 + $0xca] sm:$0xff] }
 0x1f3   : > { %v6737_v31 = vld [vmem:[#allocation3 + $0x38] sm:$0xf0]  ;;  %3870 = vst.msk [vmem:[#allocation3 + $0x34] sm:$0xf] %vm2328_vm6, %v3683_v42  ;;  %v6759_v42 = vld [vmem:[#allocation3 + $0xe8] sm:$0xf0]  ;;  %v8287_v41 = vpack.c.bf16 %v1512_v63, %v1512_v63 }
 0x1f4   : > { %v6213_v37 = vor.u32 %v6737_v31, %v6212_v5  ;;  %1440 = vst.msk [vmem:[#allocation3 + $0x6c] sm:$0xf] %vm1430_vm4, %v1257_v60  ;;  %v2471_v5 = vpack.c.bf16 %v2407_v28, %v2407_v28  ;;  %v8297_v28 = vpack.c.bf16 %v874_v9, %v874_v9  ;;  %v1514_v63 = vld [vmem:[#allocation2 + $0xe2] sm:$0xff]  ;;  %v1513_v9 = vld [vmem:[#allocation2 + $0xda] sm:$0xff] }
 0x1f5   : > { %v3962_v52 = vld [vmem:[#allocation2 + $0x1e2] sm:$0xff]  ;;  %v3963_v50 = vld [vmem:[#allocation2 + $0x1ea] sm:$0xff]  ;;  %1035 = vst.msk [vmem:[#allocation3 + $0x27c] sm:$0xf] %vm981_vm3, %v970_v16  ;;  %1344 = vrot.lane.b32.xlu2 %v1163_v18, %s7096_s17  ;;  %1342 = vrot.lane.b32.xlu1 %v1162_v19, %s7096_s17  ;;  %v8305_v19 = vpop.f32.mrf.mxu0 }
 0x1f6   : > { %4992 = vmatmul.bf16.gmra.mxu1 %v6213_v37  ;;  %v4026_v29 = vpack.c.bf16 %v3962_v52, %v3962_v52  ;;  %v4027_v54 = vpack.c.bf16 %v3963_v50, %v3963_v50  ;;  %1034 = vst.msk [vmem:[#allocation3 + $0x270] sm:$0xf] %vm981_vm3, %v969_v34  ;;  %v6304_v16 = vld [vmem:[#allocation3 + $0xe0] sm:$0xf]  ;;  %v1361_v52 = vpop.permute.xlu1 %1360 }
 0x1f7   : > { %852 = vst.msk [vmem:[#allocation2 + $0x339] sm:$0xff] %vm700_vm0, %v699_v57  ;;  %v6305_v31 = vor.u32 %v6759_v42, %v6304_v16  ;;  %v3527_v37 = vld [vmem:[#allocation2 + $0x279] sm:$0xff]  ;;  %v1511_v50 = vld [vmem:[#allocation2 + $0xc2] sm:$0xff] }
 0x1f8   : > { %4090 = vst.msk [vmem:[#allocation3 + $0x188] sm:$0xf] %vm981_vm3, %v4026_v29  ;;  %v1261_v7 = vpop.permute.xlu2 %1260  ;;  %v8278_v57 = vpack.c.bf16 %v3527_v37, %v3527_v37  ;;  %v8281_v51 = vpack.c.bf16 %v1511_v50, %v1511_v50  ;;  %v1065_v16 = vld [vmem:[#allocation2 + $0xe1] sm:$0xff] }
 0x1f9   : > { %4091 = vst.msk [vmem:[#allocation3 + $0x194] sm:$0xf] %vm981_vm3, %v4027_v54  ;;  %v1704_v54 = vpop.permute.xlu0 %1703  ;;  %v6762_v37 = vld [vmem:[#allocation3 + $0x100] sm:$0xf0] }
 0x1fa   : > { %1442 = vst.msk [vmem:[#allocation3 + $0x84] sm:$0xf] %vm1430_vm4, %v1261_v7  ;;  %v8291_v7 = vpack.c.bf16 %v873_v2, %v873_v2  ;;  %1721 = vrot.lane.b32.xlu0 %v8287_v41, %s7097_s11 }
 0x1fb   : > { %1889 = vst.msk [vmem:[#allocation3 + $0x6c] sm:$0xf] %vm1879_vm5, %v1706_v58  ;;  %v2409_v58 = vld [vmem:[#allocation2 + $0xd9] sm:$0xff] }
 0x1fc   : > { %1476 = vst.msk [vmem:[#allocation3 + $0x21c] sm:$0xf] %vm1430_vm4, %v1329_v62  ;;  %6651 = vmatmul.msk.bf16.gmra.mxu0 %vm700_vm0, %v6305_v31  ;;  %v2410_v62 = vld [vmem:[#allocation2 + $0xe1] sm:$0xff]  ;;  %v2473_v42 = vpack.c.bf16 %v2409_v58, %v2409_v58  ;;  %v6316_v31 = vld [vmem:[#allocation3 + $0xf8] sm:$0xf] }
 0x1fd   : > { %1000 = vst.msk [vmem:[#allocation3 + $0xd8] sm:$0xf] %vm981_vm3, %v8254_v36  ;;  %1719 = vrot.lane.b32.xlu2 %v8281_v51, %s7097_s11  ;;  %3694 = vrot.lane.b32.xlu1 %v8178_v1, %s7098_s19  ;;  %v1064_v1 = vld [vmem:[#allocation2 + $0xd9] sm:$0xff] }
 0x1fe   : > { %9990 = vst [vmem:[#allocation30_spill] sm:$0xff] %v8263_v33  ;;  %v3990_v34 = vld [vmem:[#allocation2 + $0x332] sm:$0xff]  ;;  %v3991_v60 = vld [vmem:[#allocation2 + $0x33a] sm:$0xff]  ;;  %v1259_v18 = vpop.permute.xlu1 %1258  ;;  %v8314_v50 = vpack.c.bf16 %v1064_v1, %v1064_v1  ;;  %v8334_v1 = vpop.f32.mrf.mxu0 }
 0x1ff   : > { %1001 = vst.msk [vmem:[#allocation3 + $0xe4] sm:$0xf] %vm981_vm3, %v8257_v14  ;;  %v4054_v48 = vpack.c.bf16 %v3990_v34, %v3990_v34  ;;  %v4055_v29 = vpack.c.bf16 %v3991_v60, %v3991_v60  ;;  %v2474_v34 = vpack.c.bf16 %v2410_v62, %v2410_v62  ;;  %v6736_v62 = vld [vmem:[#allocation3 + $0x34] sm:$0xf] }
 0x200   : > { %2536 = vst.msk [vmem:[#allocation3 + $0xb8] sm:$0xf] %vm981_vm3, %v2472_v21  ;;  %v1333_v45 = vpop.permute.xlu2 %1332  ;;  %v6780_v35 = vld [vmem:[#allocation3 + $0x190] sm:$0xf0] }
 0x201   : > { %2535 = vst.msk [vmem:[#allocation3 + $0xac] sm:$0xf] %vm981_vm3, %v2471_v5  ;;  %v3237_v21 = vpop.permute.xlu0 %3236 }
 0x202   : > { %2567 = vst.msk [vmem:[#allocation3 + $0x22c] sm:$0xf] %vm981_vm3, %v8263_v33  ;;  %1274 = vrot.lane.b32.xlu0 %v8314_v50, %s7096_s17 }
 0x203   : > { %1478 = vst.msk [vmem:[#allocation3 + $0x234] sm:$0xf] %vm1430_vm4, %v1333_v45  ;;  %v8312_v45 = vpack.c.bf16 %v1065_v16, %v1065_v16 }
 0x204   : > { %1492 = vst.msk [vmem:[#allocation3 + $0x2dc] sm:$0xf] %vm1430_vm4, %v1361_v52  ;;  %v6317_v52 = vor.u32 %v6762_v37, %v6316_v31  ;;  %v876_v31 = vld [vmem:[#allocation2 + $0x110] sm:$0xff]  ;;  %v2412_v37 = vld [vmem:[#allocation2 + $0xf9] sm:$0xff] }
 0x205   : > { %9991 = vst [vmem:[#allocation31_spill] sm:$0xff] %v8278_v57  ;;  %3696 = vrot.lane.b32.xlu2 %v8201_v59, %s7098_s19  ;;  %1276 = vrot.lane.b32.xlu1 %v8312_v45, %s7096_s17  ;;  %v3529_v59 = vld [vmem:[#allocation2 + $0x291] sm:$0xff] }
 0x206   : > { %1888 = vst.msk [vmem:[#allocation3 + $0x60] sm:$0xf] %vm1879_vm5, %v1704_v54  ;;  %v1331_v54 = vpop.permute.xlu1 %1330  ;;  %v8329_v58 = vpack.c.bf16 %v3529_v59, %v3529_v59  ;;  %v2476_v59 = vpack.c.bf16 %v2412_v37, %v2412_v37 }
 0x207   : > { %4118 = vst.msk [vmem:[#allocation3 + $0x2d8] sm:$0xf] %vm981_vm3, %v4054_v48 }
 0x208   : > { %9992 = vst [vmem:[#allocation32_spill] sm:$0xff] %v8284_v0  ;;  %v1708_v17 = vpop.permute.xlu2 %1707 }
 0x209   : > { %4119 = vst.msk [vmem:[#allocation3 + $0x2e4] sm:$0xf] %vm981_vm3, %v4055_v29  ;;  %v8319_v29 = vpop.f32.mrf.mxu3  ;;  %v2792_v2 = vpop.permute.xlu0 %2791 }
 0x20a   : > { %2568 = vst.msk [vmem:[#allocation3 + $0x238] sm:$0xf] %vm981_vm3, %v8278_v57  ;;  %3248 = vrot.lane.b32.xlu0 %v8175_v24, %s7097_s11 }
 0x20b   : > { %1002 = vst.msk [vmem:[#allocation3 + $0xf0] sm:$0xf] %vm981_vm3, %v8291_v7 }
 0x20c   : > { %1003 = vst.msk [vmem:[#allocation3 + $0xfc] sm:$0xf] %vm981_vm3, %v8297_v28  ;;  %6652 = vmatmul.msk.bf16.gmra.mxu0 %vm700_vm0, %v6317_v52 }
 0x20d   : > { %1441 = vst.msk [vmem:[#allocation3 + $0x78] sm:$0xf] %vm1430_vm4, %v1259_v18 }
 0x20e   : > { %3423 = vst.msk [vmem:[#allocation3 + $0x40] sm:$0xf] %vm1879_vm5, %v3237_v21  ;;  %v6556_v5 = vld [vmem:[#allocation3 + $0x2d8] sm:$0xf] }
 0x20f   : > { %3871 = vst.msk [vmem:[#allocation3 + $0x40] sm:$0xf] %vm2328_vm6, %v8193_v26 }
 0x210   : > { %v6822_v60 = vld [vmem:[#allocation3 + $0x2e0] sm:$0xf0]  ;;  %1890 = vst.msk [vmem:[#allocation3 + $0x78] sm:$0xf] %vm1879_vm5, %v1708_v17  ;;  %v3241_v26 = vpop.permute.xlu2 %3240  ;;  %v3528_v17 = vld [vmem:[#allocation2 + $0x289] sm:$0xff] }
 0x211   : > { %v6557_v48 = vor.u32 %v6822_v60, %v6556_v5  ;;  %2537 = vst.msk [vmem:[#allocation3 + $0xc4] sm:$0xf] %vm981_vm3, %v2473_v42  ;;  %v8332_v21 = vpack.c.bf16 %v3528_v17, %v3528_v17  ;;  %v8337_v42 = vpack.c.bf16 %v1514_v63, %v1514_v63  ;;  %v8339_v5 = vpack.c.bf16 %v1513_v9, %v1513_v9  ;;  %v2411_v60 = vld [vmem:[#allocation2 + $0xf1] sm:$0xff]  ;;  %v1067_v9 = vld [vmem:[#allocation2 + $0xf9] sm:$0xff] }
 0x212   : > { %9993 = vst [vmem:[#allocation33_spill] sm:$0xff] %v8319_v29  ;;  %v2475_v52 = vpack.c.bf16 %v2411_v60, %v2411_v60  ;;  %v1066_v63 = vld [vmem:[#allocation2 + $0xf1] sm:$0xff]  ;;  %v8366_v37 = vpack.c.bf16 %v1067_v9, %v1067_v9  ;;  %v1516_v9 = vld [vmem:[#allocation2 + $0xfa] sm:$0xff] }
 0x213   : > { %6672 = vmatmul.msk.bf16.gmra.mxu3 %vm700_vm0, %v6557_v48  ;;  %2538 = vst.msk [vmem:[#allocation3 + $0xd0] sm:$0xf] %vm981_vm3, %v2474_v34  ;;  %1725 = vrot.lane.b32.xlu2 %v8337_v42, %s7097_s11  ;;  %v8345_v34 = vpack.c.bf16 %v876_v31, %v876_v31  ;;  %v8360_v17 = vpack.c.bf16 %v1066_v63, %v1066_v63  ;;  %v1069_v29 = vld [vmem:[#allocation2 + $0x111] sm:$0xff] }
 0x214   : > { %1477 = vst.msk [vmem:[#allocation3 + $0x228] sm:$0xf] %vm1430_vm4, %v1331_v54  ;;  %1723 = vrot.lane.b32.xlu1 %v8339_v5, %s7097_s11  ;;  %v3239_v54 = vpop.permute.xlu1 %3238  ;;  %1280 = vrot.lane.b32.xlu0 %v8366_v37, %s7096_s17 }
 0x215   : > { %9994 = vst [vmem:[#allocation34_spill] sm:$0xff] %v8329_v58 }
 0x216   : > { %2976 = vst.msk [vmem:[#allocation3 + $0x58] sm:$0xf] %vm1430_vm4, %v2792_v2  ;;  %v6214_v18 = vld [vmem:[#allocation3 + $0x3c] sm:$0xf0]  ;;  %v2151_v2 = vpop.permute.xlu0 %2150 }
 0x217   : > { %9995 = vst [vmem:[#allocation35_spill] sm:$0xff] %v8332_v21  ;;  %v6217_v16 = vor.u32 %v6736_v62, %v6214_v18  ;;  %v3992_v62 = vld [vmem:[#allocation2 + $0x34a] sm:$0xff]  ;;  %v3993_v18 = vld [vmem:[#allocation2 + $0x352] sm:$0xff] }
 0x218   : > { %3425 = vst.msk [vmem:[#allocation3 + $0x58] sm:$0xf] %vm1879_vm5, %v3241_v26  ;;  %v2796_v48 = vpop.permute.xlu2 %2795  ;;  %v8355_v26 = vpop.f32.mrf.mxu3  ;;  %v4056_v31 = vpack.c.bf16 %v3992_v62, %v3992_v62  ;;  %v4057_v60 = vpack.c.bf16 %v3993_v18, %v3993_v18 }
 0x219   : > { %2570 = vst.msk [vmem:[#allocation3 + $0x250] sm:$0xf] %vm981_vm3, %v8329_v58  ;;  %5161 = vmatmul.bf16.gmra.mxu2 %v6217_v16  ;;  %v6328_v16 = vld [vmem:[#allocation3 + $0x110] sm:$0xf] }
 0x21a   : > { %2569 = vst.msk [vmem:[#allocation3 + $0x244] sm:$0xf] %vm981_vm3, %v8332_v21  ;;  %v6771_v21 = vld [vmem:[#allocation3 + $0x148] sm:$0xf0] }
 0x21b   : > { %1005 = vst.msk [vmem:[#allocation3 + $0x114] sm:$0xf] %vm981_vm3, %v8345_v34  ;;  %1278 = vrot.lane.b32.xlu2 %v8360_v17, %s7096_s17 }
 0x21c   : > { %9996 = vst [vmem:[#allocation36_spill] sm:$0xff] %v8355_v26  ;;  %v6765_v26 = vld [vmem:[#allocation3 + $0x118] sm:$0xf0]  ;;  %2158 = vrot.lane.b32.xlu1 %v8067_v10, %s7098_s19  ;;  %v2153_v63 = vpop.permute.xlu1 %2152  ;;  %v3531_v10 = vld [vmem:[#allocation2 + $0x2a9] sm:$0xff] }
 0x21d   : > { %2978 = vst.msk [vmem:[#allocation3 + $0x70] sm:$0xf] %vm1430_vm4, %v2796_v48  ;;  %v8364_v48 = vpop.f32.mrf.mxu0 }
 0x21e   : > { %3424 = vst.msk [vmem:[#allocation3 + $0x4c] sm:$0xf] %vm1879_vm5, %v3239_v54  ;;  %v6329_v54 = vor.u32 %v6765_v26, %v6328_v16  ;;  %v1515_v16 = vld [vmem:[#allocation2 + $0xf2] sm:$0xff] }
 0x21f   : > { %2336 = vst.msk [vmem:[#allocation3 + $0x54] sm:$0xf] %vm2328_vm6, %v2151_v2  ;;  %v3687_v2 = vpop.permute.xlu0 %3686 }
 0x220   : > { %2539 = vst.msk [vmem:[#allocation3 + $0xdc] sm:$0xf] %vm981_vm3, %v2475_v52  ;;  %v2155_v52 = vpop.permute.xlu2 %2154  ;;  %6653 = vmatmul.msk.bf16.gmra.mxu0 %vm700_vm0, %v6329_v54  ;;  %v8379_v62 = vpop.f32.mrf.mxu3 }
 0x221   : > { %2540 = vst.msk [vmem:[#allocation3 + $0xe8] sm:$0xf] %vm981_vm3, %v2476_v59  ;;  %v6224_v59 = vld [vmem:[#allocation3 + $0x48] sm:$0xf] }
 0x222   : > { %4120 = vst.msk [vmem:[#allocation3 + $0x2f0] sm:$0xf] %vm981_vm3, %v4056_v31  ;;  %v8382_v31 = vpack.c.bf16 %v3531_v10, %v3531_v10 }
 0x223   : > { %4121 = vst.msk [vmem:[#allocation3 + $0x2fc] sm:$0xf] %vm981_vm3, %v4057_v60  ;;  %v3530_v60 = vld [vmem:[#allocation2 + $0x2a1] sm:$0xff]  ;;  %2801 = vrot.lane.b32.xlu2 %v8243_v61, %s7096_s17 }
 0x224   : > { %2338 = vst.msk [vmem:[#allocation3 + $0x6c] sm:$0xf] %vm2328_vm6, %v2155_v52  ;;  %v8384_v54 = vpack.c.bf16 %v3530_v60, %v3530_v60  ;;  %v8386_v52 = vpack.c.bf16 %v1516_v9, %v1516_v9  ;;  %v3501_v9 = vld [vmem:[#allocation2 + $0x111] sm:$0xff]  ;;  %v3689_v60 = vpop.permute.xlu1 %3688 }
 0x225   : > { %2337 = vst.msk [vmem:[#allocation3 + $0x60] sm:$0xf] %vm2328_vm6, %v2153_v63  ;;  %v8390_v63 = vpack.c.bf16 %v1515_v16, %v1515_v16  ;;  %v8401_v10 = vpop.f32.mrf.mxu0  ;;  %v6844_v16 = vld [vmem:[%s9937_s5] sm:$0xff]  ;;  %v8414_v47 = vpack.c.bf16 %v3501_v9, %v3501_v9 }
 0x226   : > { %v6740_v26 = vld [vmem:[#allocation3 + $0x50] sm:$0xf0]  ;;  %9997 = vst [vmem:[#allocation37_spill] sm:$0xff] %v8379_v62  ;;  %1729 = vrot.lane.b32.xlu1 %v8386_v52, %s7097_s11 }
 0x227   : > { %3872 = vst.msk [vmem:[#allocation3 + $0x4c] sm:$0xf] %vm2328_vm6, %v3687_v2  ;;  %v6225_v18 = vor.u32 %v6740_v26, %v6224_v59  ;;  %v6845_v59 = vld [vmem:[%s9937_s5 + $0x8] sm:$0xff]  ;;  %1727 = vrot.lane.b32.xlu0 %v8390_v63, %s7097_s11  ;;  %v1710_v32 = vpop.permute.xlu0 %1709 }
 0x228   : > { %9998 = vst [vmem:[#allocation38_spill] sm:$0xff] %v8382_v31  ;;  %v875_v26 = vld [vmem:[#allocation2 + $0x108] sm:$0xff]  ;;  %v8405_v61 = vpop.permute.xlu2 %3690  ;;  %5699 = vmatpush.bf16.msrb.mxu3 %v6845_v59  ;;  %v1133_v59 = vpack.c.bf16 %v1069_v29, %v1069_v29  ;;  %v8417_v13 = vpop.f32.mrf.mxu3 }
 0x229   : > { %9999 = vst [vmem:[#allocation39_spill] sm:$0xff] %v8384_v54  ;;  %4997 = vmatmul.bf16.gmra.mxu1 %v6225_v18  ;;  %v6568_v62 = vld [vmem:[#allocation3 + $0x2f0] sm:$0xf]  ;;  %v8410_v0 = vpack.c.bf16 %v875_v26, %v875_v26  ;;  %v8419_v26 = vpack.c.bf16 %v1068_v15, %v1068_v15 }
 0x22a   : > { %2572 = vst.msk [vmem:[#allocation3 + $0x268] sm:$0xf] %vm981_vm3, %v8382_v31  ;;  %v6825_v2 = vld [vmem:[#allocation3 + $0x2f8] sm:$0xf0]  ;;  %v6352_v31 = vld [vmem:[#allocation3 + $0x140] sm:$0xf] }
 0x22b   : > { %2571 = vst.msk [vmem:[#allocation3 + $0x25c] sm:$0xf] %vm981_vm3, %v8384_v54  ;;  %v6569_v18 = vor.u32 %v6825_v2, %v6568_v62  ;;  %v2477_v62 = vpack.c.bf16 %v2413_v12, %v2413_v12  ;;  %v6340_v2 = vld [vmem:[#allocation3 + $0x128] sm:$0xf]  ;;  %1284 = vrot.lane.b32.xlu2 %v1133_v59, %s7096_s17  ;;  %v6743_v12 = vld [vmem:[#allocation3 + $0x68] sm:$0xf0] }
 0x22c   : > { %3873 = vst.msk [vmem:[#allocation3 + $0x58] sm:$0xf] %vm2328_vm6, %v3689_v60  ;;  %5700 = vmatpush.bf16.msrb.mxu3 %v6844_v16  ;;  %v6341_v38 = vor.u32 %v6768_v22, %v6340_v2  ;;  %v6236_v15 = vld [vmem:[#allocation3 + $0x60] sm:$0xf]  ;;  %v4983_v22 = vpop.f32.mrf.mxu1  ;;  %v2794_v29 = vpop.permute.xlu1 %2793  ;;  %v1517_v16 = vld [vmem:[#allocation2 + $0x10a] sm:$0xff] }
 0x22d   : > { %6673 = vmatmul.msk.bf16.gmra.mxu3 %vm700_vm0, %v6569_v18  ;;  %1891 = vst.msk [vmem:[#allocation3 + $0x84] sm:$0xf] %vm1879_vm5, %v1710_v32  ;;  %v8432_v60 = vpop.f32.mrf.mxu0 }
 0x22e   : > { %10000 = vst [vmem:[#allocation40_spill] sm:$0xff] %v8417_v13  ;;  %1282 = vrot.lane.b32.xlu1 %v8419_v26, %s7096_s17  ;;  %v6739_v9 = vld [vmem:[#allocation3 + $0x4c] sm:$0xf]  ;;  %v1581_v13 = vpack.c.bf16 %v1517_v16, %v1517_v16  ;;  %v8448_v16 = vpack.c.bf16 %v877_v3, %v877_v3 }
 0x22f   : > { %1004 = vst.msk [vmem:[#allocation3 + $0x108] sm:$0xf] %vm981_vm3, %v8410_v0  ;;  %2156 = vrot.lane.b32.xlu0 %v8051_v53, %s7098_s19  ;;  %v1365_v59 = vpop.permute.xlu0 %1364  ;;  %v1518_v53 = vld [vmem:[#allocation2 + $0x112] sm:$0xff] }
 0x230   : > { %2542 = vst.msk [vmem:[#allocation3 + $0x100] sm:$0xf] %vm981_vm3, %v8414_v47  ;;  %v1714_v32 = vpop.permute.xlu2 %1713  ;;  %6654 = vmatmul.msk.bf16.gmra.mxu0 %vm700_vm0, %v6341_v38  ;;  %v8439_v38 = vld [vmem:[%s9936_s4] ss:$0 sm:$0xff]  ;;  %v1582_v20 = vpack.c.bf16 %v1518_v53, %v1518_v53  ;;  %v8442_v11 = vpop.f32.mrf.mxu3 }
 0x231   : > { %2541 = vst.msk [vmem:[#allocation3 + $0xf4] sm:$0xf] %vm981_vm3, %v2477_v62  ;;  %v6237_v62 = vor.u32 %v6743_v12, %v6236_v15  ;;  %v878_v15 = vld [vmem:[#allocation2 + $0x128] sm:$0xff] }
 0x232   : > { %2977 = vst.msk [vmem:[#allocation3 + $0x64] sm:$0xf] %vm1430_vm4, %v2794_v29  ;;  %v8452_v53 = vpack.c.bf16 %v878_v15, %v878_v15 }
 0x233   : > { %v6226_v18 = vld [vmem:[#allocation3 + $0x54] sm:$0xf0]  ;;  %1494 = vst.msk [vmem:[#allocation3 + $0x2f4] sm:$0xf] %vm1430_vm4, %v1365_v59  ;;  %1731 = vrot.lane.b32.xlu2 %v1581_v13, %s7097_s11  ;;  %v2416_v59 = vld [vmem:[#allocation2 + $0x129] sm:$0xff]  ;;  %v4984_v13 = vadd.f32 %v8439_v38, %v4983_v22 }
 0x234   : > { %v6229_v2 = vor.u32 %v6739_v9, %v6226_v18  ;;  %10001 = vst [vmem:[#allocation41_spill] sm:$0xff] %v8442_v11  ;;  %v3502_v9 = vld [vmem:[#allocation2 + $0x121] sm:$0xff]  ;;  %v1265_v18 = vpop.permute.xlu1 %1264  ;;  %v4985_v11 = vpop.f32.mrf.mxu1  ;;  %v2480_v22 = vpack.c.bf16 %v2416_v59, %v2416_v59  ;;  %v1520_v59 = vld [vmem:[#allocation2 + $0x12a] sm:$0xff] }
 0x235   : > { %1444 = vst.msk [vmem:[#allocation3 + $0x9c] sm:$0xf] %vm1430_vm4, %v1265_v18  ;;  %v8455_v54 = vpack.c.bf16 %v3502_v9, %v3502_v9  ;;  %v6353_v18 = vor.u32 %v6771_v21, %v6352_v31  ;;  %v4986_v15 = vadd.f32 %v8439_v38, %v4985_v11 }
 0x236   : > { %5166 = vmatmul.bf16.gmra.mxu2 %v6229_v2  ;;  %3250 = vrot.lane.b32.xlu1 %v8218_v6, %s7097_s11  ;;  %1893 = vst.msk [vmem:[#allocation3 + $0x9c] sm:$0xf] %vm1879_vm5, %v1714_v32 }
 0x237   : > { %1733 = vrot.lane.b32.xlu0 %v1582_v20, %s7097_s11  ;;  %v1263_v2 = vpop.permute.xlu0 %1262  ;;  %v1070_v20 = vld [vmem:[#allocation2 + $0x121] sm:$0xff]  ;;  %1006 = vst.msk [vmem:[#allocation3 + $0x120] sm:$0xf] %vm981_vm3, %v8448_v16 }
 0x238   : > { %v1267_v12 = vpop.permute.xlu2 %1266  ;;  %1443 = vst.msk [vmem:[#allocation3 + $0x90] sm:$0xf] %vm1430_vm4, %v1263_v2  ;;  %v1134_v2 = vpack.c.bf16 %v1070_v20, %v1070_v20 }
 0x239   : > { %5002 = vmatmul.bf16.gmra.mxu1 %v6237_v62  ;;  %v5152_v29 = vpop.f32.mrf.mxu2  ;;  %1445 = vst.msk [vmem:[#allocation3 + $0xa8] sm:$0xf] %vm1430_vm4, %v1267_v12  ;;  %v1071_v62 = vld [vmem:[#allocation2 + $0x129] sm:$0xff]  ;;  %v8457_v12 = vpop.f32.mrf.mxu0 }
 0x23a   : > { %v5153_v3 = vadd.f32 %v5152_v29, %v4984_v13  ;;  %v8460_v58 = vpack.c.bf16 %v1071_v62, %v1071_v62  ;;  %1007 = vst.msk [vmem:[#allocation3 + $0x12c] sm:$0xf] %vm981_vm3, %v8452_v53  ;;  %v8477_v29 = vpop.f32.mrf.mxu3 }
 0x23b   : > { %3252 = vrot.lane.b32.xlu2 %v8206_v49, %s7097_s11  ;;  %2543 = vst.msk [vmem:[#allocation3 + $0x10c] sm:$0xf] %vm981_vm3, %v8455_v54 }
 0x23c   : > { %v5322_v21 = vadd.f32 %v8305_v19, %v5153_v3  ;;  %2544 = vst.msk [vmem:[#allocation3 + $0x118] sm:$0xf] %vm981_vm3, %v2480_v22  ;;  %v1337_v9 = vpop.permute.xlu1 %1336  ;;  %v1519_v19 = vld [vmem:[#allocation2 + $0x122] sm:$0xff] }
 0x23d   : > { %10002 = vst [vmem:[#allocation42_spill] sm:$0xff] %v8477_v29  ;;  %v3960_v29 = vld [vmem:[#allocation2 + $0x19a] sm:$0xff] }
 0x23e   : > { %1288 = vrot.lane.b32.xlu1 %v8460_v58, %s7096_s17  ;;  %1480 = vst.msk [vmem:[#allocation3 + $0x24c] sm:$0xf] %vm1430_vm4, %v1337_v9  ;;  %v5481_v20 = vmax.f32 %v5322_v21, 0.0  ;;  %v4024_v57 = vpack.c.bf16 %v3960_v29, %v3960_v29 }
 0x23f   : > { %1286 = vrot.lane.b32.xlu0 %v1134_v2, %s7096_s17  ;;  %v1335_v13 = vpop.permute.xlu0 %1334 }
 0x240   : > { %v1339_v11 = vpop.permute.xlu2 %1338  ;;  %6655 = vmatmul.msk.bf16.gmra.mxu0 %vm700_vm0, %v6353_v18  ;;  %1479 = vst.msk [vmem:[#allocation3 + $0x240] sm:$0xf] %vm1430_vm4, %v1335_v13  ;;  %v8483_v18 = vpack.c.bf16 %v1519_v19, %v1519_v19 }
 0x241   : > { %v5154_v32 = vpop.f32.mrf.mxu2  ;;  %1481 = vst.msk [vmem:[#allocation3 + $0x258] sm:$0xf] %vm1430_vm4, %v1339_v11  ;;  %v8485_v22 = vpop.f32.mrf.mxu0 }
 0x242   : > { %v5155_v31 = vadd.f32 %v5154_v32, %v4986_v15  ;;  %v1584_v15 = vpack.c.bf16 %v1520_v59, %v1520_v59  ;;  %v1072_v32 = vld [vmem:[#allocation2 + $0x139] sm:$0xff]  ;;  %v8496_v59 = vpop.f32.mrf.mxu3  ;;  %4088 = vst.msk [vmem:[#allocation3 + $0x170] sm:$0xf] %vm981_vm3, %v4024_v57 }
 0x243   : > { %v1136_v9 = vpack.c.bf16 %v1072_v32, %v1072_v32  ;;  %10003 = vst [vmem:[#allocation43_spill] sm:$0xff] %v8496_v59 }
 0x244   : > { %v5324_v62 = vadd.f32 %v8334_v1, %v5155_v31  ;;  %1737 = vrot.lane.b32.xlu2 %v1584_v15, %s7097_s11  ;;  %v1712_v21 = vpop.permute.xlu1 %1711  ;;  %v1073_v31 = vld [vmem:[#allocation2 + $0x141] sm:$0xff]  ;;  %v3504_v15 = vld [vmem:[#allocation2 + $0x139] sm:$0xff] }
 0x245   : > { %1892 = vst.msk [vmem:[#allocation3 + $0x90] sm:$0xf] %vm1879_vm5, %v1712_v21  ;;  %v1137_v13 = vpack.c.bf16 %v1073_v31, %v1073_v31  ;;  %v3505_v21 = vld [vmem:[#allocation2 + $0x141] sm:$0xff] }
 0x246   : > { %v5482_v3 = vmax.f32 %v5324_v62, 0.0  ;;  %1735 = vrot.lane.b32.xlu1 %v8483_v18, %s7097_s11  ;;  %v6364_v62 = vld [vmem:[#allocation3 + $0x158] sm:$0xf] }
 0x247   : > { %2803 = vrot.lane.b32.xlu0 %v8221_v46, %s7096_s17  ;;  %v3243_v11 = vpop.permute.xlu0 %3242  ;;  %v6774_v46 = vld [vmem:[#allocation3 + $0x160] sm:$0xf0] }
 0x248   : > { %v5545_v2 = vpack.c.bf16 %v5482_v3, %v5481_v20  ;;  %v8493_v1 = vpop.permute.xlu2 %3246  ;;  %3426 = vst.msk [vmem:[#allocation3 + $0x64] sm:$0xf] %vm1879_vm5, %v3243_v11  ;;  %v6365_v19 = vor.u32 %v6774_v46, %v6364_v62  ;;  %v879_v20 = vld [vmem:[#allocation2 + $0x138] sm:$0xff]  ;;  %v880_v3 = vld [vmem:[#allocation2 + $0x140] sm:$0xff]  ;;  %v8514_v62 = vpack.c.bf16 %v3504_v15, %v3504_v15  ;;  %v8517_v46 = vpack.c.bf16 %v3505_v21, %v3505_v21 }
 0x249   : > { %3874 = vst.msk [vmem:[#allocation3 + $0x64] sm:$0xf] %vm2328_vm6, %v8405_v61  ;;  %v8508_v61 = vpack.c.bf16 %v879_v20, %v879_v20  ;;  %v8511_v11 = vpack.c.bf16 %v880_v3, %v880_v3  ;;  %v1075_v15 = vld [vmem:[#allocation2 + $0x159] sm:$0xff]  ;;  %v1074_v21 = vld [vmem:[#allocation2 + $0x151] sm:$0xff] }
 0x24a   : > { %6682 = vmatmul.msk.bf16.vlgmr.msrb.gmra.mxu3 %vm700_vm0, %v5545_v2  ;;  %v8504_v2 = vpop.f32.mrf.mxu0  ;;  %2545 = vst.msk [vmem:[#allocation3 + $0x124] sm:$0xf] %vm981_vm3, %v8514_v62  ;;  %v8538_v59 = vpack.c.bf16 %v1074_v21, %v1074_v21  ;;  %v2419_v21 = vld [vmem:[#allocation2 + $0x151] sm:$0xff] }
 0x24b   : > { %1008 = vst.msk [vmem:[#allocation3 + $0x138] sm:$0xf] %vm981_vm3, %v8508_v61 }
 0x24c   : > { %1290 = vrot.lane.b32.xlu2 %v1136_v9, %s7096_s17  ;;  %v3245_v31 = vpop.permute.xlu1 %3244  ;;  %1009 = vst.msk [vmem:[#allocation3 + $0x144] sm:$0xf] %vm981_vm3, %v8511_v11 }
 0x24d   : > { %3427 = vst.msk [vmem:[#allocation3 + $0x70] sm:$0xf] %vm1879_vm5, %v3245_v31 }
 0x24e   : > { %3700 = vrot.lane.b32.xlu1 %v8235_v56, %s7098_s19  ;;  %v1522_v56 = vld [vmem:[#allocation2 + $0x142] sm:$0xff]  ;;  %2546 = vst.msk [vmem:[#allocation3 + $0x130] sm:$0xf] %vm981_vm3, %v8517_v46 }
 0x24f   : > { %1292 = vrot.lane.b32.xlu0 %v1137_v13, %s7096_s17  ;;  %v3693_v9 = vpop.permute.xlu0 %3692  ;;  %v1521_v13 = vld [vmem:[#allocation2 + $0x13a] sm:$0xff]  ;;  %v1586_v20 = vpack.c.bf16 %v1522_v56, %v1522_v56 }
 0x250   : > { %v1273_v32 = vpop.permute.xlu2 %1272  ;;  %6656 = vmatmul.msk.bf16.gmra.mxu0 %vm700_vm0, %v6365_v19  ;;  %3875 = vst.msk [vmem:[#allocation3 + $0x70] sm:$0xf] %vm2328_vm6, %v3693_v9  ;;  %v8521_v19 = vpop.f32.mrf.mxu3  ;;  %v1585_v3 = vpack.c.bf16 %v1521_v13, %v1521_v13 }
 0x251   : > { %1448 = vst.msk [vmem:[#allocation3 + $0xcc] sm:$0xf] %vm1430_vm4, %v1273_v32 }
 0x252   : > { %10004 = vst [vmem:[#allocation44_spill] sm:$0xff] %v8521_v19  ;;  %v8534_v9 = vpop.f32.mrf.mxu0  ;;  %v1139_v19 = vpack.c.bf16 %v1075_v15, %v1075_v15 }
 0x254   : > { %2160 = vrot.lane.b32.xlu2 %v8142_v55, %s7098_s19  ;;  %v2800_v31 = vpop.permute.xlu1 %2799  ;;  %v6742_v55 = vld [vmem:[#allocation3 + $0x64] sm:$0xf] }
 0x255   : > { %2980 = vst.msk [vmem:[#allocation3 + $0x88] sm:$0xf] %vm1430_vm4, %v2800_v31  ;;  %v3507_v31 = vld [vmem:[#allocation2 + $0x159] sm:$0xff] }
 0x256   : > { %1741 = vrot.lane.b32.xlu1 %v1586_v20, %s7097_s11 }
 0x257   : > { %1739 = vrot.lane.b32.xlu0 %v1585_v3, %s7097_s11  ;;  %v1269_v56 = vpop.permute.xlu0 %1268  ;;  %v6238_v13 = vld [vmem:[#allocation3 + $0x6c] sm:$0xf0]  ;;  %v3961_v3 = vld [vmem:[#allocation2 + $0x1a2] sm:$0xff] }
 0x258   : > { %v1345_v32 = vpop.permute.xlu2 %1344  ;;  %1446 = vst.msk [vmem:[#allocation3 + $0xb4] sm:$0xf] %vm1430_vm4, %v1269_v56  ;;  %v6241_v20 = vor.u32 %v6742_v55, %v6238_v13  ;;  %v4025_v33 = vpack.c.bf16 %v3961_v3, %v3961_v3  ;;  %v8542_v39 = vpop.f32.mrf.mxu3  ;;  %v1523_v56 = vld [vmem:[#allocation2 + $0x152] sm:$0xff]  ;;  %v8555_v55 = vpack.c.bf16 %v3507_v31, %v3507_v31  ;;  %v1524_v3 = vld [vmem:[#allocation2 + $0x15a] sm:$0xff] }
 0x259   : > { %1484 = vst.msk [vmem:[#allocation3 + $0x27c] sm:$0xf] %vm1430_vm4, %v1345_v32  ;;  %v882_v32 = vld [vmem:[#allocation2 + $0x158] sm:$0xff]  ;;  %v4988_v13 = vpop.f32.mrf.mxu1  ;;  %v1588_v31 = vpack.c.bf16 %v1524_v3, %v1524_v3 }
 0x25a   : > { %5171 = vmatmul.bf16.gmra.mxu2 %v6241_v20  ;;  %10005 = vst [vmem:[#allocation45_spill] sm:$0xff] %v8542_v39  ;;  %v8547_v15 = vpack.c.bf16 %v882_v32, %v882_v32  ;;  %v8559_v32 = vpop.f32.mrf.mxu0 }
 0x25b   : > { %4089 = vst.msk [vmem:[#allocation3 + $0x17c] sm:$0xf] %vm981_vm3, %v4025_v33  ;;  %v2483_v33 = vpack.c.bf16 %v2419_v21, %v2419_v21 }
 0x25c   : > { %1296 = vrot.lane.b32.xlu2 %v1139_v19, %s7096_s17  ;;  %v8551_v19 = vpack.c.bf16 %v881_v40, %v881_v40  ;;  %v1718_v57 = vpop.permute.xlu1 %1717  ;;  %1011 = vst.msk [vmem:[#allocation3 + $0x15c] sm:$0xf] %vm981_vm3, %v8547_v15  ;;  %v6376_v40 = vld [vmem:[#allocation3 + $0x170] sm:$0xf] }
 0x25d   : > { %1895 = vst.msk [vmem:[#allocation3 + $0xb4] sm:$0xf] %vm1879_vm5, %v1718_v57 }
 0x25e   : > { %1294 = vrot.lane.b32.xlu1 %v8538_v59, %s7096_s17  ;;  %1010 = vst.msk [vmem:[#allocation3 + $0x150] sm:$0xf] %vm981_vm3, %v8551_v19 }
 0x25f   : > { %3698 = vrot.lane.b32.xlu0 %v8239_v27, %s7098_s19  ;;  %v1341_v20 = vpop.permute.xlu0 %1340  ;;  %v1587_v27 = vpack.c.bf16 %v1523_v56, %v1523_v56  ;;  %2548 = vst.msk [vmem:[#allocation3 + $0x148] sm:$0xf] %vm981_vm3, %v8555_v55 }
 0x260   : > { %v1720_v29 = vpop.permute.xlu2 %1719  ;;  %1482 = vst.msk [vmem:[#allocation3 + $0x264] sm:$0xf] %vm1430_vm4, %v1341_v20  ;;  %v8572_v20 = vpop.f32.mrf.mxu3 }
 0x261   : > { %2547 = vst.msk [vmem:[#allocation3 + $0x13c] sm:$0xf] %vm981_vm3, %v2483_v33  ;;  %v4989_v33 = vadd.f32 %v8439_v38, %v4988_v13  ;;  %v3508_v13 = vld [vmem:[#allocation2 + $0x169] sm:$0xff] }
 0x262   : > { %v6777_v39 = vld [vmem:[#allocation3 + $0x178] sm:$0xf0]  ;;  %10006 = vst [vmem:[#allocation46_spill] sm:$0xff] %v8572_v20  ;;  %v884_v20 = vld [vmem:[#allocation2 + $0x170] sm:$0xff]  ;;  %v8595_v43 = vpack.c.bf16 %v3508_v13, %v3508_v13 }
 0x263   : > { %v6377_v21 = vor.u32 %v6777_v39, %v6376_v40  ;;  %v1140_v39 = vpack.c.bf16 %v1076_v30, %v1076_v30  ;;  %v8579_v40 = vpop.f32.mrf.mxu0  ;;  %v1525_v13 = vld [vmem:[#allocation2 + $0x16a] sm:$0xff] }
 0x264   : > { %1743 = vrot.lane.b32.xlu2 %v1587_v27, %s7097_s11  ;;  %v1271_v44 = vpop.permute.xlu1 %1270  ;;  %2549 = vst.msk [vmem:[#allocation3 + $0x154] sm:$0xf] %vm981_vm3, %v8595_v43 }
 0x265   : > { %6657 = vmatmul.msk.bf16.gmra.mxu0 %vm700_vm0, %v6377_v21  ;;  %1447 = vst.msk [vmem:[#allocation3 + $0xc0] sm:$0xf] %vm1430_vm4, %v1271_v44 }
 0x266   : > { %2805 = vrot.lane.b32.xlu1 %v8281_v51, %s7096_s17  ;;  %v4990_v51 = vpop.f32.mrf.mxu1  ;;  %1896 = vst.msk [vmem:[#allocation3 + $0xc0] sm:$0xf] %vm1879_vm5, %v1720_v29 }
 0x267   : > { %1745 = vrot.lane.b32.xlu0 %v1588_v31, %s7097_s11  ;;  %v1716_v3 = vpop.permute.xlu0 %1715  ;;  %v883_v31 = vld [vmem:[#allocation2 + $0x168] sm:$0xff]  ;;  %v4991_v21 = vadd.f32 %v8439_v38, %v4990_v51  ;;  %v8592_v51 = vpack.c.bf16 %v884_v20, %v884_v20 }
 0x268   : > { %v8570_v56 = vpop.permute.xlu2 %3696  ;;  %1894 = vst.msk [vmem:[#allocation3 + $0xa8] sm:$0xf] %vm1879_vm5, %v1716_v3  ;;  %v8586_v44 = vpack.c.bf16 %v883_v31, %v883_v31  ;;  %v6388_v31 = vld [vmem:[#allocation3 + $0x188] sm:$0xf] }
 0x269   : > { %v6389_v23 = vor.u32 %v6780_v35, %v6388_v31  ;;  %1013 = vst.msk [vmem:[#allocation3 + $0x174] sm:$0xf] %vm981_vm3, %v8592_v51 }
 0x26a   : > { %1012 = vst.msk [vmem:[#allocation3 + $0x168] sm:$0xf] %vm981_vm3, %v8586_v44 }
 0x26c   : > { %2807 = vrot.lane.b32.xlu2 %v8287_v41, %s7096_s17  ;;  %v1343_v8 = vpop.permute.xlu1 %1342  ;;  %v1077_v41 = vld [vmem:[#allocation2 + $0x171] sm:$0xff] }
 0x26d   : > { %v5157_v57 = vpop.f32.mrf.mxu2  ;;  %1483 = vst.msk [vmem:[#allocation3 + $0x270] sm:$0xf] %vm1430_vm4, %v1343_v8  ;;  %v8614_v8 = vpop.f32.mrf.mxu0 }
 0x26e   : > { %v5158_v27 = vadd.f32 %v5157_v57, %v4989_v33  ;;  %3256 = vrot.lane.b32.xlu1 %v8257_v14, %s7097_s11  ;;  %v3509_v57 = vld [vmem:[#allocation2 + $0x171] sm:$0xff] }
 0x26f   : > { %1298 = vrot.lane.b32.xlu0 %v1140_v39, %s7096_s17  ;;  %v2798_v4 = vpop.permute.xlu0 %2797  ;;  %v8597_v39 = vpop.f32.mrf.mxu3 }
 0x270   : > { %v1726_v30 = vpop.permute.xlu2 %1725  ;;  %v5327_v3 = vadd.f32 %v8364_v48, %v5158_v27  ;;  %10007 = vst [vmem:[#allocation47_spill] sm:$0xff] %v8597_v39  ;;  %v8601_v27 = vpack.c.bf16 %v3509_v57, %v3509_v57 }
 0x271   : > { %2979 = vst.msk [vmem:[#allocation3 + $0x7c] sm:$0xf] %vm1430_vm4, %v2798_v4 }
 0x272   : > { %3428 = vst.msk [vmem:[#allocation3 + $0x7c] sm:$0xf] %vm1879_vm5, %v8493_v1  ;;  %v5483_v20 = vmax.f32 %v5327_v3, 0.0 }
 0x273   : > { %2550 = vst.msk [vmem:[#allocation3 + $0x160] sm:$0xf] %vm981_vm3, %v8601_v27 }
 0x274   : > { %3702 = vrot.lane.b32.xlu2 %v8314_v50, %s7098_s19  ;;  %v1526_v50 = vld [vmem:[#allocation2 + $0x172] sm:$0xff] }
 0x275   : > { %v5159_v29 = vpop.f32.mrf.mxu2  ;;  %6658 = vmatmul.msk.bf16.gmra.mxu0 %vm700_vm0, %v6389_v23  ;;  %v1590_v57 = vpack.c.bf16 %v1526_v50, %v1526_v50 }
 0x276   : > { %v5160_v33 = vadd.f32 %v5159_v29, %v4991_v21  ;;  %v1141_v29 = vpack.c.bf16 %v1077_v41, %v1077_v41  ;;  %v3510_v41 = vld [vmem:[#allocation2 + $0x181] sm:$0xff] }
 0x277   : > { %2162 = vrot.lane.b32.xlu0 %v8175_v24, %s7098_s19  ;;  %v1722_v1 = vpop.permute.xlu0 %1721  ;;  %v8623_v3 = vpop.f32.mrf.mxu3  ;;  %v3511_v24 = vld [vmem:[#allocation2 + $0x189] sm:$0xff] }
 0x278   : > { %v5329_v48 = vadd.f32 %v8401_v10, %v5160_v33  ;;  %1300 = vrot.lane.b32.xlu1 %v1141_v29, %s7096_s17  ;;  %v1279_v35 = vpop.permute.xlu2 %1278  ;;  %v3695_v10 = vpop.permute.xlu1 %3694  ;;  %1897 = vst.msk [vmem:[#allocation3 + $0xcc] sm:$0xf] %vm1879_vm5, %v1722_v1  ;;  %v8625_v33 = vpack.c.bf16 %v1525_v13, %v1525_v13  ;;  %v8638_v29 = vpack.c.bf16 %v3511_v24, %v3511_v24  ;;  %v2426_v24 = vld [vmem:[#allocation2 + $0x1d1] sm:$0xff] }
 0x279   : > { %1451 = vst.msk [vmem:[#allocation3 + $0xf0] sm:$0xf] %vm1430_vm4, %v1279_v35  ;;  %v6783_v35 = vld [vmem:[#allocation3 + $0x1a8] sm:$0xf0] }
 0x27a   : > { %v5484_v21 = vmax.f32 %v5329_v48, 0.0  ;;  %3876 = vst.msk [vmem:[#allocation3 + $0x7c] sm:$0xf] %vm2328_vm6, %v3695_v10  ;;  %v8633_v48 = vpack.c.bf16 %v3510_v41, %v3510_v41  ;;  %v2425_v41 = vld [vmem:[#allocation2 + $0x1c9] sm:$0xff] }
 0x27b   : > { %10008 = vst [vmem:[#allocation48_spill] sm:$0xff] %v8623_v3  ;;  %v6786_v3 = vld [vmem:[#allocation3 + $0x1c0] sm:$0xf0] }
 0x27c   : > { %v5546_v4 = vpack.c.bf16 %v5484_v21, %v5483_v20  ;;  %1749 = vrot.lane.b32.xlu2 %v1590_v57, %s7097_s11  ;;  %v8635_v20 = vpop.f32.mrf.mxu0  ;;  %2551 = vst.msk [vmem:[#allocation3 + $0x16c] sm:$0xf] %vm981_vm3, %v8633_v48 }
 0x27d   : > { %2552 = vst.msk [vmem:[#allocation3 + $0x178] sm:$0xf] %vm981_vm3, %v8638_v29 }
 0x27e   : > { %6683 = vmatmul.msk.bf16.gmra.mxu3 %vm700_vm0, %v5546_v4  ;;  %v6400_v4 = vld [vmem:[#allocation3 + $0x1a0] sm:$0xf] }
 0x27f   : > { %3254 = vrot.lane.b32.xlu0 %v8254_v36, %s7097_s11  ;;  %v1275_v21 = vpop.permute.xlu0 %1274  ;;  %v8648_v10 = vpop.f32.mrf.mxu3  ;;  %v6401_v50 = vor.u32 %v6783_v35, %v6400_v4  ;;  %v1081_v4 = vld [vmem:[#allocation2 + $0x1d1] sm:$0xff]  ;;  %v2490_v35 = vpack.c.bf16 %v2426_v24, %v2426_v24 }
 0x280   : > { %1747 = vrot.lane.b32.xlu1 %v8625_v33, %s7097_s11  ;;  %v2802_v23 = vpop.permute.xlu2 %2801  ;;  %v1277_v31 = vpop.permute.xlu1 %1276  ;;  %1449 = vst.msk [vmem:[#allocation3 + $0xd8] sm:$0xf] %vm1430_vm4, %v1275_v21 }
 0x281   : > { %2981 = vst.msk [vmem:[#allocation3 + $0x94] sm:$0xf] %vm1430_vm4, %v2802_v23 }
 0x282   : > { %1450 = vst.msk [vmem:[#allocation3 + $0xe4] sm:$0xf] %vm1430_vm4, %v1277_v31 }
 0x283   : > { %1899 = vst.msk [vmem:[#allocation3 + $0xe4] sm:$0xf] %vm1879_vm5, %v1726_v30 }
 0x284   : > { %2166 = vrot.lane.b32.xlu2 %v8206_v49, %s7098_s19  ;;  %10009 = vst [vmem:[#allocation49_spill] sm:$0xff] %v8648_v10  ;;  %v8658_v49 = vpop.f32.mrf.mxu0  ;;  %v1145_v10 = vpack.c.bf16 %v1081_v4, %v1081_v4 }
 0x285   : > { %6659 = vmatmul.msk.bf16.gmra.mxu0 %vm700_vm0, %v6401_v50  ;;  %10010 = vst [vmem:[#allocation50_spill] sm:$0xff] %v8658_v49  ;;  %v1530_v50 = vld [vmem:[#allocation2 + $0x1d2] sm:$0xff] }
 0x286   : > { %2554 = vst.msk [vmem:[#allocation3 + $0x190] sm:$0xf] %vm981_vm3, %v2490_v35 }
 0x287   : > { %3704 = vrot.lane.b32.xlu0 %v8312_v45, %s7098_s19  ;;  %v3249_v13 = vpop.permute.xlu0 %3248  ;;  %v887_v45 = vld [vmem:[#allocation2 + $0x1c8] sm:$0xff] }
 0x288   : > { %2164 = vrot.lane.b32.xlu1 %v8218_v6, %s7098_s19  ;;  %v1285_v30 = vpop.permute.xlu2 %1284  ;;  %v1724_v1 = vpop.permute.xlu1 %1723  ;;  %3429 = vst.msk [vmem:[#allocation3 + $0x88] sm:$0xf] %vm1879_vm5, %v3249_v13  ;;  %v888_v6 = vld [vmem:[#allocation2 + $0x1d0] sm:$0xff]  ;;  %v8672_v31 = vpack.c.bf16 %v887_v45, %v887_v45 }
 0x289   : > { %1454 = vst.msk [vmem:[#allocation3 + $0x114] sm:$0xf] %vm1430_vm4, %v1285_v30  ;;  %v8666_v57 = vpack.c.bf16 %v888_v6, %v888_v6  ;;  %v1080_v30 = vld [vmem:[#allocation2 + $0x1c9] sm:$0xff]  ;;  %v4993_v13 = vpop.f32.mrf.mxu1 }
 0x28a   : > { %1898 = vst.msk [vmem:[#allocation3 + $0xd8] sm:$0xf] %vm1879_vm5, %v1724_v1  ;;  %v2489_v1 = vpack.c.bf16 %v2425_v41, %v2425_v41  ;;  %v1144_v39 = vpack.c.bf16 %v1080_v30, %v1080_v30  ;;  %v1082_v30 = vld [vmem:[#allocation2 + $0x1e1] sm:$0xff] }
 0x28b   : > { %3877 = vst.msk [vmem:[#allocation3 + $0x88] sm:$0xf] %vm2328_vm6, %v8570_v56  ;;  %v8674_v56 = vpop.f32.mrf.mxu3 }
 0x28c   : > { %3258 = vrot.lane.b32.xlu2 %v8291_v7, %s7097_s11  ;;  %10011 = vst [vmem:[#allocation51_spill] sm:$0xff] %v8674_v56  ;;  %v6412_v56 = vld [vmem:[#allocation3 + $0x1b8] sm:$0xf]  ;;  %v8683_v24 = vpop.f32.mrf.mxu0 }
 0x28d   : > { %1017 = vst.msk [vmem:[#allocation3 + $0x1a4] sm:$0xf] %vm981_vm3, %v8666_v57  ;;  %v6413_v41 = vor.u32 %v6786_v3, %v6412_v56  ;;  %v1146_v3 = vpack.c.bf16 %v1082_v30, %v1082_v30  ;;  %v3515_v30 = vld [vmem:[#allocation2 + $0x1e9] sm:$0xff] }
 0x28e   : > { %1016 = vst.msk [vmem:[#allocation3 + $0x198] sm:$0xf] %vm981_vm3, %v8672_v31 }
 0x28f   : > { %2809 = vrot.lane.b32.xlu0 %v8339_v5, %s7096_s17  ;;  %v6745_v5 = vld [vmem:[#allocation3 + $0x7c] sm:$0xf]  ;;  %10012 = vst [vmem:[#allocation52_spill] sm:$0xff] %v8683_v24 }
 0x290   : > { %2811 = vrot.lane.b32.xlu1 %v8337_v42, %s7096_s17  ;;  %v8670_v23 = vpop.permute.xlu2 %1731  ;;  %v2159_v21 = vpop.permute.xlu1 %2158  ;;  %2553 = vst.msk [vmem:[#allocation3 + $0x184] sm:$0xf] %vm981_vm3, %v2489_v1 }
 0x291   : > { %v1281_v42 = vpop.permute.xlu0 %1280  ;;  %2340 = vst.msk [vmem:[#allocation3 + $0x84] sm:$0xf] %vm2328_vm6, %v2159_v21  ;;  %v1594_v21 = vpack.c.bf16 %v1530_v50, %v1530_v50  ;;  %v4995_v56 = vpop.f32.mrf.mxu1 }
 0x292   : > { %1452 = vst.msk [vmem:[#allocation3 + $0xfc] sm:$0xf] %vm1430_vm4, %v1281_v42  ;;  %v6250_v6 = vld [vmem:[#allocation3 + $0x84] sm:$0xf0] }
 0x293   : > { %v6253_v45 = vor.u32 %v6745_v5, %v6250_v6  ;;  %v1529_v6 = vld [vmem:[#allocation2 + $0x1ca] sm:$0xff]  ;;  %v8693_v50 = vpop.f32.mrf.mxu3 }
 0x294   : > { %1308 = vrot.lane.b32.xlu2 %v1145_v10, %s7096_s17  ;;  %10013 = vst [vmem:[#allocation53_spill] sm:$0xff] %v8693_v50  ;;  %v1593_v10 = vpack.c.bf16 %v1529_v6, %v1529_v6  ;;  %v4996_v50 = vadd.f32 %v8439_v38, %v4995_v56  ;;  %v8703_v24 = vpop.f32.mrf.mxu0  ;;  %v1083_v56 = vld [vmem:[#allocation2 + $0x1e9] sm:$0xff] }
 0x295   : > { %5176 = vmatmul.bf16.gmra.mxu2 %v6253_v45  ;;  %6660 = vmatmul.msk.bf16.gmra.mxu0 %vm700_vm0, %v6413_v41  ;;  %v889_v45 = vld [vmem:[#allocation2 + $0x1e0] sm:$0xff]  ;;  %10014 = vst [vmem:[#allocation54_spill] sm:$0xff] %v8703_v24  ;;  %v8717_v24 = vpack.c.bf16 %v3515_v30, %v3515_v30 }
 0x296   : > { %v8700_v41 = vpack.c.bf16 %v889_v45, %v889_v45 }
 0x297   : > { %1757 = vrot.lane.b32.xlu0 %v1594_v21, %s7097_s11  ;;  %v890_v21 = vld [vmem:[#allocation2 + $0x1e8] sm:$0xff]  ;;  %2556 = vst.msk [vmem:[#allocation3 + $0x1a8] sm:$0xf] %vm981_vm3, %v8717_v24 }
 0x298   : > { %1306 = vrot.lane.b32.xlu1 %v1144_v39, %s7096_s17  ;;  %v8689_v4 = vpop.permute.xlu2 %3252  ;;  %v1730_v5 = vpop.permute.xlu1 %1729  ;;  %v4994_v39 = vadd.f32 %v8439_v38, %v4993_v13  ;;  %1018 = vst.msk [vmem:[#allocation3 + $0x1b0] sm:$0xf] %vm981_vm3, %v8700_v41 }
 0x299   : > { %v1728_v35 = vpop.permute.xlu0 %1727  ;;  %1901 = vst.msk [vmem:[#allocation3 + $0xfc] sm:$0xf] %vm1879_vm5, %v1730_v5  ;;  %v3514_v5 = vld [vmem:[#allocation2 + $0x1e1] sm:$0xff] }
 0x29a   : > { %1900 = vst.msk [vmem:[#allocation3 + $0xf0] sm:$0xf] %vm1879_vm5, %v1728_v35  ;;  %v8708_v35 = vpack.c.bf16 %v890_v21, %v890_v21  ;;  %v8712_v45 = vpack.c.bf16 %v3514_v5, %v3514_v5  ;;  %v6424_v21 = vld [vmem:[#allocation3 + $0x1d0] sm:$0xf] }
 0x29c   : > { %v5162_v42 = vpop.f32.mrf.mxu2  ;;  %1755 = vrot.lane.b32.xlu2 %v1593_v10, %s7097_s11  ;;  %1019 = vst.msk [vmem:[#allocation3 + $0x1bc] sm:$0xf] %vm981_vm3, %v8708_v35 }
 0x29d   : > { %v5163_v1 = vadd.f32 %v5162_v42, %v4994_v39  ;;  %2555 = vst.msk [vmem:[#allocation3 + $0x19c] sm:$0xf] %vm981_vm3, %v8712_v45 }
 0x29f   : > { %1310 = vrot.lane.b32.xlu0 %v1146_v3, %s7096_s17  ;;  %v8715_v3 = vpop.f32.mrf.mxu3 }
 0x2a0   : > { %3706 = vrot.lane.b32.xlu1 %v8360_v17, %s7098_s19  ;;  %v1738_v13 = vpop.permute.xlu2 %1737  ;;  %v1283_v42 = vpop.permute.xlu1 %1282  ;;  %v5332_v17 = vadd.f32 %v8432_v60, %v5163_v1  ;;  %v6789_v60 = vld [vmem:[#allocation3 + $0x1d8] sm:$0xf0] }
 0x2a1   : > { %v2157_v10 = vpop.permute.xlu0 %2156  ;;  %1453 = vst.msk [vmem:[#allocation3 + $0x108] sm:$0xf] %vm1430_vm4, %v1283_v42  ;;  %v1531_v42 = vld [vmem:[#allocation2 + $0x1e2] sm:$0xff] }
 0x2a2   : > { %2339 = vst.msk [vmem:[#allocation3 + $0x78] sm:$0xf] %vm2328_vm6, %v2157_v10  ;;  %v5485_v1 = vmax.f32 %v5332_v17, 0.0  ;;  %v8737_v10 = vpop.f32.mrf.mxu0 }
 0x2a3   : > { %1902 = vst.msk [vmem:[#allocation3 + $0x108] sm:$0xf] %vm1879_vm5, %v8670_v23 }
 0x2a4   : > { %v5164_v6 = vpop.f32.mrf.mxu2  ;;  %3708 = vrot.lane.b32.xlu2 %v8366_v37, %s7098_s19 }
 0x2a5   : > { %v5165_v39 = vadd.f32 %v5164_v6, %v4996_v50  ;;  %v1147_v50 = vpack.c.bf16 %v1083_v56, %v1083_v56  ;;  %v1532_v6 = vld [vmem:[#allocation2 + $0x1ea] sm:$0xff] }
 0x2a7   : > { %v5334_v49 = vadd.f32 %v8457_v12, %v5165_v39  ;;  %v6425_v12 = vor.u32 %v6789_v60, %v6424_v21  ;;  %3260 = vrot.lane.b32.xlu0 %v8297_v28, %s7097_s11  ;;  %v6746_v39 = vld [vmem:[#allocation3 + $0x80] sm:$0xf0]  ;;  %v1596_v21 = vpack.c.bf16 %v1532_v6, %v1532_v6  ;;  %v1595_v60 = vpack.c.bf16 %v1531_v42, %v1531_v42 }
 0x2a8   : > { %1312 = vrot.lane.b32.xlu1 %v1147_v50, %s7096_s17  ;;  %v1291_v30 = vpop.permute.xlu2 %1290  ;;  %v8740_v50 = vpop.f32.mrf.mxu3 }
 0x2a9   : > { %v5486_v5 = vmax.f32 %v5334_v49, 0.0  ;;  %1457 = vst.msk [vmem:[#allocation3 + $0x138] sm:$0xf] %vm1430_vm4, %v1291_v30  ;;  %v3251_v49 = vpop.permute.xlu1 %3250  ;;  %6661 = vmatmul.msk.bf16.gmra.mxu0 %vm700_vm0, %v6425_v12  ;;  %v1734_v37 = vpop.permute.xlu0 %1733  ;;  %v6248_v17 = vld [vmem:[#allocation3 + $0x78] sm:$0xf] }
 0x2aa   : > { %3430 = vst.msk [vmem:[#allocation3 + $0x94] sm:$0xf] %vm1879_vm5, %v3251_v49  ;;  %v6249_v56 = vor.u32 %v6746_v39, %v6248_v17  ;;  %v6436_v30 = vld [vmem:[#allocation3 + $0x1e8] sm:$0xf]  ;;  %v6792_v49 = vld [vmem:[#allocation3 + $0x1f0] sm:$0xf0]  ;;  %v8750_v6 = vpop.f32.mrf.mxu0 }
 0x2ab   : > { %v5547_v23 = vpack.c.bf16 %v5486_v5, %v5485_v1  ;;  %1903 = vst.msk [vmem:[#allocation3 + $0x114] sm:$0xf] %vm1879_vm5, %v1734_v37  ;;  %v4998_v5 = vpop.f32.mrf.mxu1  ;;  %v6437_v37 = vor.u32 %v6792_v49, %v6436_v30 }
 0x2ac   : > { %5007 = vmatmul.bf16.gmra.mxu1 %v6249_v56  ;;  %1761 = vrot.lane.b32.xlu2 %v1596_v21, %s7097_s11  ;;  %v4999_v39 = vadd.f32 %v8439_v38, %v4998_v5 }
 0x2ad   : > { %6684 = vmatmul.msk.bf16.gmra.mxu3 %vm700_vm0, %v5547_v23 }
 0x2af   : > { %2168 = vrot.lane.b32.xlu0 %v8254_v36, %s7098_s19 }
 0x2b0   : > { %1759 = vrot.lane.b32.xlu1 %v1595_v60, %s7097_s11  ;;  %v2161_v1 = vpop.permute.xlu2 %2160  ;;  %v8756_v42 = vpop.f32.mrf.mxu3 }
 0x2b1   : > { %2341 = vst.msk [vmem:[#allocation3 + $0x90] sm:$0xf] %vm2328_vm6, %v2161_v1  ;;  %v1289_v12 = vpop.permute.xlu1 %1288  ;;  %v1287_v23 = vpop.permute.xlu0 %1286 }
 0x2b2   : > { %1456 = vst.msk [vmem:[#allocation3 + $0x12c] sm:$0xf] %vm1430_vm4, %v1289_v12  ;;  %v8770_v21 = vpop.f32.mrf.mxu0 }
 0x2b3   : > { %1455 = vst.msk [vmem:[#allocation3 + $0x120] sm:$0xf] %vm1430_vm4, %v1287_v23 }
 0x2b4   : > { %1905 = vst.msk [vmem:[#allocation3 + $0x12c] sm:$0xf] %vm1879_vm5, %v1738_v13  ;;  %2813 = vrot.lane.b32.xlu2 %v8390_v63, %s7096_s17  ;;  %v5000_v63 = vpop.f32.mrf.mxu1 }
 0x2b7   : > { %2815 = vrot.lane.b32.xlu0 %v8386_v52, %s7096_s17  ;;  %v5001_v52 = vadd.f32 %v8439_v38, %v5000_v63  ;;  %v2606_v63 = vld [vmem:[#allocation2 + $0x112] sm:$0xff] }
 0x2b8   : > { %2170 = vrot.lane.b32.xlu1 %v8257_v14, %s7098_s19  ;;  %v1297_v17 = vpop.permute.xlu2 %1296  ;;  %v8777_v23 = vpop.f32.mrf.mxu3 }
 0x2b9   : > { %v5167_v36 = vpop.f32.mrf.mxu2  ;;  %1460 = vst.msk [vmem:[#allocation3 + $0x15c] sm:$0xf] %vm1430_vm4, %v1297_v17  ;;  %v1736_v13 = vpop.permute.xlu1 %1735  ;;  %6662 = vmatmul.msk.bf16.gmra.mxu0 %vm700_vm0, %v6437_v37  ;;  %v6448_v17 = vld [vmem:[#allocation3 + $0x200] sm:$0xf] }
 0x2ba   : > { %v2804_v56 = vpop.permute.xlu0 %2803  ;;  %1904 = vst.msk [vmem:[#allocation3 + $0x120] sm:$0xf] %vm1879_vm5, %v1736_v13  ;;  %v5168_v14 = vadd.f32 %v5167_v36, %v4999_v39  ;;  %v6795_v13 = vld [vmem:[#allocation3 + $0x208] sm:$0xf0]  ;;  %v8792_v39 = vld [vmem:[%s9938_s6] ss:$0 sm:$0xff] }
 0x2bb   : > { %2982 = vst.msk [vmem:[#allocation3 + $0xa0] sm:$0xf] %vm1430_vm4, %v2804_v56  ;;  %v8794_v56 = vpop.f32.mrf.mxu0 }
 0x2bc   : > { %3431 = vst.msk [vmem:[#allocation3 + $0xa0] sm:$0xf] %vm1879_vm5, %v8689_v4  ;;  %3264 = vrot.lane.b32.xlu2 %v8345_v34, %s7097_s11  ;;  %v5337_v1 = vadd.f32 %v8485_v22, %v5168_v14 }
 0x2be   : > { %v5487_v36 = vmax.f32 %v5337_v1, 0.0 }
 0x2bf   : > { %3710 = vrot.lane.b32.xlu0 %v8419_v26, %s7098_s19  ;;  %v6449_v26 = vor.u32 %v6795_v13, %v6448_v17 }
 0x2c0   : > { %3262 = vrot.lane.b32.xlu1 %v8410_v0, %s7097_s11  ;;  %v1744_v12 = vpop.permute.xlu2 %1743 }
 0x2c1   : > { %v5169_v60 = vpop.f32.mrf.mxu2  ;;  %v3701_v4 = vpop.permute.xlu1 %3700 }
 0x2c2   : > { %v5170_v5 = vadd.f32 %v5169_v60, %v5001_v52  ;;  %v1293_v30 = vpop.permute.xlu0 %1292  ;;  %3879 = vst.msk [vmem:[#allocation3 + $0xa0] sm:$0xf] %vm2328_vm6, %v3701_v4  ;;  %v2670_v60 = vpack.c.bf16 %v2606_v63, %v2606_v63 }
 0x2c3   : > { %1458 = vst.msk [vmem:[#allocation3 + $0x144] sm:$0xf] %vm1430_vm4, %v1293_v30 }
 0x2c4   : > { %v5339_v49 = vadd.f32 %v8504_v2, %v5170_v5  ;;  %2172 = vrot.lane.b32.xlu2 %v8291_v7, %s7098_s19  ;;  %v6925_v5 = vld [vmem:[%s7232_s16] sm:$0xff] }
 0x2c6   : > { %v5488_v37 = vmax.f32 %v5339_v49, 0.0 }
 0x2c7   : > { %2174 = vrot.lane.b32.xlu0 %v8297_v28, %s7098_s19  ;;  %v2605_v28 = vld [vmem:[#allocation2 + $0x10a] sm:$0xff] }
 0x2c8   : > { %v5548_v22 = vpack.c.bf16 %v5488_v37, %v5487_v36  ;;  %3712 = vrot.lane.b32.xlu1 %v8414_v47, %s7098_s19  ;;  %v2808_v2 = vpop.permute.xlu2 %2807  ;;  %v2669_v1 = vpack.c.bf16 %v2605_v28, %v2605_v28 }
 0x2c9   : > { %2984 = vst.msk [vmem:[#allocation3 + $0xb8] sm:$0xf] %vm1430_vm4, %v2808_v2  ;;  %v1742_v7 = vpop.permute.xlu1 %1741  ;;  %6663 = vmatmul.msk.bf16.gmra.mxu0 %vm700_vm0, %v6449_v26 }
 0x2ca   : > { %6685 = vmatmul.msk.bf16.gmra.mxu3 %vm700_vm0, %v5548_v22  ;;  %v1740_v47 = vpop.permute.xlu0 %1739  ;;  %1907 = vst.msk [vmem:[#allocation3 + $0x144] sm:$0xf] %vm1879_vm5, %v1742_v7  ;;  %v6926_v22 = vld [vmem:[%s7232_s16 + $0x8] sm:$0xff] }
 0x2cb   : > { %1906 = vst.msk [vmem:[#allocation3 + $0x138] sm:$0xf] %vm1879_vm5, %v1740_v47  ;;  %v5003_v47 = vpop.f32.mrf.mxu1 }
 0x2cc   : > { %2819 = vrot.lane.b32.xlu2 %v2670_v60, %s7096_s17 }
 0x2cd   : > { %v5702_v14 = vpop.f32.mrf.mxu3 }
 0x2ce   : > { %v5703_v52 = vadd.f32 %v8792_v39, %v5702_v14 }
 0x2cf   : > { %3266 = vrot.lane.b32.xlu0 %v8448_v16, %s7097_s11 }
 0x2d0   : > { %v5862_v4 = vadd.f32 %v6925_v5, %v5703_v52  ;;  %2817 = vrot.lane.b32.xlu1 %v2669_v1, %s7096_s17  ;;  %v8806_v49 = vpop.permute.xlu2 %3702  ;;  %v6262_v52 = vld [vmem:[#allocation3 + $0x9c] sm:$0xf0]  ;;  %v2608_v5 = vld [vmem:[#allocation2 + $0x12a] sm:$0xff] }
 0x2d1   : > { %v1295_v36 = vpop.permute.xlu1 %1294 }
 0x2d2   : > { %v5926_v30 = vmax.f32 %v5862_v4, 0.0  ;;  %v3699_v37 = vpop.permute.xlu0 %3698  ;;  %1459 = vst.msk [vmem:[#allocation3 + $0x150] sm:$0xf] %vm1430_vm4, %v1295_v36  ;;  %v5004_v4 = vadd.f32 %v8439_v38, %v5003_v47  ;;  %v2672_v36 = vpack.c.bf16 %v2608_v5, %v2608_v5  ;;  %v6927_v5 = vld [vmem:[%s7232_s16 + $0x10] sm:$0xff] }
 0x2d3   : > { %3878 = vst.msk [vmem:[#allocation3 + $0x94] sm:$0xf] %vm2328_vm6, %v3699_v37 }
 0x2d4   : > { %5990 = vst [vmem:[%s8810_s21] sm:$0xff] %v5926_v30  ;;  %3714 = vrot.lane.b32.xlu2 %v8455_v54, %s7098_s19 }
 0x2d5   : > { %v5704_v17 = vpop.f32.mrf.mxu3  ;;  %1908 = vst.msk [vmem:[#allocation3 + $0x150] sm:$0xf] %vm1879_vm5, %v1744_v12 }
 0x2d6   : > { %v5705_v13 = vadd.f32 %v8792_v39, %v5704_v17 }
 0x2d7   : > { %3716 = vrot.lane.b32.xlu0 %v8460_v58, %s7098_s19 }
 0x2d8   : > { %v5863_v26 = vadd.f32 %v6926_v22, %v5705_v13  ;;  %3268 = vrot.lane.b32.xlu1 %v8452_v53, %s7097_s11  ;;  %v1750_v7 = vpop.permute.xlu2 %1749 }
 0x2d9   : > { %v2806_v63 = vpop.permute.xlu1 %2805 }
 0x2da   : > { %v5927_v2 = vmax.f32 %v5863_v26, 0.0  ;;  %v1746_v28 = vpop.permute.xlu0 %1745  ;;  %v6748_v14 = vld [vmem:[#allocation3 + $0x94] sm:$0xf]  ;;  %2983 = vst.msk [vmem:[#allocation3 + $0xac] sm:$0xf] %vm1430_vm4, %v2806_v63 }
 0x2db   : > { %1909 = vst.msk [vmem:[#allocation3 + $0x15c] sm:$0xf] %vm1879_vm5, %v1746_v28  ;;  %v6265_v12 = vor.u32 %v6748_v14, %v6262_v52  ;;  %v6260_v14 = vld [vmem:[#allocation3 + $0x90] sm:$0xf] }
 0x2dc   : > { %5991 = vst [vmem:[%s8810_s21 + $0x8] sm:$0xff] %v5927_v2  ;;  %2178 = vrot.lane.b32.xlu2 %v8345_v34, %s7098_s19  ;;  %v5005_v34 = vpop.f32.mrf.mxu1 }
 0x2dd   : > { %5181 = vmatmul.bf16.gmra.mxu2 %v6265_v12  ;;  %v5172_v58 = vpop.f32.mrf.mxu2  ;;  %v2610_v12 = vld [vmem:[#allocation2 + $0x142] sm:$0xff] }
 0x2de   : > { %v5173_v30 = vadd.f32 %v5172_v58, %v5004_v4 }
 0x2df   : > { %2821 = vrot.lane.b32.xlu0 %v8483_v18, %s7096_s17 }
 0x2e0   : > { %2176 = vrot.lane.b32.xlu1 %v8410_v0, %s7098_s19  ;;  %v2167_v54 = vpop.permute.xlu2 %2166  ;;  %v5006_v0 = vadd.f32 %v8439_v38, %v5005_v34  ;;  %v5342_v17 = vadd.f32 %v8534_v9, %v5173_v30 }
 0x2e1   : > { %2344 = vst.msk [vmem:[#allocation3 + $0xb4] sm:$0xf] %vm2328_vm6, %v2167_v54  ;;  %v3257_v60 = vpop.permute.xlu1 %3256 }
 0x2e2   : > { %v1299_v1 = vpop.permute.xlu0 %1298  ;;  %3433 = vst.msk [vmem:[#allocation3 + $0xb8] sm:$0xf] %vm1879_vm5, %v3257_v60  ;;  %v5489_v38 = vmax.f32 %v5342_v17, 0.0 }
 0x2e3   : > { %1461 = vst.msk [vmem:[#allocation3 + $0x168] sm:$0xf] %vm1430_vm4, %v1299_v1 }
 0x2e4   : > { %3270 = vrot.lane.b32.xlu2 %v8508_v61, %s7097_s11 }
 0x2e5   : > { %v5174_v18 = vpop.f32.mrf.mxu2 }
 0x2e6   : > { %v5175_v13 = vadd.f32 %v5174_v18, %v5006_v0 }
 0x2e7   : > { %3272 = vrot.lane.b32.xlu0 %v8511_v11, %s7097_s11 }
 0x2e8   : > { %2823 = vrot.lane.b32.xlu1 %v2672_v36, %s7096_s17  ;;  %v3259_v37 = vpop.permute.xlu2 %3258  ;;  %v5344_v2 = vadd.f32 %v8559_v32, %v5175_v13  ;;  %v2609_v32 = vld [vmem:[#allocation2 + $0x13a] sm:$0xff]  ;;  %v6752_v0 = vld [vmem:[#allocation3 + $0xb0] sm:$0xf0] }
 0x2ea   : > { %v1301_v22 = vpop.permute.xlu1 %1300  ;;  %v2163_v26 = vpop.permute.xlu0 %2162  ;;  %v5490_v63 = vmax.f32 %v5344_v2, 0.0 }
 0x2eb   : > { %1462 = vst.msk [vmem:[#allocation3 + $0x174] sm:$0xf] %vm1430_vm4, %v1301_v22 }
 0x2ec   : > { %2342 = vst.msk [vmem:[#allocation3 + $0x9c] sm:$0xf] %vm2328_vm6, %v2163_v26  ;;  %3720 = vrot.lane.b32.xlu2 %v8517_v46, %s7098_s19  ;;  %v5549_v47 = vpack.c.bf16 %v5490_v63, %v5489_v38  ;;  %v6928_v38 = vld [vmem:[%s7232_s16 + $0x18] sm:$0xff] }
 0x2ed   : > { %1911 = vst.msk [vmem:[#allocation3 + $0x174] sm:$0xf] %vm1879_vm5, %v1750_v7 }
 0x2ee   : > { %6686 = vmatmul.msk.bf16.gmra.mxu3 %vm700_vm0, %v5549_v47 }
 0x2ef   : > { %2180 = vrot.lane.b32.xlu0 %v8448_v16, %s7098_s19  ;;  %v2673_v16 = vpack.c.bf16 %v2609_v32, %v2609_v32 }
 0x2f0   : > { %3718 = vrot.lane.b32.xlu1 %v8514_v62, %s7098_s19  ;;  %v1309_v9 = vpop.permute.xlu2 %1308  ;;  %v2674_v62 = vpack.c.bf16 %v2610_v12, %v2610_v12 }
 0x2f1   : > { %1466 = vst.msk [vmem:[#allocation3 + $0x1a4] sm:$0xf] %vm1430_vm4, %v1309_v9 }
 0x2f2   : > { %v1748_v28 = vpop.permute.xlu1 %1747  ;;  %v3255_v7 = vpop.permute.xlu0 %3254 }
 0x2f3   : > { %1910 = vst.msk [vmem:[#allocation3 + $0x168] sm:$0xf] %vm1879_vm5, %v1748_v28  ;;  %v6749_v52 = vld [vmem:[#allocation3 + $0x98] sm:$0xf0] }
 0x2f4   : > { %3432 = vst.msk [vmem:[#allocation3 + $0xac] sm:$0xf] %vm1879_vm5, %v3255_v7  ;;  %v6261_v46 = vor.u32 %v6749_v52, %v6260_v14  ;;  %2825 = vrot.lane.b32.xlu2 %v2673_v16, %s7096_s17  ;;  %v2611_v7 = vld [vmem:[#allocation2 + $0x152] sm:$0xff] }
 0x2f5   : > { %3880 = vst.msk [vmem:[#allocation3 + $0xac] sm:$0xf] %vm2328_vm6, %v8806_v49  ;;  %v2675_v14 = vpack.c.bf16 %v2611_v7, %v2611_v7 }
 0x2f6   : > { %5012 = vmatmul.bf16.gmra.mxu1 %v6261_v46 }
 0x2f7   : > { %2827 = vrot.lane.b32.xlu0 %v2674_v62, %s7096_s17  ;;  %v3062_v62 = vld [vmem:[#allocation2 + $0x180] sm:$0xff] }
 0x2f8   : > { %2182 = vrot.lane.b32.xlu1 %v8452_v53, %s7098_s19  ;;  %v1756_v58 = vpop.permute.xlu2 %1755 }
 0x2fa   : > { %v2165_v54 = vpop.permute.xlu1 %2164  ;;  %v3705_v60 = vpop.permute.xlu0 %3704 }
 0x2fb   : > { %2343 = vst.msk [vmem:[#allocation3 + $0xa8] sm:$0xf] %vm2328_vm6, %v2165_v54  ;;  %v3063_v54 = vld [vmem:[#allocation2 + $0x188] sm:$0xff] }
 0x2fc   : > { %3881 = vst.msk [vmem:[#allocation3 + $0xb8] sm:$0xf] %vm2328_vm6, %v3705_v60  ;;  %3276 = vrot.lane.b32.xlu2 %v8547_v15, %s7097_s11  ;;  %v6751_v17 = vld [vmem:[#allocation3 + $0xac] sm:$0xf]  ;;  %v2614_v60 = vld [vmem:[#allocation2 + $0x172] sm:$0xff] }
 0x2ff   : > { %3722 = vrot.lane.b32.xlu0 %v8538_v59, %s7098_s19 }
 0x300   : > { %3274 = vrot.lane.b32.xlu1 %v8551_v19, %s7097_s11  ;;  %v3709_v53 = vpop.permute.xlu2 %3708 }
 0x301   : > { %v5707_v1 = vpop.f32.mrf.mxu3 }
 0x302   : > { %v5708_v49 = vadd.f32 %v8792_v39, %v5707_v1  ;;  %v2812_v30 = vpop.permute.xlu1 %2811  ;;  %v6272_v36 = vld [vmem:[#allocation3 + $0xa8] sm:$0xf]  ;;  %v2810_v18 = vpop.permute.xlu0 %2809 }
 0x303   : > { %2986 = vst.msk [vmem:[#allocation3 + $0xd0] sm:$0xf] %vm1430_vm4, %v2812_v30  ;;  %v6274_v13 = vld [vmem:[#allocation3 + $0xb4] sm:$0xf0]  ;;  %v6273_v22 = vor.u32 %v6752_v0, %v6272_v36  ;;  %v8932_v0 = vld [vmem:[%s9936_s4] ss:$0 sm:$0xff] }
 0x304   : > { %v5864_v4 = vadd.f32 %v6927_v5, %v5708_v49  ;;  %v6277_v26 = vor.u32 %v6751_v17, %v6274_v13  ;;  %2985 = vst.msk [vmem:[#allocation3 + $0xc4] sm:$0xf] %vm1430_vm4, %v2810_v18  ;;  %2184 = vrot.lane.b32.xlu2 %v8508_v61, %s7098_s19  ;;  %v8916_v5 = vpack.c.bf16 %v3062_v62, %v3062_v62 }
 0x305   : > { %3434 = vst.msk [vmem:[#allocation3 + $0xc4] sm:$0xf] %vm1879_vm5, %v3259_v37  ;;  %v2612_v37 = vld [vmem:[#allocation2 + $0x15a] sm:$0xff] }
 0x306   : > { %v5928_v34 = vmax.f32 %v5864_v4, 0.0  ;;  %5186 = vmatmul.bf16.gmra.mxu2 %v6277_v26  ;;  %5017 = vmatmul.bf16.gmra.mxu1 %v6273_v22  ;;  %v2676_v61 = vpack.c.bf16 %v2612_v37, %v2612_v37  ;;  %v6930_v22 = vld [vmem:[%s7232_s16 + $0x20] sm:$0xff] }
 0x307   : > { %2186 = vrot.lane.b32.xlu0 %v8511_v11, %s7098_s19 }
 0x308   : > { %5992 = vst [vmem:[%s8810_s21 + $0x10] sm:$0xff] %v5928_v34  ;;  %3724 = vrot.lane.b32.xlu1 %v8555_v55, %s7098_s19  ;;  %v1762_v47 = vpop.permute.xlu2 %1761 }
 0x309   : > { %v5709_v2 = vpop.f32.mrf.mxu3 }
 0x30a   : > { %v5710_v59 = vadd.f32 %v8792_v39, %v5709_v2  ;;  %v1307_v28 = vpop.permute.xlu1 %1306  ;;  %v1758_v32 = vpop.permute.xlu0 %1757 }
 0x30b   : > { %1465 = vst.msk [vmem:[#allocation3 + $0x198] sm:$0xf] %vm1430_vm4, %v1307_v28 }
 0x30c   : > { %v5865_v63 = vadd.f32 %v6928_v38, %v5710_v59  ;;  %1915 = vst.msk [vmem:[#allocation3 + $0x1a4] sm:$0xf] %vm1879_vm5, %v1758_v32  ;;  %2831 = vrot.lane.b32.xlu2 %v2676_v61, %s7096_s17 }
 0x30d   : > { %1914 = vst.msk [vmem:[#allocation3 + $0x198] sm:$0xf] %vm1879_vm5, %v1756_v58 }
 0x30e   : > { %v5929_v9 = vmax.f32 %v5865_v63, 0.0 }
 0x30f   : > { %3278 = vrot.lane.b32.xlu0 %v8586_v44, %s7097_s11 }
 0x310   : > { %5993 = vst [vmem:[%s8810_s21 + $0x18] sm:$0xff] %v5929_v9  ;;  %2829 = vrot.lane.b32.xlu1 %v2675_v14, %s7096_s17  ;;  %v2814_v11 = vpop.permute.xlu2 %2813  ;;  %v2615_v9 = vld [vmem:[#allocation2 + $0x182] sm:$0xff] }
 0x311   : > { %2987 = vst.msk [vmem:[#allocation3 + $0xdc] sm:$0xf] %vm1430_vm4, %v2814_v11  ;;  %v2679_v61 = vpack.c.bf16 %v2615_v9, %v2615_v9  ;;  %v2618_v9 = vld [vmem:[#allocation2 + $0x1d2] sm:$0xff] }
 0x312   : > { %v3707_v55 = vpop.permute.xlu1 %3706  ;;  %v1311_v52 = vpop.permute.xlu0 %1310 }
 0x313   : > { %3882 = vst.msk [vmem:[#allocation3 + $0xc4] sm:$0xf] %vm2328_vm6, %v3707_v55 }
 0x314   : > { %1467 = vst.msk [vmem:[#allocation3 + $0x1b0] sm:$0xf] %vm1430_vm4, %v1311_v52  ;;  %3726 = vrot.lane.b32.xlu2 %v8595_v43, %s7098_s19 }
 0x317   : > { %3728 = vrot.lane.b32.xlu0 %v8601_v27, %s7098_s19 }
 0x318   : > { %3280 = vrot.lane.b32.xlu1 %v8592_v51, %s7097_s11  ;;  %v3265_v46 = vpop.permute.xlu2 %3264 }
 0x31a   : > { %v1313_v12 = vpop.permute.xlu1 %1312  ;;  %v3261_v16 = vpop.permute.xlu0 %3260  ;;  %v6754_v1 = vld [vmem:[#allocation3 + $0xc4] sm:$0xf] }
 0x31b   : > { %1468 = vst.msk [vmem:[#allocation3 + $0x1bc] sm:$0xf] %vm1430_vm4, %v1313_v12 }
 0x31c   : > { %3435 = vst.msk [vmem:[#allocation3 + $0xd0] sm:$0xf] %vm1879_vm5, %v3261_v16  ;;  %2190 = vrot.lane.b32.xlu2 %v8547_v15, %s7098_s19  ;;  %v3065_v16 = vld [vmem:[#allocation2 + $0x1a0] sm:$0xff] }
 0x31d   : > { %3883 = vst.msk [vmem:[#allocation3 + $0xd0] sm:$0xf] %vm2328_vm6, %v3709_v53  ;;  %v5177_v53 = vpop.f32.mrf.mxu2 }
 0x31e   : > { %1917 = vst.msk [vmem:[#allocation3 + $0x1bc] sm:$0xf] %vm1879_vm5, %v1762_v47 }
 0x31f   : > { %2833 = vrot.lane.b32.xlu0 %v8625_v33, %s7096_s17  ;;  %v8918_v33 = vpack.c.bf16 %v3063_v54, %v3063_v54 }
 0x320   : > { %2188 = vrot.lane.b32.xlu1 %v8551_v19, %s7098_s19  ;;  %v2173_v43 = vpop.permute.xlu2 %2172  ;;  %v2678_v19 = vpack.c.bf16 %v2614_v60, %v2614_v60 }
 0x321   : > { %2347 = vst.msk [vmem:[#allocation3 + $0xd8] sm:$0xf] %vm2328_vm6, %v2173_v43  ;;  %v6931_v43 = vld [vmem:[%s7232_s16 + $0x28] sm:$0xff] }
 0x322   : > { %v1760_v27 = vpop.permute.xlu1 %1759  ;;  %v2169_v58 = vpop.permute.xlu0 %2168 }
 0x323   : > { %1916 = vst.msk [vmem:[#allocation3 + $0x1b0] sm:$0xf] %vm1879_vm5, %v1760_v27 }
 0x324   : > { %2345 = vst.msk [vmem:[#allocation3 + $0xc0] sm:$0xf] %vm2328_vm6, %v2169_v58  ;;  %v6286_v15 = vld [vmem:[#allocation3 + $0xcc] sm:$0xf0]  ;;  %3282 = vrot.lane.b32.xlu2 %v8916_v5, %s7097_s11 }
 0x325   : > { %v6289_v49 = vor.u32 %v6754_v1, %v6286_v15  ;;  %v5179_v7 = vpop.f32.mrf.mxu2  ;;  %v3512_v1 = vld [vmem:[#allocation2 + $0x199] sm:$0xff] }
 0x327   : > { %5191 = vmatmul.bf16.gmra.mxu2 %v6289_v49  ;;  %3284 = vrot.lane.b32.xlu0 %v8918_v33, %s7097_s11 }
 0x328   : > { %2835 = vrot.lane.b32.xlu1 %v2678_v19, %s7096_s17  ;;  %v2820_v4 = vpop.permute.xlu2 %2819 }
 0x329   : > { %2990 = vst.msk [vmem:[#allocation3 + $0x100] sm:$0xf] %vm1430_vm4, %v2820_v4  ;;  %v5008_v36 = vpop.f32.mrf.mxu1  ;;  %v3576_v4 = vpack.c.bf16 %v3512_v1, %v3512_v1 }
 0x32a   : > { %v2171_v34 = vpop.permute.xlu1 %2170  ;;  %v2816_v30 = vpop.permute.xlu0 %2815  ;;  %v5009_v18 = vadd.f32 %v8932_v0, %v5008_v36 }
 0x32b   : > { %2346 = vst.msk [vmem:[#allocation3 + $0xcc] sm:$0xf] %vm2328_vm6, %v2171_v34  ;;  %v6284_v63 = vld [vmem:[#allocation3 + $0xc0] sm:$0xf] }
 0x32c   : > { %2988 = vst.msk [vmem:[#allocation3 + $0xe8] sm:$0xf] %vm1430_vm4, %v2816_v30  ;;  %3732 = vrot.lane.b32.xlu2 %v8638_v29, %s7098_s19  ;;  %v5178_v59 = vadd.f32 %v5177_v53, %v5009_v18  ;;  %v3513_v34 = vld [vmem:[#allocation2 + $0x1a1] sm:$0xff] }
 0x32d   : > { %3437 = vst.msk [vmem:[#allocation3 + $0xe8] sm:$0xf] %vm1879_vm5, %v3265_v46 }
 0x32e   : > { %v5347_v14 = vadd.f32 %v8579_v40, %v5178_v59  ;;  %v3064_v40 = vld [vmem:[#allocation2 + $0x198] sm:$0xff] }
 0x32f   : > { %2192 = vrot.lane.b32.xlu0 %v8586_v44, %s7098_s19  ;;  %v2616_v44 = vld [vmem:[#allocation2 + $0x18a] sm:$0xff]  ;;  %v3128_v19 = vpack.c.bf16 %v3064_v40, %v3064_v40 }
 0x330   : > { %v5712_v17 = vpop.f32.mrf.mxu3  ;;  %3730 = vrot.lane.b32.xlu1 %v8633_v48, %s7098_s19  ;;  %v8943_v2 = vpop.permute.xlu2 %3714  ;;  %v2680_v46 = vpack.c.bf16 %v2616_v44, %v2616_v44  ;;  %v5491_v58 = vmax.f32 %v5347_v14, 0.0 }
 0x331   : > { %v5713_v13 = vadd.f32 %v8792_v39, %v5712_v17  ;;  %v5010_v32 = vpop.f32.mrf.mxu1 }
 0x332   : > { %v3263_v38 = vpop.permute.xlu1 %3262  ;;  %v6755_v47 = vld [vmem:[#allocation3 + $0xc8] sm:$0xf0]  ;;  %v3711_v37 = vpop.permute.xlu0 %3710  ;;  %v5011_v48 = vadd.f32 %v8932_v0, %v5010_v32 }
 0x333   : > { %v5866_v26 = vadd.f32 %v6930_v22, %v5713_v13  ;;  %3436 = vst.msk [vmem:[#allocation3 + $0xdc] sm:$0xf] %vm1879_vm5, %v3263_v38  ;;  %v6285_v29 = vor.u32 %v6755_v47, %v6284_v63  ;;  %v6296_v13 = vld [vmem:[#allocation3 + $0xd8] sm:$0xf]  ;;  %v3577_v38 = vpack.c.bf16 %v3513_v34, %v3513_v34 }
 0x334   : > { %3884 = vst.msk [vmem:[#allocation3 + $0xdc] sm:$0xf] %vm2328_vm6, %v3711_v37  ;;  %v5180_v11 = vadd.f32 %v5179_v7, %v5011_v48  ;;  %2837 = vrot.lane.b32.xlu2 %v2679_v61, %s7096_s17  ;;  %v2617_v37 = vld [vmem:[#allocation2 + $0x1ca] sm:$0xff] }
 0x335   : > { %v5930_v28 = vmax.f32 %v5866_v26, 0.0  ;;  %5022 = vmatmul.bf16.gmra.mxu1 %v6285_v29  ;;  %v2682_v29 = vpack.c.bf16 %v2618_v9, %v2618_v9  ;;  %v6932_v48 = vld [vmem:[%s7232_s16 + $0x30] sm:$0xff]  ;;  %v2621_v9 = vld [vmem:[#allocation2 + $0x1fa] sm:$0xff] }
 0x336   : > { %v5349_v12 = vadd.f32 %v8614_v8, %v5180_v11  ;;  %v3129_v8 = vpack.c.bf16 %v3065_v16, %v3065_v16  ;;  %v6933_v16 = vld [vmem:[%s7232_s16 + $0x38] sm:$0xff] }
 0x337   : > { %5994 = vst [vmem:[%s8810_s21 + $0x20] sm:$0xff] %v5930_v28  ;;  %2839 = vrot.lane.b32.xlu0 %v2680_v46, %s7096_s17 }
 0x338   : > { %v5714_v55 = vpop.f32.mrf.mxu3  ;;  %2194 = vrot.lane.b32.xlu1 %v8592_v51, %s7098_s19  ;;  %v2179_v62 = vpop.permute.xlu2 %2178  ;;  %v5492_v54 = vmax.f32 %v5349_v12, 0.0 }
 0x339   : > { %v5715_v52 = vadd.f32 %v8792_v39, %v5714_v55  ;;  %2350 = vst.msk [vmem:[#allocation3 + $0xfc] sm:$0xf] %vm2328_vm6, %v2179_v62 }
 0x33a   : > { %v3713_v60 = vpop.permute.xlu1 %3712  ;;  %v2175_v49 = vpop.permute.xlu0 %2174  ;;  %v5550_v51 = vpack.c.bf16 %v5492_v54, %v5491_v58  ;;  %v2619_v54 = vld [vmem:[#allocation2 + $0x1e2] sm:$0xff] }
 0x33b   : > { %v5867_v27 = vadd.f32 %v6931_v43, %v5715_v52  ;;  %3885 = vst.msk [vmem:[#allocation3 + $0xe8] sm:$0xf] %vm2328_vm6, %v3713_v60  ;;  %v6757_v36 = vld [vmem:[#allocation3 + $0xdc] sm:$0xf] }
 0x33c   : > { %2348 = vst.msk [vmem:[#allocation3 + $0xe4] sm:$0xf] %vm2328_vm6, %v2175_v49  ;;  %6687 = vmatmul.msk.bf16.gmra.mxu3 %vm700_vm0, %v5550_v51  ;;  %3288 = vrot.lane.b32.xlu2 %v3129_v8, %s7097_s11  ;;  %v3068_v8 = vld [vmem:[#allocation2 + $0x1f8] sm:$0xff] }
 0x33d   : > { %v5931_v15 = vmax.f32 %v5867_v27, 0.0 }
 0x33f   : > { %5995 = vst [vmem:[%s8810_s21 + $0x28] sm:$0xff] %v5931_v15  ;;  %3734 = vrot.lane.b32.xlu0 %v3576_v4, %s7098_s19  ;;  %v2683_v15 = vpack.c.bf16 %v2619_v54, %v2619_v54  ;;  %v3069_v4 = vld [vmem:[#allocation2 + $0x200] sm:$0xff] }
 0x340   : > { %3286 = vrot.lane.b32.xlu1 %v3128_v19, %s7097_s11  ;;  %v3271_v53 = vpop.permute.xlu2 %3270  ;;  %v6761_v1 = vld [vmem:[#allocation3 + $0xf8] sm:$0xf0]  ;;  %v2620_v19 = vld [vmem:[#allocation2 + $0x1ea] sm:$0xff]  ;;  %v9009_v34 = vpack.c.bf16 %v3069_v4, %v3069_v4 }
 0x342   : > { %v2818_v30 = vpop.permute.xlu1 %2817  ;;  %v6298_v18 = vld [vmem:[#allocation3 + $0xe4] sm:$0xf0]  ;;  %v3267_v17 = vpop.permute.xlu0 %3266 }
 0x343   : > { %2989 = vst.msk [vmem:[#allocation3 + $0xf4] sm:$0xf] %vm1430_vm4, %v2818_v30  ;;  %v6758_v22 = vld [vmem:[#allocation3 + $0xe0] sm:$0xf0]  ;;  %v6301_v26 = vor.u32 %v6757_v36, %v6298_v18 }
 0x344   : > { %3438 = vst.msk [vmem:[#allocation3 + $0xf4] sm:$0xf] %vm1879_vm5, %v3267_v17  ;;  %v6297_v59 = vor.u32 %v6758_v22, %v6296_v13  ;;  %2196 = vrot.lane.b32.xlu2 %v8916_v5, %s7098_s19  ;;  %v2681_v5 = vpack.c.bf16 %v2617_v37, %v2617_v37  ;;  %v10015_v22 = vld [vmem:[#allocation11_spill] sm:$0xff] }
 0x345   : > { %3886 = vst.msk [vmem:[#allocation3 + $0xf4] sm:$0xf] %vm2328_vm6, %v8943_v2  ;;  %5196 = vmatmul.bf16.gmra.mxu2 %v6301_v26 }
 0x346   : > { %5027 = vmatmul.bf16.gmra.mxu1 %v6297_v59 }
 0x347   : > { %2198 = vrot.lane.b32.xlu0 %v8918_v33, %s7098_s19 }
 0x348   : > { %3736 = vrot.lane.b32.xlu1 %v3577_v38, %s7098_s19  ;;  %v3721_v63 = vpop.permute.xlu2 %3720 }
 0x34a   : > { %v3269_v47 = vpop.permute.xlu1 %3268  ;;  %v3717_v28 = vpop.permute.xlu0 %3716 }
 0x34b   : > { %3439 = vst.msk [vmem:[#allocation3 + $0x100] sm:$0xf] %vm1879_vm5, %v3269_v47 }
 0x34c   : > { %3887 = vst.msk [vmem:[#allocation3 + $0x100] sm:$0xf] %vm2328_vm6, %v3717_v28  ;;  %2843 = vrot.lane.b32.xlu2 %v2682_v29, %s7096_s17  ;;  %v6760_v11 = vld [vmem:[#allocation3 + $0xf4] sm:$0xf]  ;;  %v2685_v29 = vpack.c.bf16 %v2621_v9, %v2621_v9 }
 0x34d   : > { %v5717_v2 = vpop.f32.mrf.mxu3 }
 0x34e   : > { %v5718_v32 = vadd.f32 %v8792_v39, %v5717_v2 }
 0x34f   : > { %3290 = vrot.lane.b32.xlu0 %v8700_v41, %s7097_s11 }
 0x350   : > { %v5868_v44 = vadd.f32 %v6932_v48, %v5718_v32  ;;  %2841 = vrot.lane.b32.xlu1 %v2681_v5, %s7096_s17  ;;  %v2826_v7 = vpop.permute.xlu2 %2825 }
 0x351   : > { %2993 = vst.msk [vmem:[#allocation3 + $0x124] sm:$0xf] %vm1430_vm4, %v2826_v7 }
 0x352   : > { %v5932_v33 = vmax.f32 %v5868_v44, 0.0  ;;  %v2177_v61 = vpop.permute.xlu1 %2176  ;;  %v2822_v14 = vpop.permute.xlu0 %2821  ;;  %v6934_v44 = vld [vmem:[%s7232_s16 + $0x40] sm:$0xff] }
 0x353   : > { %v6310_v55 = vld [vmem:[#allocation3 + $0xfc] sm:$0xf0]  ;;  %2991 = vst.msk [vmem:[#allocation3 + $0x10c] sm:$0xf] %vm1430_vm4, %v2822_v14 }
 0x354   : > { %5996 = vst [vmem:[%s8810_s21 + $0x30] sm:$0xff] %v5932_v33  ;;  %v6313_v46 = vor.u32 %v6760_v11, %v6310_v55  ;;  %3738 = vrot.lane.b32.xlu2 %v8712_v45, %s7098_s19  ;;  %v3071_v55 = vld [vmem:[#allocation2 + $0x218] sm:$0xff] }
 0x355   : > { %v5719_v52 = vpop.f32.mrf.mxu3  ;;  %3440 = vst.msk [vmem:[#allocation3 + $0x10c] sm:$0xf] %vm1879_vm5, %v3271_v53  ;;  %v9007_v53 = vpack.c.bf16 %v3068_v8, %v3068_v8 }
 0x356   : > { %v5720_v12 = vadd.f32 %v8792_v39, %v5719_v52  ;;  %2349 = vst.msk [vmem:[#allocation3 + $0xf0] sm:$0xf] %vm2328_vm6, %v2177_v61  ;;  %5201 = vmatmul.bf16.gmra.mxu2 %v6313_v46 }
 0x357   : > { %3740 = vrot.lane.b32.xlu0 %v8717_v24, %s7098_s19 }
 0x358   : > { %v5869_v43 = vadd.f32 %v6933_v16, %v5720_v12  ;;  %3292 = vrot.lane.b32.xlu1 %v8708_v35, %s7097_s11  ;;  %v3277_v62 = vpop.permute.xlu2 %3276  ;;  %v3070_v12 = vld [vmem:[#allocation2 + $0x210] sm:$0xff] }
 0x359   : > { %v9046_v54 = vpack.c.bf16 %v3070_v12, %v3070_v12 }
 0x35a   : > { %v5933_v27 = vmax.f32 %v5869_v43, 0.0  ;;  %v2824_v40 = vpop.permute.xlu1 %2823  ;;  %v3273_v58 = vpop.permute.xlu0 %3272 }
 0x35b   : > { %2992 = vst.msk [vmem:[#allocation3 + $0x118] sm:$0xf] %vm1430_vm4, %v2824_v40 }
 0x35c   : > { %5997 = vst [vmem:[%s8810_s21 + $0x38] sm:$0xff] %v5933_v27  ;;  %2202 = vrot.lane.b32.xlu2 %v8666_v57, %s7098_s19  ;;  %v2684_v57 = vpack.c.bf16 %v2620_v19, %v2620_v19 }
 0x35d   : > { %3441 = vst.msk [vmem:[#allocation3 + $0x118] sm:$0xf] %vm1879_vm5, %v3273_v58  ;;  %v6308_v60 = vld [vmem:[#allocation3 + $0xf0] sm:$0xf] }
 0x35e   : > { %3889 = vst.msk [vmem:[#allocation3 + $0x118] sm:$0xf] %vm2328_vm6, %v3721_v63  ;;  %v6309_v45 = vor.u32 %v6761_v1, %v6308_v60  ;;  %v10016_v60 = vld [vmem:[#allocation50_spill] sm:$0xff] }
 0x35f   : > { %2845 = vrot.lane.b32.xlu0 %v2683_v15, %s7096_s17 }
 0x360   : > { %5032 = vmatmul.bf16.gmra.mxu1 %v6309_v45  ;;  %2200 = vrot.lane.b32.xlu1 %v8672_v31, %s7098_s19  ;;  %v2185_v24 = vpop.permute.xlu2 %2184  ;;  %v5182_v59 = vpop.f32.mrf.mxu2  ;;  %v6935_v45 = vld [vmem:[%s7232_s16 + $0x48] sm:$0xff] }
 0x361   : > { %2353 = vst.msk [vmem:[#allocation3 + $0x120] sm:$0xf] %vm2328_vm6, %v2185_v24  ;;  %v10017_v24 = vld [vmem:[#allocation13_spill] sm:$0xff] }
 0x362   : > { %v3719_v49 = vpop.permute.xlu1 %3718  ;;  %v2181_v51 = vpop.permute.xlu0 %2180 }
 0x363   : > { %3888 = vst.msk [vmem:[#allocation3 + $0x10c] sm:$0xf] %vm2328_vm6, %v3719_v49 }
 0x364   : > { %2351 = vst.msk [vmem:[#allocation3 + $0x108] sm:$0xf] %vm2328_vm6, %v2181_v51  ;;  %3294 = vrot.lane.b32.xlu2 %v9007_v53, %s7097_s11 }
 0x365   : > { %v6322_v18 = vld [vmem:[#allocation3 + $0x114] sm:$0xf0] }
 0x367   : > { %3296 = vrot.lane.b32.xlu0 %v9009_v34, %s7097_s11 }
 0x368   : > { %2847 = vrot.lane.b32.xlu1 %v2684_v57, %s7096_s17  ;;  %v2832_v31 = vpop.permute.xlu2 %2831  ;;  %v5184_v43 = vpop.f32.mrf.mxu2 }
 0x369   : > { %2996 = vst.msk [vmem:[#allocation3 + $0x148] sm:$0xf] %vm1430_vm4, %v2832_v31 }
 0x36a   : > { %v2183_v30 = vpop.permute.xlu1 %2182  ;;  %v6763_v36 = vld [vmem:[#allocation3 + $0x10c] sm:$0xf]  ;;  %v2828_v17 = vpop.permute.xlu0 %2827 }
 0x36b   : > { %2352 = vst.msk [vmem:[#allocation3 + $0x114] sm:$0xf] %vm2328_vm6, %v2183_v30  ;;  %v6325_v13 = vor.u32 %v6763_v36, %v6322_v18  ;;  %v6320_v63 = vld [vmem:[#allocation3 + $0x108] sm:$0xf]  ;;  %v6332_v18 = vld [vmem:[#allocation3 + $0x120] sm:$0xf] }
 0x36c   : > { %2994 = vst.msk [vmem:[#allocation3 + $0x130] sm:$0xf] %vm1430_vm4, %v2828_v17  ;;  %3744 = vrot.lane.b32.xlu2 %v7735_v25, %s7098_s19  ;;  %v2622_v25 = vld [vmem:[#allocation2 + $0x202] sm:$0xff] }
 0x36d   : > { %3443 = vst.msk [vmem:[#allocation3 + $0x130] sm:$0xf] %vm1879_vm5, %v3277_v62  ;;  %5206 = vmatmul.bf16.gmra.mxu2 %v6325_v13  ;;  %v2686_v48 = vpack.c.bf16 %v2622_v25, %v2622_v25  ;;  %v9043_v62 = vpack.c.bf16 %v3071_v55, %v3071_v55 }
 0x36f   : > { %2204 = vrot.lane.b32.xlu0 %v8700_v41, %s7098_s19 }
 0x370   : > { %3742 = vrot.lane.b32.xlu1 %v10015_v22, %s7098_s19  ;;  %v9026_v26 = vpop.permute.xlu2 %3726  ;;  %v10018_v22 = vld [vmem:[#allocation12_spill] sm:$0xff] }
 0x371   : > { %v5722_v41 = vpop.f32.mrf.mxu3 }
 0x372   : > { %v3275_v38 = vpop.permute.xlu1 %3274  ;;  %v6764_v47 = vld [vmem:[#allocation3 + $0x110] sm:$0xf0]  ;;  %v3723_v28 = vpop.permute.xlu0 %3722  ;;  %v5723_v5 = vadd.f32 %v8792_v39, %v5722_v41 }
 0x373   : > { %v5013_v37 = vpop.f32.mrf.mxu1  ;;  %3442 = vst.msk [vmem:[#allocation3 + $0x124] sm:$0xf] %vm1879_vm5, %v3275_v38  ;;  %v6321_v2 = vor.u32 %v6764_v47, %v6320_v63  ;;  %v2624_v47 = vld [vmem:[#allocation2 + $0x21a] sm:$0xff] }
 0x374   : > { %3890 = vst.msk [vmem:[#allocation3 + $0x124] sm:$0xf] %vm2328_vm6, %v3723_v28  ;;  %v5014_v32 = vadd.f32 %v8932_v0, %v5013_v37  ;;  %2849 = vrot.lane.b32.xlu2 %v2685_v29, %s7096_s17  ;;  %v5870_v33 = vadd.f32 %v6934_v44, %v5723_v5  ;;  %v3072_v37 = vld [vmem:[#allocation2 + $0x228] sm:$0xff] }
 0x375   : > { %5037 = vmatmul.bf16.gmra.mxu1 %v6321_v2  ;;  %v9071_v2 = vpack.c.bf16 %v2624_v47, %v2624_v47 }
 0x376   : > { %v5183_v7 = vadd.f32 %v5182_v59, %v5014_v32  ;;  %v5934_v14 = vmax.f32 %v5870_v33, 0.0 }
 0x377   : > { %2851 = vrot.lane.b32.xlu0 %v2686_v48, %s7096_s17  ;;  %v10019_v48 = vld [vmem:[#allocation52_spill] sm:$0xff] }
 0x378   : > { %2206 = vrot.lane.b32.xlu1 %v8708_v35, %s7098_s19  ;;  %v2191_v61 = vpop.permute.xlu2 %2190  ;;  %5998 = vst [vmem:[%s8810_s21 + $0x40] sm:$0xff] %v5934_v14  ;;  %v5352_v35 = vadd.f32 %v8635_v20, %v5183_v7 }
 0x379   : > { %2356 = vst.msk [vmem:[#allocation3 + $0x144] sm:$0xf] %vm2328_vm6, %v2191_v61  ;;  %v5724_v27 = vpop.f32.mrf.mxu3  ;;  %v3073_v61 = vld [vmem:[#allocation2 + $0x230] sm:$0xff] }
 0x37a   : > { %v3725_v11 = vpop.permute.xlu1 %3724  ;;  %v2187_v52 = vpop.permute.xlu0 %2186  ;;  %v5725_v58 = vadd.f32 %v8792_v39, %v5724_v27  ;;  %v5493_v20 = vmax.f32 %v5352_v35, 0.0  ;;  %v9090_v35 = vpack.c.bf16 %v3073_v61, %v3073_v61  ;;  %v10021_v27 = vld [vmem:[#allocation14_spill] sm:$0xff]  ;;  %v2627_v61 = vld [vmem:[#allocation2 + $0x242] sm:$0xff] }
 0x37b   : > { %v5015_v46 = vpop.f32.mrf.mxu1  ;;  %3891 = vst.msk [vmem:[#allocation3 + $0x130] sm:$0xf] %vm2328_vm6, %v3725_v11  ;;  %v6766_v19 = vld [vmem:[#allocation3 + $0x124] sm:$0xf] }
 0x37c   : > { %v5016_v16 = vadd.f32 %v8932_v0, %v5015_v46  ;;  %2354 = vst.msk [vmem:[#allocation3 + $0x12c] sm:$0xf] %vm2328_vm6, %v2187_v52  ;;  %3300 = vrot.lane.b32.xlu2 %v9043_v62, %s7097_s11  ;;  %v5871_v15 = vadd.f32 %v6935_v45, %v5725_v58  ;;  %v10020_v52 = vld [vmem:[#allocation54_spill] sm:$0xff]  ;;  %v10022_v58 = vld [vmem:[#allocation15_spill] sm:$0xff] }
 0x37e   : > { %v5185_v40 = vadd.f32 %v5184_v43, %v5016_v16  ;;  %v5935_v39 = vmax.f32 %v5871_v15, 0.0 }
 0x37f   : > { %3746 = vrot.lane.b32.xlu0 %v10017_v24, %s7098_s19 }
 0x380   : > { %v5354_v1 = vadd.f32 %v10016_v60, %v5185_v40  ;;  %3298 = vrot.lane.b32.xlu1 %v9046_v54, %s7097_s11  ;;  %v3283_v49 = vpop.permute.xlu2 %3282  ;;  %5999 = vst [vmem:[%s8810_s21 + $0x48] sm:$0xff] %v5935_v39  ;;  %v6770_v15 = vld [vmem:[#allocation3 + $0x140] sm:$0xf0] }
 0x382   : > { %v5494_v8 = vmax.f32 %v5354_v1, 0.0  ;;  %v2830_v51 = vpop.permute.xlu1 %2829  ;;  %v6334_v4 = vld [vmem:[#allocation3 + $0x12c] sm:$0xf0]  ;;  %v3279_v57 = vpop.permute.xlu0 %3278 }
 0x383   : > { %2995 = vst.msk [vmem:[#allocation3 + $0x13c] sm:$0xf] %vm1430_vm4, %v2830_v51  ;;  %v5018_v31 = vpop.f32.mrf.mxu1  ;;  %v6337_v30 = vor.u32 %v6766_v19, %v6334_v4  ;;  %v6767_v17 = vld [vmem:[#allocation3 + $0x128] sm:$0xf0]  ;;  %v3074_v19 = vld [vmem:[#allocation2 + $0x240] sm:$0xff] }
 0x384   : > { %v5551_v36 = vpack.c.bf16 %v5494_v8, %v5493_v20  ;;  %3444 = vst.msk [vmem:[#allocation3 + $0x13c] sm:$0xf] %vm1879_vm5, %v3279_v57  ;;  %v6333_v13 = vor.u32 %v6767_v17, %v6332_v18  ;;  %2208 = vrot.lane.b32.xlu2 %v9007_v53, %s7098_s19  ;;  %v5019_v28 = vadd.f32 %v8932_v0, %v5018_v31  ;;  %v2626_v57 = vld [vmem:[#allocation2 + $0x232] sm:$0xff]  ;;  %v3075_v31 = vld [vmem:[#allocation2 + $0x248] sm:$0xff] }
 0x385   : > { %5211 = vmatmul.bf16.gmra.mxu2 %v6337_v30  ;;  %3892 = vst.msk [vmem:[#allocation3 + $0x13c] sm:$0xf] %vm2328_vm6, %v9026_v26  ;;  %v2623_v26 = vld [vmem:[#allocation2 + $0x212] sm:$0xff]  ;;  %v9113_v30 = vpack.c.bf16 %v3074_v19, %v3074_v19 }
 0x386   : > { %6688 = vmatmul.msk.bf16.gmra.mxu3 %vm700_vm0, %v5551_v36  ;;  %5042 = vmatmul.bf16.gmra.mxu1 %v6333_v13  ;;  %v9073_v32 = vpack.c.bf16 %v2623_v26, %v2623_v26 }
 0x387   : > { %2210 = vrot.lane.b32.xlu0 %v9009_v34, %s7098_s19  ;;  %v9075_v34 = vpack.c.bf16 %v3072_v37, %v3072_v37 }
 0x388   : > { %3748 = vrot.lane.b32.xlu1 %v10018_v22, %s7098_s19  ;;  %v3733_v38 = vpop.permute.xlu2 %3732 }
 0x389   : > { %v5187_v59 = vpop.f32.mrf.mxu2 }
 0x38a   : > { %v3281_v63 = vpop.permute.xlu1 %3280  ;;  %v3729_v9 = vpop.permute.xlu0 %3728  ;;  %v5188_v25 = vadd.f32 %v5187_v59, %v5019_v28 }
 0x38b   : > { %3445 = vst.msk [vmem:[#allocation3 + $0x148] sm:$0xf] %vm1879_vm5, %v3281_v63  ;;  %v5020_v53 = vpop.f32.mrf.mxu1  ;;  %v10024_v63 = vld [vmem:[#allocation23_spill] sm:$0xff] }
 0x38c   : > { %3893 = vst.msk [vmem:[#allocation3 + $0x148] sm:$0xf] %vm2328_vm6, %v3729_v9  ;;  %2855 = vrot.lane.b32.xlu2 %v9071_v2, %s7096_s17  ;;  %v5021_v41 = vadd.f32 %v8932_v0, %v5020_v53  ;;  %v5357_v44 = vadd.f32 %v10019_v48, %v5188_v25  ;;  %v6769_v11 = vld [vmem:[#allocation3 + $0x13c] sm:$0xf] }
 0x38e   : > { %v5495_v16 = vmax.f32 %v5357_v44, 0.0  ;;  %v2628_v44 = vld [vmem:[#allocation2 + $0x24a] sm:$0xff] }
 0x38f   : > { %3302 = vrot.lane.b32.xlu0 %v9075_v34, %s7097_s11 }
 0x390   : > { %2853 = vrot.lane.b32.xlu1 %v9073_v32, %s7096_s17  ;;  %v2838_v5 = vpop.permute.xlu2 %2837 }
 0x391   : > { %v5189_v29 = vpop.f32.mrf.mxu2  ;;  %2999 = vst.msk [vmem:[#allocation3 + $0x16c] sm:$0xf] %vm1430_vm4, %v2838_v5 }
 0x392   : > { %v5190_v33 = vadd.f32 %v5189_v29, %v5021_v41  ;;  %v2189_v7 = vpop.permute.xlu1 %2188  ;;  %v2834_v14 = vpop.permute.xlu0 %2833 }
 0x393   : > { %2355 = vst.msk [vmem:[#allocation3 + $0x138] sm:$0xf] %vm2328_vm6, %v2189_v7  ;;  %v6346_v55 = vld [vmem:[#allocation3 + $0x144] sm:$0xf0] }
 0x394   : > { %v5359_v46 = vadd.f32 %v10020_v52, %v5190_v33  ;;  %2997 = vst.msk [vmem:[#allocation3 + $0x154] sm:$0xf] %vm1430_vm4, %v2834_v14  ;;  %v6349_v12 = vor.u32 %v6769_v11, %v6346_v55  ;;  %3750 = vrot.lane.b32.xlu2 %v10021_v27, %s7098_s19  ;;  %v3076_v14 = vld [vmem:[#allocation2 + $0x258] sm:$0xff]  ;;  %v9148_v11 = vpack.c.bf16 %v2628_v44, %v2628_v44 }
 0x395   : > { %3446 = vst.msk [vmem:[#allocation3 + $0x154] sm:$0xf] %vm1879_vm5, %v3283_v49  ;;  %v2625_v49 = vld [vmem:[#allocation2 + $0x22a] sm:$0xff] }
 0x396   : > { %v5496_v43 = vmax.f32 %v5359_v46, 0.0  ;;  %5216 = vmatmul.bf16.gmra.mxu2 %v6349_v12  ;;  %v9102_v8 = vpack.c.bf16 %v2625_v49, %v2625_v49  ;;  %v9151_v46 = vpack.c.bf16 %v2627_v61, %v2627_v61  ;;  %v9153_v12 = vpack.c.bf16 %v3076_v14, %v3076_v14 }
 0x397   : > { %3752 = vrot.lane.b32.xlu0 %v10022_v58, %s7098_s19  ;;  %v9167_v58 = vld [vmem:[%s9938_s6] ss:$0 sm:$0xff] }
 0x398   : > { %v5552_v40 = vpack.c.bf16 %v5496_v43, %v5495_v16  ;;  %3304 = vrot.lane.b32.xlu1 %v9090_v35, %s7097_s11  ;;  %v3289_v60 = vpop.permute.xlu2 %3288 }
 0x39a   : > { %6689 = vmatmul.msk.bf16.gmra.mxu3 %vm700_vm0, %v5552_v40  ;;  %v2836_v1 = vpop.permute.xlu1 %2835  ;;  %v6344_v45 = vld [vmem:[#allocation3 + $0x138] sm:$0xf]  ;;  %v3285_v20 = vpop.permute.xlu0 %3284 }
 0x39b   : > { %2998 = vst.msk [vmem:[#allocation3 + $0x160] sm:$0xf] %vm1430_vm4, %v2836_v1  ;;  %v6345_v24 = vor.u32 %v6770_v15, %v6344_v45  ;;  %v3077_v45 = vld [vmem:[#allocation2 + $0x260] sm:$0xff] }
 0x39c   : > { %3447 = vst.msk [vmem:[#allocation3 + $0x160] sm:$0xf] %vm1879_vm5, %v3285_v20  ;;  %2214 = vrot.lane.b32.xlu2 %v9043_v62, %s7098_s19  ;;  %v9115_v62 = vpack.c.bf16 %v2626_v57, %v2626_v57 }
 0x39d   : > { %3895 = vst.msk [vmem:[#allocation3 + $0x160] sm:$0xf] %vm2328_vm6, %v3733_v38  ;;  %5047 = vmatmul.bf16.gmra.mxu1 %v6345_v24  ;;  %v10023_v38 = vld [vmem:[#allocation21_spill] sm:$0xff] }
 0x39f   : > { %2857 = vrot.lane.b32.xlu0 %v9102_v8, %s7096_s17 }
 0x3a0   : > { %2212 = vrot.lane.b32.xlu1 %v9046_v54, %s7098_s19  ;;  %v2197_v39 = vpop.permute.xlu2 %2196  ;;  %v9117_v54 = vpack.c.bf16 %v3075_v31, %v3075_v31 }
 0x3a1   : > { %2359 = vst.msk [vmem:[#allocation3 + $0x168] sm:$0xf] %vm2328_vm6, %v2197_v39 }
 0x3a2   : > { %v3731_v51 = vpop.permute.xlu1 %3730  ;;  %v2193_v4 = vpop.permute.xlu0 %2192 }
 0x3a3   : > { %3894 = vst.msk [vmem:[#allocation3 + $0x154] sm:$0xf] %vm2328_vm6, %v3731_v51  ;;  %v6937_v51 = vld [vmem:[%s7232_s16 + $0x50] sm:$0xff] }
 0x3a4   : > { %2357 = vst.msk [vmem:[#allocation3 + $0x150] sm:$0xf] %vm2328_vm6, %v2193_v4  ;;  %3306 = vrot.lane.b32.xlu2 %v9113_v30, %s7097_s11  ;;  %v6358_v13 = vld [vmem:[#allocation3 + $0x15c] sm:$0xf0] }
 0x3a7   : > { %3308 = vrot.lane.b32.xlu0 %v9117_v54, %s7097_s11 }
 0x3a8   : > { %2859 = vrot.lane.b32.xlu1 %v9115_v62, %s7096_s17  ;;  %v2844_v36 = vpop.permute.xlu2 %2843  ;;  %v6368_v24 = vld [vmem:[#allocation3 + $0x168] sm:$0xf] }
 0x3a9   : > { %3002 = vst.msk [vmem:[#allocation3 + $0x190] sm:$0xf] %vm1430_vm4, %v2844_v36  ;;  %v9175_v36 = vpack.c.bf16 %v3077_v45, %v3077_v45 }
 0x3aa   : > { %v2195_v18 = vpop.permute.xlu1 %2194  ;;  %v6772_v17 = vld [vmem:[#allocation3 + $0x154] sm:$0xf]  ;;  %v2840_v22 = vpop.permute.xlu0 %2839 }
 0x3ab   : > { %2358 = vst.msk [vmem:[#allocation3 + $0x15c] sm:$0xf] %vm2328_vm6, %v2195_v18  ;;  %v6361_v59 = vor.u32 %v6772_v17, %v6358_v13  ;;  %v5192_v9 = vpop.f32.mrf.mxu2  ;;  %v6356_v28 = vld [vmem:[#allocation3 + $0x150] sm:$0xf]  ;;  %v10025_v18 = vld [vmem:[#allocation22_spill] sm:$0xff]  ;;  %v10026_v13 = vld [vmem:[#allocation24_spill] sm:$0xff] }
 0x3ac   : > { %3000 = vst.msk [vmem:[#allocation3 + $0x178] sm:$0xf] %vm1430_vm4, %v2840_v22  ;;  %3756 = vrot.lane.b32.xlu2 %v10023_v38, %s7098_s19 }
 0x3ad   : > { %3449 = vst.msk [vmem:[#allocation3 + $0x178] sm:$0xf] %vm1879_vm5, %v3289_v60  ;;  %5221 = vmatmul.bf16.gmra.mxu2 %v6361_v59 }
 0x3af   : > { %1767 = vrot.lane.b32.xlu0 %v9073_v32, %s7097_s11 }
 0x3b0   : > { %3754 = vrot.lane.b32.xlu1 %v10024_v63, %s7098_s19  ;;  %v3739_v47 = vpop.permute.xlu2 %3738 }
 0x3b2   : > { %v3287_v26 = vpop.permute.xlu1 %3286  ;;  %v6773_v37 = vld [vmem:[#allocation3 + $0x158] sm:$0xf0]  ;;  %v3735_v53 = vpop.permute.xlu0 %3734 }
 0x3b3   : > { %3448 = vst.msk [vmem:[#allocation3 + $0x16c] sm:$0xf] %vm1879_vm5, %v3287_v26  ;;  %v5023_v25 = vpop.f32.mrf.mxu1  ;;  %v6357_v41 = vor.u32 %v6773_v37, %v6356_v28  ;;  %v6938_v26 = vld [vmem:[%s7232_s16 + $0x58] sm:$0xff] }
 0x3b4   : > { %3896 = vst.msk [vmem:[#allocation3 + $0x16c] sm:$0xf] %vm2328_vm6, %v3735_v53  ;;  %v5024_v29 = vadd.f32 %v8932_v0, %v5023_v25  ;;  %2216 = vrot.lane.b32.xlu2 %v9075_v34, %s7098_s19 }
 0x3b5   : > { %5052 = vmatmul.bf16.gmra.mxu1 %v6357_v41 }
 0x3b6   : > { %v5193_v5 = vadd.f32 %v5192_v9, %v5024_v29 }
 0x3b7   : > { %2218 = vrot.lane.b32.xlu0 %v9090_v35, %s7098_s19 }
 0x3b8   : > { %1769 = vrot.lane.b32.xlu1 %v9071_v2, %s7097_s11  ;;  %v2203_v32 = vpop.permute.xlu2 %2202  ;;  %v5194_v2 = vpop.f32.mrf.mxu2  ;;  %v5362_v55 = vadd.f32 %v8737_v10, %v5193_v5 }
 0x3b9   : > { %2362 = vst.msk [vmem:[#allocation3 + $0x18c] sm:$0xf] %vm2328_vm6, %v2203_v32 }
 0x3ba   : > { %v3737_v48 = vpop.permute.xlu1 %3736  ;;  %v2199_v33 = vpop.permute.xlu0 %2198  ;;  %v5497_v27 = vmax.f32 %v5362_v55, 0.0 }
 0x3bb   : > { %3897 = vst.msk [vmem:[#allocation3 + $0x178] sm:$0xf] %vm2328_vm6, %v3737_v48  ;;  %v5025_v7 = vpop.f32.mrf.mxu1  ;;  %v6775_v43 = vld [vmem:[#allocation3 + $0x16c] sm:$0xf] }
 0x3bc   : > { %2360 = vst.msk [vmem:[#allocation3 + $0x174] sm:$0xf] %vm2328_vm6, %v2199_v33  ;;  %v5026_v34 = vadd.f32 %v8932_v0, %v5025_v7  ;;  %2863 = vrot.lane.b32.xlu2 %v9148_v11, %s7096_s17  ;;  %v2629_v33 = vld [vmem:[#allocation2 + $0x25a] sm:$0xff] }
 0x3be   : > { %v5195_v52 = vadd.f32 %v5194_v2, %v5026_v34  ;;  %v9204_v2 = vpack.c.bf16 %v2629_v33, %v2629_v33  ;;  %v3080_v33 = vld [vmem:[#allocation2 + $0x288] sm:$0xff] }
 0x3bf   : > { %3310 = vrot.lane.b32.xlu0 %v9153_v12, %s7097_s11  ;;  %v5727_v35 = vpop.f32.mrf.mxu3 }
 0x3c0   : > { %v5364_v16 = vadd.f32 %v8750_v6, %v5195_v52  ;;  %2861 = vrot.lane.b32.xlu1 %v9151_v46, %s7096_s17  ;;  %v9162_v10 = vpop.permute.xlu2 %3294  ;;  %v5728_v6 = vadd.f32 %v9167_v58, %v5727_v35  ;;  %v6779_v35 = vld [vmem:[#allocation3 + $0x188] sm:$0xf0] }
 0x3c2   : > { %v5498_v40 = vmax.f32 %v5364_v16, 0.0  ;;  %v2842_v60 = vpop.permute.xlu1 %2841  ;;  %v6370_v1 = vld [vmem:[#allocation3 + $0x174] sm:$0xf0]  ;;  %v3291_v15 = vpop.permute.xlu0 %3290  ;;  %v5872_v19 = vadd.f32 %v6937_v51, %v5728_v6  ;;  %v3078_v6 = vld [vmem:[#allocation2 + $0x270] sm:$0xff] }
 0x3c3   : > { %3001 = vst.msk [vmem:[#allocation3 + $0x184] sm:$0xf] %vm1430_vm4, %v2842_v60  ;;  %v5028_v20 = vpop.f32.mrf.mxu1  ;;  %v6776_v49 = vld [vmem:[#allocation3 + $0x170] sm:$0xf0]  ;;  %v6373_v39 = vor.u32 %v6775_v43, %v6370_v1  ;;  %v9220_v45 = vpack.c.bf16 %v3078_v6, %v3078_v6 }
 0x3c4   : > { %3450 = vst.msk [vmem:[#allocation3 + $0x184] sm:$0xf] %vm1879_vm5, %v3291_v15  ;;  %v6369_v4 = vor.u32 %v6776_v49, %v6368_v24  ;;  %v5553_v57 = vpack.c.bf16 %v5498_v40, %v5497_v27  ;;  %v5936_v31 = vmax.f32 %v5872_v19, 0.0  ;;  %3758 = vrot.lane.b32.xlu2 %v10025_v18, %s7098_s19  ;;  %v5371_v15 = vpop.f32.mrf.mxu0  ;;  %v10027_v24 = vld [vmem:[#allocation30_spill] sm:$0xff] }
 0x3c5   : > { %3898 = vst.msk [vmem:[#allocation3 + $0x184] sm:$0xf] %vm2328_vm6, %v3739_v47  ;;  %5226 = vmatmul.bf16.gmra.mxu2 %v6373_v39  ;;  %v5029_v47 = vadd.f32 %v8932_v0, %v5028_v20 }
 0x3c6   : > { %5057 = vmatmul.bf16.gmra.mxu1 %v6369_v4  ;;  %6690 = vmatmul.msk.bf16.gmra.mxu3 %vm700_vm0, %v5553_v57  ;;  %6000 = vst [vmem:[%s8810_s21 + $0x50] sm:$0xff] %v5936_v31 }
 0x3c7   : > { %3760 = vrot.lane.b32.xlu0 %v10026_v13, %s7098_s19  ;;  %v5729_v22 = vpop.f32.mrf.mxu3  ;;  %v10028_v13 = vld [vmem:[#allocation31_spill] sm:$0xff] }
 0x3c8   : > { %3312 = vrot.lane.b32.xlu1 %v9175_v36, %s7097_s11  ;;  %v5197_v17 = vpop.f32.mrf.mxu2  ;;  %v3745_v59 = vpop.permute.xlu2 %3744  ;;  %v5730_v38 = vadd.f32 %v9167_v58, %v5729_v22 }
 0x3c9   : > { %v5198_v53 = vadd.f32 %v5197_v17, %v5029_v47 }
 0x3ca   : > { %v3293_v63 = vpop.permute.xlu1 %3292  ;;  %v3741_v9 = vpop.permute.xlu0 %3740  ;;  %v5873_v28 = vadd.f32 %v6938_v26, %v5730_v38 }
 0x3cb   : > { %3451 = vst.msk [vmem:[#allocation3 + $0x190] sm:$0xf] %vm1879_vm5, %v3293_v63  ;;  %v5030_v37 = vpop.f32.mrf.mxu1  ;;  %v5367_v32 = vadd.f32 %v8770_v21, %v5198_v53  ;;  %v2631_v53 = vld [vmem:[#allocation2 + $0x272] sm:$0xff] }
 0x3cc   : > { %3899 = vst.msk [vmem:[#allocation3 + $0x190] sm:$0xf] %vm2328_vm6, %v3741_v9  ;;  %v5937_v25 = vmax.f32 %v5873_v28, 0.0  ;;  %v5031_v41 = vadd.f32 %v8932_v0, %v5030_v37  ;;  %1773 = vrot.lane.b32.xlu2 %v9115_v62, %s7097_s11  ;;  %v6778_v62 = vld [vmem:[#allocation3 + $0x184] sm:$0xf]  ;;  %v5373_v22 = vpop.f32.mrf.mxu0 }
 0x3cd   : > { %v5499_v14 = vmax.f32 %v5367_v32, 0.0 }
 0x3ce   : > { %6001 = vst [vmem:[%s8810_s21 + $0x58] sm:$0xff] %v5937_v25  ;;  %v9243_v25 = vpack.c.bf16 %v2631_v53, %v2631_v53  ;;  %v9303_v53 = vld [vmem:[%s9936_s4] ss:$0 sm:$0xff] }
 0x3cf   : > { %2220 = vrot.lane.b32.xlu0 %v9113_v30, %s7098_s19 }
 0x3d0   : > { %1771 = vrot.lane.b32.xlu1 %v9102_v8, %s7097_s11  ;;  %v5199_v29 = vpop.f32.mrf.mxu2  ;;  %v2850_v48 = vpop.permute.xlu2 %2849  ;;  %v2630_v8 = vld [vmem:[#allocation2 + $0x262] sm:$0xff] }
 0x3d1   : > { %v5200_v5 = vadd.f32 %v5199_v29, %v5031_v41  ;;  %3005 = vst.msk [vmem:[#allocation3 + $0x1b4] sm:$0xf] %vm1430_vm4, %v2850_v48  ;;  %v9206_v52 = vpack.c.bf16 %v2630_v8, %v2630_v8  ;;  %v9255_v8 = vpack.c.bf16 %v3080_v33, %v3080_v33 }
 0x3d2   : > { %v2201_v44 = vpop.permute.xlu1 %2200  ;;  %v2846_v7 = vpop.permute.xlu0 %2845 }
 0x3d3   : > { %v5369_v61 = vadd.f32 %v8794_v56, %v5200_v5  ;;  %2361 = vst.msk [vmem:[#allocation3 + $0x180] sm:$0xf] %vm2328_vm6, %v2201_v44  ;;  %v6382_v34 = vld [vmem:[#allocation3 + $0x18c] sm:$0xf0] }
 0x3d4   : > { %3003 = vst.msk [vmem:[#allocation3 + $0x19c] sm:$0xf] %vm1430_vm4, %v2846_v7  ;;  %v6385_v21 = vor.u32 %v6778_v62, %v6382_v34  ;;  %2865 = vrot.lane.b32.xlu2 %v9204_v2, %s7096_s17  ;;  %v5376_v62 = vpop.f32.mrf.mxu0  ;;  %v3081_v34 = vld [vmem:[#allocation2 + $0x290] sm:$0xff] }
 0x3d5   : > { %3452 = vst.msk [vmem:[#allocation3 + $0x19c] sm:$0xf] %vm1879_vm5, %v9162_v10  ;;  %v5500_v30 = vmax.f32 %v5369_v61, 0.0  ;;  %v3079_v10 = vld [vmem:[#allocation2 + $0x278] sm:$0xff] }
 0x3d6   : > { %5231 = vmatmul.bf16.gmra.mxu2 %v6385_v21  ;;  %v9218_v1 = vpack.c.bf16 %v3079_v10, %v3079_v10 }
 0x3d7   : > { %v5554_v55 = vpack.c.bf16 %v5500_v30, %v5499_v14  ;;  %2867 = vrot.lane.b32.xlu0 %v9206_v52, %s7096_s17  ;;  %v9259_v14 = vpack.c.bf16 %v3081_v34, %v3081_v34 }
 0x3d8   : > { %2222 = vrot.lane.b32.xlu1 %v9117_v54, %s7098_s19  ;;  %v3301_v56 = vpop.permute.xlu2 %3300 }
 0x3d9   : > { %6691 = vmatmul.msk.bf16.gmra.mxu3 %vm700_vm0, %v5554_v55  ;;  %v5202_v60 = vpop.f32.mrf.mxu2 }
 0x3da   : > { %v2848_v16 = vpop.permute.xlu1 %2847  ;;  %v6380_v43 = vld [vmem:[#allocation3 + $0x180] sm:$0xf]  ;;  %v3297_v27 = vpop.permute.xlu0 %3296 }
 0x3db   : > { %3004 = vst.msk [vmem:[#allocation3 + $0x1a8] sm:$0xf] %vm1430_vm4, %v2848_v16  ;;  %v6381_v40 = vor.u32 %v6779_v35, %v6380_v43 }
 0x3dc   : > { %3453 = vst.msk [vmem:[#allocation3 + $0x1a8] sm:$0xf] %vm1879_vm5, %v3297_v27  ;;  %3316 = vrot.lane.b32.xlu2 %v9218_v1, %s7097_s11  ;;  %v5378_v6 = vpop.f32.mrf.mxu0 }
 0x3dd   : > { %3901 = vst.msk [vmem:[#allocation3 + $0x1a8] sm:$0xf] %vm2328_vm6, %v3745_v59  ;;  %v5033_v54 = vpop.f32.mrf.mxu1  ;;  %5062 = vmatmul.bf16.gmra.mxu1 %v6381_v40 }
 0x3de   : > { %v5034_v20 = vadd.f32 %v8932_v0, %v5033_v54  ;;  %v10029_v54 = vld [vmem:[#allocation34_spill] sm:$0xff] }
 0x3df   : > { %3762 = vrot.lane.b32.xlu0 %v10027_v24, %s7098_s19  ;;  %v10030_v24 = vld [vmem:[#allocation35_spill] sm:$0xff] }
 0x3e0   : > { %3314 = vrot.lane.b32.xlu1 %v9220_v45, %s7097_s11  ;;  %v2209_v49 = vpop.permute.xlu2 %2208  ;;  %v5203_v19 = vadd.f32 %v5202_v60, %v5034_v20  ;;  %v3542_v20 = vld [vmem:[#allocation2 + $0x331] sm:$0xff] }
 0x3e1   : > { %2365 = vst.msk [vmem:[#allocation3 + $0x1b0] sm:$0xf] %vm2328_vm6, %v2209_v49  ;;  %v5204_v31 = vpop.f32.mrf.mxu2  ;;  %v9275_v49 = vpack.c.bf16 %v3542_v20, %v3542_v20 }
 0x3e2   : > { %v3743_v39 = vpop.permute.xlu1 %3742  ;;  %v2205_v51 = vpop.permute.xlu0 %2204  ;;  %v5372_v18 = vadd.f32 %v5371_v15, %v5203_v19  ;;  %v3543_v15 = vld [vmem:[#allocation2 + $0x339] sm:$0xff] }
 0x3e3   : > { %3900 = vst.msk [vmem:[#allocation3 + $0x19c] sm:$0xf] %vm2328_vm6, %v3743_v39 }
 0x3e4   : > { %2363 = vst.msk [vmem:[#allocation3 + $0x198] sm:$0xf] %vm2328_vm6, %v2205_v51  ;;  %1775 = vrot.lane.b32.xlu2 %v9151_v46, %s7097_s11  ;;  %v6394_v9 = vld [vmem:[#allocation3 + $0x1a4] sm:$0xf0]  ;;  %v5501_v28 = vmax.f32 %v5372_v18, 0.0 }
 0x3e5   : > { %v5035_v4 = vpop.f32.mrf.mxu1  ;;  %2583 = vst.msk [vmem:[#allocation3 + $0x2ec] sm:$0xf] %vm981_vm3, %v9275_v49 }
 0x3e6   : > { %v5036_v57 = vadd.f32 %v8932_v0, %v5035_v4 }
 0x3e7   : > { %1777 = vrot.lane.b32.xlu0 %v9148_v11, %s7097_s11 }
 0x3e8   : > { %v5205_v17 = vadd.f32 %v5204_v31, %v5036_v57  ;;  %3764 = vrot.lane.b32.xlu1 %v10028_v13, %s7098_s19  ;;  %v2856_v59 = vpop.permute.xlu2 %2855  ;;  %v9281_v31 = vpack.c.bf16 %v3543_v15, %v3543_v15 }
 0x3e9   : > { %3008 = vst.msk [vmem:[#allocation3 + $0x1d8] sm:$0xf] %vm1430_vm4, %v2856_v59 }
 0x3ea   : > { %v5374_v38 = vadd.f32 %v5373_v22, %v5205_v17  ;;  %v2207_v63 = vpop.permute.xlu1 %2206  ;;  %v6781_v47 = vld [vmem:[#allocation3 + $0x19c] sm:$0xf]  ;;  %v2852_v26 = vpop.permute.xlu0 %2851  ;;  %v6404_v17 = vld [vmem:[#allocation3 + $0x1b0] sm:$0xf]  ;;  %2584 = vst.msk [vmem:[#allocation3 + $0x2f8] sm:$0xf] %vm981_vm3, %v9281_v31 }
 0x3eb   : > { %2364 = vst.msk [vmem:[#allocation3 + $0x1a4] sm:$0xf] %vm2328_vm6, %v2207_v63  ;;  %v6397_v46 = vor.u32 %v6781_v47, %v6394_v9  ;;  %v6392_v48 = vld [vmem:[#allocation3 + $0x198] sm:$0xf]  ;;  %v5381_v63 = vpop.f32.mrf.mxu0 }
 0x3ec   : > { %v5502_v37 = vmax.f32 %v5374_v38, 0.0  ;;  %3006 = vst.msk [vmem:[#allocation3 + $0x1c0] sm:$0xf] %vm1430_vm4, %v2852_v26  ;;  %2226 = vrot.lane.b32.xlu2 %v9175_v36, %s7098_s19  ;;  %v2632_v36 = vld [vmem:[#allocation2 + $0x27a] sm:$0xff] }
 0x3ed   : > { %3455 = vst.msk [vmem:[#allocation3 + $0x1c0] sm:$0xf] %vm1879_vm5, %v3301_v56  ;;  %5236 = vmatmul.bf16.gmra.mxu2 %v6397_v46  ;;  %v9257_v21 = vpack.c.bf16 %v2632_v36, %v2632_v36 }
 0x3ee   : > { %v5555_v11 = vpack.c.bf16 %v5502_v37, %v5501_v28  ;;  %v2634_v37 = vld [vmem:[#allocation2 + $0x292] sm:$0xff] }
 0x3ef   : > { %2869 = vrot.lane.b32.xlu0 %v9243_v25, %s7096_s17 }
 0x3f0   : > { %6692 = vmatmul.msk.bf16.gmra.mxu3 %vm700_vm0, %v5555_v11  ;;  %2224 = vrot.lane.b32.xlu1 %v9153_v12, %s7098_s19  ;;  %v5207_v41 = vpop.f32.mrf.mxu2  ;;  %v3751_v29 = vpop.permute.xlu2 %3750  ;;  %v2633_v11 = vld [vmem:[#allocation2 + $0x28a] sm:$0xff] }
 0x3f1   : > { %v9311_v33 = vpack.c.bf16 %v2633_v11, %v2633_v11 }
 0x3f2   : > { %v3299_v32 = vpop.permute.xlu1 %3298  ;;  %v5038_v5 = vpop.f32.mrf.mxu1  ;;  %v6782_v44 = vld [vmem:[#allocation3 + $0x1a0] sm:$0xf0] }
 0x3f3   : > { %v3747_v7 = vpop.permute.xlu0 %3746  ;;  %3454 = vst.msk [vmem:[#allocation3 + $0x1b4] sm:$0xf] %vm1879_vm5, %v3299_v32  ;;  %v6393_v61 = vor.u32 %v6782_v44, %v6392_v48  ;;  %v5039_v12 = vadd.f32 %v8932_v0, %v5038_v5  ;;  %v3082_v32 = vld [vmem:[#allocation2 + $0x2a0] sm:$0xff]  ;;  %v9309_v48 = vpack.c.bf16 %v2634_v37, %v2634_v37 }
 0x3f4   : > { %3902 = vst.msk [vmem:[#allocation3 + $0x1b4] sm:$0xf] %vm2328_vm6, %v3747_v7  ;;  %3318 = vrot.lane.b32.xlu2 %v9255_v8, %s7097_s11 }
 0x3f5   : > { %5067 = vmatmul.bf16.gmra.mxu1 %v6393_v61  ;;  %v5208_v30 = vadd.f32 %v5207_v41, %v5039_v12  ;;  %v9314_v61 = vpack.c.bf16 %v3082_v32, %v3082_v32  ;;  %v2636_v32 = vld [vmem:[#allocation2 + $0x2aa] sm:$0xff] }
 0x3f7   : > { %3320 = vrot.lane.b32.xlu0 %v9259_v14, %s7097_s11  ;;  %v5377_v27 = vadd.f32 %v5376_v62, %v5208_v30 }
 0x3f8   : > { %2871 = vrot.lane.b32.xlu1 %v9257_v21, %s7096_s17  ;;  %v2215_v55 = vpop.permute.xlu2 %2214  ;;  %v5209_v10 = vpop.f32.mrf.mxu2 }
 0x3f9   : > { %2368 = vst.msk [vmem:[#allocation3 + $0x1d4] sm:$0xf] %vm2328_vm6, %v2215_v55  ;;  %v5503_v39 = vmax.f32 %v5377_v27, 0.0  ;;  %v5383_v55 = vpop.f32.mrf.mxu0 }
 0x3fa   : > { %v3749_v56 = vpop.permute.xlu1 %3748  ;;  %v5040_v16 = vpop.f32.mrf.mxu1 }
 0x3fb   : > { %v2211_v43 = vpop.permute.xlu0 %2210  ;;  %3903 = vst.msk [vmem:[#allocation3 + $0x1c0] sm:$0xf] %vm2328_vm6, %v3749_v56  ;;  %v5041_v35 = vadd.f32 %v8932_v0, %v5040_v16  ;;  %v6784_v4 = vld [vmem:[#allocation3 + $0x1b4] sm:$0xf] }
 0x3fc   : > { %2366 = vst.msk [vmem:[#allocation3 + $0x1bc] sm:$0xf] %vm2328_vm6, %v2211_v43  ;;  %3768 = vrot.lane.b32.xlu2 %v10029_v54, %s7098_s19  ;;  %v3083_v43 = vld [vmem:[#allocation2 + $0x2a8] sm:$0xff] }
 0x3fd   : > { %v5210_v40 = vadd.f32 %v5209_v10, %v5041_v35 }
 0x3ff   : > { %v5379_v60 = vadd.f32 %v5378_v6, %v5210_v40  ;;  %1779 = vrot.lane.b32.xlu0 %v9204_v2, %s7097_s11  ;;  %v6941_v6 = vld [vmem:[%s7232_s16 + $0x68] sm:$0xff] }
 0x400   : > { %3766 = vrot.lane.b32.xlu1 %v10030_v24, %s7098_s19  ;;  %v9279_v0 = vpop.permute.xlu2 %3306 }
 0x401   : > { %v5504_v51 = vmax.f32 %v5379_v60, 0.0 }
 0x402   : > { %v2854_v19 = vpop.permute.xlu1 %2853  ;;  %v6406_v57 = vld [vmem:[#allocation3 + $0x1bc] sm:$0xf0] }
 0x403   : > { %v3303_v18 = vpop.permute.xlu0 %3302  ;;  %3007 = vst.msk [vmem:[#allocation3 + $0x1cc] sm:$0xf] %vm1430_vm4, %v2854_v19  ;;  %v6785_v13 = vld [vmem:[#allocation3 + $0x1b8] sm:$0xf0]  ;;  %v6409_v22 = vor.u32 %v6784_v4, %v6406_v57  ;;  %v5556_v59 = vpack.c.bf16 %v5504_v51, %v5503_v39  ;;  %v5043_v2 = vpop.f32.mrf.mxu1  ;;  %v9331_v39 = vpack.c.bf16 %v3083_v43, %v3083_v43  ;;  %v10031_v19 = vld [vmem:[#allocation39_spill] sm:$0xff] }
 0x404   : > { %3456 = vst.msk [vmem:[#allocation3 + $0x1cc] sm:$0xf] %vm1879_vm5, %v3303_v18  ;;  %v6405_v38 = vor.u32 %v6785_v13, %v6404_v17  ;;  %2228 = vrot.lane.b32.xlu2 %v9220_v45, %s7098_s19  ;;  %v5044_v45 = vadd.f32 %v9303_v53, %v5043_v2  ;;  %v10032_v4 = vld [vmem:[#allocation38_spill] sm:$0xff] }
 0x405   : > { %3904 = vst.msk [vmem:[#allocation3 + $0x1cc] sm:$0xf] %vm2328_vm6, %v3751_v29  ;;  %5241 = vmatmul.bf16.gmra.mxu2 %v6409_v22  ;;  %6693 = vmatmul.msk.bf16.gmra.mxu3 %vm700_vm0, %v5556_v59  ;;  %v6788_v22 = vld [vmem:[#allocation3 + $0x1d0] sm:$0xf0] }
 0x406   : > { %5072 = vmatmul.bf16.gmra.mxu1 %v6405_v38  ;;  %v5386_v38 = vpop.f32.mrf.mxu0 }
 0x407   : > { %2230 = vrot.lane.b32.xlu0 %v9218_v1, %s7098_s19  ;;  %v6940_v1 = vld [vmem:[%s7232_s16 + $0x60] sm:$0xff] }
 0x408   : > { %1781 = vrot.lane.b32.xlu1 %v9206_v52, %s7097_s11  ;;  %v5212_v47 = vpop.f32.mrf.mxu2  ;;  %v9297_v26 = vpop.permute.xlu2 %3756 }
 0x409   : > { %v5732_v9 = vpop.f32.mrf.mxu3  ;;  %v5213_v5 = vadd.f32 %v5212_v47, %v5044_v45 }
 0x40a   : > { %v5733_v46 = vadd.f32 %v9167_v58, %v5732_v9  ;;  %v3305_v28 = vpop.permute.xlu1 %3304 }
 0x40b   : > { %v3753_v52 = vpop.permute.xlu0 %3752  ;;  %3457 = vst.msk [vmem:[#allocation3 + $0x1d8] sm:$0xf] %vm1879_vm5, %v3305_v28  ;;  %v5045_v29 = vpop.f32.mrf.mxu1  ;;  %v5382_v62 = vadd.f32 %v5381_v63, %v5213_v5 }
 0x40c   : > { %v5874_v41 = vadd.f32 %v6940_v1, %v5733_v46  ;;  %3905 = vst.msk [vmem:[#allocation3 + $0x1d8] sm:$0xf] %vm2328_vm6, %v3753_v52  ;;  %v5046_v7 = vadd.f32 %v9303_v53, %v5045_v29  ;;  %2875 = vrot.lane.b32.xlu2 %v9309_v48, %s7096_s17  ;;  %v6787_v27 = vld [vmem:[#allocation3 + $0x1cc] sm:$0xf]  ;;  %v6942_v46 = vld [vmem:[%s7232_s16 + $0x70] sm:$0xff]  ;;  %v2635_v1 = vld [vmem:[#allocation2 + $0x2a2] sm:$0xff] }
 0x40d   : > { %v5505_v15 = vmax.f32 %v5382_v62, 0.0 }
 0x40e   : > { %v5938_v44 = vmax.f32 %v5874_v41, 0.0 }
 0x40f   : > { %3322 = vrot.lane.b32.xlu0 %v9314_v61, %s7097_s11 }
 0x410   : > { %6002 = vst [vmem:[%s8810_s21 + $0x60] sm:$0xff] %v5938_v44  ;;  %2873 = vrot.lane.b32.xlu1 %v9311_v33, %s7096_s17  ;;  %v5214_v36 = vpop.f32.mrf.mxu2  ;;  %v9323_v30 = vpop.permute.xlu2 %2216 }
 0x411   : > { %v5734_v34 = vpop.f32.mrf.mxu3  ;;  %v5215_v12 = vadd.f32 %v5214_v36, %v5046_v7  ;;  %v5388_v7 = vpop.f32.mrf.mxu0 }
 0x412   : > { %v5735_v56 = vadd.f32 %v9167_v58, %v5734_v34  ;;  %v2213_v16 = vpop.permute.xlu1 %2212  ;;  %v9364_v34 = vpack.c.bf16 %v2636_v32, %v2636_v32  ;;  %v3086_v32 = vld [vmem:[#allocation2 + $0x2d0] sm:$0xff] }
 0x413   : > { %v2858_v35 = vpop.permute.xlu0 %2857  ;;  %v5384_v10 = vadd.f32 %v5383_v55, %v5215_v12  ;;  %2367 = vst.msk [vmem:[#allocation3 + $0x1c8] sm:$0xf] %vm2328_vm6, %v2213_v16  ;;  %v6418_v40 = vld [vmem:[#allocation3 + $0x1d4] sm:$0xf0] }
 0x414   : > { %v5875_v60 = vadd.f32 %v6941_v6, %v5735_v56  ;;  %3009 = vst.msk [vmem:[#allocation3 + $0x1e4] sm:$0xf] %vm1430_vm4, %v2858_v35  ;;  %v6421_v54 = vor.u32 %v6787_v27, %v6418_v40  ;;  %3770 = vrot.lane.b32.xlu2 %v10031_v19, %s7098_s19  ;;  %v6943_v12 = vld [vmem:[%s7232_s16 + $0x78] sm:$0xff]  ;;  %v3085_v40 = vld [vmem:[#allocation2 + $0x2c0] sm:$0xff] }
 0x415   : > { %3458 = vst.msk [vmem:[#allocation3 + $0x1e4] sm:$0xf] %vm1879_vm5, %v9279_v0  ;;  %v5506_v20 = vmax.f32 %v5384_v10, 0.0 }
 0x416   : > { %v5939_v24 = vmax.f32 %v5875_v60, 0.0  ;;  %5246 = vmatmul.bf16.gmra.mxu2 %v6421_v54 }
 0x417   : > { %v5557_v51 = vpack.c.bf16 %v5506_v20, %v5505_v15  ;;  %3772 = vrot.lane.b32.xlu0 %v10032_v4, %s7098_s19  ;;  %v9378_v15 = vpack.c.bf16 %v3085_v40, %v3085_v40 }
 0x418   : > { %6003 = vst [vmem:[%s8810_s21 + $0x68] sm:$0xff] %v5939_v24  ;;  %3324 = vrot.lane.b32.xlu1 %v9331_v39, %s7097_s11  ;;  %v2864_v0 = vpop.permute.xlu2 %2863  ;;  %v10033_v24 = vld [vmem:[#allocation16_spill] sm:$0xff] }
 0x419   : > { %v5217_v57 = vpop.f32.mrf.mxu2  ;;  %6694 = vmatmul.msk.bf16.gmra.mxu3 %vm700_vm0, %v5557_v51  ;;  %3012 = vst.msk [vmem:[#allocation3 + $0x208] sm:$0xf] %vm1430_vm4, %v2864_v0 }
 0x41a   : > { %v2860_v18 = vpop.permute.xlu1 %2859  ;;  %v5048_v17 = vpop.f32.mrf.mxu1  ;;  %v6416_v13 = vld [vmem:[#allocation3 + $0x1c8] sm:$0xf] }
 0x41b   : > { %v3309_v59 = vpop.permute.xlu0 %3308  ;;  %3010 = vst.msk [vmem:[#allocation3 + $0x1f0] sm:$0xf] %vm1430_vm4, %v2860_v18  ;;  %v6417_v2 = vor.u32 %v6788_v22, %v6416_v13  ;;  %v5049_v63 = vadd.f32 %v9303_v53, %v5048_v17  ;;  %v5391_v18 = vpop.f32.mrf.mxu0 }
 0x41c   : > { %3459 = vst.msk [vmem:[#allocation3 + $0x1f0] sm:$0xf] %vm1879_vm5, %v3309_v59  ;;  %1785 = vrot.lane.b32.xlu2 %v9257_v21, %s7097_s11 }
 0x41d   : > { %3907 = vst.msk [vmem:[#allocation3 + $0x1f0] sm:$0xf] %vm2328_vm6, %v9297_v26  ;;  %v5737_v47 = vpop.f32.mrf.mxu3  ;;  %5077 = vmatmul.bf16.gmra.mxu1 %v6417_v2  ;;  %v5218_v37 = vadd.f32 %v5217_v57, %v5049_v63  ;;  %v10034_v2 = vld [vmem:[#allocation18_spill] sm:$0xff] }
 0x41e   : > { %v5738_v9 = vadd.f32 %v9167_v58, %v5737_v47 }
 0x41f   : > { %2232 = vrot.lane.b32.xlu0 %v9255_v8, %s7098_s19  ;;  %v5387_v5 = vadd.f32 %v5386_v38, %v5218_v37  ;;  %v9359_v8 = vpack.c.bf16 %v2635_v1, %v2635_v1 }
 0x420   : > { %v5876_v28 = vadd.f32 %v6942_v46, %v5738_v9  ;;  %1783 = vrot.lane.b32.xlu1 %v9243_v25, %s7097_s11  ;;  %v3759_v26 = vpop.permute.xlu2 %3758 }
 0x421   : > { %v5219_v29 = vpop.f32.mrf.mxu2  ;;  %v5507_v56 = vmax.f32 %v5387_v5, 0.0  ;;  %v2638_v5 = vld [vmem:[#allocation2 + $0x2c2] sm:$0xff] }
 0x422   : > { %v5940_v45 = vmax.f32 %v5876_v28, 0.0  ;;  %v3755_v52 = vpop.permute.xlu1 %3754  ;;  %v5050_v11 = vpop.f32.mrf.mxu1 }
 0x423   : > { %v1768_v41 = vpop.permute.xlu0 %1767  ;;  %3906 = vst.msk [vmem:[#allocation3 + $0x1e4] sm:$0xf] %vm2328_vm6, %v3755_v52  ;;  %v5051_v21 = vadd.f32 %v9303_v53, %v5050_v11  ;;  %v5393_v52 = vpop.f32.mrf.mxu0 }
 0x424   : > { %6004 = vst [vmem:[%s8810_s21 + $0x70] sm:$0xff] %v5940_v45  ;;  %2877 = vrot.lane.b32.xlu2 %v9359_v8, %s7096_s17  ;;  %v6430_v43 = vld [vmem:[#allocation3 + $0x1ec] sm:$0xf0] }
 0x425   : > { %1920 = vst.msk [vmem:[#allocation3 + $0x1e0] sm:$0xf] %vm1879_vm5, %v1768_v41  ;;  %v5220_v25 = vadd.f32 %v5219_v29, %v5051_v21  ;;  %v5739_v44 = vpop.f32.mrf.mxu3 }
 0x426   : > { %2369 = vst.msk [vmem:[#allocation3 + $0x1e0] sm:$0xf] %vm2328_vm6, %v9323_v30  ;;  %v5740_v36 = vadd.f32 %v9167_v58, %v5739_v44 }
 0x427   : > { %v5389_v62 = vadd.f32 %v5388_v7, %v5220_v25  ;;  %2879 = vrot.lane.b32.xlu0 %v9364_v34, %s7096_s17 }
 0x428   : > { %v5877_v55 = vadd.f32 %v6943_v12, %v5740_v36  ;;  %2234 = vrot.lane.b32.xlu1 %v9259_v14, %s7098_s19  ;;  %v1774_v30 = vpop.permute.xlu2 %1773  ;;  %v3084_v14 = vld [vmem:[#allocation2 + $0x2b8] sm:$0xff]  ;;  %v9414_v12 = vpack.c.bf16 %v3086_v32, %v3086_v32 }
 0x429   : > { %v5508_v16 = vmax.f32 %v5389_v62, 0.0  ;;  %1923 = vst.msk [vmem:[#allocation3 + $0x204] sm:$0xf] %vm1879_vm5, %v1774_v30  ;;  %v9380_v20 = vpack.c.bf16 %v3084_v14, %v3084_v14 }
 0x42a   : > { %v5941_v35 = vmax.f32 %v5877_v55, 0.0  ;;  %v1770_v10 = vpop.permute.xlu1 %1769  ;;  %v6790_v27 = vld [vmem:[#allocation3 + $0x1e4] sm:$0xf]  ;;  %v9416_v55 = vpack.c.bf16 %v2638_v5, %v2638_v5 }
 0x42b   : > { %v2219_v6 = vpop.permute.xlu0 %2218  ;;  %1921 = vst.msk [vmem:[#allocation3 + $0x1ec] sm:$0xf] %vm1879_vm5, %v1770_v10  ;;  %v6433_v60 = vor.u32 %v6790_v27, %v6430_v43  ;;  %v5558_v54 = vpack.c.bf16 %v5508_v16, %v5507_v56  ;;  %v5396_v16 = vpop.f32.mrf.mxu0 }
 0x42c   : > { %6005 = vst [vmem:[%s8810_s21 + $0x78] sm:$0xff] %v5941_v35  ;;  %3328 = vrot.lane.b32.xlu2 %v9378_v15, %s7097_s11 }
 0x42d   : > { %2370 = vst.msk [vmem:[#allocation3 + $0x1ec] sm:$0xf] %vm2328_vm6, %v2219_v6  ;;  %5251 = vmatmul.bf16.gmra.mxu2 %v6433_v60  ;;  %6695 = vmatmul.msk.bf16.gmra.mxu3 %vm700_vm0, %v5558_v54  ;;  %v6428_v17 = vld [vmem:[#allocation3 + $0x1e0] sm:$0xf] }
 0x42e   : > { %v6944_v60 = vld [vmem:[%s7232_s16 + $0x80] sm:$0xff] }
 0x42f   : > { %3774 = vrot.lane.b32.xlu0 %v10033_v24, %s7098_s19 }
 0x430   : > { %3326 = vrot.lane.b32.xlu1 %v9380_v20, %s7097_s11  ;;  %v5222_v51 = vpop.f32.mrf.mxu2  ;;  %v2866_v19 = vpop.permute.xlu2 %2865 }
 0x431   : > { %3013 = vst.msk [vmem:[#allocation3 + $0x214] sm:$0xf] %vm1430_vm4, %v2866_v19 }
 0x432   : > { %v2862_v4 = vpop.permute.xlu1 %2861  ;;  %v5053_v57 = vpop.f32.mrf.mxu1 }
 0x433   : > { %v3311_v0 = vpop.permute.xlu0 %3310  ;;  %3011 = vst.msk [vmem:[#allocation3 + $0x1fc] sm:$0xf] %vm1430_vm4, %v2862_v4  ;;  %v5054_v22 = vadd.f32 %v9303_v53, %v5053_v57  ;;  %v10035_v4 = vld [vmem:[#allocation17_spill] sm:$0xff]  ;;  %v10036_v57 = vld [vmem:[#allocation20_spill] sm:$0xff] }
 0x434   : > { %3460 = vst.msk [vmem:[#allocation3 + $0x1fc] sm:$0xf] %vm1879_vm5, %v3311_v0  ;;  %v6791_v13 = vld [vmem:[#allocation3 + $0x1e8] sm:$0xf0]  ;;  %1787 = vrot.lane.b32.xlu2 %v9311_v33, %s7097_s11 }
 0x435   : > { %3908 = vst.msk [vmem:[#allocation3 + $0x1fc] sm:$0xf] %vm2328_vm6, %v3759_v26  ;;  %v6429_v59 = vor.u32 %v6791_v13, %v6428_v17  ;;  %v5223_v38 = vadd.f32 %v5222_v51, %v5054_v22  ;;  %v2637_v26 = vld [vmem:[#allocation2 + $0x2ba] sm:$0xff] }
 0x436   : > { %v9402_v1 = vpack.c.bf16 %v2637_v26, %v2637_v26 }
 0x437   : > { %5082 = vmatmul.bf16.gmra.mxu1 %v6429_v59  ;;  %1789 = vrot.lane.b32.xlu0 %v9309_v48, %s7097_s11  ;;  %v5392_v33 = vadd.f32 %v5391_v18, %v5223_v38  ;;  %v5398_v59 = vpop.f32.mrf.mxu0 }
 0x438   : > { %3776 = vrot.lane.b32.xlu1 %v10034_v2, %s7098_s19  ;;  %v3317_v63 = vpop.permute.xlu2 %3316  ;;  %v5224_v37 = vpop.f32.mrf.mxu2 }
 0x439   : > { %v5509_v48 = vmax.f32 %v5392_v33, 0.0 }
 0x43a   : > { %v3313_v47 = vpop.permute.xlu1 %3312  ;;  %v5055_v9 = vpop.f32.mrf.mxu1 }
 0x43b   : > { %v3761_v46 = vpop.permute.xlu0 %3760  ;;  %3461 = vst.msk [vmem:[#allocation3 + $0x208] sm:$0xf] %vm1879_vm5, %v3313_v47  ;;  %v5056_v28 = vadd.f32 %v9303_v53, %v5055_v9 }
 0x43c   : > { %3909 = vst.msk [vmem:[#allocation3 + $0x208] sm:$0xf] %vm2328_vm6, %v3761_v46  ;;  %2238 = vrot.lane.b32.xlu2 %v9331_v39, %s7098_s19  ;;  %v6793_v39 = vld [vmem:[#allocation3 + $0x1fc] sm:$0xf] }
 0x43d   : > { %v5225_v45 = vadd.f32 %v5224_v37, %v5056_v28  ;;  %v6945_v37 = vld [vmem:[%s7232_s16 + $0x88] sm:$0xff] }
 0x43f   : > { %v5394_v11 = vadd.f32 %v5393_v52, %v5225_v45  ;;  %2881 = vrot.lane.b32.xlu0 %v9402_v1, %s7096_s17  ;;  %v5401_v5 = vpop.f32.mrf.mxu0 }
 0x440   : > { %2236 = vrot.lane.b32.xlu1 %v9314_v61, %s7098_s19  ;;  %v1776_v21 = vpop.permute.xlu2 %1775  ;;  %v3087_v61 = vld [vmem:[#allocation2 + $0x2d8] sm:$0xff] }
 0x441   : > { %v5510_v41 = vmax.f32 %v5394_v11, 0.0  ;;  %1924 = vst.msk [vmem:[#allocation3 + $0x210] sm:$0xf] %vm1879_vm5, %v1776_v21  ;;  %v9418_v56 = vpack.c.bf16 %v3087_v61, %v3087_v61 }
 0x442   : > { %v1772_v29 = vpop.permute.xlu1 %1771 }
 0x443   : > { %v2221_v25 = vpop.permute.xlu0 %2220  ;;  %1922 = vst.msk [vmem:[#allocation3 + $0x1f8] sm:$0xf] %vm1879_vm5, %v1772_v29  ;;  %v5058_v44 = vpop.f32.mrf.mxu1  ;;  %v5559_v7 = vpack.c.bf16 %v5510_v41, %v5509_v48  ;;  %v6442_v36 = vld [vmem:[#allocation3 + $0x204] sm:$0xf0]  ;;  %v2640_v29 = vld [vmem:[#allocation2 + $0x2da] sm:$0xff] }
 0x444   : > { %2371 = vst.msk [vmem:[#allocation3 + $0x1f8] sm:$0xf] %vm2328_vm6, %v2221_v25  ;;  %v6445_v62 = vor.u32 %v6793_v39, %v6442_v36  ;;  %3330 = vrot.lane.b32.xlu2 %v9414_v12, %s7097_s11  ;;  %v5059_v40 = vadd.f32 %v9303_v53, %v5058_v44  ;;  %v3088_v25 = vld [vmem:[#allocation2 + $0x2e8] sm:$0xff]  ;;  %v6946_v36 = vld [vmem:[%s7232_s16 + $0x90] sm:$0xff] }
 0x445   : > { %6696 = vmatmul.msk.bf16.gmra.mxu3 %vm700_vm0, %v5559_v7  ;;  %v9459_v7 = vpack.c.bf16 %v2640_v29, %v2640_v29  ;;  %v2641_v29 = vld [vmem:[#allocation2 + $0x2ea] sm:$0xff] }
 0x446   : > { %5256 = vmatmul.bf16.gmra.mxu2 %v6445_v62  ;;  %v9464_v62 = vpack.c.bf16 %v3088_v25, %v3088_v25 }
 0x447   : > { %3332 = vrot.lane.b32.xlu0 %v9418_v56, %s7097_s11 }
 0x448   : > { %2883 = vrot.lane.b32.xlu1 %v9416_v55, %s7096_s17  ;;  %v5227_v30 = vpop.f32.mrf.mxu2  ;;  %v2227_v35 = vpop.permute.xlu2 %2226 }
 0x449   : > { %v5742_v43 = vpop.f32.mrf.mxu3  ;;  %v5228_v24 = vadd.f32 %v5227_v30, %v5059_v40 }
 0x44a   : > { %v5743_v10 = vadd.f32 %v9167_v58, %v5742_v43  ;;  %v2223_v27 = vpop.permute.xlu1 %2222 }
 0x44b   : > { %v2868_v6 = vpop.permute.xlu0 %2867  ;;  %2372 = vst.msk [vmem:[#allocation3 + $0x204] sm:$0xf] %vm2328_vm6, %v2223_v27  ;;  %v5060_v14 = vpop.f32.mrf.mxu1  ;;  %v5397_v18 = vadd.f32 %v5396_v16, %v5228_v24 }
 0x44c   : > { %3014 = vst.msk [vmem:[#allocation3 + $0x220] sm:$0xf] %vm1430_vm4, %v2868_v6  ;;  %v5878_v54 = vadd.f32 %v6944_v60, %v5743_v10  ;;  %v5061_v19 = vadd.f32 %v9303_v53, %v5060_v14  ;;  %3780 = vrot.lane.b32.xlu2 %v10035_v4, %s7098_s19  ;;  %v3089_v14 = vld [vmem:[#allocation2 + $0x2f0] sm:$0xff] }
 0x44d   : > { %3463 = vst.msk [vmem:[#allocation3 + $0x220] sm:$0xf] %vm1879_vm5, %v3317_v63  ;;  %v6440_v63 = vld [vmem:[#allocation3 + $0x1f8] sm:$0xf] }
 0x44e   : > { %v5942_v51 = vmax.f32 %v5878_v54, 0.0 }
 0x44f   : > { %1791 = vrot.lane.b32.xlu0 %v9359_v8, %s7097_s11  ;;  %v5511_v8 = vmax.f32 %v5397_v18, 0.0  ;;  %v9478_v18 = vpack.c.bf16 %v3089_v14, %v3089_v14 }
 0x450   : > { %6006 = vst [vmem:[%s8810_s21 + $0x80] sm:$0xff] %v5942_v51  ;;  %3778 = vrot.lane.b32.xlu1 %v10036_v57, %s7098_s19  ;;  %v5229_v0 = vpop.f32.mrf.mxu2  ;;  %v3319_v22 = vpop.permute.xlu2 %3318 }
 0x451   : > { %v5230_v17 = vadd.f32 %v5229_v0, %v5061_v19  ;;  %v5744_v13 = vpop.f32.mrf.mxu3  ;;  %v5403_v0 = vpop.f32.mrf.mxu0 }
 0x452   : > { %v5745_v2 = vadd.f32 %v9167_v58, %v5744_v13  ;;  %v3315_v38 = vpop.permute.xlu1 %3314  ;;  %v6794_v47 = vld [vmem:[#allocation3 + $0x200] sm:$0xf0]  ;;  %v6947_v13 = vld [vmem:[%s7232_s16 + $0x98] sm:$0xff] }
 0x453   : > { %v3763_v9 = vpop.permute.xlu0 %3762  ;;  %v5399_v46 = vadd.f32 %v5398_v59, %v5230_v17  ;;  %3462 = vst.msk [vmem:[#allocation3 + $0x214] sm:$0xf] %vm1879_vm5, %v3315_v38  ;;  %v6441_v28 = vor.u32 %v6794_v47, %v6440_v63  ;;  %v10038_v47 = vld [vmem:[#allocation25_spill] sm:$0xff] }
 0x454   : > { %v5879_v26 = vadd.f32 %v6945_v37, %v5745_v2  ;;  %3910 = vst.msk [vmem:[#allocation3 + $0x214] sm:$0xf] %vm2328_vm6, %v3763_v9  ;;  %2240 = vrot.lane.b32.xlu2 %v9380_v20, %s7098_s19  ;;  %v2639_v20 = vld [vmem:[#allocation2 + $0x2d2] sm:$0xff]  ;;  %v10037_v2 = vld [vmem:[#allocation19_spill] sm:$0xff] }
 0x455   : > { %v5512_v33 = vmax.f32 %v5399_v46, 0.0  ;;  %5087 = vmatmul.bf16.gmra.mxu1 %v6441_v28  ;;  %v9461_v39 = vpack.c.bf16 %v2639_v20, %v2639_v20  ;;  %v9507_v20 = vpack.c.bf16 %v2641_v29, %v2641_v29 }
 0x456   : > { %v5943_v45 = vmax.f32 %v5879_v26, 0.0 }
 0x457   : > { %v5560_v52 = vpack.c.bf16 %v5512_v33, %v5511_v8  ;;  %2242 = vrot.lane.b32.xlu0 %v9378_v15, %s7098_s19 }
 0x458   : > { %6007 = vst [vmem:[%s8810_s21 + $0x88] sm:$0xff] %v5943_v45  ;;  %1793 = vrot.lane.b32.xlu1 %v9364_v34, %s7097_s11  ;;  %v9452_v48 = vpop.permute.xlu2 %3768 }
 0x459   : > { %v5232_v11 = vpop.f32.mrf.mxu2  ;;  %6697 = vmatmul.msk.bf16.gmra.mxu3 %vm700_vm0, %v5560_v52  ;;  %v5406_v45 = vpop.f32.mrf.mxu0 }
 0x45a   : > { %v3765_v41 = vpop.permute.xlu1 %3764  ;;  %v5063_v21 = vpop.f32.mrf.mxu1 }
 0x45b   : > { %v1778_v32 = vpop.permute.xlu0 %1777  ;;  %3911 = vst.msk [vmem:[#allocation3 + $0x220] sm:$0xf] %vm2328_vm6, %v3765_v41  ;;  %v5064_v15 = vadd.f32 %v9303_v53, %v5063_v21  ;;  %v6796_v27 = vld [vmem:[#allocation3 + $0x214] sm:$0xf] }
 0x45c   : > { %1925 = vst.msk [vmem:[#allocation3 + $0x21c] sm:$0xf] %vm1879_vm5, %v1778_v32  ;;  %v5747_v34 = vpop.f32.mrf.mxu3  ;;  %2887 = vrot.lane.b32.xlu2 %v9459_v7, %s7096_s17 }
 0x45d   : > { %2374 = vst.msk [vmem:[#allocation3 + $0x21c] sm:$0xf] %vm2328_vm6, %v2227_v35  ;;  %v5748_v44 = vadd.f32 %v9167_v58, %v5747_v34  ;;  %v5233_v16 = vadd.f32 %v5232_v11, %v5064_v15 }
 0x45f   : > { %v5880_v61 = vadd.f32 %v6946_v36, %v5748_v44  ;;  %3334 = vrot.lane.b32.xlu0 %v9464_v62, %s7097_s11  ;;  %v5402_v19 = vadd.f32 %v5401_v5, %v5233_v16  ;;  %v6948_v5 = vld [vmem:[%s7232_s16 + $0xa0] sm:$0xff] }
 0x460   : > { %2885 = vrot.lane.b32.xlu1 %v9461_v39, %s7096_s17  ;;  %v2229_v43 = vpop.permute.xlu2 %2228 }
 0x461   : > { %v5944_v30 = vmax.f32 %v5880_v61, 0.0  ;;  %v5234_v24 = vpop.f32.mrf.mxu2  ;;  %v5408_v14 = vpop.f32.mrf.mxu0 }
 0x462   : > { %v2225_v35 = vpop.permute.xlu1 %2224  ;;  %v5065_v10 = vpop.f32.mrf.mxu1  ;;  %v6454_v40 = vld [vmem:[#allocation3 + $0x21c] sm:$0xf0] }
 0x463   : > { %6008 = vst [vmem:[%s8810_s21 + $0x90] sm:$0xff] %v5944_v30  ;;  %v2870_v6 = vpop.permute.xlu0 %2869  ;;  %v5066_v60 = vadd.f32 %v9303_v53, %v5065_v10  ;;  %v6457_v54 = vor.u32 %v6796_v27, %v6454_v40 }
 0x464   : > { %3015 = vst.msk [vmem:[#allocation3 + $0x22c] sm:$0xf] %vm1430_vm4, %v2870_v6  ;;  %v5749_v51 = vpop.f32.mrf.mxu3  ;;  %3782 = vrot.lane.b32.xlu2 %v10037_v2, %s7098_s19  ;;  %v6797_v8 = vld [vmem:[#allocation3 + $0x218] sm:$0xf0] }
 0x465   : > { %3464 = vst.msk [vmem:[#allocation3 + $0x22c] sm:$0xf] %vm1879_vm5, %v3319_v22  ;;  %v5235_v4 = vadd.f32 %v5234_v24, %v5066_v60  ;;  %v5750_v57 = vadd.f32 %v9167_v58, %v5749_v51  ;;  %5261 = vmatmul.bf16.gmra.mxu2 %v6457_v54  ;;  %v5513_v22 = vmax.f32 %v5402_v19, 0.0  ;;  %v9524_v60 = vld [vmem:[%s9938_s6] ss:$0 sm:$0xff] }
 0x466   : > { %2373 = vst.msk [vmem:[#allocation3 + $0x210] sm:$0xf] %vm2328_vm6, %v2225_v35 }
 0x467   : > { %v5404_v17 = vadd.f32 %v5403_v0, %v5235_v4  ;;  %v5881_v59 = vadd.f32 %v6947_v13, %v5750_v57  ;;  %3784 = vrot.lane.b32.xlu0 %v10038_v47, %s7098_s19  ;;  %v6950_v4 = vld [vmem:[%s7232_s16 + $0xa8] sm:$0xff] }
 0x468   : > { %3336 = vrot.lane.b32.xlu1 %v9478_v18, %s7097_s11  ;;  %v2876_v9 = vpop.permute.xlu2 %2875 }
 0x469   : > { %v5514_v38 = vmax.f32 %v5404_v17, 0.0  ;;  %v5945_v63 = vmax.f32 %v5881_v59, 0.0  ;;  %3018 = vst.msk [vmem:[#allocation3 + $0x250] sm:$0xf] %vm1430_vm4, %v2876_v9 }
 0x46a   : > { %v2872_v46 = vpop.permute.xlu1 %2871 }
 0x46b   : > { %6009 = vst [vmem:[%s8810_s21 + $0x98] sm:$0xff] %v5945_v63  ;;  %v3321_v28 = vpop.permute.xlu0 %3320  ;;  %v5561_v37 = vpack.c.bf16 %v5514_v38, %v5513_v22  ;;  %v10039_v22 = vld [vmem:[#allocation26_spill] sm:$0xff] }
 0x46c   : > { %3016 = vst.msk [vmem:[#allocation3 + $0x238] sm:$0xf] %vm1430_vm4, %v2872_v46  ;;  %1797 = vrot.lane.b32.xlu2 %v9416_v55, %s7097_s11 }
 0x46d   : > { %3465 = vst.msk [vmem:[#allocation3 + $0x238] sm:$0xf] %vm1879_vm5, %v3321_v28  ;;  %v6452_v26 = vld [vmem:[#allocation3 + $0x210] sm:$0xf]  ;;  %6698 = vmatmul.msk.bf16.gmra.mxu3 %vm700_vm0, %v5561_v37 }
 0x46e   : > { %3913 = vst.msk [vmem:[#allocation3 + $0x238] sm:$0xf] %vm2328_vm6, %v9452_v48  ;;  %v6453_v33 = vor.u32 %v6797_v8, %v6452_v26  ;;  %v5411_v8 = vpop.f32.mrf.mxu0 }
 0x46f   : > { %2244 = vrot.lane.b32.xlu0 %v9414_v12, %s7098_s19 }
 0x470   : > { %5092 = vmatmul.bf16.gmra.mxu1 %v6453_v33  ;;  %1795 = vrot.lane.b32.xlu1 %v9402_v1, %s7097_s11  ;;  %v5237_v52 = vpop.f32.mrf.mxu2  ;;  %v9500_v11 = vpop.permute.xlu2 %3770  ;;  %v2642_v1 = vld [vmem:[#allocation2 + $0x2f2] sm:$0xff]  ;;  %v10040_v33 = vld [vmem:[#allocation27_spill] sm:$0xff] }
 0x471   : > { %v9510_v25 = vpack.c.bf16 %v2642_v1, %v2642_v1  ;;  %v2643_v1 = vld [vmem:[#allocation2 + $0x302] sm:$0xff] }
 0x472   : > { %v3767_v41 = vpop.permute.xlu1 %3766  ;;  %v5068_v21 = vpop.f32.mrf.mxu1 }
 0x473   : > { %v1780_v48 = vpop.permute.xlu0 %1779  ;;  %v5752_v32 = vpop.f32.mrf.mxu3  ;;  %3912 = vst.msk [vmem:[#allocation3 + $0x22c] sm:$0xf] %vm2328_vm6, %v3767_v41  ;;  %v5069_v12 = vadd.f32 %v9303_v53, %v5068_v21 }
 0x474   : > { %1926 = vst.msk [vmem:[#allocation3 + $0x228] sm:$0xf] %vm1879_vm5, %v1780_v48  ;;  %v5753_v55 = vadd.f32 %v9167_v58, %v5752_v32  ;;  %2889 = vrot.lane.b32.xlu2 %v9507_v20, %s7096_s17  ;;  %v6951_v32 = vld [vmem:[%s7232_s16 + $0xb0] sm:$0xff] }
 0x475   : > { %2375 = vst.msk [vmem:[#allocation3 + $0x228] sm:$0xf] %vm2328_vm6, %v2229_v43  ;;  %v5238_v44 = vadd.f32 %v5237_v52, %v5069_v12  ;;  %v6466_v30 = vld [vmem:[#allocation3 + $0x234] sm:$0xf0]  ;;  %v3091_v43 = vld [vmem:[#allocation2 + $0x308] sm:$0xff] }
 0x476   : > { %v5882_v34 = vadd.f32 %v6948_v5, %v5753_v55  ;;  %v9529_v19 = vpack.c.bf16 %v3091_v43, %v3091_v43 }
 0x477   : > { %2891 = vrot.lane.b32.xlu0 %v9510_v25, %s7096_s17  ;;  %v5407_v24 = vadd.f32 %v5406_v45, %v5238_v44 }
 0x478   : > { %v5946_v15 = vmax.f32 %v5882_v34, 0.0  ;;  %2246 = vrot.lane.b32.xlu1 %v9418_v56, %s7098_s19  ;;  %v1786_v58 = vpop.permute.xlu2 %1785  ;;  %v3090_v56 = vld [vmem:[#allocation2 + $0x300] sm:$0xff]  ;;  %v5239_v6 = vpop.f32.mrf.mxu2  ;;  %v9560_v34 = vpack.c.bf16 %v2643_v1, %v2643_v1 }
 0x479   : > { %1929 = vst.msk [vmem:[#allocation3 + $0x24c] sm:$0xf] %vm1879_vm5, %v1786_v58  ;;  %v9532_v0 = vpack.c.bf16 %v3090_v56, %v3090_v56  ;;  %v5515_v59 = vmax.f32 %v5407_v24, 0.0 }
 0x47a   : > { %6010 = vst [vmem:[%s8810_s21 + $0xa0] sm:$0xff] %v5946_v15  ;;  %v1782_v36 = vpop.permute.xlu1 %1781  ;;  %v5070_v61 = vpop.f32.mrf.mxu1  ;;  %v6799_v16 = vld [vmem:[#allocation3 + $0x22c] sm:$0xf] }
 0x47b   : > { %v2231_v35 = vpop.permute.xlu0 %2230  ;;  %v5754_v10 = vpop.f32.mrf.mxu3  ;;  %v5071_v27 = vadd.f32 %v9303_v53, %v5070_v61  ;;  %v6469_v40 = vor.u32 %v6799_v16, %v6466_v30  ;;  %1927 = vst.msk [vmem:[#allocation3 + $0x234] sm:$0xf] %vm1879_vm5, %v1782_v36 }
 0x47c   : > { %v5755_v54 = vadd.f32 %v9524_v60, %v5754_v10  ;;  %2376 = vst.msk [vmem:[#allocation3 + $0x234] sm:$0xf] %vm2328_vm6, %v2231_v35  ;;  %3340 = vrot.lane.b32.xlu2 %v9529_v19, %s7097_s11  ;;  %v6464_v28 = vld [vmem:[#allocation3 + $0x228] sm:$0xf]  ;;  %v5413_v30 = vpop.f32.mrf.mxu0  ;;  %v3092_v35 = vld [vmem:[#allocation2 + $0x318] sm:$0xff] }
 0x47d   : > { %v5240_v51 = vadd.f32 %v5239_v6, %v5071_v27  ;;  %5266 = vmatmul.bf16.gmra.mxu2 %v6469_v40 }
 0x47e   : > { %v5883_v57 = vadd.f32 %v6950_v4, %v5755_v54  ;;  %v3093_v54 = vld [vmem:[#allocation2 + $0x320] sm:$0xff] }
 0x47f   : > { %v5409_v17 = vadd.f32 %v5408_v14, %v5240_v51  ;;  %3786 = vrot.lane.b32.xlu0 %v10039_v22, %s7098_s19 }
 0x480   : > { %v5947_v13 = vmax.f32 %v5883_v57, 0.0  ;;  %3338 = vrot.lane.b32.xlu1 %v9532_v0, %s7097_s11  ;;  %v2878_v38 = vpop.permute.xlu2 %2877  ;;  %v9573_v57 = vpack.c.bf16 %v3092_v35, %v3092_v35 }
 0x481   : > { %v5516_v2 = vmax.f32 %v5409_v17, 0.0  ;;  %3019 = vst.msk [vmem:[#allocation3 + $0x25c] sm:$0xf] %vm1430_vm4, %v2878_v38 }
 0x482   : > { %6011 = vst [vmem:[%s8810_s21 + $0xa8] sm:$0xff] %v5947_v13  ;;  %v2874_v63 = vpop.permute.xlu1 %2873 }
 0x483   : > { %v3323_v47 = vpop.permute.xlu0 %3322  ;;  %v5073_v9 = vpop.f32.mrf.mxu1  ;;  %v5562_v46 = vpack.c.bf16 %v5516_v2, %v5515_v59  ;;  %3017 = vst.msk [vmem:[#allocation3 + $0x244] sm:$0xf] %vm1430_vm4, %v2874_v63  ;;  %v6800_v37 = vld [vmem:[#allocation3 + $0x230] sm:$0xf0]  ;;  %v9578_v59 = vpack.c.bf16 %v3093_v54, %v3093_v54 }
 0x484   : > { %3466 = vst.msk [vmem:[#allocation3 + $0x244] sm:$0xf] %vm1879_vm5, %v3323_v47  ;;  %v6465_v26 = vor.u32 %v6800_v37, %v6464_v28  ;;  %1799 = vrot.lane.b32.xlu2 %v9461_v39, %s7097_s11 }
 0x485   : > { %6699 = vmatmul.msk.bf16.gmra.mxu3 %vm700_vm0, %v5562_v46  ;;  %3914 = vst.msk [vmem:[#allocation3 + $0x244] sm:$0xf] %vm2328_vm6, %v9500_v11  ;;  %v5074_v11 = vadd.f32 %v9303_v53, %v5073_v9  ;;  %v5416_v9 = vpop.f32.mrf.mxu0 }
 0x486   : > { %5097 = vmatmul.bf16.gmra.mxu1 %v6465_v26  ;;  %v6953_v26 = vld [vmem:[%s7232_s16 + $0xc0] sm:$0xff] }
 0x487   : > { %1801 = vrot.lane.b32.xlu0 %v9459_v7, %s7097_s11 }
 0x488   : > { %3788 = vrot.lane.b32.xlu1 %v10040_v33, %s7098_s19  ;;  %v5242_v45 = vpop.f32.mrf.mxu2  ;;  %v5757_v52 = vpop.f32.mrf.mxu3  ;;  %v10041_v33 = vld [vmem:[#allocation28_spill] sm:$0xff] }
 0x489   : > { %v5758_v41 = vadd.f32 %v9524_v60, %v5757_v52  ;;  %v3329_v21 = vpop.permute.xlu2 %3328  ;;  %v5243_v12 = vadd.f32 %v5242_v45, %v5074_v11  ;;  %v10042_v45 = vld [vmem:[#allocation29_spill] sm:$0xff] }
 0x48a   : > { %v3325_v29 = vpop.permute.xlu1 %3324 }
 0x48b   : > { %v3773_v48 = vpop.permute.xlu0 %3772  ;;  %v5884_v55 = vadd.f32 %v6951_v32, %v5758_v41  ;;  %3467 = vst.msk [vmem:[#allocation3 + $0x250] sm:$0xf] %vm1879_vm5, %v3325_v29  ;;  %v5075_v39 = vpop.f32.mrf.mxu1  ;;  %v5412_v58 = vadd.f32 %v5411_v8, %v5243_v12 }
 0x48c   : > { %3915 = vst.msk [vmem:[#allocation3 + $0x250] sm:$0xf] %vm2328_vm6, %v3773_v48  ;;  %v5076_v7 = vadd.f32 %v9303_v53, %v5075_v39  ;;  %2250 = vrot.lane.b32.xlu2 %v9478_v18, %s7098_s19  ;;  %v2644_v18 = vld [vmem:[#allocation2 + $0x30a] sm:$0xff]  ;;  %v6802_v56 = vld [vmem:[#allocation3 + $0x244] sm:$0xf] }
 0x48d   : > { %v5948_v5 = vmax.f32 %v5884_v55, 0.0  ;;  %v5517_v24 = vmax.f32 %v5412_v58, 0.0  ;;  %v9575_v17 = vpack.c.bf16 %v2644_v18, %v2644_v18 }
 0x48f   : > { %6012 = vst [vmem:[%s8810_s21 + $0xb0] sm:$0xff] %v5948_v5  ;;  %2893 = vrot.lane.b32.xlu0 %v9560_v34, %s7096_s17 }
 0x490   : > { %2248 = vrot.lane.b32.xlu1 %v9464_v62, %s7098_s19  ;;  %v5244_v15 = vpop.f32.mrf.mxu2  ;;  %v5759_v44 = vpop.f32.mrf.mxu3  ;;  %v6952_v62 = vld [vmem:[%s7232_s16 + $0xb8] sm:$0xff] }
 0x491   : > { %v5245_v36 = vadd.f32 %v5244_v15, %v5076_v7  ;;  %v5760_v61 = vadd.f32 %v9524_v60, %v5759_v44  ;;  %v1788_v16 = vpop.permute.xlu2 %1787  ;;  %v5418_v44 = vpop.f32.mrf.mxu0 }
 0x492   : > { %1930 = vst.msk [vmem:[#allocation3 + $0x258] sm:$0xf] %vm1879_vm5, %v1788_v16  ;;  %v1784_v43 = vpop.permute.xlu1 %1783 }
 0x493   : > { %v2233_v10 = vpop.permute.xlu0 %2232  ;;  %v5414_v27 = vadd.f32 %v5413_v30, %v5245_v36  ;;  %v5885_v40 = vadd.f32 %v6952_v62, %v5760_v61  ;;  %1928 = vst.msk [vmem:[#allocation3 + $0x240] sm:$0xf] %vm1879_vm5, %v1784_v43  ;;  %v6478_v6 = vld [vmem:[#allocation3 + $0x24c] sm:$0xf0]  ;;  %v6954_v36 = vld [vmem:[%s7232_s16 + $0xc8] sm:$0xff] }
 0x494   : > { %2377 = vst.msk [vmem:[#allocation3 + $0x240] sm:$0xf] %vm2328_vm6, %v2233_v10  ;;  %v6481_v14 = vor.u32 %v6802_v56, %v6478_v6  ;;  %3342 = vrot.lane.b32.xlu2 %v9573_v57, %s7097_s11  ;;  %v2646_v10 = vld [vmem:[#allocation2 + $0x322] sm:$0xff] }
 0x495   : > { %v5518_v51 = vmax.f32 %v5414_v27, 0.0  ;;  %v5949_v4 = vmax.f32 %v5885_v40, 0.0  ;;  %v2645_v40 = vld [vmem:[#allocation2 + $0x31a] sm:$0xff] }
 0x496   : > { %5271 = vmatmul.bf16.gmra.mxu2 %v6481_v14 }
 0x497   : > { %v5563_v13 = vpack.c.bf16 %v5518_v51, %v5517_v24  ;;  %6013 = vst [vmem:[%s8810_s21 + $0xb8] sm:$0xff] %v5949_v4  ;;  %3344 = vrot.lane.b32.xlu0 %v9578_v59, %s7097_s11  ;;  %v6955_v4 = vld [vmem:[%s7232_s16 + $0xd0] sm:$0xff] }
 0x498   : > { %2895 = vrot.lane.b32.xlu1 %v9575_v17, %s7096_s17 }
 0x499   : > { %v5247_v2 = vpop.f32.mrf.mxu2  ;;  %6700 = vmatmul.msk.bf16.gmra.mxu3 %vm700_vm0, %v5563_v13  ;;  %v2239_v22 = vpop.permute.xlu2 %2238 }
 0x49a   : > { %v2235_v38 = vpop.permute.xlu1 %2234  ;;  %v5078_v63 = vpop.f32.mrf.mxu1 }
 0x49b   : > { %v2880_v47 = vpop.permute.xlu0 %2879  ;;  %2378 = vst.msk [vmem:[#allocation3 + $0x24c] sm:$0xf] %vm2328_vm6, %v2235_v38  ;;  %v5079_v28 = vadd.f32 %v9303_v53, %v5078_v63  ;;  %v6476_v48 = vld [vmem:[#allocation3 + $0x240] sm:$0xf] }
 0x49c   : > { %3020 = vst.msk [vmem:[#allocation3 + $0x268] sm:$0xf] %vm1430_vm4, %v2880_v47  ;;  %v5762_v46 = vpop.f32.mrf.mxu3  ;;  %3792 = vrot.lane.b32.xlu2 %v10041_v33, %s7098_s19 }
 0x49d   : > { %3469 = vst.msk [vmem:[#allocation3 + $0x268] sm:$0xf] %vm1879_vm5, %v3329_v21  ;;  %v5763_v37 = vadd.f32 %v9524_v60, %v5762_v46  ;;  %v5248_v52 = vadd.f32 %v5247_v2, %v5079_v28  ;;  %v3095_v2 = vld [vmem:[#allocation2 + $0x338] sm:$0xff]  ;;  %v5421_v46 = vpop.f32.mrf.mxu0 }
 0x49f   : > { %v5886_v8 = vadd.f32 %v6953_v26, %v5763_v37  ;;  %1803 = vrot.lane.b32.xlu0 %v9507_v20, %s7097_s11  ;;  %v5417_v7 = vadd.f32 %v5416_v9, %v5248_v52  ;;  %v9633_v37 = vpack.c.bf16 %v3095_v2, %v3095_v2 }
 0x4a0   : > { %3790 = vrot.lane.b32.xlu1 %v10042_v45, %s7098_s19 }
 0x4a1   : > { %v5950_v41 = vmax.f32 %v5886_v8, 0.0  ;;  %v3331_v29 = vpop.permute.xlu2 %3330  ;;  %v5249_v12 = vpop.f32.mrf.mxu2  ;;  %v5519_v16 = vmax.f32 %v5417_v7, 0.0 }
 0x4a2   : > { %v3327_v11 = vpop.permute.xlu1 %3326  ;;  %v5080_v21 = vpop.f32.mrf.mxu1  ;;  %v6803_v32 = vld [vmem:[#allocation3 + $0x248] sm:$0xf0] }
 0x4a3   : > { %6014 = vst [vmem:[%s8810_s21 + $0xc0] sm:$0xff] %v5950_v41  ;;  %v3775_v55 = vpop.permute.xlu0 %3774  ;;  %v5081_v39 = vadd.f32 %v9303_v53, %v5080_v21  ;;  %v6477_v1 = vor.u32 %v6803_v32, %v6476_v48 }
 0x4a4   : > { %3468 = vst.msk [vmem:[#allocation3 + $0x25c] sm:$0xf] %vm1879_vm5, %v3327_v11  ;;  %v5764_v5 = vpop.f32.mrf.mxu3  ;;  %2252 = vrot.lane.b32.xlu2 %v9532_v0, %s7098_s19  ;;  %v3094_v0 = vld [vmem:[#allocation2 + $0x330] sm:$0xff] }
 0x4a5   : > { %3916 = vst.msk [vmem:[#allocation3 + $0x25c] sm:$0xf] %vm2328_vm6, %v3775_v55  ;;  %v5250_v15 = vadd.f32 %v5249_v12, %v5081_v39  ;;  %v5765_v20 = vadd.f32 %v9524_v60, %v5764_v5  ;;  %5102 = vmatmul.bf16.gmra.mxu1 %v6477_v1  ;;  %v9620_v56 = vpack.c.bf16 %v3094_v0, %v3094_v0  ;;  %v9652_v55 = vld [vmem:[%s9936_s4] ss:$0 sm:$0xff]  ;;  %v5423_v7 = vpop.f32.mrf.mxu0 }
 0x4a7   : > { %v5419_v58 = vadd.f32 %v5418_v44, %v5250_v15  ;;  %v5887_v61 = vadd.f32 %v6954_v36, %v5765_v20  ;;  %2254 = vrot.lane.b32.xlu0 %v9529_v19, %s7098_s19  ;;  %v9618_v19 = vpack.c.bf16 %v2645_v40, %v2645_v40 }
 0x4a8   : > { %1805 = vrot.lane.b32.xlu1 %v9510_v25, %s7097_s11  ;;  %v9615_v25 = vpack.c.bf16 %v2646_v10, %v2646_v10 }
 0x4a9   : > { %v5520_v30 = vmax.f32 %v5419_v58, 0.0  ;;  %v5951_v43 = vmax.f32 %v5887_v61, 0.0  ;;  %v3781_v35 = vpop.permute.xlu2 %3780  ;;  %v2647_v58 = vld [vmem:[#allocation2 + $0x332] sm:$0xff] }
 0x4aa   : > { %v3777_v18 = vpop.permute.xlu1 %3776 }
 0x4ab   : > { %6015 = vst [vmem:[%s8810_s21 + $0xc8] sm:$0xff] %v5951_v43  ;;  %v1790_v27 = vpop.permute.xlu0 %1789  ;;  %v5564_v62 = vpack.c.bf16 %v5520_v30, %v5519_v16  ;;  %v2648_v30 = vld [vmem:[#allocation2 + $0x33a] sm:$0xff]  ;;  %v2711_v43 = vpack.c.bf16 %v2647_v58, %v2647_v58 }
 0x4ac   : > { %1931 = vst.msk [vmem:[#allocation3 + $0x264] sm:$0xf] %vm1879_vm5, %v1790_v27  ;;  %2899 = vrot.lane.b32.xlu2 %v9615_v25, %s7096_s17  ;;  %v6805_v63 = vld [vmem:[#allocation3 + $0x25c] sm:$0xf]  ;;  %v3544_v27 = vld [vmem:[#allocation2 + $0x349] sm:$0xff] }
 0x4ad   : > { %2380 = vst.msk [vmem:[#allocation3 + $0x264] sm:$0xf] %vm2328_vm6, %v2239_v22  ;;  %6701 = vmatmul.msk.bf16.gmra.mxu3 %vm700_vm0, %v5564_v62  ;;  %v3096_v62 = vld [vmem:[#allocation2 + $0x348] sm:$0xff]  ;;  %v3608_v2 = vpack.c.bf16 %v3544_v27, %v3544_v27 }
 0x4ae   : > { %3917 = vst.msk [vmem:[#allocation3 + $0x268] sm:$0xf] %vm2328_vm6, %v3777_v18 }
 0x4af   : > { %3346 = vrot.lane.b32.xlu0 %v9620_v56, %s7097_s11 }
 0x4b0   : > { %2897 = vrot.lane.b32.xlu1 %v9618_v19, %s7096_s17  ;;  %v5767_v6 = vpop.f32.mrf.mxu3  ;;  %v5252_v22 = vpop.f32.mrf.mxu2 }
 0x4b1   : > { %v5768_v54 = vadd.f32 %v9524_v60, %v5767_v6  ;;  %v2241_v14 = vpop.permute.xlu2 %2240 }
 0x4b2   : > { %v2237_v24 = vpop.permute.xlu1 %2236 }
 0x4b3   : > { %v2882_v51 = vpop.permute.xlu0 %2881  ;;  %v5888_v13 = vadd.f32 %v6955_v4, %v5768_v54  ;;  %2379 = vst.msk [vmem:[#allocation3 + $0x258] sm:$0xf] %vm2328_vm6, %v2237_v24  ;;  %v3160_v4 = vpack.c.bf16 %v3096_v62, %v3096_v62 }
 0x4b4   : > { %3021 = vst.msk [vmem:[#allocation3 + $0x274] sm:$0xf] %vm1430_vm4, %v2882_v51  ;;  %v5083_v38 = vpop.f32.mrf.mxu1  ;;  %3794 = vrot.lane.b32.xlu2 %v9275_v49, %s7098_s19  ;;  %v6956_v49 = vld [vmem:[%s7232_s16 + $0xd8] sm:$0xff] }
 0x4b5   : > { %3470 = vst.msk [vmem:[#allocation3 + $0x274] sm:$0xf] %vm1879_vm5, %v3331_v29  ;;  %v5952_v47 = vmax.f32 %v5888_v13, 0.0  ;;  %v6490_v9 = vld [vmem:[#allocation3 + $0x264] sm:$0xf0]  ;;  %v5084_v26 = vadd.f32 %v9303_v53, %v5083_v38 }
 0x4b6   : > { %v6493_v28 = vor.u32 %v6805_v63, %v6490_v9  ;;  %v6806_v29 = vld [vmem:[#allocation3 + $0x260] sm:$0xf0]  ;;  %v3545_v9 = vld [vmem:[#allocation2 + $0x351] sm:$0xff] }
 0x4b7   : > { %6016 = vst [vmem:[%s8810_s21 + $0xd0] sm:$0xff] %v5952_v47  ;;  %3796 = vrot.lane.b32.xlu0 %v9281_v31, %s7098_s19  ;;  %v5253_v53 = vadd.f32 %v5252_v22, %v5084_v26 }
 0x4b8   : > { %5276 = vmatmul.bf16.gmra.mxu2 %v6493_v28  ;;  %3348 = vrot.lane.b32.xlu1 %v9633_v37, %s7097_s11  ;;  %v5769_v8 = vpop.f32.mrf.mxu3  ;;  %v5254_v1 = vpop.f32.mrf.mxu2 }
 0x4b9   : > { %v5770_v33 = vadd.f32 %v9524_v60, %v5769_v8  ;;  %v2888_v45 = vpop.permute.xlu2 %2887  ;;  %v5422_v12 = vadd.f32 %v5421_v46, %v5253_v53  ;;  %v6959_v8 = vld [vmem:[%s7232_s16 + $0xe8] sm:$0xff]  ;;  %v3609_v53 = vpack.c.bf16 %v3545_v9, %v3545_v9 }
 0x4ba   : > { %3024 = vst.msk [vmem:[#allocation3 + $0x298] sm:$0xf] %vm1430_vm4, %v2888_v45  ;;  %v2884_v52 = vpop.permute.xlu1 %2883  ;;  %v6488_v41 = vld [vmem:[#allocation3 + $0x258] sm:$0xf] }
 0x4bb   : > { %v3333_v11 = vpop.permute.xlu0 %3332  ;;  %v5889_v21 = vadd.f32 %v6956_v49, %v5770_v33  ;;  %3022 = vst.msk [vmem:[#allocation3 + $0x280] sm:$0xf] %vm1430_vm4, %v2884_v52  ;;  %v6489_v48 = vor.u32 %v6806_v29, %v6488_v41  ;;  %v5521_v36 = vmax.f32 %v5422_v12, 0.0  ;;  %v5426_v41 = vpop.f32.mrf.mxu0 }
 0x4bc   : > { %3471 = vst.msk [vmem:[#allocation3 + $0x280] sm:$0xf] %vm1879_vm5, %v3333_v11  ;;  %v5085_v32 = vpop.f32.mrf.mxu1  ;;  %1809 = vrot.lane.b32.xlu2 %v9575_v17, %s7097_s11 }
 0x4bd   : > { %v5953_v31 = vmax.f32 %v5889_v21, 0.0  ;;  %3919 = vst.msk [vmem:[#allocation3 + $0x280] sm:$0xf] %vm2328_vm6, %v3781_v35  ;;  %v5086_v39 = vadd.f32 %v9652_v55, %v5085_v32  ;;  %5107 = vmatmul.bf16.gmra.mxu1 %v6489_v48  ;;  %v3097_v35 = vld [vmem:[#allocation2 + $0x350] sm:$0xff] }
 0x4be   : > { %v3161_v51 = vpack.c.bf16 %v3097_v35, %v3097_v35 }
 0x4bf   : > { %6017 = vst [vmem:[%s8810_s21 + $0xd8] sm:$0xff] %v5953_v31  ;;  %v5255_v5 = vadd.f32 %v5254_v1, %v5086_v39  ;;  %2256 = vrot.lane.b32.xlu0 %v9573_v57, %s7098_s19 }
 0x4c0   : > { %1807 = vrot.lane.b32.xlu1 %v9560_v34, %s7097_s11  ;;  %v2712_v34 = vpack.c.bf16 %v2648_v30, %v2648_v30 }
 0x4c1   : > { %v5424_v15 = vadd.f32 %v5423_v7, %v5255_v5  ;;  %v3783_v20 = vpop.permute.xlu2 %3782 }
 0x4c2   : > { %v3779_v44 = vpop.permute.xlu1 %3778 }
 0x4c3   : > { %v5522_v61 = vmax.f32 %v5424_v15, 0.0  ;;  %v1792_v16 = vpop.permute.xlu0 %1791  ;;  %3918 = vst.msk [vmem:[#allocation3 + $0x274] sm:$0xf] %vm2328_vm6, %v3779_v44 }
 0x4c4   : > { %1932 = vst.msk [vmem:[#allocation3 + $0x270] sm:$0xf] %vm1879_vm5, %v1792_v16  ;;  %2901 = vrot.lane.b32.xlu2 %v2711_v43, %s7096_s17  ;;  %v6502_v6 = vld [vmem:[#allocation3 + $0x27c] sm:$0xf0] }
 0x4c5   : > { %v5565_v17 = vpack.c.bf16 %v5522_v61, %v5521_v36  ;;  %2381 = vst.msk [vmem:[#allocation3 + $0x270] sm:$0xf] %vm2328_vm6, %v2241_v14  ;;  %v6958_v14 = vld [vmem:[%s7232_s16 + $0xe0] sm:$0xff] }
 0x4c7   : > { %6702 = vmatmul.msk.bf16.gmra.mxu3 %vm700_vm0, %v5565_v17  ;;  %2903 = vrot.lane.b32.xlu0 %v2712_v34, %s7096_s17  ;;  %s7045_s17 = scalar_lea.hbm %s9939_s7, 2048 }
 0x4c8   : > { %2258 = vrot.lane.b32.xlu1 %v9578_v59, %s7098_s19  ;;  %v5772_v57 = vpop.f32.mrf.mxu3 }
 0x4c9   : > { %v5773_v18 = vadd.f32 %v9524_v60, %v5772_v57  ;;  %v1798_v10 = vpop.permute.xlu2 %1797  ;;  %v5257_v38 = vpop.f32.mrf.mxu2 }
 0x4ca   : > { %1935 = vst.msk [vmem:[#allocation3 + $0x294] sm:$0xf] %vm1879_vm5, %v1798_v10  ;;  %v1794_v40 = vpop.permute.xlu1 %1793  ;;  %v6808_v0 = vld [vmem:[#allocation3 + $0x274] sm:$0xf]  ;;  %v6961_v10 = vld [vmem:[%s7232_s16 + $0xf8] sm:$0xff] }
 0x4cb   : > { %v2243_v54 = vpop.permute.xlu0 %2242  ;;  %v5890_v24 = vadd.f32 %v6958_v14, %v5773_v18  ;;  %1933 = vst.msk [vmem:[#allocation3 + $0x27c] sm:$0xf] %vm1879_vm5, %v1794_v40  ;;  %v6505_v59 = vor.u32 %v6808_v0, %v6502_v6 }
 0x4cc   : > { %2382 = vst.msk [vmem:[#allocation3 + $0x27c] sm:$0xf] %vm2328_vm6, %v2243_v54  ;;  %3352 = vrot.lane.b32.xlu2 %v3161_v51, %s7097_s11  ;;  %v6500_v45 = vld [vmem:[#allocation3 + $0x270] sm:$0xf] }
 0x4cd   : > { %v5954_v13 = vmax.f32 %v5890_v24, 0.0  ;;  %5281 = vmatmul.bf16.gmra.mxu2 %v6505_v59 }
 0x4cf   : > { %6018 = vst [vmem:[%s8810_s21 + $0xe0] sm:$0xff] %v5954_v13  ;;  %3798 = vrot.lane.b32.xlu0 %v3608_v2, %s7098_s19 }
 0x4d0   : > { %3350 = vrot.lane.b32.xlu1 %v3160_v4, %s7097_s11  ;;  %v5774_v22 = vpop.f32.mrf.mxu3 }
 0x4d1   : > { %v5775_v63 = vadd.f32 %v9524_v60, %v5774_v22  ;;  %v2890_v47 = vpop.permute.xlu2 %2889  ;;  %v5259_v12 = vpop.f32.mrf.mxu2  ;;  %v6962_v22 = vld [vmem:[%s7232_s16 + $0x100] sm:$0xff] }
 0x4d2   : > { %3025 = vst.msk [vmem:[#allocation3 + $0x2a4] sm:$0xf] %vm1430_vm4, %v2890_v47  ;;  %v2886_v46 = vpop.permute.xlu1 %2885  ;;  %v5088_v28 = vpop.f32.mrf.mxu1 }
 0x4d3   : > { %v3335_v26 = vpop.permute.xlu0 %3334  ;;  %v5891_v33 = vadd.f32 %v6959_v8, %v5775_v63  ;;  %3023 = vst.msk [vmem:[#allocation3 + $0x28c] sm:$0xf] %vm1430_vm4, %v2886_v46  ;;  %v6809_v52 = vld [vmem:[#allocation3 + $0x278] sm:$0xf0]  ;;  %v5089_v49 = vadd.f32 %v9652_v55, %v5088_v28 }
 0x4d4   : > { %3472 = vst.msk [vmem:[#allocation3 + $0x28c] sm:$0xf] %vm1879_vm5, %v3335_v26  ;;  %v6501_v29 = vor.u32 %v6809_v52, %v6500_v45  ;;  %1811 = vrot.lane.b32.xlu2 %v9618_v19, %s7097_s11  ;;  %v10043_v45 = vld [vmem:[#allocation32_spill] sm:$0xff] }
 0x4d5   : > { %v5955_v11 = vmax.f32 %v5891_v33, 0.0  ;;  %3920 = vst.msk [vmem:[#allocation3 + $0x28c] sm:$0xf] %vm2328_vm6, %v3783_v20  ;;  %v5258_v21 = vadd.f32 %v5257_v38, %v5089_v49  ;;  %v5428_v20 = vpop.f32.mrf.mxu0  ;;  %v10044_v49 = vld [vmem:[#allocation33_spill] sm:$0xff] }
 0x4d6   : > { %5112 = vmatmul.bf16.gmra.mxu1 %v6501_v29 }
 0x4d7   : > { %6019 = vst [vmem:[%s8810_s21 + $0xe8] sm:$0xff] %v5955_v11  ;;  %1813 = vrot.lane.b32.xlu0 %v9615_v25, %s7097_s11  ;;  %v5427_v19 = vadd.f32 %v5426_v41, %v5258_v21  ;;  %v6960_v25 = vld [vmem:[%s7232_s16 + $0xf0] sm:$0xff] }
 0x4d8   : > { %3800 = vrot.lane.b32.xlu1 %v3609_v53, %s7098_s19 }
 0x4d9   : > { %v3341_v48 = vpop.permute.xlu2 %3340  ;;  %v5523_v36 = vmax.f32 %v5427_v19, 0.0 }
 0x4da   : > { %v3337_v32 = vpop.permute.xlu1 %3336  ;;  %v5090_v31 = vpop.f32.mrf.mxu1 }
 0x4db   : > { %v3785_v39 = vpop.permute.xlu0 %3784  ;;  %3473 = vst.msk [vmem:[#allocation3 + $0x298] sm:$0xf] %vm1879_vm5, %v3337_v32  ;;  %v5091_v1 = vadd.f32 %v9652_v55, %v5090_v31  ;;  %v6963_v31 = vld [vmem:[%s7232_s16 + $0x108] sm:$0xff] }
 0x4dc   : > { %3921 = vst.msk [vmem:[#allocation3 + $0x298] sm:$0xf] %vm2328_vm6, %v3785_v39  ;;  %v5777_v5 = vpop.f32.mrf.mxu3  ;;  %2262 = vrot.lane.b32.xlu2 %v9633_v37, %s7098_s19  ;;  %v6811_v57 = vld [vmem:[#allocation3 + $0x28c] sm:$0xf] }
 0x4dd   : > { %v5260_v7 = vadd.f32 %v5259_v12, %v5091_v1  ;;  %v5778_v15 = vadd.f32 %v9524_v60, %v5777_v5 }
 0x4df   : > { %v5429_v44 = vadd.f32 %v5428_v20, %v5260_v7  ;;  %v5892_v58 = vadd.f32 %v6960_v25, %v5778_v15 }
 0x4e0   : > { %2260 = vrot.lane.b32.xlu1 %v9620_v56, %s7098_s19  ;;  %s6847_s19 = sshll.u32 %s7162_s28, 9 }
 0x4e1   : > { %v5524_v61 = vmax.f32 %v5429_v44, 0.0  ;;  %v5956_v16 = vmax.f32 %v5892_v58, 0.0  ;;  %v1800_v30 = vpop.permute.xlu2 %1799  ;;  %s6067_s8 = scalar_lea.hbm %s9939_s7, %s6847_s19 }
 0x4e2   : > { %1936 = vst.msk [vmem:[#allocation3 + $0x2a0] sm:$0xf] %vm1879_vm5, %v1800_v30  ;;  %v1796_v17 = vpop.permute.xlu1 %1795  ;;  %s6070_s18 = sshll.u32 %s6067_s8, 4  ;;  %s6071_s18 = int_to_ptr.hbm [resolvable:$true] %s6070_s18 }
 0x4e3   : > { %v5566_v43 = vpack.c.bf16 %v5524_v61, %v5523_v36  ;;  %6020 = vst [vmem:[%s8810_s21 + $0xf0] sm:$0xff] %v5956_v16  ;;  %v2245_v34 = vpop.permute.xlu0 %2244  ;;  %v6514_v35 = vld [vmem:[#allocation3 + $0x294] sm:$0xf0]  ;;  %s7039_s28 = sshra.s32 %s6071_s18, 4  ;;  %s7040_s28 = int_to_ptr.hbm [resolvable:$true] %s7039_s28 }
 0x4e4   : > { %1934 = vst.msk [vmem:[#allocation3 + $0x288] sm:$0xf] %vm1879_vm5, %v1796_v17  ;;  %v5779_v37 = vpop.f32.mrf.mxu3  ;;  %v6517_v18 = vor.u32 %v6811_v57, %v6514_v35  ;;  %s7041_s20 = scalar_lea.hbm %s7040_s28, 512  ;;  %p7046_p0 = scmp.lt.s32.totalorder %s7040_s28, %s9939_s7 }
 0x4e5   : > { %2383 = vst.msk [vmem:[#allocation3 + $0x288] sm:$0xf] %vm2328_vm6, %v2245_v34  ;;  %v5780_v56 = vadd.f32 %v9524_v60, %v5779_v37  ;;  %6703 = vmatmul.msk.bf16.gmra.mxu3 %vm700_vm0, %v5566_v43  ;;  %p7042_p6 = scmp.ne.s32.totalorder %s7040_s28, %s7041_s20  ;;  %p7047_p2 = scmp.lt.s32.totalorder %s7045_s17, %s7041_s20 }
 0x4e6   : > { %5286 = vmatmul.bf16.gmra.mxu2 %v6517_v18 }
 0x4e7   : > { %v5893_v27 = vadd.f32 %v6961_v10, %v5780_v56  ;;  %v6964_v56 = vld [vmem:[%s7232_s16 + $0x110] sm:$0xff]  ;;  %p7043_p12 = pnand %p7042_p6, %p7190_p10  ;;  %p7048_p3 = por %p7047_p2, %p7046_p0 }
 0x4e8   : > { %v5262_v54 = vpop.f32.mrf.mxu2 }
 0x4e9   : > { %v5957_v62 = vmax.f32 %v5893_v27, 0.0  ;;  %v2251_v40 = vpop.permute.xlu2 %2250  ;;  %p7044_p13 = pneg %p7043_p12 }
 0x4ea   : > { %v2247_v0 = vpop.permute.xlu1 %2246 }
 0x4eb   : > { %6021 = vst [vmem:[%s8810_s21 + $0xf8] sm:$0xff] %v5957_v62  ;;  %v2892_v6 = vpop.permute.xlu0 %2891  ;;  %p7049_p4 = pnand %p7048_p3, %p7044_p13 }
 0x4ec   : > { %3026 = vst.msk [vmem:[#allocation3 + $0x2b0] sm:$0xf] %vm1430_vm4, %v2892_v6  ;;  %v6512_v46 = vld [vmem:[#allocation3 + $0x288] sm:$0xf] }
 0x4ed   : > { %3475 = vst.msk [vmem:[#allocation3 + $0x2b0] sm:$0xf] %vm1879_vm5, %v3341_v48  ;;  %v5093_v14 = vpop.f32.mrf.mxu1 }
 0x4ee   : > { %2384 = vst.msk [vmem:[#allocation3 + $0x294] sm:$0xf] %vm2328_vm6, %v2247_v0  ;;  %v5094_v24 = vadd.f32 %v9652_v55, %v5093_v14 }
 0x4f0   : > { %v5782_v59 = vpop.f32.mrf.mxu3  ;;  %v5263_v63 = vadd.f32 %v5262_v54, %v5094_v24  ;;  %v5264_v33 = vpop.f32.mrf.mxu2  ;;  %v10045_v54 = vld [vmem:[#allocation36_spill] sm:$0xff] }
 0x4f1   : > { %v5783_v51 = vadd.f32 %v9524_v60, %v5782_v59  ;;  %v3343_v4 = vpop.permute.xlu2 %3342 }
 0x4f2   : > { %v3339_v13 = vpop.permute.xlu1 %3338  ;;  %v5432_v52 = vadd.f32 %v10043_v45, %v5263_v63 }
 0x4f3   : > { %v3787_v2 = vpop.permute.xlu0 %3786  ;;  %v5894_v38 = vadd.f32 %v6962_v22, %v5783_v51  ;;  %3474 = vst.msk [vmem:[#allocation3 + $0x2a4] sm:$0xf] %vm1879_vm5, %v3339_v13  ;;  %v10046_v51 = vld [vmem:[#allocation37_spill] sm:$0xff] }
 0x4f4   : > { %3922 = vst.msk [vmem:[#allocation3 + $0x2a4] sm:$0xf] %vm2328_vm6, %v3787_v2  ;;  %v5525_v1 = vmax.f32 %v5432_v52, 0.0 }
 0x4f5   : > { %v5958_v47 = vmax.f32 %v5894_v38, 0.0  ;;  %v5095_v9 = vpop.f32.mrf.mxu1  ;;  %v6812_v28 = vld [vmem:[#allocation3 + $0x290] sm:$0xf0] }
 0x4f6   : > { %v5096_v26 = vadd.f32 %v9652_v55, %v5095_v9  ;;  %v6513_v8 = vor.u32 %v6812_v28, %v6512_v46  ;;  %v6965_v9 = vld [vmem:[%s7232_s16 + $0x118] sm:$0xff] }
 0x4f7   : > { %6022 = vst [vmem:[%s8810_s21 + $0x100] sm:$0xff] %v5958_v47 }
 0x4f8   : > { %v5265_v41 = vadd.f32 %v5264_v33, %v5096_v26  ;;  %5117 = vmatmul.bf16.gmra.mxu1 %v6513_v8  ;;  %v5784_v29 = vpop.f32.mrf.mxu3 }
 0x4f9   : > { %v5785_v53 = vadd.f32 %v9524_v60, %v5784_v29  ;;  %v3793_v11 = vpop.permute.xlu2 %3792 }
 0x4fa   : > { %v5434_v21 = vadd.f32 %v10044_v49, %v5265_v41  ;;  %v3789_v48 = vpop.permute.xlu1 %3788  ;;  %v6966_v49 = vld [vmem:[%s7232_s16 + $0x120] sm:$0xff] }
 0x4fb   : > { %v1802_v32 = vpop.permute.xlu0 %1801  ;;  %v5895_v39 = vadd.f32 %v6963_v31, %v5785_v53  ;;  %3923 = vst.msk [vmem:[#allocation3 + $0x2b0] sm:$0xf] %vm2328_vm6, %v3789_v48  ;;  %v6814_v20 = vld [vmem:[#allocation3 + $0x2a4] sm:$0xf] }
 0x4fc   : > { %v5526_v12 = vmax.f32 %v5434_v21, 0.0  ;;  %1937 = vst.msk [vmem:[#allocation3 + $0x2ac] sm:$0xf] %vm1879_vm5, %v1802_v32 }
 0x4fd   : > { %2386 = vst.msk [vmem:[#allocation3 + $0x2ac] sm:$0xf] %vm2328_vm6, %v2251_v40  ;;  %v5959_v5 = vmax.f32 %v5895_v39, 0.0 }
 0x4fe   : > { %v5567_v19 = vpack.c.bf16 %v5526_v12, %v5525_v1 }
 0x4ff   : > { %6023 = vst [vmem:[%s8810_s21 + $0x108] sm:$0xff] %v5959_v5 }
 0x500   : > { %6704 = vmatmul.msk.bf16.gmra.mxu3 %vm700_vm0, %v5567_v19  ;;  %v5267_v36 = vpop.f32.mrf.mxu2 }
 0x501   : > { %v2253_v7 = vpop.permute.xlu2 %2252 }
 0x502   : > { %v2249_v15 = vpop.permute.xlu1 %2248  ;;  %v6526_v44 = vld [vmem:[#allocation3 + $0x2ac] sm:$0xf0] }
 0x503   : > { %v2894_v25 = vpop.permute.xlu0 %2893  ;;  %2385 = vst.msk [vmem:[#allocation3 + $0x2a0] sm:$0xf] %vm2328_vm6, %v2249_v15  ;;  %v6529_v58 = vor.u32 %v6814_v20, %v6526_v44  ;;  %v5098_v61 = vpop.f32.mrf.mxu1 }
 0x504   : > { %3027 = vst.msk [vmem:[#allocation3 + $0x2bc] sm:$0xf] %vm1430_vm4, %v2894_v25  ;;  %v5099_v16 = vadd.f32 %v9652_v55, %v5098_v61  ;;  %v6815_v35 = vld [vmem:[#allocation3 + $0x2a8] sm:$0xf0] }
 0x505   : > { %3476 = vst.msk [vmem:[#allocation3 + $0x2bc] sm:$0xf] %vm1879_vm5, %v3343_v4  ;;  %5291 = vmatmul.bf16.gmra.mxu2 %v6529_v58  ;;  %v6967_v25 = vld [vmem:[%s7232_s16 + $0x128] sm:$0xff] }
 0x506   : > { %v5268_v37 = vadd.f32 %v5267_v36, %v5099_v16 }
 0x508   : > { %v5787_v30 = vpop.f32.mrf.mxu3  ;;  %v5269_v6 = vpop.f32.mrf.mxu2  ;;  %v5437_v14 = vadd.f32 %v10045_v54, %v5268_v37 }
 0x509   : > { %v5788_v17 = vadd.f32 %v9524_v60, %v5787_v30  ;;  %v2900_v43 = vpop.permute.xlu2 %2899 }
 0x50a   : > { %3030 = vst.msk [vmem:[#allocation3 + $0x2e0] sm:$0xf] %vm1430_vm4, %v2900_v43  ;;  %v2896_v34 = vpop.permute.xlu1 %2895  ;;  %v6524_v57 = vld [vmem:[#allocation3 + $0x2a0] sm:$0xf]  ;;  %v5527_v38 = vmax.f32 %v5437_v14, 0.0 }
 0x50b   : > { %v3345_v18 = vpop.permute.xlu0 %3344  ;;  %v5896_v10 = vadd.f32 %v6964_v56, %v5788_v17  ;;  %3028 = vst.msk [vmem:[#allocation3 + $0x2c8] sm:$0xf] %vm1430_vm4, %v2896_v34  ;;  %v6525_v27 = vor.u32 %v6815_v35, %v6524_v57  ;;  %v5100_v62 = vpop.f32.mrf.mxu1  ;;  %v10047_v35 = vld [vmem:[#allocation40_spill] sm:$0xff]  ;;  %v10048_v56 = vld [vmem:[#allocation41_spill] sm:$0xff] }
 0x50c   : > { %3477 = vst.msk [vmem:[#allocation3 + $0x2c8] sm:$0xf] %vm1879_vm5, %v3345_v18  ;;  %v5101_v0 = vadd.f32 %v9652_v55, %v5100_v62 }
 0x50d   : > { %v5960_v40 = vmax.f32 %v5896_v10, 0.0  ;;  %3925 = vst.msk [vmem:[#allocation3 + $0x2c8] sm:$0xf] %vm2328_vm6, %v3793_v11  ;;  %5122 = vmatmul.bf16.gmra.mxu1 %v6525_v27 }
 0x50e   : > { %v5270_v24 = vadd.f32 %v5269_v6, %v5101_v0 }
 0x50f   : > { %6024 = vst [vmem:[%s8810_s21 + $0x110] sm:$0xff] %v5960_v40 }
 0x510   : > { %v5789_v59 = vpop.f32.mrf.mxu3  ;;  %v5439_v4 = vadd.f32 %v10046_v51, %v5270_v24 }
 0x511   : > { %v5790_v13 = vadd.f32 %v9524_v60, %v5789_v59  ;;  %v3795_v2 = vpop.permute.xlu2 %3794  ;;  %v6968_v59 = vld [vmem:[%s7232_s16 + $0x130] sm:$0xff] }
 0x512   : > { %v3791_v22 = vpop.permute.xlu1 %3790  ;;  %v5528_v63 = vmax.f32 %v5439_v4, 0.0 }
 0x513   : > { %v1804_v47 = vpop.permute.xlu0 %1803  ;;  %v5897_v46 = vadd.f32 %v6965_v9, %v5790_v13  ;;  %3924 = vst.msk [vmem:[#allocation3 + $0x2bc] sm:$0xf] %vm2328_vm6, %v3791_v22 }
 0x514   : > { %1938 = vst.msk [vmem:[#allocation3 + $0x2b8] sm:$0xf] %vm1879_vm5, %v1804_v47  ;;  %v5568_v28 = vpack.c.bf16 %v5528_v63, %v5527_v38  ;;  %v6538_v52 = vld [vmem:[#allocation3 + $0x2c4] sm:$0xf0] }
 0x515   : > { %2387 = vst.msk [vmem:[#allocation3 + $0x2b8] sm:$0xf] %vm2328_vm6, %v2253_v7  ;;  %v5961_v26 = vmax.f32 %v5897_v46, 0.0 }
 0x516   : > { %6705 = vmatmul.msk.bf16.gmra.mxu3 %vm700_vm0, %v5568_v28 }
 0x517   : > { %6025 = vst [vmem:[%s8810_s21 + $0x118] sm:$0xff] %v5961_v26  ;;  %v6969_v26 = vld [vmem:[%s7232_s16 + $0x138] sm:$0xff] }
 0x519   : > { %v1810_v8 = vpop.permute.xlu2 %1809  ;;  %v5272_v48 = vpop.f32.mrf.mxu2 }
 0x51a   : > { %1941 = vst.msk [vmem:[#allocation3 + $0x2dc] sm:$0xf] %vm1879_vm5, %v1810_v8  ;;  %v1806_v33 = vpop.permute.xlu1 %1805  ;;  %v6817_v45 = vld [vmem:[#allocation3 + $0x2bc] sm:$0xf] }
 0x51b   : > { %v2255_v41 = vpop.permute.xlu0 %2254  ;;  %1939 = vst.msk [vmem:[#allocation3 + $0x2c4] sm:$0xf] %vm1879_vm5, %v1806_v33  ;;  %v6541_v29 = vor.u32 %v6817_v45, %v6538_v52 }
 0x51c   : > { %2388 = vst.msk [vmem:[#allocation3 + $0x2c4] sm:$0xf] %vm2328_vm6, %v2255_v41  ;;  %v5792_v53 = vpop.f32.mrf.mxu3  ;;  %v6536_v5 = vld [vmem:[#allocation3 + $0x2b8] sm:$0xf] }
 0x51d   : > { %v5793_v11 = vadd.f32 %v9524_v60, %v5792_v53  ;;  %5296 = vmatmul.bf16.gmra.mxu2 %v6541_v29 }
 0x51f   : > { %v5898_v21 = vadd.f32 %v6966_v49, %v5793_v11 }
 0x521   : > { %v5962_v32 = vmax.f32 %v5898_v21, 0.0  ;;  %v2902_v31 = vpop.permute.xlu2 %2901  ;;  %v5274_v57 = vpop.f32.mrf.mxu2 }
 0x522   : > { %3031 = vst.msk [vmem:[#allocation3 + $0x2ec] sm:$0xf] %vm1430_vm4, %v2902_v31  ;;  %v2898_v39 = vpop.permute.xlu1 %2897  ;;  %v5103_v1 = vpop.f32.mrf.mxu1  ;;  %v10049_v31 = vld [vmem:[#allocation42_spill] sm:$0xff] }
 0x523   : > { %6026 = vst [vmem:[%s8810_s21 + $0x120] sm:$0xff] %v5962_v32  ;;  %v3347_v12 = vpop.permute.xlu0 %3346  ;;  %v6818_v19 = vld [vmem:[#allocation3 + $0x2c0] sm:$0xf0]  ;;  %v5104_v20 = vadd.f32 %v9652_v55, %v5103_v1 }
 0x524   : > { %3029 = vst.msk [vmem:[#allocation3 + $0x2d4] sm:$0xf] %vm1430_vm4, %v2898_v39  ;;  %v5794_v7 = vpop.f32.mrf.mxu3  ;;  %v6537_v15 = vor.u32 %v6818_v19, %v6536_v5 }
 0x525   : > { %3478 = vst.msk [vmem:[#allocation3 + $0x2d4] sm:$0xf] %vm1879_vm5, %v3347_v12  ;;  %v5795_v44 = vadd.f32 %v9524_v60, %v5794_v7  ;;  %v5273_v36 = vadd.f32 %v5272_v48, %v5104_v20  ;;  %v10050_v12 = vld [vmem:[#allocation43_spill] sm:$0xff] }
 0x526   : > { %3926 = vst.msk [vmem:[#allocation3 + $0x2d4] sm:$0xf] %vm2328_vm6, %v3795_v2  ;;  %5127 = vmatmul.bf16.gmra.mxu1 %v6537_v15 }
 0x527   : > { %v5899_v58 = vadd.f32 %v6967_v25, %v5795_v44  ;;  %v5442_v37 = vadd.f32 %v10047_v35, %v5273_v36  ;;  %v9797_v35 = vld [vmem:[%s9938_s6] ss:$0 sm:$0xff] }
 0x529   : > { %v5963_v61 = vmax.f32 %v5899_v58, 0.0  ;;  %v3353_v16 = vpop.permute.xlu2 %3352  ;;  %v5529_v62 = vmax.f32 %v5442_v37, 0.0 }
 0x52a   : > { %v3349_v30 = vpop.permute.xlu1 %3348  ;;  %v5105_v17 = vpop.f32.mrf.mxu1 }
 0x52b   : > { %6027 = vst [vmem:[%s8810_s21 + $0x128] sm:$0xff] %v5963_v61  ;;  %v3797_v43 = vpop.permute.xlu0 %3796  ;;  %v5106_v34 = vadd.f32 %v9652_v55, %v5105_v17  ;;  %v6970_v61 = vld [vmem:[%s7232_s16 + $0x140] sm:$0xff] }
 0x52c   : > { %3479 = vst.msk [vmem:[#allocation3 + $0x2e0] sm:$0xf] %vm1879_vm5, %v3349_v30 }
 0x52d   : > { %3927 = vst.msk [vmem:[#allocation3 + $0x2e0] sm:$0xf] %vm2328_vm6, %v3797_v43  ;;  %v5275_v18 = vadd.f32 %v5274_v57, %v5106_v34  ;;  %v6820_v4 = vld [vmem:[#allocation3 + $0x2d4] sm:$0xf] }
 0x52f   : > { %v5444_v10 = vadd.f32 %v10048_v56, %v5275_v18 }
 0x530   : > { %v5797_v27 = vpop.f32.mrf.mxu3 }
 0x531   : > { %v5530_v40 = vmax.f32 %v5444_v10, 0.0  ;;  %v5798_v0 = vadd.f32 %v9524_v60, %v5797_v27  ;;  %v1812_v6 = vpop.permute.xlu2 %1811  ;;  %v6972_v10 = vld [vmem:[%s7232_s16 + $0x148] sm:$0xff] }
 0x532   : > { %1942 = vst.msk [vmem:[#allocation3 + $0x2e8] sm:$0xf] %vm1879_vm5, %v1812_v6  ;;  %v1808_v54 = vpop.permute.xlu1 %1807 }
 0x533   : > { %v5569_v14 = vpack.c.bf16 %v5530_v40, %v5529_v62  ;;  %v2257_v24 = vpop.permute.xlu0 %2256  ;;  %v5900_v51 = vadd.f32 %v6968_v59, %v5798_v0  ;;  %1940 = vst.msk [vmem:[#allocation3 + $0x2d0] sm:$0xf] %vm1879_vm5, %v1808_v54 }
 0x534   : > { %2389 = vst.msk [vmem:[#allocation3 + $0x2d0] sm:$0xf] %vm2328_vm6, %v2257_v24  ;;  %v6550_v13 = vld [vmem:[#allocation3 + $0x2dc] sm:$0xf0] }
 0x535   : > { %v5964_v2 = vmax.f32 %v5900_v51, 0.0  ;;  %6706 = vmatmul.msk.bf16.gmra.mxu3 %vm700_vm0, %v5569_v14  ;;  %v6553_v22 = vor.u32 %v6820_v4, %v6550_v13  ;;  %v10051_v4 = vld [vmem:[#allocation44_spill] sm:$0xff] }
 0x537   : > { %6028 = vst [vmem:[%s8810_s21 + $0x130] sm:$0xff] %v5964_v2  ;;  %5301 = vmatmul.bf16.gmra.mxu2 %v6553_v22  ;;  %v10052_v22 = vld [vmem:[#allocation45_spill] sm:$0xff] }
 0x538   : > { %v5799_v38 = vpop.f32.mrf.mxu3 }
 0x539   : > { %v5800_v63 = vadd.f32 %v9524_v60, %v5799_v38  ;;  %v2263_v36 = vpop.permute.xlu2 %2262 }
 0x53a   : > { %v2259_v47 = vpop.permute.xlu1 %2258  ;;  %v5108_v9 = vpop.f32.mrf.mxu1 }
 0x53b   : > { %v2904_v46 = vpop.permute.xlu0 %2903  ;;  %v5277_v28 = vpop.f32.mrf.mxu2  ;;  %v5901_v8 = vadd.f32 %v6969_v26, %v5800_v63  ;;  %2390 = vst.msk [vmem:[#allocation3 + $0x2dc] sm:$0xf] %vm2328_vm6, %v2259_v47  ;;  %v5109_v45 = vadd.f32 %v9652_v55, %v5108_v9  ;;  %v6548_v53 = vld [vmem:[#allocation3 + $0x2d0] sm:$0xf] }
 0x53c   : > { %3032 = vst.msk [vmem:[#allocation3 + $0x2f8] sm:$0xf] %vm1430_vm4, %v2904_v46  ;;  %v6973_v26 = vld [vmem:[%s7232_s16 + $0x150] sm:$0xff] }
 0x53d   : > { %3481 = vst.msk [vmem:[#allocation3 + $0x2f8] sm:$0xf] %vm1879_vm5, %v3353_v16  ;;  %v5965_v33 = vmax.f32 %v5901_v8, 0.0  ;;  %v5278_v52 = vadd.f32 %v5277_v28, %v5109_v45 }
 0x53f   : > { %6029 = vst [vmem:[%s8810_s21 + $0x138] sm:$0xff] %v5965_v33  ;;  %v5447_v39 = vadd.f32 %v10049_v31, %v5278_v52 }
 0x541   : > { %v5531_v19 = vmax.f32 %v5447_v39, 0.0 }
 0x542   : > { %v3351_v41 = vpop.permute.xlu1 %3350  ;;  %v5110_v29 = vpop.f32.mrf.mxu1  ;;  %v6821_v11 = vld [vmem:[#allocation3 + $0x2d8] sm:$0xf0] }
 0x543   : > { %v3799_v49 = vpop.permute.xlu0 %3798  ;;  %3480 = vst.msk [vmem:[#allocation3 + $0x2ec] sm:$0xf] %vm1879_vm5, %v3351_v41  ;;  %v5111_v21 = vadd.f32 %v9652_v55, %v5110_v29  ;;  %v6549_v48 = vor.u32 %v6821_v11, %v6548_v53  ;;  %v5279_v32 = vpop.f32.mrf.mxu2  ;;  %v6974_v41 = vld [vmem:[%s7232_s16 + $0x158] sm:$0xff] }
 0x544   : > { %3928 = vst.msk [vmem:[#allocation3 + $0x2ec] sm:$0xf] %vm2328_vm6, %v3799_v49 }
 0x545   : > { %v5280_v1 = vadd.f32 %v5279_v32, %v5111_v21  ;;  %5132 = vmatmul.bf16.gmra.mxu1 %v6549_v48 }
 0x547   : > { %v5449_v5 = vadd.f32 %v10050_v12, %v5280_v1  ;;  %v10053_v1 = vld [vmem:[#allocation46_spill] sm:$0xff] }
 0x549   : > { %v5532_v7 = vmax.f32 %v5449_v5, 0.0 }
 0x54a   : > { %v5802_v15 = vpop.f32.mrf.mxu3  ;;  %v3801_v20 = vpop.permute.xlu1 %3800 }
 0x54b   : > { %v5570_v44 = vpack.c.bf16 %v5532_v7, %v5531_v19  ;;  %v1814_v25 = vpop.permute.xlu0 %1813  ;;  %v5803_v58 = vadd.f32 %v9524_v60, %v5802_v15  ;;  %3929 = vst.msk [vmem:[#allocation3 + $0x2f8] sm:$0xf] %vm2328_vm6, %v3801_v20  ;;  %v6823_v17 = vld [vmem:[#allocation3 + $0x2ec] sm:$0xf]  ;;  %v10054_v19 = vld [vmem:[#allocation47_spill] sm:$0xff] }
 0x54c   : > { %1943 = vst.msk [vmem:[#allocation3 + $0x2f4] sm:$0xf] %vm1879_vm5, %v1814_v25 }
 0x54d   : > { %2392 = vst.msk [vmem:[#allocation3 + $0x2f4] sm:$0xf] %vm2328_vm6, %v2263_v36  ;;  %v5902_v16 = vadd.f32 %v6970_v61, %v5803_v58  ;;  %6707 = vmatmul.msk.bf16.gmra.mxu3 %vm700_vm0, %v5570_v44  ;;  %v6975_v36 = vld [vmem:[%s7232_s16 + $0x160] sm:$0xff] }
 0x54f   : > { %v5966_v30 = vmax.f32 %v5902_v16, 0.0 }
 0x550   : > { %v5282_v60 = vpop.f32.mrf.mxu2 }
 0x551   : > { %6030 = vst [vmem:[%s8810_s21 + $0x140] sm:$0xff] %v5966_v30 }
 0x552   : > { %v5804_v43 = vpop.f32.mrf.mxu3  ;;  %v2261_v34 = vpop.permute.xlu1 %2260  ;;  %v6562_v57 = vld [vmem:[#allocation3 + $0x2f4] sm:$0xf0] }
 0x553   : > { %v5805_v37 = vadd.f32 %v9797_v35, %v5804_v43  ;;  %2391 = vst.msk [vmem:[#allocation3 + $0x2e8] sm:$0xf] %vm2328_vm6, %v2261_v34  ;;  %v5113_v18 = vpop.f32.mrf.mxu1  ;;  %v6565_v56 = vor.u32 %v6823_v17, %v6562_v57 }
 0x554   : > { %v5114_v62 = vadd.f32 %v9652_v55, %v5113_v18  ;;  %v6824_v54 = vld [vmem:[#allocation3 + $0x2f0] sm:$0xf0] }
 0x555   : > { %v5903_v27 = vadd.f32 %v6972_v10, %v5805_v37  ;;  %5306 = vmatmul.bf16.gmra.mxu2 %v6565_v56 }
 0x556   : > { %v5283_v0 = vadd.f32 %v5282_v60, %v5114_v62  ;;  %v6976_v60 = vld [vmem:[%s7232_s16 + $0x168] sm:$0xff] }
 0x557   : > { %v5967_v40 = vmax.f32 %v5903_v27, 0.0 }
 0x558   : > { %v5284_v51 = vpop.f32.mrf.mxu2  ;;  %v5452_v13 = vadd.f32 %v10051_v4, %v5283_v0 }
 0x559   : > { %6031 = vst [vmem:[%s8810_s21 + $0x148] sm:$0xff] %v5967_v40  ;;  %v10055_v40 = vld [vmem:[#allocation48_spill] sm:$0xff] }
 0x55a   : > { %v6560_v6 = vld [vmem:[#allocation3 + $0x2e8] sm:$0xf]  ;;  %v5533_v63 = vmax.f32 %v5452_v13, 0.0 }
 0x55b   : > { %v5115_v14 = vpop.f32.mrf.mxu1  ;;  %v6561_v24 = vor.u32 %v6824_v54, %v6560_v6  ;;  %v10056_v54 = vld [vmem:[#allocation49_spill] sm:$0xff] }
 0x55c   : > { %v5116_v59 = vadd.f32 %v9652_v55, %v5115_v14 }
 0x55d   : > { %5137 = vmatmul.bf16.gmra.mxu1 %v6561_v24 }
 0x55e   : > { %v5285_v2 = vadd.f32 %v5284_v51, %v5116_v59 }
 0x560   : > { %v5454_v38 = vadd.f32 %v10052_v22, %v5285_v2  ;;  %v6977_v2 = vld [vmem:[%s7232_s16 + $0x170] sm:$0xff] }
 0x562   : > { %v5534_v47 = vmax.f32 %v5454_v38, 0.0 }
 0x564   : > { %v5571_v9 = vpack.c.bf16 %v5534_v47, %v5533_v63 }
 0x566   : > { %6708 = vmatmul.msk.bf16.gmra.mxu3 %vm700_vm0, %v5571_v9 }
 0x568   : > { %v5807_v46 = vpop.f32.mrf.mxu3 }
 0x569   : > { %v5808_v28 = vadd.f32 %v9797_v35, %v5807_v46  ;;  %v5287_v53 = vpop.f32.mrf.mxu2 }
 0x56b   : > { %v5904_v8 = vadd.f32 %v6973_v26, %v5808_v28  ;;  %v6978_v28 = vld [vmem:[%s7232_s16 + $0x178] sm:$0xff] }
 0x56d   : > { %v5968_v33 = vmax.f32 %v5904_v8, 0.0 }
 0x56f   : > { %6032 = vst [vmem:[%s8810_s21 + $0x150] sm:$0xff] %v5968_v33 }
 0x570   : > { %v5809_v45 = vpop.f32.mrf.mxu3 }
 0x571   : > { %v5810_v52 = vadd.f32 %v9797_v35, %v5809_v45  ;;  %v5289_v39 = vpop.f32.mrf.mxu2 }
 0x573   : > { %v5905_v29 = vadd.f32 %v6974_v41, %v5810_v52 }
 0x575   : > { %v5969_v11 = vmax.f32 %v5905_v29, 0.0  ;;  %v5118_v49 = vpop.f32.mrf.mxu1 }
 0x576   : > { %v5119_v21 = vadd.f32 %v9652_v55, %v5118_v49 }
 0x577   : > { %6033 = vst [vmem:[%s8810_s21 + $0x158] sm:$0xff] %v5969_v11 }
 0x578   : > { %v5288_v48 = vadd.f32 %v5287_v53, %v5119_v21  ;;  %v10057_v53 = vld [vmem:[#allocation51_spill] sm:$0xff]  ;;  %v10058_v21 = vld [vmem:[#allocation53_spill] sm:$0xff] }
 0x57a   : > { %v5457_v12 = vadd.f32 %v10053_v1, %v5288_v48 }
 0x57c   : > { %v5535_v20 = vmax.f32 %v5457_v12, 0.0 }
 0x57d   : > { %v5120_v32 = vpop.f32.mrf.mxu1 }
 0x57e   : > { %v5121_v31 = vadd.f32 %v9652_v55, %v5120_v32 }
 0x580   : > { %v5290_v5 = vadd.f32 %v5289_v39, %v5121_v31 }
 0x582   : > { %v5459_v7 = vadd.f32 %v10054_v19, %v5290_v5  ;;  %v6979_v5 = vld [vmem:[%s7232_s16 + $0x180] sm:$0xff] }
 0x583   : > { %v5812_v15 = vpop.f32.mrf.mxu3 }
 0x584   : > { %v5536_v44 = vmax.f32 %v5459_v7, 0.0  ;;  %v5813_v25 = vadd.f32 %v9797_v35, %v5812_v15 }
 0x586   : > { %v5572_v58 = vpack.c.bf16 %v5536_v44, %v5535_v20  ;;  %v5906_v61 = vadd.f32 %v6975_v36, %v5813_v25 }
 0x588   : > { %v5970_v16 = vmax.f32 %v5906_v61, 0.0  ;;  %6709 = vmatmul.msk.bf16.gmra.mxu3 %vm700_vm0, %v5572_v58  ;;  %v5292_v30 = vpop.f32.mrf.mxu2  ;;  %v6980_v58 = vld [vmem:[%s7232_s16 + $0x188] sm:$0xff] }
 0x58a   : > { %6034 = vst [vmem:[%s8810_s21 + $0x160] sm:$0xff] %v5970_v16  ;;  %v5123_v17 = vpop.f32.mrf.mxu1 }
 0x58b   : > { %v5814_v43 = vpop.f32.mrf.mxu3  ;;  %v5124_v57 = vadd.f32 %v9652_v55, %v5123_v17 }
 0x58c   : > { %v5815_v34 = vadd.f32 %v9797_v35, %v5814_v43 }
 0x58d   : > { %v5293_v56 = vadd.f32 %v5292_v30, %v5124_v57 }
 0x58e   : > { %v5907_v37 = vadd.f32 %v6976_v60, %v5815_v34 }
 0x58f   : > { %v5462_v0 = vadd.f32 %v10055_v40, %v5293_v56  ;;  %v6981_v40 = vld [vmem:[%s7232_s16 + $0x190] sm:$0xff] }
 0x590   : > { %v5971_v18 = vmax.f32 %v5907_v37, 0.0  ;;  %v5294_v62 = vpop.f32.mrf.mxu2 }
 0x591   : > { %v5537_v24 = vmax.f32 %v5462_v0, 0.0 }
 0x592   : > { %6035 = vst [vmem:[%s8810_s21 + $0x168] sm:$0xff] %v5971_v18  ;;  %v5125_v10 = vpop.f32.mrf.mxu1 }
 0x593   : > { %v5126_v27 = vadd.f32 %v9652_v55, %v5125_v10 }
 0x595   : > { %v5295_v6 = vadd.f32 %v5294_v62, %v5126_v27 }
 0x597   : > { %v5464_v14 = vadd.f32 %v10056_v54, %v5295_v6 }
 0x599   : > { %v5538_v59 = vmax.f32 %v5464_v14, 0.0  ;;  %v5817_v51 = vpop.f32.mrf.mxu3 }
 0x59a   : > { %v5818_v13 = vadd.f32 %v9797_v35, %v5817_v51 }
 0x59b   : > { %v5573_v4 = vpack.c.bf16 %v5538_v59, %v5537_v24  ;;  %v6982_v59 = vld [vmem:[%s7232_s16 + $0x198] sm:$0xff] }
 0x59c   : > { %v5908_v22 = vadd.f32 %v6977_v2, %v5818_v13 }
 0x59d   : > { %6710 = vmatmul.msk.bf16.gmra.mxu3 %vm700_vm0, %v5573_v4 }
 0x59e   : > { %v5972_v38 = vmax.f32 %v5908_v22, 0.0 }
 0x5a0   : > { %6036 = vst [vmem:[%s8810_s21 + $0x170] sm:$0xff] %v5972_v38  ;;  %v5297_v47 = vpop.f32.mrf.mxu2 }
 0x5a1   : > { %v5819_v63 = vpop.f32.mrf.mxu3 }
 0x5a2   : > { %v5820_v9 = vadd.f32 %v9797_v35, %v5819_v63 }
 0x5a3   : > { %v5128_v46 = vpop.f32.mrf.mxu1 }
 0x5a4   : > { %v5909_v26 = vadd.f32 %v6978_v28, %v5820_v9  ;;  %v5129_v8 = vadd.f32 %v9652_v55, %v5128_v46 }
 0x5a6   : > { %v5973_v33 = vmax.f32 %v5909_v26, 0.0  ;;  %v5298_v45 = vadd.f32 %v5297_v47, %v5129_v8 }
 0x5a8   : > { %6037 = vst [vmem:[%s8810_s21 + $0x178] sm:$0xff] %v5973_v33  ;;  %v5299_v29 = vpop.f32.mrf.mxu2  ;;  %v5467_v11 = vadd.f32 %v10057_v53, %v5298_v45  ;;  %v6983_v45 = vld [vmem:[%s7232_s16 + $0x1a0] sm:$0xff] }
 0x5aa   : > { %v5539_v32 = vmax.f32 %v5467_v11, 0.0 }
 0x5ab   : > { %v5130_v52 = vpop.f32.mrf.mxu1 }
 0x5ac   : > { %v5131_v41 = vadd.f32 %v9652_v55, %v5130_v52 }
 0x5ae   : > { %v5300_v49 = vadd.f32 %v5299_v29, %v5131_v41 }
 0x5b0   : > { %v5469_v48 = vadd.f32 %v10058_v21, %v5300_v49  ;;  %v6985_v21 = vld [vmem:[%s7232_s16 + $0x1b0] sm:$0xff] }
 0x5b2   : > { %v5540_v31 = vmax.f32 %v5469_v48, 0.0 }
 0x5b4   : > { %v5574_v39 = vpack.c.bf16 %v5540_v31, %v5539_v32 }
 0x5b6   : > { %6711 = vmatmul.msk.bf16.gmra.mxu3 %vm700_vm0, %v5574_v39 }
 0x5b8   : > { %v5822_v1 = vpop.f32.mrf.mxu3 }
 0x5b9   : > { %v5823_v12 = vadd.f32 %v9797_v35, %v5822_v1  ;;  %v6986_v1 = vld [vmem:[%s7232_s16 + $0x1b8] sm:$0xff] }
 0x5ba   : > { %v5302_v44 = vpop.f32.mrf.mxu2 }
 0x5bb   : > { %v5910_v19 = vadd.f32 %v6979_v5, %v5823_v12 }
 0x5bd   : > { %v5974_v7 = vmax.f32 %v5910_v19, 0.0 }
 0x5bf   : > { %6038 = vst [vmem:[%s8810_s21 + $0x180] sm:$0xff] %v5974_v7 }
 0x5c0   : > { %v5824_v15 = vpop.f32.mrf.mxu3 }
 0x5c1   : > { %v5825_v20 = vadd.f32 %v9797_v35, %v5824_v15  ;;  %v6987_v15 = vld [vmem:[%s7232_s16 + $0x1c0] sm:$0xff] }
 0x5c2   : > { %v5133_v25 = vpop.f32.mrf.mxu1  ;;  %v5304_v34 = vpop.f32.mrf.mxu2 }
 0x5c3   : > { %v5911_v36 = vadd.f32 %v6980_v58, %v5825_v20  ;;  %v5134_v16 = vadd.f32 %v9652_v55, %v5133_v25 }
 0x5c5   : > { %v5975_v61 = vmax.f32 %v5911_v36, 0.0  ;;  %v5303_v30 = vadd.f32 %v5302_v44, %v5134_v16  ;;  %v6988_v36 = vld [vmem:[%s7232_s16 + $0x1c8] sm:$0xff] }
 0x5c7   : > { %6039 = vst [vmem:[%s8810_s21 + $0x188] sm:$0xff] %v5975_v61  ;;  %v5472_v57 = vadd.f32 %v8715_v3, %v5303_v30 }
 0x5c9   : > { %v5541_v56 = vmax.f32 %v5472_v57, 0.0 }
 0x5ca   : > { %v5135_v17 = vpop.f32.mrf.mxu1 }
 0x5cb   : > { %v5136_v43 = vadd.f32 %v9652_v55, %v5135_v17 }
 0x5cd   : > { %v5305_v60 = vadd.f32 %v5304_v34, %v5136_v43  ;;  %v6989_v43 = vld [vmem:[%s7232_s16 + $0x1d0] sm:$0xff] }
 0x5cf   : > { %v5474_v37 = vadd.f32 %v8740_v50, %v5305_v60 }
 0x5d0   : > { %v5827_v18 = vpop.f32.mrf.mxu3 }
 0x5d1   : > { %v5542_v10 = vmax.f32 %v5474_v37, 0.0  ;;  %v5828_v27 = vadd.f32 %v9797_v35, %v5827_v18  ;;  %v6990_v18 = vld [vmem:[%s7232_s16 + $0x1d8] sm:$0xff] }
 0x5d3   : > { %v5575_v62 = vpack.c.bf16 %v5542_v10, %v5541_v56  ;;  %v5912_v0 = vadd.f32 %v6981_v40, %v5828_v27  ;;  %v6991_v40 = vld [vmem:[%s7232_s16 + $0x1e0] sm:$0xff] }
 0x5d5   : > { %v5976_v6 = vmax.f32 %v5912_v0, 0.0  ;;  %6712 = vmatmul.msk.bf16.gmra.mxu3 %vm700_vm0, %v5575_v62 }
 0x5d7   : > { %6040 = vst [vmem:[%s8810_s21 + $0x190] sm:$0xff] %v5976_v6 }
 0x5d8   : > { %v5829_v54 = vpop.f32.mrf.mxu3  ;;  %v5307_v14 = vpop.f32.mrf.mxu2 }
 0x5d9   : > { %v5830_v3 = vadd.f32 %v9797_v35, %v5829_v54 }
 0x5da   : > { %v5138_v24 = vpop.f32.mrf.mxu1 }
 0x5db   : > { %v5913_v50 = vadd.f32 %v6982_v59, %v5830_v3  ;;  %v5139_v4 = vadd.f32 %v9652_v55, %v5138_v24 }
 0x5dd   : > { %v5977_v51 = vmax.f32 %v5913_v50, 0.0  ;;  %v5308_v13 = vadd.f32 %v5307_v14, %v5139_v4  ;;  %v6992_v14 = vld [vmem:[%s7232_s16 + $0x1e8] sm:$0xff]  ;;  %v6993_v4 = vld [vmem:[%s7232_s16 + $0x1f0] sm:$0xff] }
 0x5df   : > { %6041 = vst [vmem:[%s8810_s21 + $0x198] sm:$0xff] %v5977_v51  ;;  %v5477_v63 = vadd.f32 %v8756_v42, %v5308_v13 }
 0x5e0   : > { %v5309_v38 = vpop.f32.mrf.mxu2 }
 0x5e1   : > { %v5543_v46 = vmax.f32 %v5477_v63, 0.0  ;;  %v6994_v63 = vld [vmem:[%s7232_s16 + $0x1f8] sm:$0xff] }
 0x5e2   : > { %v5140_v2 = vpop.f32.mrf.mxu1 }
 0x5e3   : > { %v5141_v22 = vadd.f32 %v9652_v55, %v5140_v2 }
 0x5e5   : > { %v5310_v47 = vadd.f32 %v5309_v38, %v5141_v22 }
 0x5e7   : > { %v5479_v9 = vadd.f32 %v8777_v23, %v5310_v47  ;;  %v6984_v23 = vld [vmem:[%s7232_s16 + $0x1a8] sm:$0xff] }
 0x5e9   : > { %v5544_v28 = vmax.f32 %v5479_v9, 0.0  ;;  %v5832_v26 = vpop.f32.mrf.mxu3 }
 0x5ea   : > { %v5833_v8 = vadd.f32 %v9797_v35, %v5832_v26 }
 0x5eb   : > { %v5576_v33 = vpack.c.bf16 %v5544_v28, %v5543_v46 }
 0x5ec   : > { %v5914_v52 = vadd.f32 %v6983_v45, %v5833_v8 }
 0x5ed   : > { %6713 = vmatmul.msk.bf16.gmra.mxu3 %vm700_vm0, %v5576_v33 }
 0x5ee   : > { %v5978_v55 = vmax.f32 %v5914_v52, 0.0 }
 0x5f0   : > { %6042 = vst [vmem:[%s8810_s21 + $0x1a0] sm:$0xff] %v5978_v55 }
 0x5f1   : > { %v5834_v42 = vpop.f32.mrf.mxu3 }
 0x5f2   : > { %v5835_v41 = vadd.f32 %v9797_v35, %v5834_v42 }
 0x5f4   : > { %v5915_v29 = vadd.f32 %v6984_v23, %v5835_v41 }
 0x5f6   : > { %v5979_v53 = vmax.f32 %v5915_v29, 0.0 }
 0x5f8   : > { %6043 = vst [vmem:[%s8810_s21 + $0x1a8] sm:$0xff] %v5979_v53 }
 0x60b   : > { %v5837_v11 = vpop.f32.mrf.mxu3 }
 0x60c   : > { %v5838_v49 = vadd.f32 %v9797_v35, %v5837_v11 }
 0x60e   : > { %v5916_v48 = vadd.f32 %v6985_v21, %v5838_v49 }
 0x610   : > { %v5980_v32 = vmax.f32 %v5916_v48, 0.0 }
 0x612   : > { %6044 = vst [vmem:[%s8810_s21 + $0x1b0] sm:$0xff] %v5980_v32 }
 0x613   : > { %v5839_v31 = vpop.f32.mrf.mxu3 }
 0x614   : > { %v5840_v39 = vadd.f32 %v9797_v35, %v5839_v31 }
 0x616   : > { %v5917_v12 = vadd.f32 %v6986_v1, %v5840_v39 }
 0x618   : > { %v5981_v5 = vmax.f32 %v5917_v12, 0.0 }
 0x61a   : > { %6045 = vst [vmem:[%s8810_s21 + $0x1b8] sm:$0xff] %v5981_v5 }
 0x620   : > { %v5842_v19 = vpop.f32.mrf.mxu3 }
 0x621   : > { %v5843_v7 = vadd.f32 %v9797_v35, %v5842_v19 }
 0x623   : > { %v5918_v20 = vadd.f32 %v6987_v15, %v5843_v7 }
 0x625   : > { %v5982_v44 = vmax.f32 %v5918_v20, 0.0 }
 0x627   : > { %6046 = vst [vmem:[%s8810_s21 + $0x1c0] sm:$0xff] %v5982_v44 }
 0x628   : > { %v5844_v25 = vpop.f32.mrf.mxu3 }
 0x629   : > { %v5845_v58 = vadd.f32 %v9797_v35, %v5844_v25 }
 0x62b   : > { %v5919_v61 = vadd.f32 %v6988_v36, %v5845_v58 }
 0x62d   : > { %v5983_v16 = vmax.f32 %v5919_v61, 0.0 }
 0x62f   : > { %6047 = vst [vmem:[%s8810_s21 + $0x1c8] sm:$0xff] %v5983_v16 }
 0x639   : > { %v5847_v30 = vpop.f32.mrf.mxu3 }
 0x63a   : > { %v5848_v17 = vadd.f32 %v9797_v35, %v5847_v30 }
 0x63c   : > { %v5920_v34 = vadd.f32 %v6989_v43, %v5848_v17 }
 0x63e   : > { %v5984_v57 = vmax.f32 %v5920_v34, 0.0 }
 0x640   : > { %6048 = vst [vmem:[%s8810_s21 + $0x1d0] sm:$0xff] %v5984_v57 }
 0x641   : > { %v5849_v60 = vpop.f32.mrf.mxu3 }
 0x642   : > { %v5850_v37 = vadd.f32 %v9797_v35, %v5849_v60 }
 0x644   : > { %v5921_v56 = vadd.f32 %v6990_v18, %v5850_v37 }
 0x646   : > { %v5985_v10 = vmax.f32 %v5921_v56, 0.0 }
 0x648   : > { %6049 = vst [vmem:[%s8810_s21 + $0x1d8] sm:$0xff] %v5985_v10 }
 0x658   : > { %v5852_v27 = vpop.f32.mrf.mxu3 }
 0x659   : > { %v5853_v62 = vadd.f32 %v9797_v35, %v5852_v27 }
 0x65b   : > { %v5922_v0 = vadd.f32 %v6991_v40, %v5853_v62 }
 0x65d   : > { %v5986_v6 = vmax.f32 %v5922_v0, 0.0 }
 0x65f   : > { %6050 = vst [vmem:[%s8810_s21 + $0x1e0] sm:$0xff] %v5986_v6 }
 0x660   : > { %v5854_v54 = vpop.f32.mrf.mxu3 }
 0x661   : > { %v5855_v3 = vadd.f32 %v9797_v35, %v5854_v54 }
 0x663   : > { %v5923_v24 = vadd.f32 %v6992_v14, %v5855_v3 }
 0x665   : > { %v5987_v59 = vmax.f32 %v5923_v24, 0.0 }
 0x667   : > { %6051 = vst [vmem:[%s8810_s21 + $0x1e8] sm:$0xff] %v5987_v59 }
 0x670   : > { %v5857_v50 = vpop.f32.mrf.mxu3 }
 0x671   : > { %v5858_v51 = vadd.f32 %v9797_v35, %v5857_v50 }
 0x673   : > { %v5924_v13 = vadd.f32 %v6993_v4, %v5858_v51 }
 0x675   : > { %v5988_v2 = vmax.f32 %v5924_v13, 0.0 }
 0x677   : > { %6052 = vst [vmem:[%s8810_s21 + $0x1f0] sm:$0xff] %v5988_v2 }
 0x678   : > { %v5859_v22 = vpop.f32.mrf.mxu3 }
 0x679   : > { %v5860_v38 = vadd.f32 %v9797_v35, %v5859_v22 }
 0x67b   : > { %v5925_v47 = vadd.f32 %v6994_v63, %v5860_v38 }
 0x67d   : > { %v5989_v9 = vmax.f32 %v5925_v47, 0.0 }
 0x67f   : > { %6053 = vst [vmem:[%s8810_s21 + $0x1f8] sm:$0xff] %v5989_v9 }
 0x680   : > { %7052 = shalt.err (!%p7049_p4)
}
 0x681   : > { %s7099_s22 = smov 128   ;;  %s7100_s16 = smov 8  }
 0x682   : > { %6868 = dma.vmem_to_hbm [thread:$0]  (%p7190_p10), %s6069_s12, 8192, %s6071_s18, %s6055_s15, %s7099_s22, %s7099_s22, %s7100_s16  }
 0x683 PF: > { %p6879_p5 = scmp.ge.s32.totalorder %s7091_s27, 2  ;;  %s6085_s21 = sand.u32 1, %s7079_s24  }
 0x684   : > { %s6086_s23 = scalar_lea.sflag [#allocation6], %s6085_s21 }
 0x685   : > { %p6875_p7 = pnand %p6879_p5, %p7194_p11 }
 0x687   : > { %p6876_p8 = pneg %p6875_p7 }
 0x689   : > { %7074 = dma.done.wait (%p6876_p8), %s6086_s23, 8192  }
 0x68a   : > { %7076 = vsyncadd (%p6876_p8), %s6086_s23, 4294959104  ;;  %s10059_s29 = sld [smem:[#allocation10_spill]]  ;;  %p20_p9 = scmp.ge.s32.totalorder %s7166_s30, 6  }
 0x68b   : > { %s10060_s24 = smov %s7083_s25  ;;  %s10061_s25 = smov %s7087_s26 }
 0x68c   : > { %s10063_s27 = smov %s7166_s30  ;;  %22 = sbr.rel (!%p20_p9) target bundleno = 5 (0x5), region = 96 }
 0x690   : > { %s10062_s26 = smov %s10059_s29 }
 0x691   :  { %6092 = vsyncpa [#allocation5], 1 }
 0x692   :  { %6094 = vsyncpa [#allocation5 + $0x1], 1 }
 0x693   :  { %6095 = vsyncpa [#allocation6], 1 }
 0x694   :  { %6097 = vsyncpa [#allocation6 + $0x1], 1 }

</bundles_post_ra>
